<compile_context>
chip_gen: v6e
topology: v6e:2x2x1
jax: 0.10.0
libtpu: 0.0.40
codegen_flags: <defaults>
</compile_context>

<pallas_src>
import numpy as np
import jax
import jax.numpy as jnp
from jax import lax
from jax.experimental import pallas as pl
from jax.experimental.pallas import tpu as pltpu

BN_EPS = 1e-5


# --------------------------- mask helpers (static) ---------------------------

def make_mask(k, mask_type):
    yc, xc = k // 2, k // 2
    mask = np.zeros((k, k), np.float32)
    mask[:yc, :] = 1.0
    mask[yc, :xc + 1] = 1.0
    if mask_type == 'A':
        mask[yc, xc] = 0.0
    elif mask_type != 'B':
        raise ValueError(f'Mask Type {mask_type} is Invalid Value.')
    return mask


def nonzero_taps(k, mask_type):
    m = make_mask(k, mask_type)
    return [(kh, kw) for kh in range(k) for kw in range(k) if m[kh, kw] > 0]


def _choose_row_tile(h, w, n):
    """Output rows per grid step.  Must divide h exactly (keeps BN statistics
    exact: no padded rows ever enter the sums).  Target rt*w ~ 512 matmul rows
    and >= 2 total grid steps so megacore / v7x's 2 TensorCores share work."""
    target = max(1, 512 // max(w, 1))
    divs = [d for d in range(1, h + 1) if h % d == 0]
    rt = max([d for d in divs if d <= target] or [divs[0]])
    while n * (h // rt) < 2:
        smaller = [d for d in divs if d < rt]
        if not smaller:
            break
        rt = max(smaller)
    return rt


# ----------------------------- Pallas kernels -----------------------------

def _make_conv_stats_kernel(taps, rt, w_out, cout, ktot):
    def kernel(body_ref, halo_ref, w_ref, conv_ref, ssum_ref, ssq_ref):
        # slab: (pad + rt) rows of the W-padded bf16 image needed by this tile.
        slab = jnp.concatenate([halo_ref[...], body_ref[...]], axis=0)
        # In-VMEM im2col over the statically-nonzero mask taps only.
        cols = [slab[kh:kh + rt, kw:kw + w_out, :] for kh, kw in taps]
        patch = jnp.concatenate(cols, axis=-1)          # (rt, W, ntaps*C) bf16
        patch = patch.reshape(rt * w_out, ktot)         # leading-dim merge only
        # One big-K MXU matmul per tile, f32 accumulation.
        acc = jnp.dot(patch, w_ref[...], preferred_element_type=jnp.float32)
        # Partial BatchNorm statistics (f32), written as separate outputs.
        ssum_ref[...] = jnp.sum(acc, axis=0, keepdims=True)
        ssq_ref[...] = jnp.sum(acc * acc, axis=0, keepdims=True)
        # bf16 writeback of the conv intermediate (halves the HBM round trip).
        conv_ref[...] = acc.reshape(rt, w_out, cout).astype(conv_ref.dtype)
    return kernel


def _bn_relu_residual_kernel(conv_ref, scale_ref, shift_ref, res_ref, out_ref):
    # BN folded into per-channel scale/shift, then ReLU and residual add.
    y = conv_ref[...].astype(jnp.float32) * scale_ref[...] + shift_ref[...]
    out_ref[...] = jnp.maximum(y, 0.0) + res_ref[...]


# ----------------------------- forward wrapper -----------------------------

def masked_conv_residual_block(x_nchw, w_kkio, gamma, beta):
    """Forward of MaskedConvResidualBlock (mask type 'B').

    x_nchw : (N, C, H, W) float32
    w_kkio : (K, K, Cin, Cout) float32 raw conv weight (mask applied here)
    gamma, beta : (C,) BatchNorm2d affine parameters
    """
    n, c, h, w_sp = x_nchw.shape
    k = w_kkio.shape[0]
    cout = w_kkio.shape[3]
    assert w_kkio.shape == (k, k, c, cout) and cout == c
    pad = k // 2
    assert pad >= 1, "kernel_size >= 3 expected"

    taps = nonzero_taps(k, 'B')
    ntaps = len(taps)
    ktot = ntaps * c
    wp = w_sp + 2 * pad
    m = n * h * w_sp

    rt = _choose_row_tile(h, w_sp, n)
    g_steps = h // rt

    # NHWC activations; cast to bf16 BEFORE padding / halo gather.
    x_nhwc = jnp.transpose(x_nchw, (0, 2, 3, 1)).astype(jnp.float32)
    x_bf = x_nhwc.astype(jnp.bfloat16)
    x_wpad = jnp.pad(x_bf, ((0, 0), (0, 0), (pad, pad), (0, 0)))     # (N,H,Wp,C)
    x_tpad = jnp.pad(x_wpad, ((0, 0), (pad, 0), (0, 0), (0, 0)))     # (N,H+pad,Wp,C)
    # pad rows of history above each row-group (zeros above the image top).
    halo = jnp.stack([x_tpad[:, g * rt: g * rt + pad] for g in range(g_steps)],
                     axis=1)                                         # (N,G,pad,Wp,C)

    # Masked weight matrix: only the statically-nonzero taps, (ntaps*C, Cout) bf16.
    w_mat = jnp.stack([w_kkio[kh, kw] for kh, kw in taps], axis=0)
    w_mat = w_mat.reshape(ktot, cout).astype(jnp.bfloat16)

    # VMEM budget from the actual chip (v7x: 64 MiB; budget ~75% of capacity).
    try:
        vmem_cap = int(getattr(pltpu.get_tpu_info(), "vmem_capacity_bytes",
                               64 << 20))
    except Exception:
        vmem_cap = 64 << 20
    blk_body = rt * wp * c * 2
    blk_halo = pad * wp * c * 2
    blk_w = ktot * cout * 2
    blk_conv = rt * w_sp * cout * 2
    blk_patch = rt * w_sp * ktot * 2
    blk_acc = rt * w_sp * cout * 4
    blk_res = rt * w_sp * cout * 4
    needed = max(2 * (blk_body + blk_halo + blk_conv) + 2 * blk_w
                 + 3 * blk_patch + 2 * blk_acc,
                 2 * (blk_conv + 2 * blk_res))
    vmem_limit = int(min(max(needed + (8 << 20), 16 << 20),
                         int(0.75 * vmem_cap)))

    cparams = pltpu.CompilerParams(
        dimension_semantics=("parallel", "parallel"),
        vmem_limit_bytes=vmem_limit)

    # ---- pass 1: masked conv via in-VMEM patch build + big-K MXU matmul,
    #              plus per-tile partial BN statistics -----------------------
    conv_kernel = _make_conv_stats_kernel(taps, rt, w_sp, cout, ktot)
    conv_out, ssum, ssq = pl.pallas_call(
        conv_kernel,
        out_shape=(jax.ShapeDtypeStruct((n, h, w_sp, cout), jnp.bfloat16),
                   jax.ShapeDtypeStruct((n, g_steps, 1, cout), jnp.float32),
                   jax.ShapeDtypeStruct((n, g_steps, 1, cout), jnp.float32)),
        grid=(n, g_steps),
        in_specs=[pl.BlockSpec((None, rt, wp, c), lambda i, g: (i, g, 0, 0)),
                  pl.BlockSpec((None, None, pad, wp, c),
                               lambda i, g: (i, g, 0, 0, 0)),
                  pl.BlockSpec((ktot, cout), lambda i, g: (0, 0))],
        out_specs=(pl.BlockSpec((None, rt, w_sp, cout),
                                lambda i, g: (i, g, 0, 0)),
                   pl.BlockSpec((None, None, 1, cout),
                                lambda i, g: (i, g, 0, 0)),
                   pl.BlockSpec((None, None, 1, cout),
                                lambda i, g: (i, g, 0, 0))),
        compiler_params=cparams,
        cost_estimate=pl.CostEstimate(
            flops=2 * m * ktot * cout,
            transcendentals=0,
            bytes_accessed=int(x_wpad.size * 2 + halo.size * 2 + w_mat.size * 2
                               + m * cout * 2 + 2 * n * g_steps * cout * 4)),
    )(x_wpad, halo, w_mat)

    # ---- tiny cross-tile reduction + BN affine fold (O(C) JAX glue) --------
    ssum_tot = jnp.sum(ssum, axis=(0, 1, 2))
    ssq_tot = jnp.sum(ssq, axis=(0, 1, 2))
    mean = ssum_tot / m
    var = jnp.maximum(ssq_tot / m - mean * mean, 0.0)   # biased variance (train)
    scale = gamma.astype(jnp.float32) * lax.rsqrt(var + BN_EPS)
    shift = beta.astype(jnp.float32) - mean * scale
    scale2d = scale.reshape(1, cout)
    shift2d = shift.reshape(1, cout)

    # ---- pass 2: normalize + affine + ReLU + residual add (tiled, parallel) --
    out = pl.pallas_call(
        _bn_relu_residual_kernel,
        out_shape=jax.ShapeDtypeStruct((n, h, w_sp, cout), jnp.float32),
        grid=(n, g_steps),
        in_specs=[pl.BlockSpec((None, rt, w_sp, cout),
                               lambda i, g: (i, g, 0, 0)),
                  pl.BlockSpec((1, cout), lambda i, g: (0, 0)),
                  pl.BlockSpec((1, cout), lambda i, g: (0, 0)),
                  pl.BlockSpec((None, rt, w_sp, cout),
                               lambda i, g: (i, g, 0, 0))],
        out_specs=pl.BlockSpec((None, rt, w_sp, cout),
                               lambda i, g: (i, g, 0, 0)),
        compiler_params=cparams,
        cost_estimate=pl.CostEstimate(
            flops=4 * m * cout,
            transcendentals=0,
            bytes_accessed=int(m * cout * (2 + 4 + 4) + 2 * cout * 4)),
    )(conv_out, scale2d, shift2d, x_nhwc)

    return jnp.transpose(out, (0, 3, 1, 2))   # back to NCHW


# ----------------------------- pure-JAX reference -----------------------------
# TODO(synk): BatchNorm running_mean/running_var in-place buffer updates are
# training bookkeeping with no effect on the forward output; not reproduced.

def reference_forward(x_nchw, w_kkio, gamma, beta):
    k = w_kkio.shape[0]
    mask = jnp.asarray(make_mask(k, 'B'))
    w_oihw = jnp.transpose(w_kkio * mask[:, :, None, None], (3, 2, 0, 1))
    x = x_nchw.astype(jnp.float32)
    conv = lax.conv_general_dilated(
        x, w_oihw, (1, 1), ((k // 2, k // 2), (k // 2, k // 2)),
        dimension_numbers=('NCHW', 'OIHW', 'NCHW'),
        precision=lax.Precision.HIGHEST)
    mean = jnp.mean(conv, axis=(0, 2, 3), keepdims=True)
    var = jnp.mean(jnp.square(conv - mean), axis=(0, 2, 3), keepdims=True)
    y = (conv - mean) * lax.rsqrt(var + BN_EPS)
    y = y * gamma.reshape(1, -1, 1, 1) + beta.reshape(1, -1, 1, 1)
    return jnp.maximum(y, 0.0) + x


# ----------------------------- main -----------------------------

if __name__ == "__main__":
    key = jax.random.PRNGKey(0)

    # Primary config C=128 (lane-dense stores, fills v5e's 128-wide MXU);
    # second config exercises the sub-128-channel path.
    configs = [
        dict(batch=2, channels=128, spatial=16, ksize=7),
        dict(batch=2, channels=32, spatial=16, ksize=7),
    ]

    for cfg in configs:
        key, kx, kw, kg, kb = jax.random.split(key, 5)
        n, c, s, ksz = cfg["batch"], cfg["channels"], cfg["spatial"], cfg["ksize"]

        x = jax.random.normal(kx, (n, c, s, s), jnp.float32)
        w = jax.random.normal(kw, (ksz, ksz, c, c), jnp.float32) / np.sqrt(c * ksz * ksz)
        gamma = 1.0 + 0.1 * jax.random.normal(kg, (c,), jnp.float32)
        beta = 0.1 * jax.random.normal(kb, (c,), jnp.float32)

        out = jax.jit(masked_conv_residual_block)(x, w, gamma, beta)
        out = jax.block_until_ready(out)
        assert out.shape == (n, c, s, s), out.shape

        ref = reference_forward(x, w, gamma, beta)
        max_err = float(jnp.max(jnp.abs(out - ref)))
        assert jnp.allclose(out, ref, atol=5e-2, rtol=5e-2), (cfg, max_err)

    print("KERNEL_OK")
</pallas_src>

<mosaic_0001>
module attributes {stable_mosaic.version = 11 : i64} {
  func.func @kernel(%arg0: i32, %arg1: i32, %arg2: memref<1x16x22x128xbf16, #tpu.memory_space<vmem>>, %arg3: memref<1x1x3x22x128xbf16, #tpu.memory_space<vmem>>, %arg4: memref<3200x128xbf16, #tpu.memory_space<vmem>>, %arg5: memref<1x16x16x128xbf16, #tpu.memory_space<vmem>>, %arg6: memref<1x1x1x128xf32, #tpu.memory_space<vmem>>, %arg7: memref<1x1x1x128xf32, #tpu.memory_space<vmem>>) attributes {dimension_semantics = [#tpu.dimension_semantics<parallel>, #tpu.dimension_semantics<parallel>], iteration_bounds = array<i64: 2, 1>, scalar_prefetch = 0 : i64, scratch_operands = 0 : i64, tpu.core_type = #tpu.core_type<tc>, window_params = [{transform_indices = @transform_0, window_bounds = array<i64: 1, 16, 22, 128>}, {transform_indices = @transform_1, window_bounds = array<i64: 1, 1, 3, 22, 128>}, {pipeline_mode = #tpu.pipeline_mode<synchronous>, transform_indices = @transform_2, window_bounds = array<i64: 3200, 128>}, {transform_indices = @transform_3, window_bounds = array<i64: 1, 16, 16, 128>}, {transform_indices = @transform_4, window_bounds = array<i64: 1, 1, 1, 128>}, {transform_indices = @transform_5, window_bounds = array<i64: 1, 1, 1, 128>}]} {
    %c0 = arith.constant 0 : index
    %c0_0 = arith.constant 0 : index
    %c0_1 = arith.constant 0 : index
    %c0_2 = arith.constant 0 : index
    %c0_3 = arith.constant 0 : index
    %0 = vector.load %arg3[%c0, %c0_0, %c0_1, %c0_2, %c0_3] : memref<1x1x3x22x128xbf16, #tpu.memory_space<vmem>>, vector<1x1x3x22x128xbf16>
    %1 = vector.shape_cast %0 : vector<1x1x3x22x128xbf16> to vector<3x22x128xbf16>
    %c0_4 = arith.constant 0 : index
    %c0_5 = arith.constant 0 : index
    %c0_6 = arith.constant 0 : index
    %c0_7 = arith.constant 0 : index
    %2 = vector.load %arg2[%c0_4, %c0_5, %c0_6, %c0_7] : memref<1x16x22x128xbf16, #tpu.memory_space<vmem>>, vector<1x16x22x128xbf16>
    %3 = vector.shape_cast %2 : vector<1x16x22x128xbf16> to vector<16x22x128xbf16>
    %4 = tpu.concatenate %1, %3 in 0 : vector<3x22x128xbf16>, vector<16x22x128xbf16> -> vector<19x22x128xbf16>
    %5 = vector.extract_strided_slice %4 {offsets = [0, 0, 0], sizes = [16, 16, 128], strides = [1, 1, 1]} : vector<19x22x128xbf16> to vector<16x16x128xbf16>
    %6 = vector.extract_strided_slice %4 {offsets = [0, 1, 0], sizes = [16, 16, 128], strides = [1, 1, 1]} : vector<19x22x128xbf16> to vector<16x16x128xbf16>
    %7 = vector.extract_strided_slice %4 {offsets = [0, 2, 0], sizes = [16, 16, 128], strides = [1, 1, 1]} : vector<19x22x128xbf16> to vector<16x16x128xbf16>
    %8 = vector.extract_strided_slice %4 {offsets = [0, 3, 0], sizes = [16, 16, 128], strides = [1, 1, 1]} : vector<19x22x128xbf16> to vector<16x16x128xbf16>
    %9 = vector.extract_strided_slice %4 {offsets = [0, 4, 0], sizes = [16, 16, 128], strides = [1, 1, 1]} : vector<19x22x128xbf16> to vector<16x16x128xbf16>
    %10 = vector.extract_strided_slice %4 {offsets = [0, 5, 0], sizes = [16, 16, 128], strides = [1, 1, 1]} : vector<19x22x128xbf16> to vector<16x16x128xbf16>
    %11 = vector.extract_strided_slice %4 {offsets = [0, 6, 0], sizes = [16, 16, 128], strides = [1, 1, 1]} : vector<19x22x128xbf16> to vector<16x16x128xbf16>
    %12 = vector.extract_strided_slice %4 {offsets = [1, 0, 0], sizes = [16, 16, 128], strides = [1, 1, 1]} : vector<19x22x128xbf16> to vector<16x16x128xbf16>
    %13 = vector.extract_strided_slice %4 {offsets = [1, 1, 0], sizes = [16, 16, 128], strides = [1, 1, 1]} : vector<19x22x128xbf16> to vector<16x16x128xbf16>
    %14 = vector.extract_strided_slice %4 {offsets = [1, 2, 0], sizes = [16, 16, 128], strides = [1, 1, 1]} : vector<19x22x128xbf16> to vector<16x16x128xbf16>
    %15 = vector.extract_strided_slice %4 {offsets = [1, 3, 0], sizes = [16, 16, 128], strides = [1, 1, 1]} : vector<19x22x128xbf16> to vector<16x16x128xbf16>
    %16 = vector.extract_strided_slice %4 {offsets = [1, 4, 0], sizes = [16, 16, 128], strides = [1, 1, 1]} : vector<19x22x128xbf16> to vector<16x16x128xbf16>
    %17 = vector.extract_strided_slice %4 {offsets = [1, 5, 0], sizes = [16, 16, 128], strides = [1, 1, 1]} : vector<19x22x128xbf16> to vector<16x16x128xbf16>
    %18 = vector.extract_strided_slice %4 {offsets = [1, 6, 0], sizes = [16, 16, 128], strides = [1, 1, 1]} : vector<19x22x128xbf16> to vector<16x16x128xbf16>
    %19 = vector.extract_strided_slice %4 {offsets = [2, 0, 0], sizes = [16, 16, 128], strides = [1, 1, 1]} : vector<19x22x128xbf16> to vector<16x16x128xbf16>
    %20 = vector.extract_strided_slice %4 {offsets = [2, 1, 0], sizes = [16, 16, 128], strides = [1, 1, 1]} : vector<19x22x128xbf16> to vector<16x16x128xbf16>
    %21 = vector.extract_strided_slice %4 {offsets = [2, 2, 0], sizes = [16, 16, 128], strides = [1, 1, 1]} : vector<19x22x128xbf16> to vector<16x16x128xbf16>
    %22 = vector.extract_strided_slice %4 {offsets = [2, 3, 0], sizes = [16, 16, 128], strides = [1, 1, 1]} : vector<19x22x128xbf16> to vector<16x16x128xbf16>
    %23 = vector.extract_strided_slice %4 {offsets = [2, 4, 0], sizes = [16, 16, 128], strides = [1, 1, 1]} : vector<19x22x128xbf16> to vector<16x16x128xbf16>
    %24 = vector.extract_strided_slice %4 {offsets = [2, 5, 0], sizes = [16, 16, 128], strides = [1, 1, 1]} : vector<19x22x128xbf16> to vector<16x16x128xbf16>
    %25 = vector.extract_strided_slice %4 {offsets = [2, 6, 0], sizes = [16, 16, 128], strides = [1, 1, 1]} : vector<19x22x128xbf16> to vector<16x16x128xbf16>
    %26 = vector.extract_strided_slice %4 {offsets = [3, 0, 0], sizes = [16, 16, 128], strides = [1, 1, 1]} : vector<19x22x128xbf16> to vector<16x16x128xbf16>
    %27 = vector.extract_strided_slice %4 {offsets = [3, 1, 0], sizes = [16, 16, 128], strides = [1, 1, 1]} : vector<19x22x128xbf16> to vector<16x16x128xbf16>
    %28 = vector.extract_strided_slice %4 {offsets = [3, 2, 0], sizes = [16, 16, 128], strides = [1, 1, 1]} : vector<19x22x128xbf16> to vector<16x16x128xbf16>
    %29 = vector.extract_strided_slice %4 {offsets = [3, 3, 0], sizes = [16, 16, 128], strides = [1, 1, 1]} : vector<19x22x128xbf16> to vector<16x16x128xbf16>
    %30 = tpu.concatenate %5, %6, %7, %8, %9, %10, %11, %12, %13, %14, %15, %16, %17, %18, %19, %20 in 2 : vector<16x16x128xbf16>, vector<16x16x128xbf16>, vector<16x16x128xbf16>, vector<16x16x128xbf16>, vector<16x16x128xbf16>, vector<16x16x128xbf16>, vector<16x16x128xbf16>, vector<16x16x128xbf16>, vector<16x16x128xbf16>, vector<16x16x128xbf16>, vector<16x16x128xbf16>, vector<16x16x128xbf16>, vector<16x16x128xbf16>, vector<16x16x128xbf16>, vector<16x16x128xbf16>, vector<16x16x128xbf16> -> vector<16x16x2048xbf16>
    %31 = tpu.concatenate %21, %22, %23, %24, %25, %26, %27, %28, %29 in 2 : vector<16x16x128xbf16>, vector<16x16x128xbf16>, vector<16x16x128xbf16>, vector<16x16x128xbf16>, vector<16x16x128xbf16>, vector<16x16x128xbf16>, vector<16x16x128xbf16>, vector<16x16x128xbf16>, vector<16x16x128xbf16> -> vector<16x16x1152xbf16>
    %32 = tpu.concatenate %30, %31 in 2 : vector<16x16x2048xbf16>, vector<16x16x1152xbf16> -> vector<16x16x3200xbf16>
    %33 = vector.shape_cast %32 : vector<16x16x3200xbf16> to vector<256x3200xbf16>
    %c0_8 = arith.constant 0 : index
    %c0_9 = arith.constant 0 : index
    %34 = vector.load %arg4[%c0_8, %c0_9] : memref<3200x128xbf16, #tpu.memory_space<vmem>>, vector<3200x128xbf16>
    %cst = arith.constant dense<0.000000e+00> : vector<256x128xf32>
    %35 = tpu.matmul %33, %34, %cst {dimension_numbers = #tpu.dot_dimension_numbers<[1], [0], [0], [1], [0, 0, 1, 1], [], []>} : vector<256x3200xbf16>, vector<3200x128xbf16>, vector<256x128xf32> -> vector<256x128xf32>
    %cst_10 = arith.constant dense<0.000000e+00> : vector<128xf32>
    %36 = vector.multi_reduction <add>, %35, %cst_10 [0] : vector<256x128xf32> to vector<128xf32>
    %37 = vector.shape_cast %36 : vector<128xf32> to vector<1x128xf32>
    %c0_11 = arith.constant 0 : index
    %c0_12 = arith.constant 0 : index
    %c0_13 = arith.constant 0 : index
    %c0_14 = arith.constant 0 : index
    %38 = vector.load %arg6[%c0_11, %c0_12, %c0_13, %c0_14] : memref<1x1x1x128xf32, #tpu.memory_space<vmem>>, vector<1x1x1x128xf32>
    %39 = vector.shape_cast %38 : vector<1x1x1x128xf32> to vector<1x128xf32>
    %40 = vector.shape_cast %37 : vector<1x128xf32> to vector<1x1x1x128xf32>
    tpu.vector_store %arg6[%c0_11, %c0_12, %c0_13, %c0_14], %40 {strides = array<i32>} : memref<1x1x1x128xf32, #tpu.memory_space<vmem>>, vector<1x1x1x128xf32>,
    %41 = arith.mulf %35, %35 : vector<256x128xf32>
    %cst_15 = arith.constant dense<0.000000e+00> : vector<128xf32>
    %42 = vector.multi_reduction <add>, %41, %cst_15 [0] : vector<256x128xf32> to vector<128xf32>
    %43 = vector.shape_cast %42 : vector<128xf32> to vector<1x128xf32>
    %c0_16 = arith.constant 0 : index
    %c0_17 = arith.constant 0 : index
    %c0_18 = arith.constant 0 : index
    %c0_19 = arith.constant 0 : index
    %44 = vector.load %arg7[%c0_16, %c0_17, %c0_18, %c0_19] : memref<1x1x1x128xf32, #tpu.memory_space<vmem>>, vector<1x1x1x128xf32>
    %45 = vector.shape_cast %44 : vector<1x1x1x128xf32> to vector<1x128xf32>
    %46 = vector.shape_cast %43 : vector<1x128xf32> to vector<1x1x1x128xf32>
    tpu.vector_store %arg7[%c0_16, %c0_17, %c0_18, %c0_19], %46 {strides = array<i32>} : memref<1x1x1x128xf32, #tpu.memory_space<vmem>>, vector<1x1x1x128xf32>,
    %47 = vector.shape_cast %35 : vector<256x128xf32> to vector<16x16x128xf32>
    %48 = arith.truncf %47 : vector<16x16x128xf32> to vector<16x16x128xbf16>
    %c0_20 = arith.constant 0 : index
    %c0_21 = arith.constant 0 : index
    %c0_22 = arith.constant 0 : index
    %c0_23 = arith.constant 0 : index
    %49 = vector.load %arg5[%c0_20, %c0_21, %c0_22, %c0_23] : memref<1x16x16x128xbf16, #tpu.memory_space<vmem>>, vector<1x16x16x128xbf16>
    %50 = vector.shape_cast %49 : vector<1x16x16x128xbf16> to vector<16x16x128xbf16>
    %51 = vector.shape_cast %48 : vector<16x16x128xbf16> to vector<1x16x16x128xbf16>
    tpu.vector_store %arg5[%c0_20, %c0_21, %c0_22, %c0_23], %51 {strides = array<i32>} : memref<1x16x16x128xbf16, #tpu.memory_space<vmem>>, vector<1x16x16x128xbf16>,
    return
  }
  func.func @transform_0(%arg0: i32, %arg1: i32) -> (i32, i32, i32, i32) {
    %c0_i32 = arith.constant 0 : i32
    %c0_i32_0 = arith.constant 0 : i32
    %c0_i32_1 = arith.constant 0 : i32
    return %arg0, %arg1, %c0_i32, %c0_i32_0 : i32, i32, i32, i32
  }
  func.func @transform_1(%arg0: i32, %arg1: i32) -> (i32, i32, i32, i32, i32) {
    %c0_i32 = arith.constant 0 : i32
    %c0_i32_0 = arith.constant 0 : i32
    %c0_i32_1 = arith.constant 0 : i32
    %c0_i32_2 = arith.constant 0 : i32
    return %arg0, %arg1, %c0_i32, %c0_i32_0, %c0_i32_1 : i32, i32, i32, i32, i32
  }
  func.func @transform_2(%arg0: i32, %arg1: i32) -> (i32, i32) {
    %c0_i32 = arith.constant 0 : i32
    %c0_i32_0 = arith.constant 0 : i32
    %c0_i32_1 = arith.constant 0 : i32
    return %c0_i32, %c0_i32_0 : i32, i32
  }
  func.func @transform_3(%arg0: i32, %arg1: i32) -> (i32, i32, i32, i32) {
    %c0_i32 = arith.constant 0 : i32
    %c0_i32_0 = arith.constant 0 : i32
    %c0_i32_1 = arith.constant 0 : i32
    return %arg0, %arg1, %c0_i32, %c0_i32_0 : i32, i32, i32, i32
  }
  func.func @transform_4(%arg0: i32, %arg1: i32) -> (i32, i32, i32, i32) {
    %c0_i32 = arith.constant 0 : i32
    %c0_i32_0 = arith.constant 0 : i32
    %c0_i32_1 = arith.constant 0 : i32
    return %arg0, %arg1, %c0_i32, %c0_i32_0 : i32, i32, i32, i32
  }
  func.func @transform_5(%arg0: i32, %arg1: i32) -> (i32, i32, i32, i32) {
    %c0_i32 = arith.constant 0 : i32
    %c0_i32_0 = arith.constant 0 : i32
    %c0_i32_1 = arith.constant 0 : i32
    return %arg0, %arg1, %c0_i32, %c0_i32_0 : i32, i32, i32, i32
  }
}

module attributes {stable_mosaic.version = 11 : i64} {
  func.func @_bn_relu_residual_kernel(%arg0: i32, %arg1: i32, %arg2: memref<1x16x16x128xbf16, #tpu.memory_space<vmem>>, %arg3: memref<1x128xf32, #tpu.memory_space<vmem>>, %arg4: memref<1x128xf32, #tpu.memory_space<vmem>>, %arg5: memref<1x16x16x128xf32, #tpu.memory_space<vmem>>, %arg6: memref<1x16x16x128xf32, #tpu.memory_space<vmem>>) attributes {dimension_semantics = [#tpu.dimension_semantics<parallel>, #tpu.dimension_semantics<parallel>], iteration_bounds = array<i64: 2, 1>, scalar_prefetch = 0 : i64, scratch_operands = 0 : i64, tpu.core_type = #tpu.core_type<tc>, window_params = [{transform_indices = @transform_0, window_bounds = array<i64: 1, 16, 16, 128>}, {pipeline_mode = #tpu.pipeline_mode<synchronous>, transform_indices = @transform_1, window_bounds = array<i64: 1, 128>}, {pipeline_mode = #tpu.pipeline_mode<synchronous>, transform_indices = @transform_2, window_bounds = array<i64: 1, 128>}, {transform_indices = @transform_3, window_bounds = array<i64: 1, 16, 16, 128>}, {transform_indices = @transform_4, window_bounds = array<i64: 1, 16, 16, 128>}]} {
    %c0 = arith.constant 0 : index
    %c0_0 = arith.constant 0 : index
    %c0_1 = arith.constant 0 : index
    %c0_2 = arith.constant 0 : index
    %0 = vector.load %arg2[%c0, %c0_0, %c0_1, %c0_2] : memref<1x16x16x128xbf16, #tpu.memory_space<vmem>>, vector<1x16x16x128xbf16>
    %1 = vector.shape_cast %0 : vector<1x16x16x128xbf16> to vector<16x16x128xbf16>
    %2 = arith.extf %1 : vector<16x16x128xbf16> to vector<16x16x128xf32>
    %c0_3 = arith.constant 0 : index
    %c0_4 = arith.constant 0 : index
    %3 = vector.load %arg3[%c0_3, %c0_4] : memref<1x128xf32, #tpu.memory_space<vmem>>, vector<1x128xf32>
    %4 = vector.shape_cast %3 : vector<1x128xf32> to vector<1x1x128xf32>
    %5 = vector.broadcast %4 : vector<1x1x128xf32> to vector<16x16x128xf32>
    %6 = arith.mulf %2, %5 : vector<16x16x128xf32>
    %c0_5 = arith.constant 0 : index
    %c0_6 = arith.constant 0 : index
    %7 = vector.load %arg4[%c0_5, %c0_6] : memref<1x128xf32, #tpu.memory_space<vmem>>, vector<1x128xf32>
    %8 = vector.shape_cast %7 : vector<1x128xf32> to vector<1x1x128xf32>
    %9 = vector.broadcast %8 : vector<1x1x128xf32> to vector<16x16x128xf32>
    %10 = arith.addf %6, %9 : vector<16x16x128xf32>
    %cst = arith.constant 0.000000e+00 : f32
    %11 = vector.broadcast %cst : f32 to vector<16x16x128xf32>
    %12 = arith.maximumf %10, %11 : vector<16x16x128xf32>
    %c0_7 = arith.constant 0 : index
    %c0_8 = arith.constant 0 : index
    %c0_9 = arith.constant 0 : index
    %c0_10 = arith.constant 0 : index
    %13 = vector.load %arg5[%c0_7, %c0_8, %c0_9, %c0_10] : memref<1x16x16x128xf32, #tpu.memory_space<vmem>>, vector<1x16x16x128xf32>
    %14 = vector.shape_cast %13 : vector<1x16x16x128xf32> to vector<16x16x128xf32>
    %15 = arith.addf %12, %14 : vector<16x16x128xf32>
    %c0_11 = arith.constant 0 : index
    %c0_12 = arith.constant 0 : index
    %c0_13 = arith.constant 0 : index
    %c0_14 = arith.constant 0 : index
    %16 = vector.load %arg6[%c0_11, %c0_12, %c0_13, %c0_14] : memref<1x16x16x128xf32, #tpu.memory_space<vmem>>, vector<1x16x16x128xf32>
    %17 = vector.shape_cast %16 : vector<1x16x16x128xf32> to vector<16x16x128xf32>
    %18 = vector.shape_cast %15 : vector<16x16x128xf32> to vector<1x16x16x128xf32>
    tpu.vector_store %arg6[%c0_11, %c0_12, %c0_13, %c0_14], %18 {strides = array<i32>} : memref<1x16x16x128xf32, #tpu.memory_space<vmem>>, vector<1x16x16x128xf32>,
    return
  }
  func.func @transform_0(%arg0: i32, %arg1: i32) -> (i32, i32, i32, i32) {
    %c0_i32 = arith.constant 0 : i32
    %c0_i32_0 = arith.constant 0 : i32
    %c0_i32_1 = arith.constant 0 : i32
    return %arg0, %arg1, %c0_i32, %c0_i32_0 : i32, i32, i32, i32
  }
  func.func @transform_1(%arg0: i32, %arg1: i32) -> (i32, i32) {
    %c0_i32 = arith.constant 0 : i32
    %c0_i32_0 = arith.constant 0 : i32
    %c0_i32_1 = arith.constant 0 : i32
    return %c0_i32, %c0_i32_0 : i32, i32
  }
  func.func @transform_2(%arg0: i32, %arg1: i32) -> (i32, i32) {
    %c0_i32 = arith.constant 0 : i32
    %c0_i32_0 = arith.constant 0 : i32
    %c0_i32_1 = arith.constant 0 : i32
    return %c0_i32, %c0_i32_0 : i32, i32
  }
  func.func @transform_3(%arg0: i32, %arg1: i32) -> (i32, i32, i32, i32) {
    %c0_i32 = arith.constant 0 : i32
    %c0_i32_0 = arith.constant 0 : i32
    %c0_i32_1 = arith.constant 0 : i32
    return %arg0, %arg1, %c0_i32, %c0_i32_0 : i32, i32, i32, i32
  }
  func.func @transform_4(%arg0: i32, %arg1: i32) -> (i32, i32, i32, i32) {
    %c0_i32 = arith.constant 0 : i32
    %c0_i32_0 = arith.constant 0 : i32
    %c0_i32_1 = arith.constant 0 : i32
    return %arg0, %arg1, %c0_i32, %c0_i32_0 : i32, i32, i32, i32
  }
}

</mosaic_0001>

<bundles_post_ra>
// kernel: masked_conv_residual_block.3
= control target key start
LH: loop header
LB: loop body
LE: loop exit
PB: predicated region body
PF: predicated region fallthrough
CT: control target
= control target key end

     0   :  { %9 = vsyncpa [#allocation3], 0  ;;  %s1206_s0 = inlined_call_operand.vmem [shape: bf16[2,16,16,128], index: 0, kind: input, shape index: {}]   ;;  %s1207_s1 = inlined_call_operand.vmem [shape: f32[1,128], index: 1, kind: input, shape index: {}]   ;;  %s1208_s2 = inlined_call_operand.vmem [shape: f32[1,128], index: 2, kind: input, shape index: {}]   ;;  %s1209_s3 = inlined_call_operand.vmem [shape: f32[2,16,16,128], index: 3, kind: input, shape index: {}]   ;;  %s1210_s4 = inlined_call_operand.hbm [shape: f32[2,16,16,128], index: 4, kind: output, shape index: {}]  }
   0x1   :  { %11 = vsyncpa [#allocation3 + $0x1], 0  ;;  %s921_s15 = smov 0   ;;  %s923_s16 = smov 0  }
   0x2   :  { %s925_s17 = smov 0   ;;  %s927_s18 = smov 0  }
   0x3   :  { %s929_s19 = smov 0   ;;  %s931_s20 = smov 0  }
   0x4 LB: > { %s659_s21 = sadd.s32 4294967295, %s891_s20   ;;  %s660_s22 = sadd.s32 4294967294, %s891_s20   ;;  %s891_s20 = sphi %s931_s20, %s17_s20   ;;  %s887_s19 = sphi %s929_s19, %s1217_s19   ;;  %s883_s18 = sphi %s927_s18, %s1216_s18   ;;  %s879_s17 = sphi %s925_s17, %s1215_s17   ;;  %s875_s16 = sphi %s923_s16, %s1214_s16   ;;  %s871_s15 = sphi %s921_s15, %s1213_s15  }
   0x5   : > { %s29_s23 = sadd.s32 1, %s887_s19  ;;  %s136_s24 = sadd.s32 1, %s879_s17 }
   0x6   : > { %p31_p0 = scmp.ge.s32.totalorder %s29_s23, 2  ;;  %p146_p1 = scmp.ne.s32.totalorder %s879_s17, %s875_s16 }
   0x7   : > { %p147_p2 = scmp.eq.s32.totalorder %s659_s21, 1  ;;  %p152_p3 = scmp.ne.s32.totalorder %s875_s16, %s871_s15 }
   0x8   : > { %s1219_s23 = smov (%p31_p0, %s29_s23), 0  ;;  %p153_p5 = scmp.eq.s32.totalorder %s660_s22, 1 }
   0x9   : > { %p961_p4 = por %p147_p2, %p146_p1  ;;  %s131_s26 = ssub.s32 %s887_s19, %s1219_s23 }
   0xa   : > { %p663_p6 = scmp.ge.s32.totalorder %s891_s20, 1  ;;  %p134_p7 = scmp.eq.s32.totalorder %s131_s26, 0 }
   0xb   : > { %p968_p8 = por %p153_p5, %p152_p3  ;;  %p205_p9 = scmp.lt.s32.totalorder %s891_s20, 3 }
   0xc   : > { %s974_s28 = scalar_select %p134_p7, %s879_s17, %s136_s24  }
   0xd   : > { %p206_p10 = pnand %p663_p6, %p205_p9 }
   0xe   : > { %p247_p11 = scmp.lt.s32.totalorder (!%p206_p10), %s883_s18, 1  ;;  %s243_s11 = sand.u32 (!%p206_p10), 1, %s875_s16  }
   0xf   : > { %209 = sbr.rel (%p206_p10) target bundleno = 81 (0x51), region = 36  ;;  %s1009_s24 = sshll.u32 (!%p206_p10), %s243_s11, 8 }
  0x10   : > { %s1035_s26 = scalar_lea.vmem (!%p206_p10), [#allocation2], %s1009_s24  ;;  %s893_s9 = smov (!%p206_p10), [#allocation2]  }
  0x11   : > { %s819_s10 = sshll.u32 (!%p206_p10), %s893_s9, 4  ;;  %s820_s10 = int_to_ptr.vmem [resolvable:$false] %s819_s10 }
  0x12   : > { %s821_s12 = scalar_lea.vmem (!%p206_p10), %s820_s10, 8192 }
  0x14   : > { %s248_s29 = scalar_select %p247_p11, %s883_s18, 1  ;;  %v987_v1 = vld [vmem:[%s1207_s1] ss:$0 sm:$0xff] }
  0x15   : > { %v994_v5 = vld [vmem:[%s1208_s2] ss:$0 sm:$0xff] }
  0x16   : > { %s676_s30 = sshll.u32 %s248_s29, 7  ;;  %s677_s8 = sshll.u32 %s248_s29, 8 }
  0x17   : > { %s981_s7 = scalar_lea.vmem %s1206_s0, %s676_s30  ;;  %s1000_s22 = scalar_lea.vmem %s1209_s3, %s677_s8 }
  0x18   : > { %v680_v0 = vld [vmem:[%s981_s7] sm:$0xff]   ;;  %v743_v4 = vld [vmem:[%s981_s7 + $0x8] sm:$0xff]   ;;  %v744_v8 = vld [vmem:[%s981_s7 + $0x10] sm:$0xff]   ;;  %s678_s29 = sshll.u32 %s883_s18, 12  ;;  %s556_s30 = sshll.u32 %s1035_s26, 4  ;;  %s1151_s30 = int_to_ptr.vmem [resolvable:$true] %s556_s30 }
  0x19   : > { %v681_v2 = vunpack.c.l.bf16 %v680_v0  ;;  %v682_v3 = vunpack.c.h.bf16 %v680_v0  ;;  %v685_v6 = vunpack.c.l.bf16 %v743_v4  ;;  %v686_v7 = vunpack.c.h.bf16 %v743_v4  ;;  %v745_v13 = vld [vmem:[%s981_s7 + $0x18] sm:$0xff]   ;;  %v443_v22 = vld [vmem:[%s1000_s22] sm:$0xff]  ;;  %v444_v23 = vld [vmem:[%s1000_s22 + $0x8] sm:$0xff]  ;;  %s1149_s6 = scalar_lea.hbm %s1210_s4, %s678_s29  ;;  %s815_s8 = scalar_lea.vmem %s1151_s30, 4096 }
  0x1a   : > { %v689_v11 = vunpack.c.l.bf16 %v744_v8  ;;  %v690_v12 = vunpack.c.h.bf16 %v744_v8  ;;  %v693_v16 = vunpack.c.l.bf16 %v745_v13  ;;  %v694_v17 = vunpack.c.h.bf16 %v745_v13  ;;  %v445_v30 = vld [vmem:[%s1000_s22 + $0x10] sm:$0xff]  ;;  %v446_v31 = vld [vmem:[%s1000_s22 + $0x18] sm:$0xff]  ;;  %v447_v36 = vld [vmem:[%s1000_s22 + $0x20] sm:$0xff]  ;;  %p816_p12 = scmp.ne.s32.totalorder %s1151_s30, %s815_s8  ;;  %p822_p1 = scmp.lt.s32.totalorder %s1151_s30, %s820_s10 }
  0x1b   : > { %v340_v9 = vmul.f32 %v681_v2, %v987_v1  ;;  %v341_v10 = vmul.f32 %v682_v3, %v987_v1  ;;  %v342_v14 = vmul.f32 %v685_v6, %v987_v1  ;;  %v343_v15 = vmul.f32 %v686_v7, %v987_v1  ;;  %v448_v37 = vld [vmem:[%s1000_s22 + $0x28] sm:$0xff]  ;;  %v746_v40 = vld [vmem:[%s981_s7 + $0x20] sm:$0xff]   ;;  %v449_v45 = vld [vmem:[%s1000_s22 + $0x30] sm:$0xff]  ;;  %p823_p2 = scmp.lt.s32.totalorder %s821_s12, %s815_s8 }
  0x1c   : > { %v344_v20 = vmul.f32 %v689_v11, %v987_v1  ;;  %v345_v21 = vmul.f32 %v690_v12, %v987_v1  ;;  %v346_v26 = vmul.f32 %v693_v16, %v987_v1  ;;  %v347_v27 = vmul.f32 %v694_v17, %v987_v1  ;;  %v450_v46 = vld [vmem:[%s1000_s22 + $0x38] sm:$0xff]  ;;  %v747_v47 = vld [vmem:[%s981_s7 + $0x28] sm:$0xff]   ;;  %v748_v52 = vld [vmem:[%s981_s7 + $0x30] sm:$0xff]   ;;  %p817_p13 = pnand %p816_p12, %p961_p4 }
  0x1d   : > { %v379_v18 = vadd.f32 %v994_v5, %v340_v9  ;;  %v380_v19 = vadd.f32 %v994_v5, %v341_v10  ;;  %v381_v24 = vadd.f32 %v994_v5, %v342_v14  ;;  %v382_v25 = vadd.f32 %v994_v5, %v343_v15  ;;  %v749_v57 = vld [vmem:[%s981_s7 + $0x38] sm:$0xff]   ;;  %v451_v12 = vld [vmem:[%s1000_s22 + $0x40] sm:$0xff]  ;;  %v452_v13 = vld [vmem:[%s1000_s22 + $0x48] sm:$0xff]  ;;  %p824_p3 = por %p823_p2, %p822_p1 }
  0x1e   : > { %v383_v32 = vadd.f32 %v994_v5, %v344_v20  ;;  %v384_v33 = vadd.f32 %v994_v5, %v345_v21  ;;  %v385_v38 = vadd.f32 %v994_v5, %v346_v26  ;;  %v386_v39 = vadd.f32 %v994_v5, %v347_v27  ;;  %v453_v20 = vld [vmem:[%s1000_s22 + $0x50] sm:$0xff]  ;;  %v454_v21 = vld [vmem:[%s1000_s22 + $0x58] sm:$0xff]  ;;  %v455_v26 = vld [vmem:[%s1000_s22 + $0x60] sm:$0xff]  ;;  %p818_p0 = pneg %p817_p13 }
  0x1f   : > { %v411_v28 = vmax.f32 %v379_v18, 0.0  ;;  %v412_v29 = vmax.f32 %v380_v19, 0.0  ;;  %v413_v34 = vmax.f32 %v381_v24, 0.0  ;;  %v414_v35 = vmax.f32 %v382_v25, 0.0  ;;  %v456_v27 = vld [vmem:[%s1000_s22 + $0x68] sm:$0xff] }
  0x20   : > { %v415_v43 = vmax.f32 %v383_v32, 0.0  ;;  %v416_v44 = vmax.f32 %v384_v33, 0.0  ;;  %v417_v50 = vmax.f32 %v385_v38, 0.0  ;;  %v418_v51 = vmax.f32 %v386_v39, 0.0  ;;  %p825_p5 = pnand %p824_p3, %p818_p0 }
  0x21   : > { %v475_v41 = vadd.f32 %v443_v22, %v411_v28  ;;  %v476_v42 = vadd.f32 %v444_v23, %v412_v29  ;;  %v477_v48 = vadd.f32 %v445_v30, %v413_v34  ;;  %v478_v49 = vadd.f32 %v446_v31, %v414_v35  ;;  %v750_v30 = vld [vmem:[%s981_s7 + $0x40] sm:$0xff]   ;;  %v457_v35 = vld [vmem:[%s1000_s22 + $0x70] sm:$0xff] }
  0x22   : > { %v479_v53 = vadd.f32 %v447_v36, %v415_v43  ;;  %v480_v54 = vadd.f32 %v448_v37, %v416_v44  ;;  %v697_v55 = vunpack.c.l.bf16 %v746_v40  ;;  %v698_v56 = vunpack.c.h.bf16 %v746_v40  ;;  %v458_v36 = vld [vmem:[%s1000_s22 + $0x78] sm:$0xff]  ;;  %v751_v37 = vld [vmem:[%s981_s7 + $0x48] sm:$0xff]  }
  0x23   : > { %507 = vst [vmem:[%s1035_s26] sm:$0xff] %v475_v41  ;;  %508 = vst [vmem:[%s1035_s26 + $0x8] sm:$0xff] %v476_v42  ;;  %v481_v58 = vadd.f32 %v449_v45, %v417_v50  ;;  %v482_v59 = vadd.f32 %v450_v46, %v418_v51  ;;  %v701_v60 = vunpack.c.l.bf16 %v747_v47  ;;  %v702_v61 = vunpack.c.h.bf16 %v747_v47  ;;  %v752_v42 = vld [vmem:[%s981_s7 + $0x50] sm:$0xff]   ;;  %v753_v47 = vld [vmem:[%s981_s7 + $0x58] sm:$0xff]  }
  0x24   : > { %509 = vst [vmem:[%s1035_s26 + $0x10] sm:$0xff] %v477_v48  ;;  %510 = vst [vmem:[%s1035_s26 + $0x18] sm:$0xff] %v478_v49  ;;  %v348_v62 = vmul.f32 %v697_v55, %v987_v1  ;;  %v349_v63 = vmul.f32 %v698_v56, %v987_v1  ;;  %v705_v0 = vunpack.c.l.bf16 %v748_v52  ;;  %v706_v2 = vunpack.c.h.bf16 %v748_v52 }
  0x25   : > { %511 = vst [vmem:[%s1035_s26 + $0x20] sm:$0xff] %v479_v53  ;;  %512 = vst [vmem:[%s1035_s26 + $0x28] sm:$0xff] %v480_v54  ;;  %v350_v3 = vmul.f32 %v701_v60, %v987_v1  ;;  %v351_v4 = vmul.f32 %v702_v61, %v987_v1  ;;  %v709_v6 = vunpack.c.l.bf16 %v749_v57  ;;  %v710_v7 = vunpack.c.h.bf16 %v749_v57 }
  0x26   : > { %513 = vst [vmem:[%s1035_s26 + $0x30] sm:$0xff] %v481_v58  ;;  %514 = vst [vmem:[%s1035_s26 + $0x38] sm:$0xff] %v482_v59  ;;  %v387_v8 = vadd.f32 %v994_v5, %v348_v62  ;;  %v388_v9 = vadd.f32 %v994_v5, %v349_v63  ;;  %v352_v10 = vmul.f32 %v705_v0, %v987_v1  ;;  %v713_v45 = vunpack.c.l.bf16 %v750_v30  ;;  %v459_v0 = vld [vmem:[%s1000_s22 + $0x80] sm:$0xff] }
  0x27   : > { %v353_v11 = vmul.f32 %v706_v2, %v987_v1  ;;  %v389_v14 = vadd.f32 %v994_v5, %v350_v3  ;;  %v390_v15 = vadd.f32 %v994_v5, %v351_v4  ;;  %v354_v16 = vmul.f32 %v709_v6, %v987_v1  ;;  %v460_v2 = vld [vmem:[%s1000_s22 + $0x88] sm:$0xff] }
  0x28   : > { %v355_v17 = vmul.f32 %v710_v7, %v987_v1  ;;  %v419_v18 = vmax.f32 %v387_v8, 0.0  ;;  %v420_v19 = vmax.f32 %v388_v9, 0.0  ;;  %v391_v22 = vadd.f32 %v994_v5, %v352_v10  ;;  %v461_v10 = vld [vmem:[%s1000_s22 + $0x90] sm:$0xff] }
  0x29   : > { %v392_v23 = vadd.f32 %v994_v5, %v353_v11  ;;  %v421_v24 = vmax.f32 %v389_v14, 0.0  ;;  %v422_v25 = vmax.f32 %v390_v15, 0.0  ;;  %v393_v28 = vadd.f32 %v994_v5, %v354_v16  ;;  %v462_v11 = vld [vmem:[%s1000_s22 + $0x98] sm:$0xff]  ;;  %v463_v16 = vld [vmem:[%s1000_s22 + $0xa0] sm:$0xff] }
  0x2a   : > { %v394_v29 = vadd.f32 %v994_v5, %v355_v17  ;;  %v483_v31 = vadd.f32 %v451_v12, %v419_v18  ;;  %v484_v32 = vadd.f32 %v452_v13, %v420_v19  ;;  %v423_v33 = vmax.f32 %v391_v22, 0.0  ;;  %v464_v17 = vld [vmem:[%s1000_s22 + $0xa8] sm:$0xff] }
  0x2b   : > { %v424_v34 = vmax.f32 %v392_v23, 0.0  ;;  %v485_v38 = vadd.f32 %v453_v20, %v421_v24  ;;  %v486_v39 = vadd.f32 %v454_v21, %v422_v25  ;;  %v425_v40 = vmax.f32 %v393_v28, 0.0  ;;  %v754_v20 = vld [vmem:[%s981_s7 + $0x60] sm:$0xff]   ;;  %v465_v25 = vld [vmem:[%s1000_s22 + $0xb0] sm:$0xff] }
  0x2c   : > { %v426_v41 = vmax.f32 %v394_v29, 0.0  ;;  %515 = vst [vmem:[%s1035_s26 + $0x40] sm:$0xff] %v483_v31  ;;  %516 = vst [vmem:[%s1035_s26 + $0x48] sm:$0xff] %v484_v32  ;;  %v487_v43 = vadd.f32 %v455_v26, %v423_v33  ;;  %v714_v46 = vunpack.c.h.bf16 %v750_v30  ;;  %v717_v50 = vunpack.c.l.bf16 %v751_v37  ;;  %v466_v26 = vld [vmem:[%s1000_s22 + $0xb8] sm:$0xff]  ;;  %v756_v32 = vld [vmem:[%s981_s7 + $0x70] sm:$0xff]  }
  0x2d   : > { %v488_v44 = vadd.f32 %v456_v27, %v424_v34  ;;  %517 = vst [vmem:[%s1035_s26 + $0x50] sm:$0xff] %v485_v38  ;;  %518 = vst [vmem:[%s1035_s26 + $0x58] sm:$0xff] %v486_v39  ;;  %v489_v48 = vadd.f32 %v457_v35, %v425_v40  ;;  %v718_v51 = vunpack.c.h.bf16 %v751_v37  ;;  %v356_v52 = vmul.f32 %v713_v45, %v987_v1  ;;  %v755_v27 = vld [vmem:[%s981_s7 + $0x68] sm:$0xff]   ;;  %v757_v37 = vld [vmem:[%s981_s7 + $0x78] sm:$0xff]   ;;  %s1161_s7 = scalar_lea.sflag [#allocation3], %s243_s11 }
  0x2e   : > { %v490_v49 = vadd.f32 %v458_v36, %v426_v41  ;;  %519 = vst [vmem:[%s1035_s26 + $0x60] sm:$0xff] %v487_v43  ;;  %v357_v53 = vmul.f32 %v714_v46, %v987_v1  ;;  %v721_v54 = vunpack.c.l.bf16 %v752_v42  ;;  %v722_v55 = vunpack.c.h.bf16 %v752_v42 }
  0x2f   : > { %520 = vst [vmem:[%s1035_s26 + $0x68] sm:$0xff] %v488_v44  ;;  %521 = vst [vmem:[%s1035_s26 + $0x70] sm:$0xff] %v489_v48  ;;  %v358_v56 = vmul.f32 %v717_v50, %v987_v1  ;;  %v359_v57 = vmul.f32 %v718_v51, %v987_v1  ;;  %v725_v58 = vunpack.c.l.bf16 %v753_v47  ;;  %v726_v59 = vunpack.c.h.bf16 %v753_v47 }
  0x30   : > { %522 = vst [vmem:[%s1035_s26 + $0x78] sm:$0xff] %v490_v49  ;;  %v395_v60 = vadd.f32 %v994_v5, %v356_v52  ;;  %v396_v61 = vadd.f32 %v994_v5, %v357_v53  ;;  %v360_v62 = vmul.f32 %v721_v54, %v987_v1  ;;  %v361_v63 = vmul.f32 %v722_v55, %v987_v1  ;;  %v467_v54 = vld [vmem:[%s1000_s22 + $0xc0] sm:$0xff]  ;;  %v468_v55 = vld [vmem:[%s1000_s22 + $0xc8] sm:$0xff] }
  0x31   : > { %v397_v3 = vadd.f32 %v994_v5, %v358_v56  ;;  %v398_v4 = vadd.f32 %v994_v5, %v359_v57  ;;  %v362_v6 = vmul.f32 %v725_v58, %v987_v1  ;;  %v363_v7 = vmul.f32 %v726_v59, %v987_v1 }
  0x32   : > { %v427_v8 = vmax.f32 %v395_v60, 0.0  ;;  %v428_v9 = vmax.f32 %v396_v61, 0.0  ;;  %v399_v12 = vadd.f32 %v994_v5, %v360_v62  ;;  %v400_v13 = vadd.f32 %v994_v5, %v361_v63  ;;  %v469_v62 = vld [vmem:[%s1000_s22 + $0xd0] sm:$0xff]  ;;  %v470_v63 = vld [vmem:[%s1000_s22 + $0xd8] sm:$0xff] }
  0x33   : > { %v429_v14 = vmax.f32 %v397_v3, 0.0  ;;  %v430_v15 = vmax.f32 %v398_v4, 0.0  ;;  %v401_v18 = vadd.f32 %v994_v5, %v362_v6  ;;  %v402_v19 = vadd.f32 %v994_v5, %v363_v7  ;;  %v471_v6 = vld [vmem:[%s1000_s22 + $0xe0] sm:$0xff]  ;;  %v472_v7 = vld [vmem:[%s1000_s22 + $0xe8] sm:$0xff] }
  0x34   : > { %v491_v21 = vadd.f32 %v459_v0, %v427_v8  ;;  %v492_v22 = vadd.f32 %v460_v2, %v428_v9  ;;  %v431_v23 = vmax.f32 %v399_v12, 0.0  ;;  %v432_v24 = vmax.f32 %v400_v13, 0.0  ;;  %v473_v13 = vld [vmem:[%s1000_s22 + $0xf0] sm:$0xff] }
  0x35   : > { %v493_v28 = vadd.f32 %v461_v10, %v429_v14  ;;  %v494_v29 = vadd.f32 %v462_v11, %v430_v15  ;;  %v433_v30 = vmax.f32 %v401_v18, 0.0  ;;  %v434_v31 = vmax.f32 %v402_v19, 0.0  ;;  %v474_v14 = vld [vmem:[%s1000_s22 + $0xf8] sm:$0xff] }
  0x36   : > { %523 = vst [vmem:[%s1035_s26 + $0x80] sm:$0xff] %v491_v21  ;;  %524 = vst [vmem:[%s1035_s26 + $0x88] sm:$0xff] %v492_v22  ;;  %v495_v33 = vadd.f32 %v463_v16, %v431_v23  ;;  %v496_v34 = vadd.f32 %v464_v17, %v432_v24  ;;  %v729_v35 = vunpack.c.l.bf16 %v754_v20  ;;  %v730_v36 = vunpack.c.h.bf16 %v754_v20 }
  0x37   : > { %525 = vst [vmem:[%s1035_s26 + $0x90] sm:$0xff] %v493_v28  ;;  %526 = vst [vmem:[%s1035_s26 + $0x98] sm:$0xff] %v494_v29  ;;  %v497_v38 = vadd.f32 %v465_v25, %v433_v30  ;;  %v498_v39 = vadd.f32 %v466_v26, %v434_v31  ;;  %v733_v40 = vunpack.c.l.bf16 %v755_v27  ;;  %v734_v41 = vunpack.c.h.bf16 %v755_v27 }
  0x38   : > { %527 = vst [vmem:[%s1035_s26 + $0xa0] sm:$0xff] %v495_v33  ;;  %528 = vst [vmem:[%s1035_s26 + $0xa8] sm:$0xff] %v496_v34  ;;  %v364_v42 = vmul.f32 %v729_v35, %v987_v1  ;;  %v365_v43 = vmul.f32 %v730_v36, %v987_v1  ;;  %v737_v44 = vunpack.c.l.bf16 %v756_v32  ;;  %v738_v45 = vunpack.c.h.bf16 %v756_v32 }
  0x39   : > { %529 = vst [vmem:[%s1035_s26 + $0xb0] sm:$0xff] %v497_v38  ;;  %530 = vst [vmem:[%s1035_s26 + $0xb8] sm:$0xff] %v498_v39  ;;  %v366_v46 = vmul.f32 %v733_v40, %v987_v1  ;;  %v367_v47 = vmul.f32 %v734_v41, %v987_v1  ;;  %v741_v48 = vunpack.c.l.bf16 %v757_v37  ;;  %v742_v49 = vunpack.c.h.bf16 %v757_v37 }
  0x3a   : > { %v403_v50 = vadd.f32 %v994_v5, %v364_v42  ;;  %v404_v51 = vadd.f32 %v994_v5, %v365_v43  ;;  %v368_v52 = vmul.f32 %v737_v44, %v987_v1  ;;  %v369_v53 = vmul.f32 %v738_v45, %v987_v1 }
  0x3b   : > { %v405_v56 = vadd.f32 %v994_v5, %v366_v46  ;;  %v406_v57 = vadd.f32 %v994_v5, %v367_v47  ;;  %v370_v58 = vmul.f32 %v741_v48, %v987_v1  ;;  %v371_v59 = vmul.f32 %v742_v49, %v987_v1 }
  0x3c   : > { %v435_v60 = vmax.f32 %v403_v50, 0.0  ;;  %v436_v61 = vmax.f32 %v404_v51, 0.0  ;;  %v407_v0 = vadd.f32 %v994_v5, %v368_v52  ;;  %v408_v2 = vadd.f32 %v994_v5, %v369_v53 }
  0x3d   : > { %v437_v3 = vmax.f32 %v405_v56, 0.0  ;;  %v438_v4 = vmax.f32 %v406_v57, 0.0  ;;  %v409_v8 = vadd.f32 %v994_v5, %v370_v58  ;;  %v410_v1 = vadd.f32 %v994_v5, %v371_v59 }
  0x3e   : > { %v499_v9 = vadd.f32 %v467_v54, %v435_v60  ;;  %v500_v10 = vadd.f32 %v468_v55, %v436_v61  ;;  %v439_v11 = vmax.f32 %v407_v0, 0.0  ;;  %v440_v12 = vmax.f32 %v408_v2, 0.0 }
  0x3f   : > { %v501_v15 = vadd.f32 %v469_v62, %v437_v3  ;;  %v502_v16 = vadd.f32 %v470_v63, %v438_v4  ;;  %v441_v17 = vmax.f32 %v409_v8, 0.0  ;;  %v442_v18 = vmax.f32 %v410_v1, 0.0 }
  0x40   : > { %531 = vst [vmem:[%s1035_s26 + $0xc0] sm:$0xff] %v499_v9  ;;  %532 = vst [vmem:[%s1035_s26 + $0xc8] sm:$0xff] %v500_v10  ;;  %v503_v5 = vadd.f32 %v471_v6, %v439_v11  ;;  %v504_v19 = vadd.f32 %v472_v7, %v440_v12 }
  0x41   : > { %533 = vst [vmem:[%s1035_s26 + $0xd0] sm:$0xff] %v501_v15  ;;  %534 = vst [vmem:[%s1035_s26 + $0xd8] sm:$0xff] %v502_v16  ;;  %v505_v20 = vadd.f32 %v473_v13, %v441_v17  ;;  %v506_v21 = vadd.f32 %v474_v14, %v442_v18 }
  0x42   : > { %535 = vst [vmem:[%s1035_s26 + $0xe0] sm:$0xff] %v503_v5  ;;  %536 = vst [vmem:[%s1035_s26 + $0xe8] sm:$0xff] %v504_v19 }
  0x43   : > { %537 = vst [vmem:[%s1035_s26 + $0xf0] sm:$0xff] %v505_v20  ;;  %538 = vst [vmem:[%s1035_s26 + $0xf8] sm:$0xff] %v506_v21 }
  0x44   : > { %828 = shalt.err (!%p825_p5)
}
  0x45   : > { %s829_s11 = scalar_lea.hbm %s1149_s6, 4096  ;;  %s833_s21 = scalar_lea.hbm %s1210_s4, 8192 }
  0x46   : > { %p830_p6 = scmp.ne.s32.totalorder %s1149_s6, %s829_s11  ;;  %p834_p10 = scmp.lt.s32.totalorder %s1149_s6, %s1210_s4 }
  0x47   : > { %p835_p11 = scmp.lt.s32.totalorder %s833_s21, %s829_s11 }
  0x48   : > { %p831_p7 = pnand %p830_p6, %p961_p4 }
  0x49   : > { %p836_p12 = por %p835_p11, %p834_p10 }
  0x4a   : > { %p832_p9 = pneg %p831_p7 }
  0x4c   : > { %p837_p13 = pnand %p836_p12, %p832_p9 }
  0x4e   : > { %840 = shalt.err (!%p837_p13)
}
  0x4f   : > { %s894_s26 = smov 128   ;;  %s895_s29 = smov 8  }
  0x50   : > { %758 = dma.vmem_to_hbm [thread:$0]  (%p961_p4), %s1151_s30, 4096, %s1149_s6, %s1161_s7, %s894_s26, %s894_s26, %s895_s29  }
  0x51 PF: > { %p764_p0 = scmp.ge.s32.totalorder %s891_s20, 2  ;;  %s571_s18 = sand.u32 1, %s871_s15  }
  0x52   : > { %s572_s5 = scalar_lea.sflag [#allocation3], %s571_s18 }
  0x53   : > { %p761_p1 = pnand %p764_p0, %p968_p8 }
  0x55   : > { %p762_p2 = pneg %p761_p1 }
  0x57   : > { %866 = dma.done.wait (%p762_p2), %s572_s5, 4096  }
  0x58   : > { %868 = vsyncadd (%p762_p2), %s572_s5, 4294963200  ;;  %s17_s20 = sadd.s32 1, %s891_s20   ;;  %s1213_s15 = smov %s875_s16 }
  0x59   : > { %p14_p3 = scmp.ge.s32.totalorder %s17_s20, 4   ;;  %s1214_s16 = smov %s879_s17 }
  0x5a   : > { %s1215_s17 = smov %s974_s28  ;;  %s1216_s18 = smov %s887_s19 }
  0x5b   : > { %s1217_s19 = smov %s1219_s23  ;;  %16 = sbr.rel (!%p14_p3) target bundleno = 4 (0x4), region = 74 }
  0x60   :  { %577 = vsyncpa [#allocation3], 1 }
  0x61   :  { %579 = vsyncpa [#allocation3 + $0x1], 1 }

// kernel: masked_conv_residual_block.2
= control target key start
LH: loop header
LB: loop body
LE: loop exit
PB: predicated region body
PF: predicated region fallthrough
CT: control target
= control target key end

     0   :  { %s8196_s18 = smov 0   ;;  %s8198_s19 = smov 0   ;;  %s11937_s0 = inlined_call_operand.vmem [shape: bf16[2,16,22,128], index: 0, kind: input, shape index: {}]   ;;  %s11938_s1 = inlined_call_operand.vmem [shape: bf16[2,1,3,22,128], index: 1, kind: input, shape index: {}]   ;;  %s11939_s2 = inlined_call_operand.vmem [shape: bf16[3200,128], index: 2, kind: input, shape index: {}]   ;;  %s11940_s3 = inlined_call_operand.vmem [shape: bf16[2,16,16,128], index: 3, kind: output, shape index: {0}]   ;;  %s11941_s4 = inlined_call_operand.vmem [shape: f32[2,1,1,128], index: 4, kind: output, shape index: {1}]   ;;  %s11942_s5 = inlined_call_operand.vmem [shape: f32[2,1,1,128], index: 5, kind: output, shape index: {2}]  }
   0x1   :  { %s8200_s20 = smov 0  }
   0x2 LB: > { %s28_s21 = sadd.s32 1, %s8160_s19  ;;  %p5954_p0 = scmp.ge.s32.totalorder %s8164_s20, 1  ;;  %s8164_s20 = sphi %s8200_s20, %s16_s20   ;;  %s8160_s19 = sphi %s8198_s19, %s13008_s19   ;;  %s8156_s18 = sphi %s8196_s18, %s13007_s18  }
   0x3   : > { %p30_p1 = scmp.ge.s32.totalorder %s28_s21, 2  ;;  %p234_p2 = scmp.lt.s32.totalorder %s8164_s20, 3 }
   0x5   : > { %s13010_s21 = smov (%p30_p1, %s28_s21), 0  ;;  %p235_p3 = pnand %p5954_p0, %p234_p2 }
   0x7   : > { %238 = sbr.rel (%p235_p3) target bundleno = 1060 (0x424), region = 32 }
   0xc   : > { %v7833_v0 = vld [vmem:[%s11939_s2 + $0x78] sm:$0xff]   ;;  %v7835_v2 = vld [vmem:[%s11939_s2 + $0x70] sm:$0xff]   ;;  %p294_p4 = scmp.lt.s32.totalorder %s8156_s18, 1  ;;  %v7837_v4 = vld [vmem:[%s11939_s2 + $0x68] sm:$0xff]   ;;  %vm538_vm0 = vsmask.f32 7424 }
   0xd   : > { %v7834_v1 = vld [vmem:[%s11939_s2 + $0x38] sm:$0xff]   ;;  %6375 = vmatprep.subr.bf16.mxu0 %v7833_v0  ;;  %7791 = vmatprep.subr.bf16.mxu1 %v7833_v0  ;;  %v7836_v3 = vld [vmem:[%s11939_s2 + $0x30] sm:$0xff]   ;;  %v7838_v5 = vld [vmem:[%s11939_s2 + $0x28] sm:$0xff]   ;;  %vm747_vm1 = vcmask 1046528   ;;  %vm812_vm2 = vsmask.f32 6400 }
   0xe   : > { %6376 = vmatpush3.bf16.msra.mxu0 %v7834_v1  ;;  %7799 = vmatpush3.bf16.msra.mxu1 %v7834_v1  ;;  %s13012_s18 = smov (!%p294_p4, %s8156_s18), 1  ;;  %v7839_v6 = vld [vmem:[%s11939_s2 + $0x60] sm:$0xff]   ;;  %v7841_v8 = vld [vmem:[%s11939_s2 + $0x58] sm:$0xff]   ;;  %v7843_v10 = vld [vmem:[%s11939_s2 + $0x50] sm:$0xff]   ;;  %vm1038_vm3 = vsmask.f32 5376 }
   0xf   : > { %6377 = vmatprep.subr.bf16.mxu0 %v7835_v2  ;;  %7792 = vmatprep.subr.bf16.mxu1 %v7835_v2  ;;  %s7808_s11 = smul.u32 36, %s13012_s18  ;;  %v7840_v7 = vld [vmem:[%s11939_s2 + $0x20] sm:$0xff]   ;;  %v7842_v9 = vld [vmem:[%s11939_s2 + $0x18] sm:$0xff]   ;;  %v7844_v11 = vld [vmem:[%s11939_s2 + $0x10] sm:$0xff]   ;;  %vm973_vm4 = vcmask 1045504   ;;  %vm1167_vm5 = vcmask 1044480   ;;  %s329_s27 = scalar_lea.vmem %s11941_s4, %s13012_s18 }
  0x10   : > { %s7807_s16 = smul.u32 192, %s13012_s18  ;;  %v7845_v18 = vld [vmem:[%s11939_s2 + $0x48] sm:$0xff]   ;;  %v7847_v28 = vld [vmem:[%s11939_s2 + $0x40] sm:$0xff]   ;;  %v7853_v33 = vld [vmem:[%s11939_s2 + $0xf8] sm:$0xff]   ;;  %vm1361_vm6 = vsmask.f32 256  ;;  %s335_s6 = scalar_lea.vmem %s11942_s5, %s13012_s18 }
  0x11   : > { %s8251_s25 = scalar_lea.vmem %s11938_s1, %s7808_s11  ;;  %v7846_v25 = vld [vmem:[%s11939_s2 + $0x8] sm:$0xff]   ;;  %v7848_v30 = vld [vmem:[%s11939_s2] sm:$0xff]   ;;  %v7854_v34 = vld [vmem:[%s11939_s2 + $0x178] sm:$0xff]  }
  0x12   : > { %6378 = vmatpush3.bf16.msra.mxu0 %v7836_v3  ;;  %7800 = vmatpush3.bf16.msra.mxu1 %v7836_v3  ;;  %s8259_s30 = scalar_lea.vmem %s11937_s0, %s7807_s16  ;;  %v8265_v12 = vld [vmem:[%s8251_s25] sm:$0xff]   ;;  %v8268_v13 = vld [vmem:[%s8251_s25 + $0x8] ss:$0 sps:$4 sm:$0x77]   ;;  %v8318_v36 = vld [vmem:[%s8251_s25 + $0xc] sm:$0xff]  }
  0x13   : > { %6379 = vmatprep.subr.bf16.mxu0 %v7837_v4  ;;  %7793 = vmatprep.subr.bf16.mxu1 %v7837_v4  ;;  %v8271_v14 = vshrl.u32 %v8265_v12, 16  ;;  %v8274_v15 = vshll.u32 %v8265_v12, 16  ;;  %v8277_v16 = vshll.u32 %v8268_v13, 16  ;;  %v7851_v17 = vld [vmem:[%s8259_s30 + $0x6c] sm:$0xff]   ;;  %v7861_v38 = vld [vmem:[%s8259_s30 + $0x78] sm:$0xff]   ;;  %v8332_v41 = vshrl.u32 %v8318_v36, 16 }
  0x14   : > { %v7852_v19 = vld [vmem:[%s8259_s30 + $0x74] ss:$0 sps:$4 sm:$0x77]   ;;  %v8286_v22 = vshrl.u32 %v7851_v17, 16  ;;  %v8288_v23 = vshll.u32 %v7851_v17, 16  ;;  %v7855_v39 = vld [vmem:[%s11939_s2 + $0xb8] sm:$0xff]  }
  0x15   : > { %v544_v20 = vrot.slane %v8274_v15, 1  ;;  %v549_v21 = vrot.slane %v8277_v16, 1  ;;  %v8290_v24 = vshll.u32 %v7852_v19, 16  ;;  %v8321_v37 = vld [vmem:[%s8251_s25 + $0x14] ss:$0 sps:$4 sm:$0x77]  }
  0x16   : > { %6380 = vmatpush3.bf16.msra.mxu0 %v7838_v5  ;;  %7801 = vmatpush3.bf16.msra.mxu1 %v7838_v5  ;;  %12302 = vst [vmem:[#allocation2_spill] sm:$0xff] %v8286_v22  ;;  %12303 = vst [vmem:[#allocation3_spill] sm:$0xff] %v8288_v23  ;;  %v688_v27 = vrot.slane %v8288_v23, 1  ;;  %v7856_v40 = vld [vmem:[%s11939_s2 + $0x138] sm:$0xff]   ;;  %v8335_v42 = vshll.u32 %v8318_v36, 16  ;;  %v8338_v43 = vshll.u32 %v8321_v37, 16 }
  0x17   : > { %6381 = vmatprep.subr.bf16.mxu0 %v7839_v6  ;;  %7794 = vmatprep.subr.bf16.mxu1 %v7839_v6  ;;  %12304 = vst [vmem:[#allocation4_spill] sm:$0xff] %v8290_v24  ;;  %v545_v26 = vor.u32 %v544_v20, %v8271_v14  ;;  %v11946_v29 = vrot.slane %v8290_v24, 1  ;;  %v7862_v44 = vld [vmem:[%s8259_s30 + $0x80] ss:$0 sps:$4 sm:$0x77]   ;;  %v8341_v45 = vshrl.u32 %v7861_v38, 16 }
  0x18   : > { %v689_v32 = vor.u32 %v688_v27, %v8286_v22  ;;  %v8343_v46 = vshll.u32 %v7861_v38, 16  ;;  %v7857_v47 = vld [vmem:[%s11939_s2 + $0xf0] sm:$0xff]   ;;  %v556_v48 = vrot.slane %v8335_v42, 1  ;;  %v561_v49 = vrot.slane %v8338_v43, 1  ;;  %v7863_v61 = vld [vmem:[%s11939_s2 + $0xe8] sm:$0xff]   ;;  %v7865_v2 = vld [vmem:[%s11939_s2 + $0xe0] sm:$0xff]  }
  0x19   : > { %v550_v31 = vsel %vm538_vm0, %v545_v26, %v549_v21  ;;  %12306 = vst [vmem:[#allocation6_spill] sm:$0xff] %v8341_v45  ;;  %v8351_v51 = vshll.u32 %v7862_v44, 16  ;;  %v11951_v52 = vshrl.u32 %v8268_v13, 16  ;;  %v7858_v54 = vld [vmem:[%s11939_s2 + $0xb0] sm:$0xff]   ;;  %v813_v59 = vrot.slane %v8271_v14, 1  ;;  %v7864_v63 = vld [vmem:[%s11939_s2 + $0xa8] sm:$0xff]  }
  0x1a   : > { %6382 = vmatpush3.bf16.msra.mxu0 %v7840_v7  ;;  %7802 = vmatpush3.bf16.msra.mxu1 %v7840_v7  ;;  %v8315_v35 = vsel %vm538_vm0, %v689_v32, %v11946_v29  ;;  %12307 = vst [vmem:[#allocation7_spill] sm:$0xff] %v8343_v46  ;;  %v700_v50 = vrot.slane %v8343_v46, 1  ;;  %v557_v53 = vor.u32 %v556_v48, %v8332_v41  ;;  %v7866_v58 = vld [vmem:[%s11939_s2 + $0x170] sm:$0xff]   ;;  %v814_v62 = vrot.slane %v8274_v15, 2  ;;  %v8393_v3 = vld [vmem:[%s8251_s25 + $0x18] sm:$0xff]  }
  0x1b   : > { %6383 = vmatprep.subr.bf16.mxu0 %v7841_v8  ;;  %7795 = vmatprep.subr.bf16.mxu1 %v7841_v8  ;;  %12305 = vst [vmem:[#allocation5_spill] sm:$0xff] %v8315_v35  ;;  %12308 = vst [vmem:[#allocation8_spill] sm:$0xff] %v8351_v51  ;;  %v11945_v56 = vrot.slane %v8351_v51, 1  ;;  %v7868_v0 = vld [vmem:[%s11939_s2 + $0x130] sm:$0xff]   ;;  %v8387_v1 = vrot.slane %v11951_v52, 1  ;;  %v8399_v5 = vshrl.u32 %v8393_v3, 16 }
  0x1c   : > { %3434 = vmatprep.mubr.bf16.mxu0 %v550_v31  ;;  %3530 = vmatprep.mubr.bf16.mxu1 %v8315_v35  ;;  %v701_v55 = vor.u32 %v700_v50, %v8341_v45  ;;  %v8362_v57 = vsel %vm538_vm0, %v557_v53, %v561_v49  ;;  %v8396_v4 = vld [vmem:[%s8251_s25 + $0x20] ss:$0 sps:$4 sm:$0x77]   ;;  %v8402_v6 = vshll.u32 %v8393_v3, 16  ;;  %v7871_v8 = vld [vmem:[%s8259_s30 + $0x84] sm:$0xff]   ;;  %v819_v21 = vrot.slane %v8277_v16, 2 }
  0x1d   : > { %12309 = vst [vmem:[#allocation9_spill] sm:$0xff] %v8362_v57  ;;  %12311 = vst [vmem:[#allocation11_spill] sm:$0xff] %v8396_v4  ;;  %v8405_v7 = vshll.u32 %v8396_v4, 16  ;;  %v8417_v19 = vshll.u32 %v7871_v8, 16  ;;  %v7873_v27 = vld [vmem:[%s11939_s2 + $0xd8] sm:$0xff]   ;;  %v7876_v49 = vld [vmem:[%s11939_s2 + $0x90] sm:$0xff]  }
  0x1e   : > { %6384 = vmatpush3.bf16.msra.mxu0 %v7842_v9  ;;  %7803 = vmatpush3.bf16.msra.mxu1 %v7842_v9  ;;  %v8372_v60 = vsel %vm538_vm0, %v701_v55, %v11945_v56  ;;  %v7867_v9 = vld [vmem:[%s11939_s2 + $0xa0] sm:$0xff]   ;;  %v7880_v53 = vld [vmem:[%s8259_s30 + $0x98] ss:$0 sps:$4 sm:$0x77]   ;;  %v8611_v52 = vshrl.u32 %v8396_v4, 16 }
  0x1f   : > { %6385 = vmatprep.subr.bf16.mxu0 %v7843_v10  ;;  %7796 = vmatprep.subr.bf16.mxu1 %v7843_v10  ;;  %12310 = vst [vmem:[#allocation10_spill] sm:$0xff] %v8372_v60  ;;  %12312 = vst [vmem:[#allocation12_spill] sm:$0xff] %v8405_v7  ;;  %v7872_v10 = vld [vmem:[%s8259_s30 + $0x8c] ss:$0 sps:$4 sm:$0x77]   ;;  %v712_v26 = vrot.slane %v8417_v19, 1 }
  0x20   : > { %12314 = vst [vmem:[#allocation14_spill] sm:$0xff] %v8417_v19  ;;  %v8419_v20 = vshll.u32 %v7872_v10, 16  ;;  %v8558_v56 = vld [vmem:[%s8259_s30 + $0x18] sm:$0xff]   ;;  %12341 = vst [vmem:[#allocation41_spill] sm:$0xff] %v8611_v52 }
  0x21   : > { %v8742_v46 = vld [vmem:[%s8259_s30 + $0x50] ss:$0 sps:$4 sm:$0x77]   ;;  %v8782_v45 = vld [vmem:[%s8259_s30 + $0x54] sm:$0xff]  }
  0x22   : > { %6386 = vmatpush3.bf16.msra.mxu0 %v7844_v11  ;;  %7804 = vmatpush3.bf16.msra.mxu1 %v7844_v11  ;;  %v568_v11 = vrot.slane %v8402_v6, 1  ;;  %12315 = vst [vmem:[#allocation15_spill] sm:$0xff] %v8419_v20  ;;  %12366 = vst [vmem:[#allocation62_spill] sm:$0xff] %v8742_v46 }
  0x23   : > { %6387 = vmatprep.subr.bf16.mxu0 %v7845_v18  ;;  %7797 = vmatprep.subr.bf16.mxu1 %v7845_v18  ;;  %v8415_v18 = vshrl.u32 %v7871_v8, 16 }
  0x25   : > { %12313 = vst [vmem:[#allocation13_spill] sm:$0xff] %v8415_v18  ;;  %v713_v32 = vor.u32 %v712_v26, %v8415_v18  ;;  %v7912_v18 = vld [vmem:[%s11939_s2 + $0x108] sm:$0xff]  }
  0x26   : > { %6388 = vmatpush3.bf16.msra.mxu0 %v7846_v25  ;;  %7805 = vmatpush3.bf16.msra.mxu1 %v7846_v25  ;;  %v569_v25 = vor.u32 %v568_v11, %v8399_v5 }
  0x27   : > { %6389 = vmatprep.subr.bf16.mxu0 %v7847_v28  ;;  %7798 = vmatprep.subr.bf16.mxu1 %v7847_v28  ;;  %v11944_v28 = vrot.slane %v8419_v20, 1 }
  0x29   : > { %v8452_v44 = vsel %vm538_vm0, %v713_v32, %v11944_v28  ;;  %v7890_v28 = vld [vmem:[%s11939_s2 + $0x1b8] sm:$0xff]  }
  0x2a   : > { %6390 = vmatpush3.bf16.msra.mxu0 %v7848_v30  ;;  %7806 = vmatpush3.bf16.msra.mxu1 %v7848_v30  ;;  %v7874_v30 = vld [vmem:[%s11939_s2 + $0x98] sm:$0xff]   ;;  %12318 = vst [vmem:[#allocation18_spill] sm:$0xff] %v8452_v44 }
  0x2b   : > { %6487 = vmatprep.subr.bf16.mxu1 %v7853_v33  ;;  %6599 = vmatprep.subr.bf16.mxu0 %v7854_v34  ;;  %v7875_v33 = vld [vmem:[%s11939_s2 + $0xd0] sm:$0xff]   ;;  %v8441_v34 = vld [vmem:[%s8259_s30] sm:$0xff]  }
  0x2c   : > { %v8458_v48 = vshll.u32 %v8441_v34, 16 }
  0x2d   : > { %3435 = vmatmul.mubr.bf16.vlgmr.msra.gmra.mxu0 %v8265_v12  ;;  %3531 = vmatmul.mubr.bf16.vlgmr.msra.gmra.mxu1 %v7851_v17  ;;  %v11948_v17 = vrot.slane %v8405_v7, 1 }
  0x2e   : > { %6488 = vmatpush3.bf16.msra.mxu1 %v7855_v39  ;;  %6600 = vmatpush3.bf16.msra.mxu0 %v7856_v40  ;;  %v8446_v39 = vld [vmem:[%s8259_s30 + $0x8] ss:$0 sps:$4 sm:$0x77]   ;;  %v7879_v40 = vld [vmem:[%s8259_s30 + $0x90] sm:$0xff]   ;;  %12320 = vst [vmem:[#allocation20_spill] sm:$0xff] %v8458_v48 }
  0x2f   : > { %6489 = vmatprep.subr.bf16.mxu1 %v7857_v47  ;;  %3442 = vmatprep.mubr.bf16.mxu0 %v8362_v57  ;;  %v8434_v31 = vsel %vm538_vm0, %v569_v25, %v11948_v17  ;;  %12317 = vst [vmem:[#allocation17_spill] sm:$0xff] %v8446_v39  ;;  %v8455_v47 = vshrl.u32 %v8441_v34, 16  ;;  %v8465_v50 = vshll.u32 %v8446_v39, 16  ;;  %v8470_v55 = vshll.u32 %v7879_v40, 16  ;;  %v7883_v25 = vld [vmem:[%s11939_s2 + $0x88] sm:$0xff]   ;;  %v8683_v57 = vld [vmem:[%s8259_s30 + $0x3c] sm:$0xff]  }
  0x30   : > { %3538 = vmatprep.mubr.bf16.mxu1 %v8372_v60  ;;  %6601 = vmatprep.subr.bf16.mxu0 %v7866_v58  ;;  %12316 = vst [vmem:[#allocation16_spill] sm:$0xff] %v8434_v31  ;;  %v580_v58 = vrot.slane %v8458_v48, 1  ;;  %v8562_v17 = vld [vmem:[%s8259_s30 + $0x20] ss:$0 sps:$4 sm:$0x77]   ;;  %v8637_v60 = vld [vmem:[%s8259_s30 + $0x30] sm:$0xff]  }
  0x31   : > { %12319 = vst [vmem:[#allocation19_spill] sm:$0xff] %v8455_v47  ;;  %12321 = vst [vmem:[#allocation21_spill] sm:$0xff] %v8465_v50 }
  0x32   : > { %6490 = vmatpush3.bf16.msra.mxu1 %v7858_v54  ;;  %6602 = vmatpush3.bf16.msra.mxu0 %v7868_v0  ;;  %v8468_v54 = vshrl.u32 %v7879_v40, 16  ;;  %12323 = vst [vmem:[#allocation23_spill] sm:$0xff] %v8470_v55  ;;  %v724_v0 = vrot.slane %v8470_v55, 1  ;;  %12331 = vst [vmem:[#allocation31_spill] sm:$0xff] %v8562_v17 }
  0x33   : > { %6491 = vmatprep.subr.bf16.mxu1 %v7863_v61  ;;  %v7881_v61 = vld [vmem:[%s11939_s2 + $0xc8] sm:$0xff]  }
  0x34   : > { %12322 = vst [vmem:[#allocation22_spill] sm:$0xff] %v8468_v54  ;;  %v725_v10 = vor.u32 %v724_v0, %v8468_v54  ;;  %v823_v0 = vrot.slane %v8335_v42, 2 }
  0x35   : > { %3443 = vmatmul.mubr.bf16.gmra.mxu0 %v8318_v36  ;;  %3539 = vmatmul.mubr.bf16.gmra.mxu1 %v7861_v38  ;;  %v748_v38 = vrot.slane %v8265_v12, 1 }
  0x36   : > { %6492 = vmatpush3.bf16.msra.mxu1 %v7864_v63  ;;  %3450 = vmatprep.mubr.bf16.mxu0 %v8434_v31  ;;  %v11947_v63 = vrot.slane %v8465_v50, 1  ;;  %v7904_v31 = vld [vmem:[%s11939_s2 + $0x110] sm:$0xff]  }
  0x37   : > { %6493 = vmatprep.subr.bf16.mxu1 %v7865_v2  ;;  %3546 = vmatprep.mubr.bf16.mxu1 %v8452_v44  ;;  %v8479_v2 = vshll.u32 %v7880_v53, 16  ;;  %v815_v53 = vor.u32 %v814_v62, %v813_v59  ;;  %v7886_v59 = vld [vmem:[%s11939_s2 + $0x80] sm:$0xff]  }
  0x39   : > { %12324 = vst [vmem:[#allocation24_spill] sm:$0xff] %v8479_v2  ;;  %v11943_v11 = vrot.slane %v8479_v2, 1 }
  0x3a   : > { %6494 = vmatpush3.bf16.msra.mxu1 %v7867_v9  ;;  %v7882_v9 = vld [vmem:[%s11939_s2 + $0x168] sm:$0xff]  }
  0x3b   : > { %6495 = vmatprep.subr.bf16.mxu1 %v7873_v27  ;;  %6603 = vmatprep.subr.bf16.mxu0 %v7882_v9  ;;  %v7884_v27 = vld [vmem:[%s11939_s2 + $0x128] sm:$0xff]   ;;  %v8503_v32 = vsel %vm538_vm0, %v725_v10, %v11943_v11  ;;  %v11949_v9 = vshrl.u32 %v8321_v37, 16  ;;  %v8521_v10 = vld [vmem:[%s8259_s30 + $0x14] ss:$0 sps:$4 sm:$0x77]  }
  0x3c   : > { %12326 = vst [vmem:[#allocation26_spill] sm:$0xff] %v8503_v32  ;;  %6604 = vmatpush3.bf16.msra.mxu0 %v7884_v27  ;;  %12327 = vst [vmem:[#allocation27_spill] sm:$0xff] %v8521_v10 }
  0x3d   : > { %3451 = vmatmul.mubr.bf16.gmra.mxu0 %v8393_v3  ;;  %3547 = vmatmul.mubr.bf16.gmra.mxu1 %v7871_v8  ;;  %v581_v8 = vor.u32 %v580_v58, %v8455_v47  ;;  %v820_v58 = vor.u32 %v819_v21, %v8387_v1  ;;  %v8534_v21 = vshll.u32 %v8521_v10, 16 }
  0x3e   : > { %6496 = vmatpush3.bf16.msra.mxu1 %v7874_v30  ;;  %v749_v30 = vrot.slane %v8268_v13, 1  ;;  %3554 = vmatprep.mubr.bf16.mxu1 %v8503_v32  ;;  %v837_v32 = vrot.slane %v8405_v7, 2 }
  0x3f   : > { %6497 = vmatprep.subr.bf16.mxu1 %v7875_v33  ;;  %v8493_v26 = vsel %vm538_vm0, %v581_v8, %v11947_v63  ;;  %v7885_v33 = vld [vmem:[%s11939_s2 + $0xc0] sm:$0xff]   ;;  %v8518_v8 = vld [vmem:[%s8259_s30 + $0xc] sm:$0xff]   ;;  %12330 = vst [vmem:[#allocation30_spill] sm:$0xff] %v8534_v21  ;;  %v11950_v11 = vrot.slane %v8534_v21, 1  ;;  %v828_v63 = vrot.slane %v8338_v43, 2 }
  0x40   : > { %12325 = vst [vmem:[#allocation25_spill] sm:$0xff] %v8493_v26  ;;  %3458 = vmatprep.mubr.bf16.mxu0 %v8493_v26  ;;  %v8528_v62 = vshrl.u32 %v8518_v8, 16  ;;  %v8531_v1 = vshll.u32 %v8518_v8, 16  ;;  %v836_v26 = vrot.slane %v8611_v52, 1 }
  0x42   : > { %6498 = vmatpush3.bf16.msra.mxu1 %v7876_v49  ;;  %v822_v49 = vrot.slane %v8332_v41, 1  ;;  %12328 = vst [vmem:[#allocation28_spill] sm:$0xff] %v8528_v62  ;;  %12329 = vst [vmem:[#allocation29_spill] sm:$0xff] %v8531_v1  ;;  %v592_v27 = vrot.slane %v8531_v1, 1 }
  0x43   : > { %6499 = vmatprep.subr.bf16.mxu1 %v7881_v61  ;;  %v821_v61 = vsel %vm812_vm2, %v815_v53, %v820_v58  ;;  %v7892_v53 = vld [vmem:[%s11939_s2 + $0x120] sm:$0xff]  }
  0x44   : > { %v593_v58 = vor.u32 %v592_v27, %v8528_v62  ;;  %v824_v29 = vor.u32 %v823_v0, %v822_v49  ;;  %v8567_v27 = vld [vmem:[%s8259_s30 + $0x24] sm:$0xff]   ;;  %v8585_v0 = vld [vmem:[%s8259_s30 + $0x2c] ss:$0 sps:$4 sm:$0x77]  }
  0x45   : > { %3459 = vmatmul.mubr.bf16.gmra.mxu0 %v8441_v34  ;;  %3555 = vmatmul.mubr.bf16.gmra.mxu1 %v7879_v40  ;;  %v7889_v40 = vld [vmem:[%s11939_s2 + $0x1f8] sm:$0xff]   ;;  %12336 = vst [vmem:[#allocation36_spill] sm:$0xff] %v8585_v0 }
  0x46   : > { %6500 = vmatpush3.bf16.msra.mxu1 %v7883_v25  ;;  %3595 = vmatprep.mubr.bf16.mxu1 %v821_v61  ;;  %v827_v25 = vrot.slane %v11949_v9, 1  ;;  %v750_v61 = vsel %vm747_vm1, %v748_v38, %v749_v30  ;;  %v751_v9 = vrot.slane %v8318_v36, 1  ;;  %v8572_v12 = vsel %vm538_vm0, %v593_v58, %v11950_v11  ;;  %v7898_v58 = vld [vmem:[%s11939_s2 + $0x1f0] sm:$0xff]  }
  0x47   : > { %6501 = vmatprep.subr.bf16.mxu1 %v7885_v33  ;;  %v7891_v33 = vld [vmem:[%s11939_s2 + $0x160] sm:$0xff]   ;;  %12332 = vst [vmem:[#allocation32_spill] sm:$0xff] %v8572_v12  ;;  %v8575_v38 = vshrl.u32 %v8558_v56, 16  ;;  %v8578_v30 = vshll.u32 %v8558_v56, 16  ;;  %3466 = vmatprep.mubr.bf16.mxu0 %v8572_v12  ;;  %v8582_v36 = vshll.u32 %v8562_v17, 16 }
  0x48   : > { %6605 = vmatprep.subr.bf16.mxu0 %v7891_v33  ;;  %v829_v49 = vor.u32 %v828_v63, %v827_v25  ;;  %v8596_v63 = vshll.u32 %v8567_v27, 16  ;;  %v7897_v25 = vld [vmem:[%s11939_s2 + $0x158] sm:$0xff]  }
  0x49   : > { %6606 = vmatpush3.bf16.msra.mxu0 %v7892_v53  ;;  %12333 = vst [vmem:[#allocation33_spill] sm:$0xff] %v8575_v38  ;;  %12334 = vst [vmem:[#allocation34_spill] sm:$0xff] %v8578_v30  ;;  %v8593_v53 = vshrl.u32 %v8567_v27, 16  ;;  %v12343_v35 = vrot.slane %v8582_v36, 1 }
  0x4a   : > { %6502 = vmatpush3.bf16.msra.mxu1 %v7886_v59  ;;  %v752_v59 = vrot.slane %v8321_v37, 1  ;;  %12335 = vst [vmem:[#allocation35_spill] sm:$0xff] %v8582_v36  ;;  %v8590_v33 = vsel %vm812_vm2, %v824_v29, %v829_v49  ;;  %12339 = vst [vmem:[#allocation39_spill] sm:$0xff] %v8596_v63  ;;  %v831_v29 = vrot.slane %v8399_v5, 1  ;;  %v616_v11 = vrot.slane %v8596_v63, 1  ;;  %6607 = vmatprep.subr.bf16.mxu0 %v7897_v25 }
  0x4b   : > { %6711 = vmatprep.subr.bf16.mxu1 %v7889_v40  ;;  %v604_v40 = vrot.slane %v8578_v30, 1  ;;  %12337 = vst [vmem:[#allocation37_spill] sm:$0xff] %v8590_v33  ;;  %12338 = vst [vmem:[#allocation38_spill] sm:$0xff] %v8593_v53 }
  0x4c   : > { %v8618_v44 = vsel %vm747_vm1, %v751_v9, %v752_v59  ;;  %v617_v25 = vor.u32 %v616_v11, %v8593_v53  ;;  %v7900_v9 = vld [vmem:[%s11939_s2 + $0x1b0] sm:$0xff]   ;;  %v754_v59 = vrot.slane %v8393_v3, 1  ;;  %v8644_v11 = vor.u32 %v837_v32, %v836_v26 }
  0x4d   : > { %3596 = vmatmul.mubr.bf16.vlgmr.msra.gmra.mxu1 %v750_v61  ;;  %3467 = vmatmul.mubr.bf16.gmra.mxu0 %v8518_v8  ;;  %v832_v61 = vrot.slane %v8402_v6, 2  ;;  %v605_v49 = vor.u32 %v604_v40, %v8575_v38  ;;  %12342 = vst [vmem:[#allocation42_spill] sm:$0xff] %v8618_v44  ;;  %v7899_v40 = vld [vmem:[%s11939_s2 + $0x118] sm:$0xff]   ;;  %v8653_v3 = vshrl.u32 %v8637_v60, 16  ;;  %v8661_v26 = vshll.u32 %v8637_v60, 16 }
  0x4e   : > { %6712 = vmatpush3.bf16.msra.mxu1 %v7890_v28  ;;  %3603 = vmatprep.mubr.bf16.mxu1 %v8590_v33  ;;  %v8604_v28 = vshll.u32 %v8585_v0, 16  ;;  %12347 = vst [vmem:[#allocation45_spill] sm:$0xff] %v8644_v11  ;;  %v841_v32 = vrot.slane %v8458_v48, 2 }
  0x4f   : > { %v8627_v33 = vsel %vm538_vm0, %v605_v49, %v12343_v35  ;;  %v833_v12 = vor.u32 %v832_v61, %v831_v29  ;;  %6713 = vmatprep.subr.bf16.mxu1 %v7898_v58  ;;  %6608 = vmatpush3.bf16.msra.mxu0 %v7899_v40  ;;  %v840_v29 = vrot.slane %v8455_v47, 1  ;;  %v8650_v61 = vld [vmem:[%s8259_s30 + $0x38] ss:$0 sps:$4 sm:$0x77]   ;;  %12349 = vst [vmem:[#allocation47_spill] sm:$0xff] %v8653_v3  ;;  %12351 = vst [vmem:[#allocation49_spill] sm:$0xff] %v8661_v26 }
  0x50   : > { %12340 = vst [vmem:[#allocation40_spill] sm:$0xff] %v8604_v28  ;;  %12344 = vst [vmem:[#allocation43_spill] sm:$0xff] %v8627_v33  ;;  %3474 = vmatprep.mubr.bf16.mxu0 %v8627_v33  ;;  %v12345_v35 = vrot.slane %v8604_v28, 1  ;;  %v628_v58 = vrot.slane %v8661_v26, 1 }
  0x51   : > { %12348 = vst [vmem:[#allocation46_spill] sm:$0xff] %v8650_v61  ;;  %v8658_v40 = vsel %vm812_vm2, %v833_v12, %v8644_v11  ;;  %v8673_v12 = vshll.u32 %v8650_v61, 16  ;;  %v842_v11 = vor.u32 %v841_v32, %v840_v29  ;;  %v849_v29 = vrot.slane %v8528_v62, 1  ;;  %v7907_v32 = vld [vmem:[%s11939_s2 + $0x1e8] sm:$0xff]  }
  0x52   : > { %v8642_v49 = vsel %vm538_vm0, %v617_v25, %v12345_v35  ;;  %6714 = vmatpush3.bf16.msra.mxu1 %v7900_v9  ;;  %12350 = vst [vmem:[#allocation48_spill] sm:$0xff] %v8658_v40  ;;  %v8665_v25 = vshrl.u32 %v8446_v39, 16  ;;  %v7903_v9 = vld [vmem:[%s11939_s2 + $0x150] sm:$0xff]   ;;  %v846_v35 = vrot.slane %v8465_v50, 2  ;;  %v629_v2 = vor.u32 %v628_v58, %v8653_v3 }
  0x53   : > { %12346 = vst [vmem:[#allocation44_spill] sm:$0xff] %v8642_v49  ;;  %12353 = vst [vmem:[#allocation51_spill] sm:$0xff] %v8673_v12  ;;  %6609 = vmatprep.subr.bf16.mxu0 %v7903_v9  ;;  %v8698_v9 = vld [vmem:[%s8259_s30 + $0x44] ss:$0 sps:$4 sm:$0x77]   ;;  %6715 = vmatprep.subr.bf16.mxu1 %v7907_v32  ;;  %v8748_v32 = vshrl.u32 %v8562_v17, 16 }
  0x54   : > { %12352 = vst [vmem:[#allocation50_spill] sm:$0xff] %v8665_v25  ;;  %v845_v33 = vrot.slane %v8665_v25, 1  ;;  %6610 = vmatpush3.bf16.msra.mxu0 %v7904_v31  ;;  %12357 = vst [vmem:[#allocation54_spill] sm:$0xff] %v8698_v9  ;;  %v8723_v20 = vshll.u32 %v8698_v9, 16 }
  0x55   : > { %3604 = vmatmul.mubr.bf16.gmra.mxu1 %v8618_v44  ;;  %3475 = vmatmul.mubr.bf16.gmra.mxu0 %v8558_v56  ;;  %12368 = vst [vmem:[#allocation64_spill] sm:$0xff] %v8748_v32 }
  0x56   : > { %3482 = vmatprep.mubr.bf16.mxu0 %v8642_v49  ;;  %3611 = vmatprep.mubr.bf16.mxu1 %v8658_v40  ;;  %v12354_v40 = vrot.slane %v8396_v4, 1  ;;  %v8691_v55 = vor.u32 %v846_v35, %v845_v33  ;;  %v8701_v49 = vshrl.u32 %v8683_v57, 16  ;;  %v8704_v4 = vshll.u32 %v8683_v57, 16  ;;  %12364 = vst [vmem:[#allocation60_spill] sm:$0xff] %v8723_v20 }
  0x57   : > { %v12360_v33 = vrot.slane %v8673_v12, 1  ;;  %v855_v35 = vrot.slane %v8534_v21, 2 }
  0x58   : > { %v8688_v44 = vsel %vm747_vm1, %v754_v59, %v12354_v40  ;;  %12356 = vst [vmem:[#allocation53_spill] sm:$0xff] %v8691_v55  ;;  %12358 = vst [vmem:[#allocation55_spill] sm:$0xff] %v8701_v49  ;;  %v850_v59 = vrot.slane %v8531_v1, 2  ;;  %v8714_v58 = vsel %vm812_vm2, %v842_v11, %v8691_v55  ;;  %v8717_v40 = vshrl.u32 %v8521_v10, 16  ;;  %v8734_v55 = vld [vmem:[%s8259_s30 + $0x48] sm:$0xff]  }
  0x59   : > { %12355 = vst [vmem:[#allocation52_spill] sm:$0xff] %v8688_v44  ;;  %12359 = vst [vmem:[#allocation56_spill] sm:$0xff] %v8704_v4  ;;  %v8710_v31 = vsel %vm538_vm0, %v629_v2, %v12360_v33  ;;  %v640_v54 = vrot.slane %v8704_v4, 1  ;;  %v7908_v2 = vld [vmem:[%s11939_s2 + $0x1a8] sm:$0xff]   ;;  %v757_v11 = vrot.slane %v8441_v34, 1  ;;  %v8745_v34 = vshll.u32 %v8734_v55, 16 }
  0x5a   : > { %12361 = vst [vmem:[#allocation57_spill] sm:$0xff] %v8710_v31  ;;  %12362 = vst [vmem:[#allocation58_spill] sm:$0xff] %v8714_v58  ;;  %v854_v33 = vrot.slane %v8717_v40, 1  ;;  %6716 = vmatpush3.bf16.msra.mxu1 %v7908_v2  ;;  %v858_v2 = vrot.slane %v8575_v38, 1 }
  0x5b   : > { %12363 = vst [vmem:[#allocation59_spill] sm:$0xff] %v8717_v40  ;;  %v641_v19 = vor.u32 %v640_v54, %v8701_v49  ;;  %12367 = vst [vmem:[#allocation63_spill] sm:$0xff] %v8745_v34  ;;  %v652_v38 = vrot.slane %v8745_v34, 1 }
  0x5c   : > { %v8739_v51 = vor.u32 %v855_v35, %v854_v33  ;;  %v8759_v35 = vshrl.u32 %v8734_v55, 16  ;;  %v859_v33 = vrot.slane %v8578_v30, 2 }
  0x5d   : > { %3612 = vmatmul.mubr.bf16.gmra.mxu1 %v8688_v44  ;;  %3483 = vmatmul.mubr.bf16.gmra.mxu0 %v8567_v27  ;;  %v851_v44 = vor.u32 %v850_v59, %v849_v29  ;;  %v7911_v29 = vld [vmem:[%s11939_s2 + $0x148] sm:$0xff]   ;;  %v12369_v59 = vrot.slane %v8446_v39, 1  ;;  %v8771_v39 = vshll.u32 %v8742_v46, 16 }
  0x5e   : > { %3619 = vmatprep.mubr.bf16.mxu1 %v8714_v58  ;;  %3490 = vmatprep.mubr.bf16.mxu0 %v8710_v31  ;;  %12365 = vst [vmem:[#allocation61_spill] sm:$0xff] %v8739_v51  ;;  %12371 = vst [vmem:[#allocation66_spill] sm:$0xff] %v8759_v35  ;;  %v12374_v31 = vrot.slane %v8723_v20, 1 }
  0x5f   : > { %v8756_v54 = vsel %vm747_vm1, %v757_v11, %v12369_v59  ;;  %v8768_v58 = vsel %vm812_vm2, %v851_v44, %v8739_v51  ;;  %12373 = vst [vmem:[#allocation68_spill] sm:$0xff] %v8771_v39  ;;  %v863_v11 = vrot.slane %v8748_v32, 1  ;;  %v864_v59 = vrot.slane %v8582_v36, 2  ;;  %6611 = vmatprep.subr.bf16.mxu0 %v7911_v29  ;;  %v8790_v51 = vld [vmem:[%s8259_s30 + $0x5c] ss:$0 sps:$4 sm:$0x77]  }
  0x60   : > { %12370 = vst [vmem:[#allocation65_spill] sm:$0xff] %v8756_v54  ;;  %12372 = vst [vmem:[#allocation67_spill] sm:$0xff] %v8768_v58  ;;  %v8778_v30 = vsel %vm538_vm0, %v641_v19, %v12374_v31  ;;  %6612 = vmatpush3.bf16.msra.mxu0 %v7912_v18  ;;  %v760_v44 = vrot.slane %v8518_v8, 1  ;;  %v8793_v19 = vshrl.u32 %v8585_v0, 16  ;;  %v860_v31 = vor.u32 %v859_v33, %v858_v2  ;;  %v7915_v18 = vld [vmem:[%s11939_s2 + $0x1e0] sm:$0xff]  }
  0x61   : > { %12375 = vst [vmem:[#allocation69_spill] sm:$0xff] %v8778_v30  ;;  %12376 = vst [vmem:[#allocation70_spill] sm:$0xff] %v8790_v51  ;;  %v8797_v36 = vor.u32 %v864_v59, %v863_v11  ;;  %v8804_v8 = vshll.u32 %v8782_v45, 16  ;;  %v867_v29 = vrot.slane %v8593_v53, 1  ;;  %v868_v32 = vrot.slane %v8596_v63, 2  ;;  %v7917_v11 = vld [vmem:[%s11939_s2 + $0x140] sm:$0xff]   ;;  %6717 = vmatprep.subr.bf16.mxu1 %v7915_v18 }
  0x62   : > { %12377 = vst [vmem:[#allocation71_spill] sm:$0xff] %v8793_v19  ;;  %v8812_v2 = vshll.u32 %v8790_v51, 16  ;;  %v873_v33 = vrot.slane %v8604_v28, 2  ;;  %v12382_v59 = vrot.slane %v8521_v10, 1  ;;  %v872_v63 = vrot.slane %v8793_v19, 1  ;;  %v7918_v28 = vld [vmem:[%s11939_s2 + $0x100] sm:$0xff]   ;;  %6613 = vmatprep.subr.bf16.mxu0 %v7917_v11 }
  0x63   : > { %12378 = vst [vmem:[#allocation72_spill] sm:$0xff] %v8797_v36  ;;  %12380 = vst [vmem:[#allocation74_spill] sm:$0xff] %v8804_v8  ;;  %v8832_v53 = vsel %vm812_vm2, %v860_v31, %v8797_v36  ;;  %v12385_v21 = vrot.slane %v8771_v39, 1  ;;  %v8841_v18 = vld [vmem:[%s8259_s30 + $0x60] sm:$0xff]   ;;  %v763_v31 = vrot.slane %v8558_v56, 1 }
  0x64   : > { %12381 = vst [vmem:[#allocation75_spill] sm:$0xff] %v8812_v2  ;;  %12384 = vst [vmem:[#allocation77_spill] sm:$0xff] %v8832_v53  ;;  %6614 = vmatpush3.bf16.msra.mxu0 %v7918_v28  ;;  %v8850_v11 = vor.u32 %v873_v33, %v872_v63  ;;  %v8853_v28 = vshrl.u32 %v8650_v61, 16  ;;  %v8863_v56 = vshll.u32 %v8841_v18, 16  ;;  %v7922_v63 = vld [vmem:[%s11939_s2 + $0x278] sm:$0xff]   ;;  %v876_v33 = vrot.slane %v8653_v3, 1 }
  0x65   : > { %3620 = vmatmul.mubr.bf16.gmra.mxu1 %v8756_v54  ;;  %3491 = vmatmul.mubr.bf16.gmra.mxu0 %v8637_v60  ;;  %v8800_v54 = vshrl.u32 %v8782_v45, 16  ;;  %12387 = vst [vmem:[#allocation79_spill] sm:$0xff] %v8841_v18 }
  0x66   : > { %3627 = vmatprep.mubr.bf16.mxu1 %v8768_v58  ;;  %3498 = vmatprep.mubr.bf16.mxu0 %v8778_v30  ;;  %v653_v58 = vor.u32 %v652_v38, %v8759_v35  ;;  %v7916_v38 = vld [vmem:[%s11939_s2 + $0x1a0] sm:$0xff]   ;;  %v8824_v30 = vsel %vm747_vm1, %v760_v44, %v12382_v59  ;;  %v664_v44 = vrot.slane %v8804_v8, 1  ;;  %12388 = vst [vmem:[#allocation80_spill] sm:$0xff] %v8850_v11  ;;  %12389 = vst [vmem:[#allocation81_spill] sm:$0xff] %v8853_v28  ;;  %v7921_v59 = vld [vmem:[%s11939_s2 + $0x1d8] sm:$0xff]  }
  0x67   : > { %12379 = vst [vmem:[#allocation73_spill] sm:$0xff] %v8800_v54  ;;  %12383 = vst [vmem:[#allocation76_spill] sm:$0xff] %v8824_v30  ;;  %6718 = vmatpush3.bf16.msra.mxu1 %v7916_v38  ;;  %v12034_v38 = vrot.slane %v8562_v17, 1  ;;  %6823 = vmatprep.subr.bf16.mxu0 %v7922_v63  ;;  %v12047_v63 = vrot.slane %v8585_v0, 1 }
  0x68   : > { %v8837_v10 = vsel %vm538_vm0, %v653_v58, %v12385_v21  ;;  %v869_v58 = vor.u32 %v868_v32, %v867_v29  ;;  %v665_v36 = vor.u32 %v664_v44, %v8800_v54  ;;  %12391 = vst [vmem:[#allocation83_spill] sm:$0xff] %v8863_v56  ;;  %6719 = vmatprep.subr.bf16.mxu1 %v7921_v59  ;;  %v7923_v32 = vld [vmem:[%s11939_s2 + $0x198] sm:$0xff]   ;;  %v877_v44 = vrot.slane %v8661_v26, 2 }
  0x69   : > { %12386 = vst [vmem:[#allocation78_spill] sm:$0xff] %v8837_v10  ;;  %v8874_v29 = vsel %vm747_vm1, %v763_v31, %v12034_v38  ;;  %v8883_v21 = vshrl.u32 %v8841_v18, 16  ;;  %v7925_v31 = vld [vmem:[%s11939_s2 + $0x1d0] sm:$0xff]   ;;  %v12395_v38 = vrot.slane %v8812_v2, 1 }
  0x6a   : > { %12392 = vst [vmem:[#allocation84_spill] sm:$0xff] %v8874_v29  ;;  %v8880_v59 = vsel %vm812_vm2, %v869_v58, %v8850_v11  ;;  %v676_v58 = vrot.slane %v8863_v56, 1 }
  0x6b   : > { %12393 = vst [vmem:[#allocation85_spill] sm:$0xff] %v8880_v59  ;;  %12394 = vst [vmem:[#allocation86_spill] sm:$0xff] %v8883_v21  ;;  %6720 = vmatpush3.bf16.msra.mxu1 %v7923_v32  ;;  %v8893_v17 = vsel %vm538_vm0, %v665_v36, %v12395_v38  ;;  %v8905_v32 = vshrl.u32 %v8698_v9, 16  ;;  %v878_v36 = vor.u32 %v877_v44, %v876_v33  ;;  %v1039_v33 = vrot.slane %v8271_v14, 2  ;;  %v7929_v14 = vld [vmem:[%s11939_s2 + $0x1c8] sm:$0xff]  }
  0x6c   : > { %12396 = vst [vmem:[#allocation87_spill] sm:$0xff] %v8893_v17  ;;  %6721 = vmatprep.subr.bf16.mxu1 %v7925_v31  ;;  %v1040_v44 = vrot.slane %v8274_v15, 3  ;;  %v1043_v31 = vrot.slane %v8277_v16, 3  ;;  %v12050_v15 = vrot.slane %v8650_v61, 1 }
  0x6d   : > { %3628 = vmatmul.mubr.bf16.gmra.mxu1 %v8824_v30  ;;  %3499 = vmatmul.mubr.bf16.gmra.mxu0 %v8683_v57  ;;  %v882_v30 = vrot.slane %v8673_v12, 2  ;;  %v766_v12 = vrot.slane %v8567_v27, 1  ;;  %12398 = vst [vmem:[#allocation89_spill] sm:$0xff] %v8905_v32  ;;  %v677_v27 = vor.u32 %v676_v58, %v8883_v21 }
  0x6e   : > { %3635 = vmatprep.mubr.bf16.mxu1 %v8832_v53  ;;  %3506 = vmatprep.mubr.bf16.mxu0 %v8837_v10  ;;  %v8860_v53 = vld [vmem:[%s8259_s30 + $0x68] ss:$0 sps:$4 sm:$0x77]   ;;  %v881_v10 = vrot.slane %v8853_v28, 1  ;;  %v885_v28 = vrot.slane %v8701_v49, 1 }
  0x6f   : > { %12390 = vst [vmem:[#allocation82_spill] sm:$0xff] %v8860_v53  ;;  %v8897_v11 = vshll.u32 %v8860_v53, 16 }
  0x70   : > { %v8908_v38 = vor.u32 %v882_v30, %v881_v10  ;;  %v890_v10 = vrot.slane %v8905_v32, 1  ;;  %v891_v30 = vrot.slane %v8723_v20, 2 }
  0x71   : > { %12397 = vst [vmem:[#allocation88_spill] sm:$0xff] %v8897_v11  ;;  %v12403_v0 = vrot.slane %v8897_v11, 1 }
  0x72   : > { %12399 = vst [vmem:[#allocation90_spill] sm:$0xff] %v8908_v38  ;;  %v8928_v58 = vsel %vm812_vm2, %v878_v36, %v8908_v38  ;;  %v8950_v36 = vor.u32 %v891_v30, %v890_v10  ;;  %v8953_v38 = vshrl.u32 %v8742_v46, 16  ;;  %v894_v10 = vrot.slane %v8759_v35, 1 }
  0x73   : > { %12401 = vst [vmem:[#allocation92_spill] sm:$0xff] %v8928_v58  ;;  %v895_v30 = vrot.slane %v8745_v34, 2 }
  0x74   : > { %12405 = vst [vmem:[#allocation94_spill] sm:$0xff] %v8950_v36  ;;  %12406 = vst [vmem:[#allocation95_spill] sm:$0xff] %v8953_v38 }
  0x75   : > { %3636 = vmatmul.mubr.bf16.gmra.mxu1 %v8874_v29  ;;  %3507 = vmatmul.mubr.bf16.gmra.mxu0 %v8734_v55  ;;  %v7927_v29 = vld [vmem:[%s11939_s2 + $0x190] sm:$0xff]  }
  0x76   : > { %3643 = vmatprep.mubr.bf16.mxu1 %v8880_v59  ;;  %3514 = vmatprep.mubr.bf16.mxu0 %v8893_v17  ;;  %v8918_v59 = vsel %vm747_vm1, %v766_v12, %v12047_v63  ;;  %v886_v17 = vrot.slane %v8704_v4, 2  ;;  %v12402_v12 = vshrl.u32 %v8268_v13, 16  ;;  %v769_v13 = vrot.slane %v8637_v60, 1 }
  0x77   : > { %12400 = vst [vmem:[#allocation91_spill] sm:$0xff] %v8918_v59  ;;  %6722 = vmatpush3.bf16.msra.mxu1 %v7927_v29  ;;  %v8936_v29 = vsel %vm538_vm0, %v677_v27, %v12403_v0  ;;  %v7931_v0 = vld [vmem:[%s11939_s2 + $0x188] sm:$0xff]   ;;  %v1041_v27 = vor.u32 %v1040_v44, %v1039_v33  ;;  %v899_v33 = vrot.slane %v8953_v38, 1  ;;  %v900_v44 = vrot.slane %v8771_v39, 2 }
  0x78   : > { %v1042_v63 = vrot.slane %v12402_v12, 2  ;;  %12404 = vst [vmem:[#allocation93_spill] sm:$0xff] %v8936_v29  ;;  %v887_v16 = vor.u32 %v886_v17, %v885_v28  ;;  %6723 = vmatprep.subr.bf16.mxu1 %v7929_v14  ;;  %v7933_v17 = vld [vmem:[%s11939_s2 + $0x1c0] sm:$0xff]   ;;  %v8961_v28 = vsel %vm747_vm1, %v769_v13, %v12050_v15  ;;  %v1046_v14 = vrot.slane %v8332_v41, 2 }
  0x79   : > { %12407 = vst [vmem:[#allocation96_spill] sm:$0xff] %v8961_v28  ;;  %v1047_v13 = vrot.slane %v8335_v42, 3  ;;  %v8986_v41 = vshrl.u32 %v8790_v51, 16  ;;  %v904_v39 = vrot.slane %v8804_v8, 2 }
  0x7a   : > { %v1044_v12 = vor.u32 %v1043_v31, %v1042_v63  ;;  %v8967_v63 = vsel %vm812_vm2, %v887_v16, %v8950_v36  ;;  %v7935_v16 = vld [vmem:[%s11939_s2 + $0x180] sm:$0xff]   ;;  %v896_v36 = vor.u32 %v895_v30, %v894_v10  ;;  %v909_v30 = vrot.slane %v8812_v2, 2 }
  0x7b   : > { %6724 = vmatpush3.bf16.msra.mxu1 %v7931_v0  ;;  %12408 = vst [vmem:[#allocation97_spill] sm:$0xff] %v8967_v63  ;;  %v12409_v0 = vshrl.u32 %v8321_v37, 16  ;;  %12410 = vst [vmem:[#allocation98_spill] sm:$0xff] %v8986_v41  ;;  %v8989_v37 = vld [vmem:[%s8251_s25] sm:$0xff]   ;;  %v908_v10 = vrot.slane %v8986_v41, 1 }
  0x7c   : > { %6725 = vmatprep.subr.bf16.mxu1 %v7933_v17  ;;  %v1045_v31 = vsel %vm1038_vm3, %v1041_v27, %v1044_v12  ;;  %v1050_v17 = vrot.slane %v8338_v43, 3  ;;  %v772_v27 = vrot.slane %v8683_v57, 1  ;;  %v974_v42 = vrot.slane %v8989_v37, 2  ;;  %v8993_v43 = vld [vmem:[%s8251_s25 + $0x8] ss:$0 sps:$4 sm:$0x77]  }
  0x7d   : > { %3644 = vmatmul.mubr.bf16.gmra.mxu1 %v8918_v59  ;;  %3515 = vmatmul.mubr.bf16.gmra.mxu0 %v8782_v45  ;;  %v1049_v15 = vrot.slane %v12409_v0, 2  ;;  %v975_v0 = vrot.slane %v8993_v43, 2  ;;  %v1048_v12 = vor.u32 %v1047_v13, %v1046_v14  ;;  %v903_v59 = vrot.slane %v8800_v54, 1  ;;  %v7926_v13 = vld [vmem:[%s11939_s2 + $0x270] sm:$0xff]  }
  0x7e   : > { %3651 = vmatprep.mubr.bf16.mxu1 %v8928_v58  ;;  %3522 = vmatprep.mubr.bf16.mxu0 %v8936_v29  ;;  %v8996_v58 = vor.u32 %v900_v44, %v899_v33  ;;  %v1053_v44 = vrot.slane %v8399_v5, 2  ;;  %v1054_v14 = vrot.slane %v8402_v6, 3  ;;  %v9033_v6 = vld [vmem:[%s8251_s25 + $0xc] sm:$0xff]   ;;  %v9047_v5 = vshrl.u32 %v8860_v53, 16 }
  0x7f   : > { %6726 = vmatpush3.bf16.msra.mxu1 %v7935_v16  ;;  %v1051_v29 = vor.u32 %v1050_v17, %v1049_v15  ;;  %v976_v15 = vsel %vm973_vm4, %v974_v42, %v975_v0  ;;  %v1056_v16 = vrot.slane %v8611_v52, 2  ;;  %v977_v42 = vrot.slane %v9033_v6, 2  ;;  %v9037_v0 = vld [vmem:[%s8251_s25 + $0x14] ss:$0 sps:$4 sm:$0x77]  }
  0x80   : > { %12411 = vst [vmem:[#allocation99_spill] sm:$0xff] %v8996_v58  ;;  %v9016_v33 = vsel %vm812_vm2, %v896_v36, %v8996_v58  ;;  %v775_v36 = vrot.slane %v8734_v55, 1  ;;  %12417 = vst [vmem:[#allocation104_spill] sm:$0xff] %v9047_v5  ;;  %v1055_v58 = vor.u32 %v1054_v14, %v1053_v44  ;;  %v913_v14 = vrot.slane %v8863_v56, 2 }
  0x81   : > { %12414 = vst [vmem:[#allocation101_spill] sm:$0xff] %v9016_v33  ;;  %v9024_v17 = vsel %vm1038_vm3, %v1048_v12, %v1051_v29  ;;  %v978_v29 = vrot.slane %v9037_v0, 2  ;;  %v905_v12 = vor.u32 %v904_v39, %v903_v59  ;;  %v912_v39 = vrot.slane %v8883_v21, 1  ;;  %v7932_v59 = vld [vmem:[%s11939_s2 + $0x228] sm:$0xff]  }
  0x82   : > { %12415 = vst [vmem:[#allocation102_spill] sm:$0xff] %v9024_v17 }
  0x85   : > { %3652 = vmatmul.mubr.bf16.gmra.mxu1 %v8961_v28  ;;  %3523 = vmatmul.mubr.bf16.gmra.mxu0 %v8841_v18 }
  0x86   : > { %3659 = vmatprep.mubr.bf16.mxu1 %v8967_v63  ;;  %3756 = vmatprep.mubr.bf16.mxu0 %v1045_v31  ;;  %v12412_v63 = vrot.slane %v8698_v9, 1  ;;  %v7938_v31 = vld [vmem:[%s11939_s2 + $0x2f8] sm:$0xff]  }
  0x87   : > { %6935 = vmatprep.subr.bf16.mxu1 %v7938_v31  ;;  %v9040_v31 = vor.u32 %v909_v30, %v908_v10  ;;  %v12418_v10 = vrot.slane %v8742_v46, 1 }
  0x88   : > { %v9001_v28 = vsel %vm747_vm1, %v772_v27, %v12412_v63  ;;  %v7924_v63 = vld [vmem:[%s11939_s2 + $0x238] sm:$0xff]   ;;  %v1057_v27 = vrot.slane %v8405_v7, 3  ;;  %v7930_v7 = vld [vmem:[%s11939_s2 + $0x268] sm:$0xff]  }
  0x89   : > { %12413 = vst [vmem:[#allocation100_spill] sm:$0xff] %v9001_v28  ;;  %12416 = vst [vmem:[#allocation103_spill] sm:$0xff] %v9040_v31  ;;  %v9059_v30 = vsel %vm747_vm1, %v775_v36, %v12418_v10  ;;  %v9066_v44 = vsel %vm812_vm2, %v905_v12, %v9040_v31  ;;  %v1060_v36 = vrot.slane %v8455_v47, 2  ;;  %v1063_v12 = vrot.slane %v8665_v25, 2  ;;  %v7936_v47 = vld [vmem:[%s11939_s2 + $0x220] sm:$0xff]   ;;  %v7937_v31 = vld [vmem:[%s11939_s2 + $0x258] sm:$0xff]  }
  0x8a   : > { %v1058_v52 = vor.u32 %v1057_v27, %v1056_v16  ;;  %12419 = vst [vmem:[#allocation105_spill] sm:$0xff] %v9059_v30  ;;  %12421 = vst [vmem:[#allocation107_spill] sm:$0xff] %v9066_v44  ;;  %v917_v16 = vrot.slane %v9047_v5, 1  ;;  %v918_v27 = vrot.slane %v8897_v11, 2  ;;  %v1064_v10 = vrot.slane %v8465_v50, 3 }
  0x8b   : > { %v9098_v50 = vld [vmem:[%s8259_s30 + $0x74] ss:$0 sps:$4 sm:$0x77]  }
  0x8c   : > { %v9095_v25 = vor.u32 %v918_v27, %v917_v16  ;;  %12425 = vst [vmem:[#allocation111_spill] sm:$0xff] %v9098_v50  ;;  %v921_v27 = vrot.slane %v8286_v22, 1  ;;  %v1088_v22 = vrot.slane %v8653_v3, 2 }
  0x8d   : > { %3660 = vmatmul.mubr.bf16.gmra.mxu1 %v9001_v28  ;;  %3757 = vmatmul.mubr.bf16.vlgmr.msra.gmra.mxu0 %v976_v15  ;;  %v7928_v15 = vld [vmem:[%s11939_s2 + $0x230] sm:$0xff]  }
  0x8e   : > { %3667 = vmatprep.mubr.bf16.mxu1 %v9016_v33  ;;  %6824 = vmatpush3.bf16.msra.mxu0 %v7924_v63  ;;  %v9062_v63 = vsel %vm973_vm4, %v977_v42, %v978_v29  ;;  %v1061_v42 = vrot.slane %v8458_v48, 3  ;;  %v9077_v29 = vsel %vm1038_vm3, %v1055_v58, %v1058_v52  ;;  %v9087_v48 = vld [vmem:[%s8251_s25 + $0x18] sm:$0xff]   ;;  %v9091_v58 = vld [vmem:[%s8251_s25 + $0x20] ss:$0 sps:$4 sm:$0x77]   ;;  %12424 = vst [vmem:[#allocation110_spill] sm:$0xff] %v9095_v25 }
  0x8f   : > { %3764 = vmatprep.mubr.bf16.mxu0 %v9024_v17  ;;  %6825 = vmatprep.subr.bf16.mxu0 %v7926_v13  ;;  %12420 = vst [vmem:[#allocation106_spill] sm:$0xff] %v9062_v63  ;;  %v7934_v13 = vld [vmem:[%s11939_s2 + $0x260] sm:$0xff]   ;;  %12422 = vst [vmem:[#allocation108_spill] sm:$0xff] %v9077_v29  ;;  %v980_v52 = vrot.slane %v9087_v48, 2  ;;  %v1065_v33 = vor.u32 %v1064_v10, %v1063_v12  ;;  %v12429_v16 = vrot.slane %v9091_v58, 2  ;;  %v927_v12 = vrot.slane %v8290_v24, 2 }
  0x90   : > { %12423 = vst [vmem:[#allocation109_spill] sm:$0xff] %v9091_v58  ;;  %v1062_v17 = vor.u32 %v1061_v42, %v1060_v36  ;;  %v922_v36 = vrot.slane %v8288_v23, 2  ;;  %v1067_v10 = vrot.slane %v8528_v62, 2  ;;  %v7941_v62 = vld [vmem:[%s11939_s2 + $0x250] sm:$0xff]  }
  0x92   : > { %6826 = vmatpush3.bf16.msra.mxu0 %v7928_v15  ;;  %v778_v15 = vrot.slane %v8782_v45, 1 }
  0x93   : > { %6827 = vmatprep.subr.bf16.mxu0 %v7930_v7  ;;  %v914_v7 = vor.u32 %v913_v14, %v912_v39  ;;  %v12427_v39 = vrot.slane %v8790_v51, 1 }
  0x95   : > { %3668 = vmatmul.mubr.bf16.gmra.mxu1 %v9059_v30  ;;  %3765 = vmatmul.mubr.bf16.gmra.mxu0 %v9062_v63  ;;  %v9112_v14 = vsel %vm747_vm1, %v778_v15, %v12427_v39  ;;  %v7939_v15 = vld [vmem:[%s11939_s2 + $0x218] sm:$0xff]   ;;  %v1070_v39 = vrot.slane %v8717_v40, 2  ;;  %v9157_v40 = vld [vmem:[%s8259_s30 + $0x8] ss:$0 sps:$4 sm:$0x77]  }
  0x96   : > { %3675 = vmatprep.mubr.bf16.mxu1 %v9066_v44  ;;  %3772 = vmatprep.mubr.bf16.mxu0 %v9077_v29  ;;  %v9101_v44 = vshrl.u32 %v9098_v50, 16  ;;  %12428 = vst [vmem:[#allocation113_spill] sm:$0xff] %v9112_v14  ;;  %12437 = vst [vmem:[#allocation120_spill] sm:$0xff] %v9157_v40  ;;  %v923_v29 = vor.u32 %v922_v36, %v921_v27  ;;  %v7945_v63 = vld [vmem:[%s11939_s2 + $0x248] sm:$0xff]   ;;  %v12441_v27 = vld [vmem:[#allocation6_spill] sm:$0xff]  ;;  %v12446_v24 = vrot.slane %v9157_v40, 2 }
  0x97   : > { %6828 = vmatpush3.bf16.msra.mxu0 %v7932_v59  ;;  %v9117_v59 = vsel %vm973_vm4, %v980_v52, %v12429_v16  ;;  %v9132_v52 = vsel %vm1038_vm3, %v1062_v17, %v1065_v33  ;;  %v12433_v16 = vld [vmem:[#allocation30_spill] sm:$0xff]  ;;  %v930_v36 = vrot.slane %v12441_v27, 1  ;;  %v12482_v40 = vld [vmem:[#allocation81_spill] sm:$0xff] }
  0x98   : > { %12426 = vst [vmem:[#allocation112_spill] sm:$0xff] %v9101_v44  ;;  %6829 = vmatprep.subr.bf16.mxu0 %v7934_v13  ;;  %12430 = vst [vmem:[#allocation114_spill] sm:$0xff] %v9117_v59  ;;  %v9123_v13 = vsel %vm812_vm2, %v914_v7, %v9095_v25  ;;  %v926_v42 = vrot.slane %v9101_v44, 1  ;;  %v1068_v7 = vrot.slane %v8531_v1, 3  ;;  %v1071_v25 = vrot.slane %v12433_v16, 3  ;;  %v9146_v33 = vld [vmem:[%s8259_s30] sm:$0xff]  }
  0x99   : > { %12431 = vst [vmem:[#allocation115_spill] sm:$0xff] %v9123_v13  ;;  %12432 = vst [vmem:[#allocation116_spill] sm:$0xff] %v9132_v52  ;;  %v983_v17 = vrot.slane %v9146_v33, 2  ;;  %v9150_v1 = vld [vmem:[%s8259_s30 + $0x80] ss:$0 sps:$4 sm:$0x77]  }
  0x9a   : > { %12434 = vst [vmem:[#allocation117_spill] sm:$0xff] %v9146_v33  ;;  %12435 = vst [vmem:[#allocation118_spill] sm:$0xff] %v9150_v1  ;;  %v1072_v30 = vor.u32 %v1071_v25, %v1070_v39  ;;  %v12443_v16 = vld [vmem:[#allocation8_spill] sm:$0xff]  ;;  %v12444_v25 = vld [vmem:[#allocation33_spill] sm:$0xff]  ;;  %v1091_v33 = vrot.slane %v12482_v40, 2 }
  0x9b   : > { %6830 = vmatpush3.bf16.msra.mxu0 %v7936_v47  ;;  %v781_v47 = vrot.slane %v8841_v18, 1  ;;  %v9182_v44 = vsel %vm973_vm4, %v983_v17, %v12446_v24  ;;  %v7949_v24 = vld [vmem:[%s11939_s2 + $0x240] sm:$0xff]   ;;  %v9302_v18 = vld [vmem:[%s8259_s30 + $0x90] sm:$0xff]  }
  0x9c   : > { %6831 = vmatprep.subr.bf16.mxu0 %v7937_v31  ;;  %v9153_v31 = vshrl.u32 %v9150_v1, 16  ;;  %12447 = vst [vmem:[#allocation123_spill] sm:$0xff] %v9182_v44 }
  0x9d   : > { %3676 = vmatmul.mubr.bf16.gmra.mxu1 %v9112_v14  ;;  %3773 = vmatmul.mubr.bf16.gmra.mxu0 %v9117_v59  ;;  %v9160_v14 = vor.u32 %v927_v12, %v926_v42  ;;  %v1069_v59 = vor.u32 %v1068_v7, %v1067_v10  ;;  %v12442_v42 = vld [vmem:[#allocation7_spill] sm:$0xff]  ;;  %v936_v10 = vrot.slane %v12443_v16, 2  ;;  %v12445_v7 = vld [vmem:[#allocation34_spill] sm:$0xff] }
  0x9e   : > { %3683 = vmatprep.mubr.bf16.mxu1 %v9123_v13  ;;  %12436 = vst [vmem:[#allocation119_spill] sm:$0xff] %v9153_v31  ;;  %3780 = vmatprep.mubr.bf16.mxu0 %v9132_v52  ;;  %v7943_v13 = vld [vmem:[%s11939_s2 + $0x210] sm:$0xff]   ;;  %v12439_v52 = vrot.slane %v8860_v53, 1  ;;  %v931_v12 = vrot.slane %v12442_v42, 2  ;;  %v1075_v39 = vrot.slane %v12445_v7, 3  ;;  %v12451_v16 = vld [vmem:[#allocation35_spill] sm:$0xff] }
  0x9f   : > { %12438 = vst [vmem:[#allocation121_spill] sm:$0xff] %v9160_v14  ;;  %6832 = vmatpush3.bf16.msra.mxu0 %v7939_v15  ;;  %v935_v15 = vrot.slane %v9153_v31, 1  ;;  %v9193_v7 = vsel %vm1038_vm3, %v1069_v59, %v1072_v30  ;;  %v1078_v31 = vrot.slane %v12451_v16, 3  ;;  %v9208_v30 = vld [vmem:[%s8259_s30 + $0xc] sm:$0xff]  }
  0xa0   : > { %6833 = vmatprep.subr.bf16.mxu0 %v7941_v62  ;;  %v9171_v28 = vsel %vm747_vm1, %v781_v47, %v12439_v52  ;;  %v1074_v62 = vrot.slane %v12444_v25, 2  ;;  %v9186_v52 = vsel %vm812_vm2, %v923_v29, %v9160_v14  ;;  %v12449_v47 = vld [vmem:[#allocation64_spill] sm:$0xff]  ;;  %v7947_v25 = vld [vmem:[%s11939_s2 + $0x208] sm:$0xff]   ;;  %12450 = vst [vmem:[#allocation125_spill] sm:$0xff] %v9193_v7  ;;  %12453 = vst [vmem:[#allocation127_spill] sm:$0xff] %v9208_v30 }
  0xa1   : > { %12440 = vst [vmem:[#allocation122_spill] sm:$0xff] %v9171_v28  ;;  %12448 = vst [vmem:[#allocation124_spill] sm:$0xff] %v9186_v52  ;;  %v1077_v42 = vrot.slane %v12449_v47, 2  ;;  %v9201_v29 = vld [vmem:[%s8259_s30 + $0x6c] sm:$0xff]   ;;  %v932_v16 = vor.u32 %v931_v12, %v930_v36  ;;  %v9236_v36 = vld [vmem:[%s8259_s30 + $0x78] sm:$0xff]  }
  0xa2   : > { %12452 = vst [vmem:[#allocation126_spill] sm:$0xff] %v9201_v29  ;;  %v9212_v59 = vld [vmem:[%s8259_s30 + $0x8c] ss:$0 sps:$4 sm:$0x77]   ;;  %12460 = vst [vmem:[#allocation133_spill] sm:$0xff] %v9236_v36  ;;  %v787_v12 = vrot.slane %v9236_v36, 1 }
  0xa3   : > { %6834 = vmatpush3.bf16.msra.mxu0 %v7943_v13  ;;  %v784_v13 = vrot.slane %v9201_v29, 1  ;;  %12454 = vst [vmem:[#allocation128_spill] sm:$0xff] %v9212_v59  ;;  %v9215_v14 = vshrl.u32 %v9212_v59, 16  ;;  %v9219_v47 = vld [vmem:[%s8259_s30 + $0x14] ss:$0 sps:$4 sm:$0x77]   ;;  %v1079_v27 = vor.u32 %v1078_v31, %v1077_v42 }
  0xa4   : > { %6835 = vmatprep.subr.bf16.mxu0 %v7945_v63  ;;  %v986_v63 = vrot.slane %v9208_v30, 2  ;;  %12456 = vst [vmem:[#allocation130_spill] sm:$0xff] %v9219_v47  ;;  %v7954_v30 = vld [vmem:[%s11939_s2 + $0x378] sm:$0xff]   ;;  %v12463_v42 = vld [vmem:[#allocation15_spill] sm:$0xff] }
  0xa5   : > { %3684 = vmatmul.mubr.bf16.gmra.mxu1 %v9171_v28  ;;  %3781 = vmatmul.mubr.bf16.gmra.mxu0 %v9182_v44  ;;  %12455 = vst [vmem:[#allocation129_spill] sm:$0xff] %v9215_v14  ;;  %v9222_v28 = vor.u32 %v936_v10, %v935_v15  ;;  %v1076_v44 = vor.u32 %v1075_v39, %v1074_v62  ;;  %v12461_v15 = vld [vmem:[#allocation13_spill] sm:$0xff]  ;;  %v944_v31 = vrot.slane %v9215_v14, 1  ;;  %v945_v39 = vrot.slane %v12463_v42, 2  ;;  %v12469_v14 = vld [vmem:[#allocation40_spill] sm:$0xff]  ;;  %v12483_v53 = vld [vmem:[#allocation51_spill] sm:$0xff] }
  0xa6   : > { %3691 = vmatprep.mubr.bf16.mxu1 %v9186_v52  ;;  %3788 = vmatprep.mubr.bf16.mxu0 %v9193_v7  ;;  %v7951_v52 = vld [vmem:[%s11939_s2 + $0x200] sm:$0xff]   ;;  %v12458_v7 = vrot.slane %v9098_v50, 1  ;;  %v939_v10 = vrot.slane %v12461_v15, 1  ;;  %v12465_v50 = vld [vmem:[#allocation39_spill] sm:$0xff]  ;;  %v1085_v36 = vrot.slane %v12469_v14, 3 }
  0xa7   : > { %12457 = vst [vmem:[#allocation131_spill] sm:$0xff] %v9222_v28  ;;  %6836 = vmatpush3.bf16.msra.mxu0 %v7947_v25  ;;  %v12462_v25 = vld [vmem:[#allocation14_spill] sm:$0xff]  ;;  %v9252_v15 = vsel %vm812_vm2, %v932_v16, %v9222_v28  ;;  %v9257_v42 = vsel %vm1038_vm3, %v1076_v44, %v1079_v27  ;;  %v9268_v16 = vld [vmem:[%s8259_s30 + $0x18] sm:$0xff]  }
  0xa8   : > { %6837 = vmatprep.subr.bf16.mxu0 %v7949_v24  ;;  %v9233_v29 = vsel %vm747_vm1, %v784_v13, %v12458_v7  ;;  %v940_v62 = vrot.slane %v12462_v25, 2  ;;  %v12464_v24 = vld [vmem:[#allocation38_spill] sm:$0xff]  ;;  %v1082_v7 = vrot.slane %v12465_v50, 3  ;;  %v12466_v13 = vrot.slane %v9219_v47, 2  ;;  %12468 = vst [vmem:[#allocation135_spill] sm:$0xff] %v9252_v15  ;;  %12470 = vst [vmem:[#allocation136_spill] sm:$0xff] %v9257_v42 }
  0xa9   : > { %12459 = vst [vmem:[#allocation132_spill] sm:$0xff] %v9233_v29  ;;  %v1081_v17 = vrot.slane %v12464_v24, 2  ;;  %v1084_v25 = vrot.slane %v8793_v19, 2  ;;  %v9261_v24 = vld [vmem:[%s8259_s30 + $0x98] ss:$0 sps:$4 sm:$0x77]  }
  0xaa   : > { %v9248_v23 = vsel %vm973_vm4, %v986_v63, %v12466_v13  ;;  %12471 = vst [vmem:[#allocation137_spill] sm:$0xff] %v9261_v24  ;;  %v9264_v63 = vshrl.u32 %v9261_v24, 16  ;;  %12473 = vst [vmem:[#allocation139_spill] sm:$0xff] %v9268_v16  ;;  %v989_v13 = vrot.slane %v9268_v16, 2  ;;  %v941_v27 = vor.u32 %v940_v62, %v939_v10  ;;  %v9276_v50 = vld [vmem:[%s8259_s30 + $0x84] sm:$0xff]   ;;  %v12481_v19 = vld [vmem:[#allocation24_spill] sm:$0xff] }
  0xab   : > { %12467 = vst [vmem:[#allocation134_spill] sm:$0xff] %v9248_v23  ;;  %6838 = vmatpush3.bf16.msra.mxu0 %v7951_v52  ;;  %v9272_v52 = vld [vmem:[%s8259_s30 + $0x20] ss:$0 sps:$4 sm:$0x77]   ;;  %12475 = vst [vmem:[#allocation141_spill] sm:$0xff] %v9276_v50  ;;  %v790_v28 = vrot.slane %v9276_v50, 1  ;;  %v1083_v62 = vor.u32 %v1082_v7, %v1081_v17  ;;  %v1086_v44 = vor.u32 %v1085_v36, %v1084_v25 }
  0xac   : > { %12472 = vst [vmem:[#allocation138_spill] sm:$0xff] %v9264_v63  ;;  %7047 = vmatprep.subr.bf16.mxu0 %v7954_v30  ;;  %12474 = vst [vmem:[#allocation140_spill] sm:$0xff] %v9272_v52  ;;  %v9281_v30 = vor.u32 %v945_v39, %v944_v31  ;;  %v9285_v14 = vld [vmem:[%s8259_s30 + $0x24] sm:$0xff]   ;;  %v9289_v16 = vld [vmem:[%s8259_s30 + $0x2c] ss:$0 sps:$4 sm:$0x77]  }
  0xad   : > { %3692 = vmatmul.mubr.bf16.gmra.mxu1 %v9233_v29  ;;  %3789 = vmatmul.mubr.bf16.gmra.mxu0 %v9248_v23  ;;  %12477 = vst [vmem:[#allocation143_spill] sm:$0xff] %v9285_v14  ;;  %v992_v29 = vrot.slane %v9285_v14, 2  ;;  %12478 = vst [vmem:[#allocation144_spill] sm:$0xff] %v9289_v16  ;;  %v12479_v23 = vld [vmem:[#allocation22_spill] sm:$0xff]  ;;  %v953_v39 = vrot.slane %v9264_v63, 1  ;;  %v954_v47 = vrot.slane %v12481_v19, 2  ;;  %v9323_v17 = vsel %vm1038_vm3, %v1083_v62, %v1086_v44 }
  0xae   : > { %3699 = vmatprep.mubr.bf16.mxu1 %v9252_v15  ;;  %12476 = vst [vmem:[#allocation142_spill] sm:$0xff] %v9281_v30  ;;  %3796 = vmatprep.mubr.bf16.mxu0 %v9257_v42  ;;  %v948_v50 = vrot.slane %v12479_v23, 1  ;;  %v12480_v15 = vld [vmem:[#allocation23_spill] sm:$0xff]  ;;  %v1089_v14 = vrot.slane %v8661_v26, 3  ;;  %v1092_v10 = vrot.slane %v12483_v53, 3  ;;  %v12484_v25 = vrot.slane %v9150_v1, 1 }
  0xaf   : > { %v949_v31 = vrot.slane %v12480_v15, 2  ;;  %v12486_v42 = vrot.slane %v9272_v52, 2  ;;  %v9320_v53 = vsel %vm812_vm2, %v941_v27, %v9281_v30  ;;  %12489 = vst [vmem:[#allocation148_spill] sm:$0xff] %v9323_v17  ;;  %v1095_v36 = vrot.slane %v8701_v49, 2  ;;  %v12505_v62 = vld [vmem:[#allocation4_spill] sm:$0xff] }
  0xb0   : > { %v9309_v7 = vsel %vm747_vm1, %v787_v12, %v12484_v25  ;;  %12488 = vst [vmem:[#allocation147_spill] sm:$0xff] %v9320_v53  ;;  %v1096_v12 = vrot.slane %v8704_v4, 3  ;;  %v1098_v25 = vrot.slane %v8905_v32, 2  ;;  %v9332_v27 = vor.u32 %v954_v47, %v953_v39  ;;  %v12491_v47 = vld [vmem:[#allocation68_spill] sm:$0xff] }
  0xb1   : > { %12485 = vst [vmem:[#allocation145_spill] sm:$0xff] %v9309_v7  ;;  %v9314_v3 = vsel %vm973_vm4, %v989_v13, %v12486_v42  ;;  %v1099_v42 = vrot.slane %v8723_v20, 3  ;;  %v950_v40 = vor.u32 %v949_v31, %v948_v50  ;;  %v1090_v4 = vor.u32 %v1089_v14, %v1088_v22  ;;  %v12499_v14 = vld [vmem:[#allocation82_spill] sm:$0xff] }
  0xb2   : > { %12487 = vst [vmem:[#allocation146_spill] sm:$0xff] %v9314_v3  ;;  %12490 = vst [vmem:[#allocation149_spill] sm:$0xff] %v9332_v27  ;;  %v1093_v49 = vor.u32 %v1092_v10, %v1091_v33  ;;  %v1102_v30 = vrot.slane %v8759_v35, 2  ;;  %v1103_v13 = vrot.slane %v8745_v34, 3  ;;  %v1105_v50 = vrot.slane %v8953_v38, 2  ;;  %v12501_v35 = vld [vmem:[#allocation120_spill] sm:$0xff] }
  0xb3   : > { %v1106_v31 = vrot.slane %v12491_v47, 3  ;;  %v12492_v33 = vrot.slane %v9212_v59, 1  ;;  %v12494_v39 = vrot.slane %v9289_v16, 2  ;;  %v9363_v44 = vsel %vm812_vm2, %v950_v40, %v9332_v27  ;;  %v12503_v38 = vld [vmem:[#allocation3_spill] sm:$0xff]  ;;  %v12504_v40 = vld [vmem:[#allocation112_spill] sm:$0xff]  ;;  %v12506_v27 = vld [vmem:[#allocation126_spill] sm:$0xff] }
  0xb4   : > { %12496 = vst [vmem:[#allocation152_spill] sm:$0xff] %v9363_v44  ;;  %v9372_v22 = vsel %vm1038_vm3, %v1090_v4, %v1093_v49  ;;  %v12502_v4 = vld [vmem:[#allocation2_spill] sm:$0xff]  ;;  %v12510_v49 = vrot.slane %v9261_v24, 1  ;;  %v12513_v47 = vrot.slane %v8650_v61, 2  ;;  %v12514_v32 = vrot.slane %v8637_v60, 2  ;;  %v7940_v60 = vld [vmem:[%s11939_s2 + $0x2b8] sm:$0xff]  }
  0xb5   : > { %3700 = vmatmul.mubr.bf16.gmra.mxu1 %v9309_v7  ;;  %3797 = vmatmul.mubr.bf16.gmra.mxu0 %v9314_v3  ;;  %v9352_v10 = vsel %vm747_vm1, %v790_v28, %v12492_v33  ;;  %v9359_v26 = vsel %vm973_vm4, %v992_v29, %v12494_v39  ;;  %12497 = vst [vmem:[#allocation153_spill] sm:$0xff] %v9372_v22  ;;  %v12498_v39 = vld [vmem:[#allocation79_spill] sm:$0xff]  ;;  %v12500_v28 = vld [vmem:[#allocation117_spill] sm:$0xff]  ;;  %v12509_v34 = vld [vmem:[#allocation130_spill] sm:$0xff]  ;;  %v12511_v29 = vrot.slane %v9302_v18, 1  ;;  %v12523_v3 = vrot.slane %v8698_v9, 2 }
  0xb6   : > { %3707 = vmatprep.mubr.bf16.mxu1 %v9320_v53  ;;  %3804 = vmatprep.mubr.bf16.mxu0 %v9323_v17  ;;  %12493 = vst [vmem:[#allocation150_spill] sm:$0xff] %v9352_v10  ;;  %12495 = vst [vmem:[#allocation151_spill] sm:$0xff] %v9359_v26  ;;  %v12507_v17 = vld [vmem:[#allocation111_spill] sm:$0xff]  ;;  %v9404_v20 = vsel %vm973_vm4, %v12514_v32, %v12513_v47  ;;  %v12519_v7 = vld [vmem:[#allocation8_spill] sm:$0xff]  ;;  %v1104_v32 = vor.u32 %v1103_v13, %v1102_v30  ;;  %v12535_v9 = vrot.slane %v9037_v0, 3 }
  0xb7   : > { %v12508_v33 = vld [vmem:[#allocation127_spill] sm:$0xff]  ;;  %12515 = vst [vmem:[#allocation117_spill] sm:$0xff] %v9404_v20  ;;  %v1107_v47 = vor.u32 %v1106_v31, %v1105_v50  ;;  %v12527_v13 = vld [vmem:[#allocation133_spill] sm:$0xff] }
  0xb8   : > { %v12518_v53 = vld [vmem:[#allocation119_spill] sm:$0xff] }
  0xb9   : > { %v9436_v30 = vsel %vm1038_vm3, %v1104_v32, %v1107_v47  ;;  %v12530_v47 = vld [vmem:[#allocation14_spill] sm:$0xff]  ;;  %v7948_v31 = vld [vmem:[%s11939_s2 + $0x2a8] sm:$0xff]   ;;  %v12536_v32 = vrot.slane %v9033_v6, 3 }
  0xba   : > { %12526 = vst [vmem:[#allocation154_spill] sm:$0xff] %v9436_v30 }
  0xbd   : > { %3708 = vmatmul.mubr.bf16.gmra.mxu1 %v9352_v10  ;;  %3805 = vmatmul.mubr.bf16.gmra.mxu0 %v9359_v26  ;;  %v1100_v10 = vor.u32 %v1099_v42, %v1098_v25  ;;  %v12517_v25 = vld [vmem:[#allocation7_spill] sm:$0xff]  ;;  %v12524_v26 = vrot.slane %v8683_v57, 2  ;;  %v12533_v57 = vrot.slane %v8986_v41, 2 }
  0xbe   : > { %3715 = vmatprep.mubr.bf16.mxu1 %v9363_v44  ;;  %3812 = vmatprep.mubr.bf16.mxu0 %v9372_v22  ;;  %v1097_v44 = vor.u32 %v1096_v12, %v1095_v36  ;;  %v9397_v22 = vsel %vm747_vm1, %v12511_v29, %v12510_v49  ;;  %v12516_v36 = vld [vmem:[#allocation6_spill] sm:$0xff]  ;;  %v12521_v29 = vrot.slane %v8993_v43, 3  ;;  %v12522_v49 = vrot.slane %v8989_v37, 3  ;;  %v7944_v37 = vld [vmem:[%s11939_s2 + $0x2b0] sm:$0xff]   ;;  %v7946_v43 = vld [vmem:[%s11939_s2 + $0x2e8] sm:$0xff]  }
  0xbf   : > { %12512 = vst [vmem:[#allocation79_spill] sm:$0xff] %v9397_v22  ;;  %v9433_v42 = vsel %vm973_vm4, %v12524_v26, %v12523_v3  ;;  %v12528_v26 = vld [vmem:[#allocation139_spill] sm:$0xff]  ;;  %v12534_v3 = vrot.slane %v8812_v2, 3 }
  0xc0   : > { %v9411_v24 = vsel %vm1038_vm3, %v1097_v44, %v1100_v10  ;;  %v1170_v44 = vsel %vm1167_vm5, %v12522_v49, %v12521_v29  ;;  %v7942_v10 = vld [vmem:[%s11939_s2 + $0x2f0] sm:$0xff]   ;;  %12525 = vst [vmem:[#allocation127_spill] sm:$0xff] %v9433_v42  ;;  %v12531_v49 = vrot.slane %v8800_v54, 2  ;;  %v9469_v29 = vsel %vm1167_vm5, %v12536_v32, %v12535_v9  ;;  %v7952_v9 = vld [vmem:[%s11939_s2 + $0x2a0] sm:$0xff]   ;;  %v7955_v32 = vld [vmem:[%s11939_s2 + $0x298] sm:$0xff]  }
  0xc1   : > { %12520 = vst [vmem:[#allocation126_spill] sm:$0xff] %v9411_v24  ;;  %v1114_v50 = vor.u32 %v12534_v3, %v12533_v57  ;;  %v12544_v3 = vrot.slane %v8897_v11, 3  ;;  %v12599_v11 = vld [vmem:[#allocation65_spill] sm:$0xff] }
  0xc5   : > { %3716 = vmatmul.mubr.bf16.gmra.mxu1 %v9397_v22  ;;  %3813 = vmatmul.mubr.bf16.gmra.mxu0 %v9404_v20 }
  0xc6   : > { %3917 = vmatprep.mubr.bf16.mxu1 %v9033_v6  ;;  %3820 = vmatprep.mubr.bf16.mxu0 %v9411_v24  ;;  %v12541_v6 = vrot.slane %v8883_v21, 2 }
  0xcd   : > { %3918 = vmatmul.mubr.bf16.vlgmr.msra.gmra.mxu1 %v1170_v44  ;;  %3821 = vmatmul.mubr.bf16.gmra.mxu0 %v9433_v42  ;;  %v12532_v44 = vrot.slane %v8804_v8, 3  ;;  %v12556_v8 = vrot.slane %v12504_v40, 2 }
  0xce   : > { %6936 = vmatpush3.bf16.msra.mxu1 %v7940_v60  ;;  %3828 = vmatprep.mubr.bf16.mxu0 %v9436_v30  ;;  %v12529_v60 = vld [vmem:[#allocation13_spill] sm:$0xff]  ;;  %v12611_v30 = vld [vmem:[#allocation96_spill] sm:$0xff] }
  0xcf   : > { %3925 = vmatprep.mubr.bf16.mxu1 %v9087_v48  ;;  %v1111_v12 = vor.u32 %v12532_v44, %v12531_v49  ;;  %6937 = vmatprep.subr.bf16.mxu1 %v7942_v10  ;;  %v7950_v49 = vld [vmem:[%s11939_s2 + $0x2e0] sm:$0xff]   ;;  %v12537_v44 = vrot.slane %v8742_v46, 2  ;;  %v12538_v10 = vrot.slane %v8734_v55, 2  ;;  %v7953_v55 = vld [vmem:[%s11939_s2 + $0x2d8] sm:$0xff]   ;;  %v12559_v46 = vrot.slane %v12501_v35, 3 }
  0xd1   : > { %v9479_v57 = vsel %vm973_vm4, %v12538_v10, %v12537_v44  ;;  %v9482_v0 = vsel %vm1038_vm3, %v1111_v12, %v1114_v50  ;;  %v12542_v12 = vrot.slane %v8863_v56, 3  ;;  %v12545_v44 = vrot.slane %v9091_v58, 3  ;;  %v12553_v56 = vld [vmem:[#allocation141_spill] sm:$0xff]  ;;  %v7963_v58 = vld [vmem:[%s11939_s2 + $0x288] sm:$0xff]  }
  0xd2   : > { %6938 = vmatpush3.bf16.msra.mxu1 %v7944_v37  ;;  %12539 = vst [vmem:[#allocation133_spill] sm:$0xff] %v9479_v57  ;;  %12540 = vst [vmem:[#allocation139_spill] sm:$0xff] %v9482_v0  ;;  %v12546_v10 = vrot.slane %v9087_v48, 3  ;;  %v12551_v48 = vld [vmem:[#allocation129_spill] sm:$0xff] }
  0xd3   : > { %6939 = vmatprep.subr.bf16.mxu1 %v7946_v43  ;;  %v1118_v37 = vor.u32 %v12542_v12, %v12541_v6  ;;  %v12543_v43 = vrot.slane %v9047_v5, 2  ;;  %v7957_v6 = vld [vmem:[%s11939_s2 + $0x2d0] sm:$0xff]   ;;  %v12547_v12 = vrot.slane %v8790_v51, 2 }
  0xd5   : > { %3926 = vmatmul.mubr.bf16.gmra.mxu1 %v9469_v29  ;;  %3829 = vmatmul.mubr.bf16.gmra.mxu0 %v9479_v57  ;;  %v1121_v50 = vor.u32 %v12544_v3, %v12543_v43  ;;  %v12548_v43 = vrot.slane %v8782_v45, 2 }
  0xd6   : > { %3933 = vmatprep.mubr.bf16.mxu1 %v12500_v28  ;;  %3836 = vmatprep.mubr.bf16.mxu0 %v9482_v0 }
  0xd7   : > { %6940 = vmatpush3.bf16.msra.mxu1 %v7948_v31  ;;  %v9510_v31 = vsel %vm1167_vm5, %v12546_v10, %v12545_v44  ;;  %v9523_v3 = vsel %vm1038_vm3, %v1118_v37, %v1121_v50  ;;  %v1140_v44 = vrot.slane %v12551_v48, 2  ;;  %v12552_v10 = vld [vmem:[#allocation15_spill] sm:$0xff]  ;;  %v12554_v50 = vrot.slane %v12502_v4, 2  ;;  %v8099_v48 = vld [vmem:[%s8259_s30 + $0x50] ss:$0 sps:$4 sm:$0x77]  }
  0xd8   : > { %6941 = vmatprep.subr.bf16.mxu1 %v7950_v49  ;;  %v9520_v49 = vsel %vm973_vm4, %v12548_v43, %v12547_v12  ;;  %12550 = vst [vmem:[#allocation156_spill] sm:$0xff] %v9523_v3  ;;  %v1141_v45 = vrot.slane %v12552_v10, 3  ;;  %v7961_v37 = vld [vmem:[%s11939_s2 + $0x2c8] sm:$0xff]   ;;  %v12555_v43 = vrot.slane %v12503_v38, 3  ;;  %v12557_v12 = vrot.slane %v12505_v62, 3 }
  0xd9   : > { %12549 = vst [vmem:[#allocation155_spill] sm:$0xff] %v9520_v49  ;;  %v12560_v4 = vrot.slane %v12500_v28, 3  ;;  %v7971_v28 = vld [vmem:[%s11939_s2 + $0x3f8] sm:$0xff]   ;;  %v12577_v38 = vrot.slane %v9272_v52, 3  ;;  %v1196_v10 = vrot.slane %v8099_v48, 3 }
  0xda   : > { %v1125_v21 = vor.u32 %v12555_v43, %v12554_v50  ;;  %v1128_v54 = vor.u32 %v12557_v12, %v12556_v8  ;;  %v7965_v8 = vld [vmem:[%s11939_s2 + $0x2c0] sm:$0xff]   ;;  %v12561_v12 = vrot.slane %v12499_v14, 2  ;;  %v12562_v43 = vrot.slane %v12498_v39, 2 }
  0xdb   : > { %6942 = vmatpush3.bf16.msra.mxu1 %v7952_v9  ;;  %v12558_v9 = vld [vmem:[#allocation143_spill] sm:$0xff]  ;;  %v9557_v50 = vsel %vm1167_vm5, %v12560_v4, %v12559_v46  ;;  %v7967_v46 = vld [vmem:[%s11939_s2 + $0x280] sm:$0xff]   ;;  %v12567_v4 = vrot.slane %v12518_v53, 2  ;;  %v12586_v14 = vrot.slane %v9212_v59, 2 }
  0xdc   : > { %6943 = vmatprep.subr.bf16.mxu1 %v7953_v55  ;;  %v7959_v55 = vld [vmem:[%s11939_s2 + $0x290] sm:$0xff]  }
  0xdd   : > { %3934 = vmatmul.mubr.bf16.gmra.mxu1 %v9510_v31  ;;  %3837 = vmatmul.mubr.bf16.gmra.mxu0 %v9520_v49 }
  0xde   : > { %3941 = vmatprep.mubr.bf16.mxu1 %v12508_v33  ;;  %3844 = vmatprep.mubr.bf16.mxu0 %v9523_v3  ;;  %v12605_v3 = vld [vmem:[#allocation84_spill] sm:$0xff] }
  0xdf   : > { %6944 = vmatpush3.bf16.msra.mxu1 %v7955_v32  ;;  %v9570_v32 = vsel %vm1038_vm3, %v1125_v21, %v1128_v54  ;;  %v12565_v54 = vrot.slane %v12516_v36, 2  ;;  %v12566_v21 = vrot.slane %v12517_v25, 3  ;;  %v12572_v36 = vrot.slane %v12506_v27, 2 }
  0xe0   : > { %6945 = vmatprep.subr.bf16.mxu1 %v7957_v6  ;;  %v9567_v6 = vsel %vm973_vm4, %v12562_v43, %v12561_v12  ;;  %12564 = vst [vmem:[#allocation143_spill] sm:$0xff] %v9570_v32  ;;  %v12569_v12 = vrot.slane %v12509_v34, 3  ;;  %v12570_v43 = vrot.slane %v12508_v33, 3  ;;  %v12575_v27 = vrot.slane %v12529_v60, 2  ;;  %v8093_v60 = vld [vmem:[%s8259_s30 + $0x30] sm:$0xff]  }
  0xe1   : > { %12563 = vst [vmem:[#allocation141_spill] sm:$0xff] %v9567_v6  ;;  %v1132_v39 = vor.u32 %v12566_v21, %v12565_v54  ;;  %v12576_v33 = vrot.slane %v12530_v47, 3  ;;  %v1189_v47 = vrot.slane %v8093_v60, 3 }
  0xe2   : > { %v9595_v51 = vsel %vm1167_vm5, %v12570_v43, %v12569_v12  ;;  %v1148_v12 = vrot.slane %v12481_v19, 3 }
  0xe3   : > { %6946 = vmatpush3.bf16.msra.mxu1 %v7959_v55  ;;  %v12568_v55 = vrot.slane %v12519_v7, 3 }
  0xe4   : > { %6947 = vmatprep.subr.bf16.mxu1 %v7961_v37 }
  0xe5   : > { %3942 = vmatmul.mubr.bf16.gmra.mxu1 %v9557_v50  ;;  %3845 = vmatmul.mubr.bf16.gmra.mxu0 %v9567_v6  ;;  %v1135_v37 = vor.u32 %v12568_v55, %v12567_v4  ;;  %v1145_v55 = vrot.slane %v12480_v15, 3 }
  0xe6   : > { %3949 = vmatprep.mubr.bf16.mxu1 %v12528_v26  ;;  %3852 = vmatprep.mubr.bf16.mxu0 %v9570_v32 }
  0xe7   : > { %6948 = vmatpush3.bf16.msra.mxu1 %v7963_v58  ;;  %v12571_v58 = vrot.slane %v12507_v17, 2  ;;  %v9605_v54 = vsel %vm1038_vm3, %v1132_v39, %v1135_v37  ;;  %v1147_v37 = vrot.slane %v9264_v63, 2  ;;  %v12593_v63 = vld [vmem:[#allocation42_spill] sm:$0xff] }
  0xe8   : > { %6949 = vmatprep.subr.bf16.mxu1 %v7965_v8  ;;  %12574 = vst [vmem:[#allocation158_spill] sm:$0xff] %v9605_v54 }
  0xe9   : > { %v9602_v25 = vsel %vm973_vm4, %v12572_v36, %v12571_v58  ;;  %v1139_v36 = vor.u32 %v12576_v33, %v12575_v27  ;;  %v8094_v27 = vld [vmem:[%s8259_s30 + $0x38] ss:$0 sps:$4 sm:$0x77]  }
  0xea   : > { %12573 = vst [vmem:[#allocation157_spill] sm:$0xff] %v9602_v25 }
  0xeb   : > { %6950 = vmatpush3.bf16.msra.mxu1 %v7967_v46  ;;  %v1142_v46 = vor.u32 %v1141_v45, %v1140_v44  ;;  %v1190_v44 = vrot.slane %v8094_v27, 3 }
  0xec   : > { %7159 = vmatprep.subr.bf16.mxu1 %v7971_v28  ;;  %v1144_v28 = vrot.slane %v12479_v23, 2  ;;  %v12578_v23 = vrot.slane %v12528_v26, 3 }
  0xed   : > { %v6391_v8 = vpop.f32.mrf.mxu0  ;;  %v6463_v21 = vpop.f32.mrf.mxu1  ;;  %3950 = vmatmul.mubr.bf16.gmra.mxu1 %v9595_v51  ;;  %3853 = vmatmul.mubr.bf16.gmra.mxu0 %v9602_v25  ;;  %v9644_v52 = vsel %vm1038_vm3, %v1139_v36, %v1142_v46 }
  0xee   : > { %3957 = vmatprep.mubr.bf16.mxu1 %v12558_v9  ;;  %3860 = vmatprep.mubr.bf16.mxu0 %v9605_v54  ;;  %v9630_v15 = vsel %vm1167_vm5, %v12578_v23, %v12577_v38  ;;  %12582 = vst [vmem:[#allocation160_spill] sm:$0xff] %v9644_v52 }
  0xef   : > { %v6392_v4 = vpop.f32.mrf.mxu0  ;;  %v6464_v39 = vpop.f32.mrf.mxu1 }
  0xf0   : > { %v9619_v43 = vadd.f32 %v6392_v4, %v6391_v8  ;;  %v9621_v58 = vadd.f32 %v6464_v39, %v6463_v21  ;;  %v12579_v8 = vrot.slane %v9150_v1, 2  ;;  %v12580_v21 = vrot.slane %v12527_v13, 2 }
  0xf1   : > { %v6394_v45 = vpop.f32.mrf.mxu0  ;;  %v6466_v33 = vpop.f32.mrf.mxu1 }
  0xf2   : > { %v9637_v4 = vsel %vm973_vm4, %v12580_v21, %v12579_v8  ;;  %v12584_v8 = vrot.slane %v12558_v9, 3 }
  0xf3   : > { %v6395_v34 = vpop.f32.mrf.mxu0  ;;  %v6467_v17 = vpop.f32.mrf.mxu1  ;;  %12581 = vst [vmem:[#allocation159_spill] sm:$0xff] %v9637_v4 }
  0xf4   : > { %v9639_v39 = vadd.f32 %v6395_v34, %v6394_v45  ;;  %v9641_v27 = vadd.f32 %v6467_v17, %v6466_v33  ;;  %v1146_v17 = vor.u32 %v1145_v55, %v1144_v28  ;;  %v1149_v45 = vor.u32 %v1148_v12, %v1147_v37 }
  0xf5   : > { %v6397_v26 = vpop.f32.mrf.mxu0  ;;  %v6469_v35 = vpop.f32.mrf.mxu1  ;;  %3958 = vmatmul.mubr.bf16.gmra.mxu1 %v9630_v15  ;;  %3861 = vmatmul.mubr.bf16.gmra.mxu0 %v9637_v4  ;;  %v12583_v33 = vrot.slane %v9289_v16, 3 }
  0xf6   : > { %3965 = vmatprep.mubr.bf16.mxu1 %v8093_v60  ;;  %3868 = vmatprep.mubr.bf16.mxu0 %v9644_v52  ;;  %v9672_v37 = vsel %vm1038_vm3, %v1146_v17, %v1149_v45 }
  0xf7   : > { %v6398_v23 = vpop.f32.mrf.mxu0  ;;  %v6470_v38 = vpop.f32.mrf.mxu1  ;;  %v9658_v21 = vsel %vm1167_vm5, %v12584_v8, %v12583_v33  ;;  %12589 = vst [vmem:[#allocation163_spill] sm:$0xff] %v9672_v37  ;;  %v9685_v8 = vsel %vm1167_vm5, %v1189_v47, %v1190_v44  ;;  %v8097_v44 = vld [vmem:[%s8259_s30 + $0x44] ss:$0 sps:$4 sm:$0x77]  }
  0xf8   : > { %v9649_v13 = vadd.f32 %v6398_v23, %v6397_v26  ;;  %v9651_v34 = vadd.f32 %v6470_v38, %v6469_v35  ;;  %12585 = vst [vmem:[#allocation161_spill] sm:$0xff] %v9658_v21  ;;  %v12587_v26 = vrot.slane %v12553_v56, 2  ;;  %v8095_v23 = vld [vmem:[%s8259_s30 + $0x3c] sm:$0xff]   ;;  %12591 = vst [vmem:[#allocation164_spill] sm:$0xff] %v9685_v8 }
  0xf9   : > { %v6400_v36 = vpop.f32.mrf.mxu0  ;;  %v6472_v46 = vpop.f32.mrf.mxu1  ;;  %v1192_v47 = vrot.slane %v8095_v23, 3 }
  0xfa   : > { %v9665_v35 = vsel %vm973_vm4, %v12587_v26, %v12586_v14  ;;  %v1019_v14 = vrot.slane %v9302_v18, 2 }
  0xfb   : > { %v6401_v60 = vpop.f32.mrf.mxu0  ;;  %v6473_v1 = vpop.f32.mrf.mxu1  ;;  %12588 = vst [vmem:[#allocation162_spill] sm:$0xff] %v9665_v35 }
  0xfc   : > { %v9667_v28 = vadd.f32 %v6401_v60, %v6400_v36  ;;  %v9669_v55 = vadd.f32 %v6473_v1, %v6472_v46  ;;  %v12590_v36 = vld [vmem:[#allocation137_spill] sm:$0xff] }
  0xfd   : > { %v6403_v9 = vpop.f32.mrf.mxu0  ;;  %v6475_v12 = vpop.f32.mrf.mxu1  ;;  %3966 = vmatmul.mubr.bf16.gmra.mxu1 %v9658_v21  ;;  %3869 = vmatmul.mubr.bf16.gmra.mxu0 %v9665_v35  ;;  %v12209_v1 = vrot.slane %v12590_v36, 2 }
  0xfe   : > { %3973 = vmatprep.mubr.bf16.mxu1 %v8095_v23  ;;  %3876 = vmatprep.mubr.bf16.mxu0 %v9672_v37  ;;  %v7956_v23 = vld [vmem:[%s11939_s2 + $0x338] sm:$0xff]   ;;  %v12602_v37 = vld [vmem:[#allocation76_spill] sm:$0xff] }
  0xff   : > { %v6404_v38 = vpop.f32.mrf.mxu0  ;;  %v6476_v56 = vpop.f32.mrf.mxu1  ;;  %v9690_v16 = vsel %vm973_vm4, %v1019_v14, %v12209_v1 }
 0x100   : > { %v9680_v46 = vadd.f32 %v6404_v38, %v6403_v9  ;;  %v9682_v17 = vadd.f32 %v6476_v56, %v6475_v12  ;;  %12592 = vst [vmem:[#allocation165_spill] sm:$0xff] %v9690_v16  ;;  %v8096_v38 = vld [vmem:[%s8259_s30 + $0x48] sm:$0xff]   ;;  %v1193_v56 = vrot.slane %v8097_v44, 3 }
 0x101   : > { %v6406_v45 = vpop.f32.mrf.mxu0  ;;  %v6478_v33 = vpop.f32.mrf.mxu1 }
 0x103   : > { %v6407_v60 = vpop.f32.mrf.mxu0  ;;  %v6479_v26 = vpop.f32.mrf.mxu1 }
 0x104   : > { %v9692_v18 = vadd.f32 %v6407_v60, %v6406_v45  ;;  %v9694_v59 = vadd.f32 %v6479_v26, %v6478_v33  ;;  %v9706_v26 = vsel %vm1167_vm5, %v1192_v47, %v1193_v56  ;;  %v8098_v47 = vld [vmem:[%s8259_s30 + $0x54] sm:$0xff]   ;;  %v1195_v56 = vrot.slane %v8096_v38, 3 }
 0x105   : > { %v6409_v9 = vpop.f32.mrf.mxu0  ;;  %v6481_v12 = vpop.f32.mrf.mxu1  ;;  %3974 = vmatmul.mubr.bf16.gmra.mxu1 %v9685_v8  ;;  %3877 = vmatmul.mubr.bf16.gmra.mxu0 %v9690_v16  ;;  %12594 = vst [vmem:[#allocation42_spill] sm:$0xff] %v9706_v26  ;;  %v1198_v5 = vrot.slane %v8098_v47, 3 }
 0x106   : > { %3981 = vmatprep.mubr.bf16.mxu1 %v8096_v38  ;;  %4078 = vmatprep.mubr.bf16.mxu0 %v12593_v63  ;;  %v9735_v40 = vsel %vm1167_vm5, %v1195_v56, %v1196_v10 }
 0x107   : > { %v6410_v61 = vpop.f32.mrf.mxu0  ;;  %v6482_v36 = vpop.f32.mrf.mxu1 }
 0x108   : > { %v9701_v14 = vadd.f32 %v6410_v61, %v6409_v9  ;;  %v9703_v45 = vadd.f32 %v6482_v36, %v6481_v12  ;;  %v7958_v61 = vld [vmem:[%s11939_s2 + $0x370] sm:$0xff]   ;;  %v12595_v12 = vld [vmem:[#allocation9_spill] sm:$0xff] }
 0x109   : > { %v6412_v33 = vpop.f32.mrf.mxu0  ;;  %v6484_v60 = vpop.f32.mrf.mxu1  ;;  %12597 = vst [vmem:[#allocation9_spill] sm:$0xff] %v9735_v40 }
 0x10b   : > { %v6413_v1 = vpop.f32.mrf.mxu0  ;;  %v6485_v19 = vpop.f32.mrf.mxu1 }
 0x10c   : > { %v9711_v44 = vadd.f32 %v6413_v1, %v6412_v33  ;;  %v9713_v63 = vadd.f32 %v6485_v19, %v6484_v60  ;;  %v12596_v33 = vld [vmem:[#allocation52_spill] sm:$0xff] }
 0x10d   : > { %v6503_v36 = vpop.f32.mrf.mxu1  ;;  %3982 = vmatmul.mubr.bf16.gmra.mxu1 %v9706_v26  ;;  %v6415_v9 = vpop.f32.mrf.mxu0  ;;  %4079 = vmatmul.mubr.bf16.vlgmr.msra.gmra.mxu0 %v12595_v12  ;;  %v7960_v19 = vld [vmem:[%s11939_s2 + $0x330] sm:$0xff]   ;;  %v7962_v12 = vld [vmem:[%s11939_s2 + $0x368] sm:$0xff]  }
 0x10e   : > { %3989 = vmatprep.mubr.bf16.mxu1 %v8098_v47  ;;  %7048 = vmatpush3.bf16.msra.mxu0 %v7956_v23 }
 0x10f   : > { %v6504_v1 = vpop.f32.mrf.mxu1  ;;  %4086 = vmatprep.mubr.bf16.mxu0 %v12596_v33  ;;  %v6416_v60 = vpop.f32.mrf.mxu0  ;;  %7049 = vmatprep.subr.bf16.mxu0 %v7958_v61  ;;  %v7964_v61 = vld [vmem:[%s11939_s2 + $0x328] sm:$0xff]  }
 0x110   : > { %v6505_v53 = vadd.f32 %v6504_v1, %v6503_v36  ;;  %v9729_v7 = vadd.f32 %v6416_v60, %v6415_v9  ;;  %v8100_v60 = vld [vmem:[%s8259_s30 + $0x60] sm:$0xff]  }
 0x111   : > { %v6506_v38 = vpop.f32.mrf.mxu1  ;;  %v6418_v23 = vpop.f32.mrf.mxu0  ;;  %v1201_v33 = vrot.slane %v8100_v60, 3 }
 0x112   : > { %v9732_v48 = vadd.f32 %v6505_v53, %v9619_v43  ;;  %7050 = vmatpush3.bf16.msra.mxu0 %v7960_v19  ;;  %v7966_v53 = vld [vmem:[%s11939_s2 + $0x360] sm:$0xff]   ;;  %v12598_v19 = vld [vmem:[#allocation16_spill] sm:$0xff] }
 0x113   : > { %v6507_v62 = vpop.f32.mrf.mxu1  ;;  %v6419_v36 = vpop.f32.mrf.mxu0  ;;  %7051 = vmatprep.subr.bf16.mxu0 %v7962_v12 }
 0x114   : > { %v6508_v1 = vadd.f32 %v6507_v62, %v6506_v38  ;;  %v9743_v43 = vadd.f32 %v6419_v36, %v6418_v23  ;;  %v8101_v62 = vld [vmem:[%s8259_s30 + $0x5c] ss:$0 sps:$4 sm:$0x77]   ;;  %v7968_v23 = vld [vmem:[%s11939_s2 + $0x320] sm:$0xff]  }
 0x115   : > { %v6509_v9 = vpop.f32.mrf.mxu1  ;;  %3990 = vmatmul.mubr.bf16.gmra.mxu1 %v9735_v40  ;;  %v6421_v56 = vpop.f32.mrf.mxu0  ;;  %4087 = vmatmul.mubr.bf16.gmra.mxu0 %v12598_v19  ;;  %v1199_v12 = vrot.slane %v8101_v62, 3 }
 0x116   : > { %v9747_v10 = vadd.f32 %v6508_v1, %v9639_v39  ;;  %3997 = vmatprep.mubr.bf16.mxu1 %v8100_v60  ;;  %4094 = vmatprep.mubr.bf16.mxu0 %v12599_v11  ;;  %v7970_v39 = vld [vmem:[%s11939_s2 + $0x358] sm:$0xff]  }
 0x117   : > { %v6510_v38 = vpop.f32.mrf.mxu1  ;;  %7052 = vmatpush3.bf16.msra.mxu0 %v7964_v61  ;;  %v6422_v36 = vpop.f32.mrf.mxu0  ;;  %v9765_v61 = vsel %vm1167_vm5, %v1198_v5, %v1199_v12 }
 0x118   : > { %v6511_v41 = vadd.f32 %v6510_v38, %v6509_v9  ;;  %7053 = vmatprep.subr.bf16.mxu0 %v7966_v53  ;;  %v9759_v1 = vadd.f32 %v6422_v36, %v6421_v56  ;;  %12600 = vst [vmem:[#allocation166_spill] sm:$0xff] %v9765_v61  ;;  %v7972_v53 = vld [vmem:[%s11939_s2 + $0x318] sm:$0xff]   ;;  %v8102_v36 = vld [vmem:[%s8259_s30 + $0x6c] sm:$0xff]  }
 0x119   : > { %v6512_v47 = vpop.f32.mrf.mxu1  ;;  %v6424_v2 = vpop.f32.mrf.mxu0  ;;  %v1204_v32 = vrot.slane %v8102_v36, 3 }
 0x11a   : > { %v9762_v62 = vadd.f32 %v6511_v41, %v9649_v13  ;;  %v7974_v41 = vld [vmem:[%s11939_s2 + $0x350] sm:$0xff]  }
 0x11b   : > { %v6513_v11 = vpop.f32.mrf.mxu1  ;;  %7054 = vmatpush3.bf16.msra.mxu0 %v7968_v23  ;;  %v6425_v9 = vpop.f32.mrf.mxu0  ;;  %v12601_v23 = vld [vmem:[#allocation25_spill] sm:$0xff] }
 0x11c   : > { %v6514_v38 = vadd.f32 %v6513_v11, %v6512_v47  ;;  %7055 = vmatprep.subr.bf16.mxu0 %v7970_v39  ;;  %v9773_v13 = vadd.f32 %v6425_v9, %v6424_v2  ;;  %v8103_v11 = vld [vmem:[%s8259_s30 + $0x68] ss:$0 sps:$4 sm:$0x77]   ;;  %v7976_v2 = vld [vmem:[%s11939_s2 + $0x310] sm:$0xff]  }
 0x11d   : > { %v6515_v56 = vpop.f32.mrf.mxu1  ;;  %3998 = vmatmul.mubr.bf16.gmra.mxu1 %v9765_v61  ;;  %v6427_v12 = vpop.f32.mrf.mxu0  ;;  %4095 = vmatmul.mubr.bf16.gmra.mxu0 %v12601_v23  ;;  %v1202_v39 = vrot.slane %v8103_v11, 3  ;;  %v12608_v61 = vld [vmem:[#allocation91_spill] sm:$0xff] }
 0x11e   : > { %v9777_v5 = vadd.f32 %v6514_v38, %v9667_v28  ;;  %4005 = vmatprep.mubr.bf16.mxu1 %v8102_v36  ;;  %4102 = vmatprep.mubr.bf16.mxu0 %v12602_v37  ;;  %v7978_v28 = vld [vmem:[%s11939_s2 + $0x348] sm:$0xff]  }
 0x11f   : > { %v6516_v47 = vpop.f32.mrf.mxu1  ;;  %7056 = vmatpush3.bf16.msra.mxu0 %v7972_v53  ;;  %v6428_v9 = vpop.f32.mrf.mxu0  ;;  %v9795_v53 = vsel %vm1167_vm5, %v1201_v33, %v1202_v39 }
 0x120   : > { %v6517_v52 = vadd.f32 %v6516_v47, %v6515_v56  ;;  %7057 = vmatprep.subr.bf16.mxu0 %v7974_v41  ;;  %v9789_v38 = vadd.f32 %v6428_v9, %v6427_v12  ;;  %12603 = vst [vmem:[#allocation167_spill] sm:$0xff] %v9795_v53  ;;  %v7980_v41 = vld [vmem:[%s11939_s2 + $0x308] sm:$0xff]   ;;  %v8104_v9 = vld [vmem:[%s8259_s30 + $0x78] sm:$0xff]  }
 0x121   : > { %v6518_v60 = vpop.f32.mrf.mxu1  ;;  %v6430_v37 = vpop.f32.mrf.mxu0 }
 0x122   : > { %v9792_v11 = vadd.f32 %v6517_v52, %v9680_v46  ;;  %v7982_v52 = vld [vmem:[%s11939_s2 + $0x340] sm:$0xff]  }
 0x123   : > { %v6519_v54 = vpop.f32.mrf.mxu1  ;;  %7058 = vmatpush3.bf16.msra.mxu0 %v7976_v2  ;;  %v6431_v56 = vpop.f32.mrf.mxu0  ;;  %v12604_v2 = vld [vmem:[#allocation32_spill] sm:$0xff] }
 0x124   : > { %v6520_v47 = vadd.f32 %v6519_v54, %v6518_v60  ;;  %7059 = vmatprep.subr.bf16.mxu0 %v7978_v28  ;;  %v9803_v46 = vadd.f32 %v6431_v56, %v6430_v37  ;;  %v8105_v54 = vld [vmem:[%s8259_s30 + $0x74] ss:$0 sps:$4 sm:$0x77]   ;;  %v7984_v37 = vld [vmem:[%s11939_s2 + $0x300] sm:$0xff]  }
 0x125   : > { %v6521_v12 = vpop.f32.mrf.mxu1  ;;  %4006 = vmatmul.mubr.bf16.gmra.mxu1 %v9795_v53  ;;  %v6433_v39 = vpop.f32.mrf.mxu0  ;;  %4103 = vmatmul.mubr.bf16.gmra.mxu0 %v12604_v2  ;;  %v1205_v28 = vrot.slane %v8105_v54, 3 }
 0x126   : > { %v9807_v33 = vadd.f32 %v6520_v47, %v9692_v18  ;;  %4013 = vmatprep.mubr.bf16.mxu1 %v8104_v9  ;;  %4110 = vmatprep.mubr.bf16.mxu0 %v12605_v3  ;;  %v7988_v18 = vld [vmem:[%s11939_s2 + $0x478] sm:$0xff]  }
 0x127   : > { %v6522_v60 = vpop.f32.mrf.mxu1  ;;  %7060 = vmatpush3.bf16.msra.mxu0 %v7980_v41  ;;  %v6434_v56 = vpop.f32.mrf.mxu0  ;;  %v9825_v41 = vsel %vm1167_vm5, %v1204_v32, %v1205_v28  ;;  %v1207_v32 = vrot.slane %v8104_v9, 3  ;;  %v8107_v28 = vld [vmem:[%s8259_s30 + $0x80] ss:$0 sps:$4 sm:$0x77]  }
 0x128   : > { %v6523_v53 = vadd.f32 %v6522_v60, %v6521_v12  ;;  %7061 = vmatprep.subr.bf16.mxu0 %v7982_v52  ;;  %v9819_v47 = vadd.f32 %v6434_v56, %v6433_v39  ;;  %12606 = vst [vmem:[#allocation168_spill] sm:$0xff] %v9825_v41  ;;  %v8106_v56 = vld [vmem:[%s8259_s30 + $0x84] sm:$0xff]   ;;  %v1208_v23 = vrot.slane %v8107_v28, 3 }
 0x129   : > { %v6524_v36 = vpop.f32.mrf.mxu1  ;;  %v6436_v3 = vpop.f32.mrf.mxu0 }
 0x12a   : > { %v9822_v54 = vadd.f32 %v6523_v53, %v9701_v14  ;;  %v12607_v53 = vld [vmem:[#allocation43_spill] sm:$0xff] }
 0x12b   : > { %v6525_v2 = vpop.f32.mrf.mxu1  ;;  %7062 = vmatpush3.bf16.msra.mxu0 %v7984_v37  ;;  %v6437_v12 = vpop.f32.mrf.mxu0 }
 0x12c   : > { %v6526_v52 = vadd.f32 %v6525_v2, %v6524_v36  ;;  %7271 = vmatprep.subr.bf16.mxu0 %v7988_v18  ;;  %v9827_v60 = vadd.f32 %v6437_v12, %v6436_v3 }
 0x12d   : > { %v6527_v0 = vpop.f32.mrf.mxu1  ;;  %4014 = vmatmul.mubr.bf16.gmra.mxu1 %v9825_v41  ;;  %v6439_v14 = vpop.f32.mrf.mxu0  ;;  %4111 = vmatmul.mubr.bf16.gmra.mxu0 %v12607_v53 }
 0x12e   : > { %v9831_v39 = vadd.f32 %v6526_v52, %v9711_v44  ;;  %4021 = vmatprep.mubr.bf16.mxu1 %v8106_v56  ;;  %4118 = vmatprep.mubr.bf16.mxu0 %v12608_v61  ;;  %v9843_v52 = vsel %vm1167_vm5, %v1207_v32, %v1208_v23  ;;  %v8109_v23 = vld [vmem:[%s8259_s30 + $0x8c] ss:$0 sps:$4 sm:$0x77]  }
 0x12f   : > { %v6528_v37 = vpop.f32.mrf.mxu1  ;;  %v6440_v2 = vpop.f32.mrf.mxu0  ;;  %12609 = vst [vmem:[#allocation169_spill] sm:$0xff] %v9843_v52  ;;  %v1211_v32 = vrot.slane %v8109_v23, 3 }
 0x130   : > { %v6529_v3 = vadd.f32 %v6528_v37, %v6527_v0  ;;  %v9837_v18 = vadd.f32 %v6440_v2, %v6439_v14  ;;  %v12610_v37 = vld [vmem:[#allocation44_spill] sm:$0xff]  ;;  %v1210_v2 = vrot.slane %v8106_v56, 3 }
 0x131   : > { %v6530_v36 = vpop.f32.mrf.mxu1  ;;  %v6442_v12 = vpop.f32.mrf.mxu0 }
 0x132   : > { %v9840_v44 = vadd.f32 %v6529_v3, %v9729_v7  ;;  %v8108_v7 = vld [vmem:[%s8259_s30 + $0x90] sm:$0xff]  }
 0x133   : > { %v6531_v9 = vpop.f32.mrf.mxu1  ;;  %v6443_v41 = vpop.f32.mrf.mxu0 }
 0x134   : > { %v6532_v28 = vadd.f32 %v6531_v9, %v6530_v36  ;;  %v9845_v53 = vadd.f32 %v6443_v41, %v6442_v12 }
 0x135   : > { %v6533_v61 = vpop.f32.mrf.mxu1  ;;  %4022 = vmatmul.mubr.bf16.gmra.mxu1 %v9843_v52  ;;  %v6445_v14 = vpop.f32.mrf.mxu0  ;;  %4119 = vmatmul.mubr.bf16.gmra.mxu0 %v12610_v37  ;;  %v9861_v52 = vsel %vm1167_vm5, %v1210_v2, %v1211_v32  ;;  %v9864_v37 = vld [vmem:[%s8259_s30 + $0x9c] sm:$0xff]   ;;  %v1213_v2 = vrot.slane %v8108_v7, 3  ;;  %v8110_v32 = vld [vmem:[%s8259_s30 + $0x98] ss:$0 sps:$4 sm:$0x77]  }
 0x136   : > { %v9849_v0 = vadd.f32 %v6532_v28, %v9743_v43  ;;  %4029 = vmatprep.mubr.bf16.mxu1 %v8108_v7  ;;  %4126 = vmatprep.mubr.bf16.mxu0 %v12611_v30  ;;  %12612 = vst [vmem:[#allocation170_spill] sm:$0xff] %v9861_v52 }
 0x137   : > { %v6534_v3 = vpop.f32.mrf.mxu1  ;;  %v6446_v41 = vpop.f32.mrf.mxu0 }
 0x138   : > { %v6535_v36 = vadd.f32 %v6534_v3, %v6533_v61  ;;  %v9855_v12 = vadd.f32 %v6446_v41, %v6445_v14  ;;  %v1214_v3 = vrot.slane %v8110_v32, 3 }
 0x139   : > { %v6536_v9 = vpop.f32.mrf.mxu1  ;;  %v6448_v28 = vpop.f32.mrf.mxu0 }
 0x13a   : > { %v9858_v43 = vadd.f32 %v6535_v36, %v9759_v1  ;;  %v12613_v1 = vld [vmem:[#allocation57_spill] sm:$0xff]  ;;  %v12614_v36 = vld [vmem:[#allocation100_spill] sm:$0xff] }
 0x13b   : > { %v6537_v56 = vpop.f32.mrf.mxu1  ;;  %v6449_v23 = vpop.f32.mrf.mxu0 }
 0x13c   : > { %v6538_v40 = vadd.f32 %v6537_v56, %v6536_v9  ;;  %v9866_v19 = vadd.f32 %v6449_v23, %v6448_v28 }
 0x13d   : > { %v6539_v30 = vpop.f32.mrf.mxu1  ;;  %4030 = vmatmul.mubr.bf16.gmra.mxu1 %v9861_v52  ;;  %v6451_v14 = vpop.f32.mrf.mxu0  ;;  %4127 = vmatmul.mubr.bf16.gmra.mxu0 %v12613_v1 }
 0x13e   : > { %v9870_v61 = vadd.f32 %v6538_v40, %v9773_v13  ;;  %4037 = vmatprep.mubr.bf16.mxu1 %v9864_v37  ;;  %4134 = vmatprep.mubr.bf16.mxu0 %v12614_v36  ;;  %v9882_v13 = vsel %vm1167_vm5, %v1213_v2, %v1214_v3 }
 0x13f   : > { %v6540_v41 = vpop.f32.mrf.mxu1  ;;  %v6452_v9 = vpop.f32.mrf.mxu0  ;;  %12615 = vst [vmem:[#allocation171_spill] sm:$0xff] %v9882_v13 }
 0x140   : > { %v6541_v28 = vadd.f32 %v6540_v41, %v6539_v30  ;;  %v9876_v56 = vadd.f32 %v6452_v9, %v6451_v14  ;;  %v12616_v41 = vld [vmem:[#allocation69_spill] sm:$0xff] }
 0x141   : > { %v6542_v23 = vpop.f32.mrf.mxu1  ;;  %v6454_v40 = vpop.f32.mrf.mxu0 }
 0x142   : > { %v9879_v52 = vadd.f32 %v6541_v28, %v9789_v38  ;;  %v12617_v38 = vld [vmem:[#allocation106_spill] sm:$0xff]  ;;  %v12618_v28 = vld [vmem:[#allocation105_spill] sm:$0xff] }
 0x143   : > { %v6543_v1 = vpop.f32.mrf.mxu1  ;;  %v6455_v24 = vpop.f32.mrf.mxu0 }
 0x144   : > { %v6544_v7 = vadd.f32 %v6543_v1, %v6542_v23  ;;  %v9884_v26 = vadd.f32 %v6455_v24, %v6454_v40 }
 0x145   : > { %v6545_v32 = vpop.f32.mrf.mxu1  ;;  %4038 = vmatmul.mubr.bf16.gmra.mxu1 %v9882_v13  ;;  %v6457_v14 = vpop.f32.mrf.mxu0  ;;  %4135 = vmatmul.mubr.bf16.gmra.mxu0 %v12616_v41  ;;  %v12622_v41 = vld [vmem:[#allocation114_spill] sm:$0xff] }
 0x146   : > { %v9888_v30 = vadd.f32 %v6544_v7, %v9803_v46  ;;  %4239 = vmatprep.mubr.bf16.mxu1 %v12617_v38  ;;  %4142 = vmatprep.mubr.bf16.mxu0 %v12618_v28  ;;  %v7973_v46 = vld [vmem:[%s11939_s2 + $0x3b8] sm:$0xff]   ;;  %v7975_v38 = vld [vmem:[%s11939_s2 + $0x3f0] sm:$0xff]  }
 0x147   : > { %v6546_v9 = vpop.f32.mrf.mxu1  ;;  %v6458_v2 = vpop.f32.mrf.mxu0 }
 0x148   : > { %v6547_v3 = vadd.f32 %v6546_v9, %v6545_v32  ;;  %v9893_v36 = vadd.f32 %v6458_v2, %v6457_v14  ;;  %v12619_v14 = vld [vmem:[#allocation37_spill] sm:$0xff]  ;;  %v12620_v2 = vld [vmem:[#allocation78_spill] sm:$0xff] }
 0x149   : > { %v6548_v24 = vpop.f32.mrf.mxu1  ;;  %v6460_v23 = vpop.f32.mrf.mxu0 }
 0x14a   : > { %v9896_v1 = vadd.f32 %v6547_v3, %v9819_v47  ;;  %v7977_v3 = vld [vmem:[%s11939_s2 + $0x3b0] sm:$0xff]  }
 0x14b   : > { %v6549_v40 = vpop.f32.mrf.mxu1  ;;  %v6461_v7 = vpop.f32.mrf.mxu0 }
 0x14c   : > { %v6550_v13 = vadd.f32 %v6549_v40, %v6548_v24  ;;  %v9904_v28 = vadd.f32 %v6461_v7, %v6460_v23  ;;  %v12621_v40 = vld [vmem:[#allocation113_spill] sm:$0xff]  ;;  %v7979_v23 = vld [vmem:[%s11939_s2 + $0x3e8] sm:$0xff]  }
 0x14d   : > { %v6551_v32 = vpop.f32.mrf.mxu1  ;;  %4240 = vmatmul.mubr.bf16.vlgmr.msra.gmra.mxu1 %v12619_v14  ;;  %v6615_v9 = vpop.f32.mrf.mxu0  ;;  %4143 = vmatmul.mubr.bf16.gmra.mxu0 %v12620_v2 }
 0x14e   : > { %v9908_v47 = vadd.f32 %v6550_v13, %v9827_v60  ;;  %7160 = vmatpush3.bf16.msra.mxu1 %v7973_v46  ;;  %4150 = vmatprep.mubr.bf16.mxu0 %v12621_v40 }
 0x14f   : > { %v6552_v24 = vpop.f32.mrf.mxu1  ;;  %4247 = vmatprep.mubr.bf16.mxu1 %v12622_v41  ;;  %v6616_v60 = vpop.f32.mrf.mxu0  ;;  %7161 = vmatprep.subr.bf16.mxu1 %v7975_v38  ;;  %v7981_v41 = vld [vmem:[%s11939_s2 + $0x3a8] sm:$0xff]   ;;  %v7983_v38 = vld [vmem:[%s11939_s2 + $0x3e0] sm:$0xff]  }
 0x150   : > { %v6553_v7 = vadd.f32 %v6552_v24, %v6551_v32  ;;  %v6617_v13 = vadd.f32 %v6616_v60, %v6615_v9  ;;  %v12623_v24 = vld [vmem:[#allocation48_spill] sm:$0xff] }
 0x151   : > { %v6554_v14 = vpop.f32.mrf.mxu1  ;;  %v6618_v2 = vpop.f32.mrf.mxu0 }
 0x152   : > { %v9920_v46 = vadd.f32 %v6553_v7, %v9837_v18  ;;  %7162 = vmatpush3.bf16.msra.mxu1 %v7977_v3  ;;  %v9923_v8 = vadd.f32 %v6617_v13, %v9732_v48  ;;  %v12624_v7 = vld [vmem:[#allocation87_spill] sm:$0xff]  ;;  %v12626_v13 = vld [vmem:[#allocation122_spill] sm:$0xff] }
 0x153   : > { %v6555_v40 = vpop.f32.mrf.mxu1  ;;  %7163 = vmatprep.subr.bf16.mxu1 %v7979_v23  ;;  %v6619_v32 = vpop.f32.mrf.mxu0  ;;  %v12625_v23 = vld [vmem:[#allocation123_spill] sm:$0xff] }
 0x154   : > { %v6556_v16 = vadd.f32 %v6555_v40, %v6554_v14  ;;  %v6620_v9 = vadd.f32 %v6619_v32, %v6618_v2  ;;  %v7985_v2 = vld [vmem:[%s11939_s2 + $0x3a0] sm:$0xff]  }
 0x155   : > { %v6557_v18 = vpop.f32.mrf.mxu1  ;;  %4248 = vmatmul.mubr.bf16.gmra.mxu1 %v12623_v24  ;;  %v6621_v48 = vpop.f32.mrf.mxu0  ;;  %4151 = vmatmul.mubr.bf16.gmra.mxu0 %v12624_v7  ;;  %v12629_v24 = vld [vmem:[#allocation134_spill] sm:$0xff] }
 0x156   : > { %v9933_v3 = vadd.f32 %v6556_v16, %v9845_v53  ;;  %4255 = vmatprep.mubr.bf16.mxu1 %v12625_v23  ;;  %v9938_v60 = vadd.f32 %v6620_v9, %v9747_v10  ;;  %4158 = vmatprep.mubr.bf16.mxu0 %v12626_v13  ;;  %v7987_v16 = vld [vmem:[%s11939_s2 + $0x3d8] sm:$0xff]  }
 0x157   : > { %v6558_v40 = vpop.f32.mrf.mxu1  ;;  %7164 = vmatpush3.bf16.msra.mxu1 %v7981_v41  ;;  %v6622_v32 = vpop.f32.mrf.mxu0 }
 0x158   : > { %v6559_v14 = vadd.f32 %v6558_v40, %v6557_v18  ;;  %7165 = vmatprep.subr.bf16.mxu1 %v7983_v38  ;;  %v6623_v53 = vadd.f32 %v6622_v32, %v6621_v48  ;;  %v7989_v18 = vld [vmem:[%s11939_s2 + $0x398] sm:$0xff]   ;;  %v7991_v48 = vld [vmem:[%s11939_s2 + $0x3d0] sm:$0xff]  }
 0x159   : > { %v6560_v23 = vpop.f32.mrf.mxu1  ;;  %v6624_v9 = vpop.f32.mrf.mxu0 }
 0x15a   : > { %v9948_v10 = vadd.f32 %v6559_v14, %v9855_v12  ;;  %v9951_v13 = vadd.f32 %v6623_v53, %v9762_v62  ;;  %v12627_v14 = vld [vmem:[#allocation58_spill] sm:$0xff] }
 0x15b   : > { %v6561_v41 = vpop.f32.mrf.mxu1  ;;  %7166 = vmatpush3.bf16.msra.mxu1 %v7985_v2  ;;  %v6625_v40 = vpop.f32.mrf.mxu0  ;;  %v12628_v2 = vld [vmem:[#allocation93_spill] sm:$0xff] }
 0x15c   : > { %v6562_v38 = vadd.f32 %v6561_v41, %v6560_v23  ;;  %7167 = vmatprep.subr.bf16.mxu1 %v7987_v16  ;;  %v6626_v32 = vadd.f32 %v6625_v40, %v6624_v9  ;;  %v12630_v41 = vld [vmem:[#allocation132_spill] sm:$0xff] }
 0x15d   : > { %v6563_v12 = vpop.f32.mrf.mxu1  ;;  %4256 = vmatmul.mubr.bf16.gmra.mxu1 %v12627_v14  ;;  %v6627_v53 = vpop.f32.mrf.mxu0  ;;  %4159 = vmatmul.mubr.bf16.gmra.mxu0 %v12628_v2  ;;  %v7993_v9 = vld [vmem:[%s11939_s2 + $0x390] sm:$0xff]   ;;  %v12633_v2 = vld [vmem:[#allocation146_spill] sm:$0xff] }
 0x15e   : > { %v9961_v62 = vadd.f32 %v6562_v38, %v9866_v19  ;;  %4263 = vmatprep.mubr.bf16.mxu1 %v12629_v24  ;;  %v9966_v23 = vadd.f32 %v6626_v32, %v9777_v5  ;;  %4166 = vmatprep.mubr.bf16.mxu0 %v12630_v41  ;;  %v7995_v19 = vld [vmem:[%s11939_s2 + $0x3c8] sm:$0xff]  }
 0x15f   : > { %v6564_v16 = vpop.f32.mrf.mxu1  ;;  %7168 = vmatpush3.bf16.msra.mxu1 %v7989_v18  ;;  %v6628_v14 = vpop.f32.mrf.mxu0 }
 0x160   : > { %v6565_v40 = vadd.f32 %v6564_v16, %v6563_v12  ;;  %7169 = vmatprep.subr.bf16.mxu1 %v7991_v48  ;;  %v6629_v38 = vadd.f32 %v6628_v14, %v6627_v53  ;;  %v7997_v12 = vld [vmem:[%s11939_s2 + $0x388] sm:$0xff]   ;;  %v7999_v14 = vld [vmem:[%s11939_s2 + $0x3c0] sm:$0xff]  }
 0x161   : > { %v6566_v24 = vpop.f32.mrf.mxu1  ;;  %v6630_v32 = vpop.f32.mrf.mxu0 }
 0x162   : > { %v9976_v5 = vadd.f32 %v6565_v40, %v9876_v56  ;;  %v9979_v41 = vadd.f32 %v6629_v38, %v9792_v11  ;;  %v12631_v40 = vld [vmem:[#allocation67_spill] sm:$0xff] }
 0x163   : > { %v6567_v18 = vpop.f32.mrf.mxu1  ;;  %7170 = vmatpush3.bf16.msra.mxu1 %v7993_v9  ;;  %v6631_v16 = vpop.f32.mrf.mxu0  ;;  %v12632_v9 = vld [vmem:[#allocation5_spill] sm:$0xff] }
 0x164   : > { %v6568_v48 = vadd.f32 %v6567_v18, %v6566_v24  ;;  %7171 = vmatprep.subr.bf16.mxu1 %v7995_v19  ;;  %v6632_v53 = vadd.f32 %v6631_v16, %v6630_v32  ;;  %v12634_v18 = vld [vmem:[#allocation145_spill] sm:$0xff]  ;;  %v8001_v32 = vld [vmem:[%s11939_s2 + $0x380] sm:$0xff]  }
 0x165   : > { %v6569_v56 = vpop.f32.mrf.mxu1  ;;  %4264 = vmatmul.mubr.bf16.gmra.mxu1 %v12631_v40  ;;  %v6633_v38 = vpop.f32.mrf.mxu0  ;;  %4167 = vmatmul.mubr.bf16.gmra.mxu0 %v12632_v9 }
 0x166   : > { %v9989_v11 = vadd.f32 %v6568_v48, %v9884_v26  ;;  %4271 = vmatprep.mubr.bf16.mxu1 %v12633_v2  ;;  %v9994_v24 = vadd.f32 %v6632_v53, %v9807_v33  ;;  %4174 = vmatprep.mubr.bf16.mxu0 %v12634_v18  ;;  %v8004_v26 = vld [vmem:[%s11939_s2 + $0x4f8] sm:$0xff]  }
 0x167   : > { %v6570_v19 = vpop.f32.mrf.mxu1  ;;  %7172 = vmatpush3.bf16.msra.mxu1 %v7997_v12  ;;  %v6634_v40 = vpop.f32.mrf.mxu0 }
 0x168   : > { %v6571_v16 = vadd.f32 %v6570_v19, %v6569_v56  ;;  %7173 = vmatprep.subr.bf16.mxu1 %v7999_v14  ;;  %v6635_v48 = vadd.f32 %v6634_v40, %v6633_v38  ;;  %v12635_v19 = vld [vmem:[#allocation77_spill] sm:$0xff]  ;;  %v12637_v38 = vld [vmem:[#allocation10_spill] sm:$0xff] }
 0x169   : > { %v6572_v2 = vpop.f32.mrf.mxu1  ;;  %v6636_v53 = vpop.f32.mrf.mxu0 }
 0x16a   : > { %v10004_v33 = vadd.f32 %v6571_v16, %v9893_v36  ;;  %v10007_v18 = vadd.f32 %v6635_v48, %v9822_v54  ;;  %v12638_v36 = vld [vmem:[#allocation151_spill] sm:$0xff] }
 0x16b   : > { %v6573_v12 = vpop.f32.mrf.mxu1  ;;  %7174 = vmatpush3.bf16.msra.mxu1 %v8001_v32  ;;  %v6637_v7 = vpop.f32.mrf.mxu0 }
 0x16c   : > { %v6574_v9 = vadd.f32 %v6573_v12, %v6572_v2  ;;  %7383 = vmatprep.subr.bf16.mxu1 %v8004_v26  ;;  %v6638_v56 = vadd.f32 %v6637_v7, %v6636_v53  ;;  %v12639_v2 = vld [vmem:[#allocation150_spill] sm:$0xff] }
 0x16d   : > { %v6575_v14 = vpop.f32.mrf.mxu1  ;;  %4272 = vmatmul.mubr.bf16.gmra.mxu1 %v12635_v19  ;;  %v6639_v40 = vpop.f32.mrf.mxu0  ;;  %4175 = vmatmul.mubr.bf16.gmra.mxu0 %v12637_v38  ;;  %v10026_v38 = vld [vmem:[%s8259_s30 + $0xa4] ss:$0 sps:$4 sm:$0x77]  }
 0x16e   : > { %v10011_v21 = vadd.f32 %v6574_v9, %v9904_v28  ;;  %4279 = vmatprep.mubr.bf16.mxu1 %v12638_v36  ;;  %v10016_v54 = vadd.f32 %v6638_v56, %v9831_v39  ;;  %4182 = vmatprep.mubr.bf16.mxu0 %v12639_v2  ;;  %12640 = vst [vmem:[#allocation37_spill] sm:$0xff] %v10026_v38 }
 0x16f   : > { %v6576_v32 = vpop.f32.mrf.mxu1  ;;  %v6640_v7 = vpop.f32.mrf.mxu0 }
 0x170   : > { %12636 = vst [vmem:[#allocation106_spill] sm:$0xff] %v10011_v21  ;;  %v6577_v16 = vadd.f32 %v6576_v32, %v6575_v14  ;;  %v6641_v26 = vadd.f32 %v6640_v7, %v6639_v40  ;;  %v12641_v21 = vld [vmem:[#allocation85_spill] sm:$0xff]  ;;  %v12642_v32 = vld [vmem:[#allocation18_spill] sm:$0xff] }
 0x171   : > { %v6578_v48 = vpop.f32.mrf.mxu1  ;;  %v6642_v28 = vpop.f32.mrf.mxu0 }
 0x172   : > { %v10020_v53 = vadd.f32 %v6577_v16, %v9621_v58  ;;  %v10023_v9 = vadd.f32 %v6641_v26, %v9840_v44  ;;  %v10039_v16 = vshll.u32 %v9864_v37, 16  ;;  %v1254_v26 = vrot.slane %v9864_v37, 1 }
 0x173   : > { %v6579_v12 = vpop.f32.mrf.mxu1  ;;  %v6643_v36 = vpop.f32.mrf.mxu0 }
 0x174   : > { %v6580_v19 = vadd.f32 %v6579_v12, %v6578_v48  ;;  %v6644_v39 = vadd.f32 %v6643_v36, %v6642_v28  ;;  %12643 = vst [vmem:[#allocation172_spill] sm:$0xff] %v10039_v16 }
 0x175   : > { %v6581_v56 = vpop.f32.mrf.mxu1  ;;  %4280 = vmatmul.mubr.bf16.gmra.mxu1 %v12641_v21  ;;  %v6645_v40 = vpop.f32.mrf.mxu0  ;;  %4183 = vmatmul.mubr.bf16.gmra.mxu0 %v12642_v32  ;;  %v12649_v21 = vld [vmem:[#allocation26_spill] sm:$0xff] }
 0x176   : > { %v10030_v14 = vadd.f32 %v6580_v19, %v9641_v27  ;;  %4287 = vmatprep.mubr.bf16.mxu1 %v9404_v20  ;;  %v10035_v58 = vadd.f32 %v6644_v39, %v9849_v0  ;;  %4190 = vmatprep.mubr.bf16.mxu0 %v9397_v22  ;;  %v10050_v20 = vshrl.u32 %v9864_v37, 16 }
 0x177   : > { %v6582_v44 = vpop.f32.mrf.mxu1  ;;  %v6646_v7 = vpop.f32.mrf.mxu0 }
 0x178   : > { %v6583_v36 = vadd.f32 %v6582_v44, %v6581_v56  ;;  %v6647_v19 = vadd.f32 %v6646_v7, %v6645_v40  ;;  %12644 = vst [vmem:[#allocation173_spill] sm:$0xff] %v10050_v20  ;;  %v1246_v56 = vrot.slane %v10039_v16, 1  ;;  %v10054_v44 = vshll.u32 %v10026_v38, 16 }
 0x179   : > { %v6584_v48 = vpop.f32.mrf.mxu1  ;;  %v6648_v12 = vpop.f32.mrf.mxu0  ;;  %v12646_v40 = vrot.slane %v10026_v38, 1 }
 0x17a   : > { %v10044_v28 = vadd.f32 %v6583_v36, %v9651_v34  ;;  %v10047_v0 = vadd.f32 %v6647_v19, %v9858_v43  ;;  %12645 = vst [vmem:[#allocation174_spill] sm:$0xff] %v10054_v44  ;;  %v12648_v43 = vld [vmem:[#allocation92_spill] sm:$0xff] }
 0x17b   : > { %v6585_v39 = vpop.f32.mrf.mxu1  ;;  %v6649_v27 = vpop.f32.mrf.mxu0  ;;  %v10059_v34 = vsel %vm747_vm1, %v1254_v26, %v12646_v40  ;;  %v1247_v26 = vor.u32 %v1246_v56, %v10050_v20 }
 0x17c   : > { %v6586_v22 = vadd.f32 %v6585_v39, %v6584_v48  ;;  %12647 = vst [vmem:[#allocation175_spill] sm:$0xff] %v10059_v34  ;;  %v6650_v36 = vadd.f32 %v6649_v27, %v6648_v12  ;;  %v12247_v27 = vrot.slane %v10054_v44, 1 }
 0x17d   : > { %v6587_v7 = vpop.f32.mrf.mxu1  ;;  %4288 = vmatmul.mubr.bf16.gmra.mxu1 %v12648_v43  ;;  %v6651_v2 = vpop.f32.mrf.mxu0  ;;  %4191 = vmatmul.mubr.bf16.gmra.mxu0 %v12649_v21 }
 0x17e   : > { %v10063_v19 = vadd.f32 %v6586_v22, %v9669_v55  ;;  %4295 = vmatprep.mubr.bf16.mxu1 %v9433_v42  ;;  %v10068_v48 = vadd.f32 %v6650_v36, %v9870_v61  ;;  %4198 = vmatprep.mubr.bf16.mxu0 %v10059_v34  ;;  %v10082_v36 = vsel %vm538_vm0, %v1247_v26, %v12247_v27 }
 0x17f   : > { %v6588_v39 = vpop.f32.mrf.mxu1  ;;  %v6652_v40 = vpop.f32.mrf.mxu0 }
 0x180   : > { %v6589_v12 = vadd.f32 %v6588_v39, %v6587_v7  ;;  %v6653_v43 = vadd.f32 %v6652_v40, %v6651_v2  ;;  %v12650_v39 = vld [vmem:[#allocation97_spill] sm:$0xff] }
 0x181   : > { %v6590_v22 = vpop.f32.mrf.mxu1  ;;  %v6654_v21 = vpop.f32.mrf.mxu0 }
 0x182   : > { %v10074_v55 = vadd.f32 %v6589_v12, %v9682_v17  ;;  %v10077_v42 = vadd.f32 %v6653_v43, %v9879_v52 }
 0x183   : > { %v6591_v61 = vpop.f32.mrf.mxu1  ;;  %v6655_v34 = vpop.f32.mrf.mxu0 }
 0x184   : > { %v6592_v56 = vadd.f32 %v6591_v61, %v6590_v22  ;;  %v6656_v32 = vadd.f32 %v6655_v34, %v6654_v21 }
 0x185   : > { %v6593_v7 = vpop.f32.mrf.mxu1  ;;  %4296 = vmatmul.mubr.bf16.gmra.mxu1 %v12650_v39  ;;  %v6657_v17 = vpop.f32.mrf.mxu0  ;;  %4199 = vmatmul.mubr.bf16.gmra.mxu0 %v10082_v36 }
 0x186   : > { %v10086_v2 = vadd.f32 %v6592_v56, %v9694_v59  ;;  %4303 = vmatprep.mubr.bf16.mxu1 %v9479_v57  ;;  %v10091_v52 = vadd.f32 %v6656_v32, %v9888_v30  ;;  %4400 = vmatprep.mubr.bf16.mxu0 %v9469_v29  ;;  %v7990_v30 = vld [vmem:[%s11939_s2 + $0x438] sm:$0xff]   ;;  %v7992_v29 = vld [vmem:[%s11939_s2 + $0x470] sm:$0xff]  }
 0x187   : > { %v6594_v43 = vpop.f32.mrf.mxu1  ;;  %v6658_v12 = vpop.f32.mrf.mxu0 }
 0x188   : > { %v6595_v26 = vadd.f32 %v6594_v43, %v6593_v7  ;;  %v6659_v21 = vadd.f32 %v6658_v12, %v6657_v17  ;;  %v12651_v43 = vld [vmem:[#allocation101_spill] sm:$0xff] }
 0x189   : > { %v6596_v34 = vpop.f32.mrf.mxu1  ;;  %v6660_v59 = vpop.f32.mrf.mxu0 }
 0x18a   : > { %v10095_v40 = vadd.f32 %v6595_v26, %v9703_v45  ;;  %v10098_v22 = vadd.f32 %v6659_v21, %v9896_v1  ;;  %v12652_v26 = vld [vmem:[#allocation102_spill] sm:$0xff] }
 0x18b   : > { %v6597_v61 = vpop.f32.mrf.mxu1  ;;  %v6661_v56 = vpop.f32.mrf.mxu0 }
 0x18c   : > { %v6598_v32 = vadd.f32 %v6597_v61, %v6596_v34  ;;  %v6662_v7 = vadd.f32 %v6661_v56, %v6660_v59  ;;  %v7994_v34 = vld [vmem:[%s11939_s2 + $0x430] sm:$0xff]  }
 0x18d   : > { %v6727_v17 = vpop.f32.mrf.mxu1  ;;  %4304 = vmatmul.mubr.bf16.gmra.mxu1 %v12651_v43  ;;  %v6663_v1 = vpop.f32.mrf.mxu0  ;;  %4401 = vmatmul.mubr.bf16.vlgmr.msra.gmra.mxu0 %v12652_v26 }
 0x18e   : > { %v10108_v45 = vadd.f32 %v6598_v32, %v9713_v63  ;;  %4311 = vmatprep.mubr.bf16.mxu1 %v9520_v49  ;;  %v10113_v12 = vadd.f32 %v6662_v7, %v9908_v47  ;;  %7272 = vmatpush3.bf16.msra.mxu0 %v7990_v30  ;;  %v7996_v63 = vld [vmem:[%s11939_s2 + $0x468] sm:$0xff]  }
 0x18f   : > { %v6728_v21 = vpop.f32.mrf.mxu1  ;;  %4408 = vmatprep.mubr.bf16.mxu0 %v9510_v31  ;;  %v6664_v59 = vpop.f32.mrf.mxu0  ;;  %7273 = vmatprep.subr.bf16.mxu0 %v7992_v29 }
 0x190   : > { %v6729_v61 = vadd.f32 %v6728_v21, %v6727_v17  ;;  %v6665_v32 = vadd.f32 %v6664_v59, %v6663_v1  ;;  %v7998_v17 = vld [vmem:[%s11939_s2 + $0x428] sm:$0xff]   ;;  %v8000_v1 = vld [vmem:[%s11939_s2 + $0x460] sm:$0xff]  }
 0x191   : > { %v6730_v56 = vpop.f32.mrf.mxu1  ;;  %v6666_v30 = vpop.f32.mrf.mxu0  ;;  %v12653_v59 = vld [vmem:[#allocation107_spill] sm:$0xff] }
 0x192   : > { %v10123_v47 = vadd.f32 %v6729_v61, %v9923_v8  ;;  %v10126_v7 = vadd.f32 %v6665_v32, %v9920_v46  ;;  %7274 = vmatpush3.bf16.msra.mxu0 %v7994_v34  ;;  %v12654_v34 = vld [vmem:[#allocation108_spill] sm:$0xff] }
 0x193   : > { %v6731_v31 = vpop.f32.mrf.mxu1  ;;  %v6667_v29 = vpop.f32.mrf.mxu0  ;;  %7275 = vmatprep.subr.bf16.mxu0 %v7996_v63 }
 0x194   : > { %v6732_v26 = vadd.f32 %v6731_v31, %v6730_v56  ;;  %v6668_v21 = vadd.f32 %v6667_v29, %v6666_v30  ;;  %v8002_v56 = vld [vmem:[%s11939_s2 + $0x420] sm:$0xff]  }
 0x195   : > { %v6733_v8 = vpop.f32.mrf.mxu1  ;;  %4312 = vmatmul.mubr.bf16.gmra.mxu1 %v12653_v59  ;;  %v6669_v61 = vpop.f32.mrf.mxu0  ;;  %4409 = vmatmul.mubr.bf16.gmra.mxu0 %v12654_v34  ;;  %v12697_v59 = vld [vmem:[#allocation12_spill] sm:$0xff] }
 0x196   : > { %v10136_v46 = vadd.f32 %v6732_v26, %v9938_v60  ;;  %4319 = vmatprep.mubr.bf16.mxu1 %v9567_v6  ;;  %v10141_v32 = vadd.f32 %v6668_v21, %v9933_v3  ;;  %4416 = vmatprep.mubr.bf16.mxu0 %v9557_v50  ;;  %v8003_v60 = vld [vmem:[%s11939_s2 + $0x458] sm:$0xff]   ;;  %v12670_v6 = vld [vmem:[#allocation152_spill] sm:$0xff] }
 0x197   : > { %v6734_v63 = vpop.f32.mrf.mxu1  ;;  %7276 = vmatpush3.bf16.msra.mxu0 %v7998_v17  ;;  %v6670_v30 = vpop.f32.mrf.mxu0 }
 0x198   : > { %v6735_v31 = vadd.f32 %v6734_v63, %v6733_v8  ;;  %7277 = vmatprep.subr.bf16.mxu0 %v8000_v1  ;;  %v6671_v29 = vadd.f32 %v6670_v30, %v6669_v61  ;;  %v8005_v8 = vld [vmem:[%s11939_s2 + $0x418] sm:$0xff]   ;;  %v8007_v61 = vld [vmem:[%s11939_s2 + $0x450] sm:$0xff]   ;;  %v12655_v30 = vld [vmem:[#allocation115_spill] sm:$0xff] }
 0x199   : > { %v6736_v26 = vpop.f32.mrf.mxu1  ;;  %v6672_v21 = vpop.f32.mrf.mxu0 }
 0x19a   : > { %v10151_v3 = vadd.f32 %v6735_v31, %v9951_v13  ;;  %v10154_v50 = vadd.f32 %v6671_v29, %v9948_v10 }
 0x19b   : > { %v6737_v17 = vpop.f32.mrf.mxu1  ;;  %7278 = vmatpush3.bf16.msra.mxu0 %v8002_v56  ;;  %v6673_v1 = vpop.f32.mrf.mxu0  ;;  %v12656_v56 = vld [vmem:[#allocation116_spill] sm:$0xff] }
 0x19c   : > { %v6738_v34 = vadd.f32 %v6737_v17, %v6736_v26  ;;  %7279 = vmatprep.subr.bf16.mxu0 %v8003_v60  ;;  %v6674_v63 = vadd.f32 %v6673_v1, %v6672_v21  ;;  %v8009_v26 = vld [vmem:[%s11939_s2 + $0x410] sm:$0xff]  }
 0x19d   : > { %v6739_v13 = vpop.f32.mrf.mxu1  ;;  %4320 = vmatmul.mubr.bf16.gmra.mxu1 %v12655_v30  ;;  %v6675_v31 = vpop.f32.mrf.mxu0  ;;  %4417 = vmatmul.mubr.bf16.gmra.mxu0 %v12656_v56  ;;  %v8116_v30 = vld [vmem:[%s8259_s30 + $0x30] sm:$0xff]  }
 0x19e   : > { %v10164_v10 = vadd.f32 %v6738_v34, %v9966_v23  ;;  %4327 = vmatprep.mubr.bf16.mxu1 %v9602_v25  ;;  %v10169_v29 = vadd.f32 %v6674_v63, %v9961_v62  ;;  %4424 = vmatprep.mubr.bf16.mxu0 %v9595_v51  ;;  %v8011_v23 = vld [vmem:[%s11939_s2 + $0x448] sm:$0xff]  }
 0x19f   : > { %v6740_v60 = vpop.f32.mrf.mxu1  ;;  %7280 = vmatpush3.bf16.msra.mxu0 %v8005_v8  ;;  %v6676_v21 = vpop.f32.mrf.mxu0 }
 0x1a0   : > { %v6741_v17 = vadd.f32 %v6740_v60, %v6739_v13  ;;  %7281 = vmatprep.subr.bf16.mxu0 %v8007_v61  ;;  %v6677_v1 = vadd.f32 %v6676_v21, %v6675_v31  ;;  %v8013_v13 = vld [vmem:[%s11939_s2 + $0x408] sm:$0xff]   ;;  %v8015_v31 = vld [vmem:[%s11939_s2 + $0x440] sm:$0xff]   ;;  %v12657_v21 = vld [vmem:[#allocation124_spill] sm:$0xff] }
 0x1a1   : > { %v6742_v34 = vpop.f32.mrf.mxu1  ;;  %v6678_v63 = vpop.f32.mrf.mxu0 }
 0x1a2   : > { %v10179_v62 = vadd.f32 %v6741_v17, %v9979_v41  ;;  %v10182_v51 = vadd.f32 %v6677_v1, %v9976_v5 }
 0x1a3   : > { %v6743_v8 = vpop.f32.mrf.mxu1  ;;  %7282 = vmatpush3.bf16.msra.mxu0 %v8009_v26  ;;  %v6679_v61 = vpop.f32.mrf.mxu0  ;;  %v12658_v26 = vld [vmem:[#allocation125_spill] sm:$0xff] }
 0x1a4   : > { %v6744_v56 = vadd.f32 %v6743_v8, %v6742_v34  ;;  %7283 = vmatprep.subr.bf16.mxu0 %v8011_v23  ;;  %v6680_v60 = vadd.f32 %v6679_v61, %v6678_v63  ;;  %v8017_v34 = vld [vmem:[%s11939_s2 + $0x400] sm:$0xff]  }
 0x1a5   : > { %v6745_v41 = vpop.f32.mrf.mxu1  ;;  %4328 = vmatmul.mubr.bf16.gmra.mxu1 %v12657_v21  ;;  %v6681_v17 = vpop.f32.mrf.mxu0  ;;  %4425 = vmatmul.mubr.bf16.gmra.mxu0 %v12658_v26 }
 0x1a6   : > { %v10192_v5 = vadd.f32 %v6744_v56, %v9994_v24  ;;  %4335 = vmatprep.mubr.bf16.mxu1 %v9637_v4  ;;  %v10197_v1 = vadd.f32 %v6680_v60, %v9989_v11  ;;  %4432 = vmatprep.mubr.bf16.mxu0 %v9630_v15  ;;  %v8020_v24 = vld [vmem:[%s11939_s2 + $0x578] sm:$0xff]  }
 0x1a7   : > { %v6746_v23 = vpop.f32.mrf.mxu1  ;;  %7284 = vmatpush3.bf16.msra.mxu0 %v8013_v13  ;;  %v6682_v63 = vpop.f32.mrf.mxu0 }
 0x1a8   : > { %v6747_v8 = vadd.f32 %v6746_v23, %v6745_v41  ;;  %7285 = vmatprep.subr.bf16.mxu0 %v8015_v31  ;;  %v6683_v61 = vadd.f32 %v6682_v63, %v6681_v17  ;;  %v12659_v23 = vld [vmem:[#allocation135_spill] sm:$0xff]  ;;  %v12660_v63 = vld [vmem:[#allocation136_spill] sm:$0xff] }
 0x1a9   : > { %v6748_v56 = vpop.f32.mrf.mxu1  ;;  %v6684_v60 = vpop.f32.mrf.mxu0 }
 0x1aa   : > { %v10207_v11 = vadd.f32 %v6747_v8, %v10007_v18  ;;  %v10210_v15 = vadd.f32 %v6683_v61, %v10004_v33  ;;  %v12661_v18 = vld [vmem:[#allocation106_spill] sm:$0xff] }
 0x1ab   : > { %v6749_v13 = vpop.f32.mrf.mxu1  ;;  %7286 = vmatpush3.bf16.msra.mxu0 %v8017_v34  ;;  %v6685_v26 = vpop.f32.mrf.mxu0  ;;  %v12662_v34 = vld [vmem:[#allocation161_spill] sm:$0xff] }
 0x1ac   : > { %v6750_v27 = vadd.f32 %v6749_v13, %v6748_v56  ;;  %7495 = vmatprep.subr.bf16.mxu0 %v8020_v24  ;;  %v6686_v41 = vadd.f32 %v6685_v26, %v6684_v60 }
 0x1ad   : > { %v6751_v31 = vpop.f32.mrf.mxu1  ;;  %4336 = vmatmul.mubr.bf16.gmra.mxu1 %v12659_v23  ;;  %v6687_v17 = vpop.f32.mrf.mxu0  ;;  %4433 = vmatmul.mubr.bf16.gmra.mxu0 %v12660_v63  ;;  %v8115_v23 = vld [vmem:[%s8259_s30 + $0x24] sm:$0xff]  }
 0x1ae   : > { %v10214_v4 = vadd.f32 %v6750_v27, %v10016_v54  ;;  %4343 = vmatprep.mubr.bf16.mxu1 %v9665_v35  ;;  %v10219_v33 = vadd.f32 %v6686_v41, %v12661_v18  ;;  %4440 = vmatprep.mubr.bf16.mxu0 %v12662_v34  ;;  %v12663_v18 = vld [vmem:[#allocation147_spill] sm:$0xff] }
 0x1af   : > { %v6752_v8 = vpop.f32.mrf.mxu1  ;;  %v6688_v61 = vpop.f32.mrf.mxu0 }
 0x1b0   : > { %v6753_v24 = vadd.f32 %v6752_v8, %v6751_v31  ;;  %v6689_v56 = vadd.f32 %v6688_v61, %v6687_v17  ;;  %v12664_v17 = vld [vmem:[#allocation148_spill] sm:$0xff]  ;;  %v12665_v8 = vld [vmem:[#allocation165_spill] sm:$0xff] }
 0x1b1   : > { %v6754_v60 = vpop.f32.mrf.mxu1  ;;  %v6690_v54 = vpop.f32.mrf.mxu0 }
 0x1b2   : > { %v10223_v13 = vadd.f32 %v6753_v24, %v10023_v9  ;;  %v10226_v27 = vadd.f32 %v6689_v56, %v10020_v53  ;;  %v10235_v9 = vshrl.u32 %v10026_v38, 16  ;;  %v12667_v24 = vld [vmem:[#allocation164_spill] sm:$0xff]  ;;  %v1268_v56 = vrot.slane %v9864_v37, 2 }
 0x1b3   : > { %v6755_v26 = vpop.f32.mrf.mxu1  ;;  %v6691_v63 = vpop.f32.mrf.mxu0 }
 0x1b4   : > { %v6756_v35 = vadd.f32 %v6755_v26, %v6754_v60  ;;  %v6692_v25 = vadd.f32 %v6691_v63, %v6690_v54  ;;  %12666 = vst [vmem:[#allocation102_spill] sm:$0xff] %v10235_v9  ;;  %v1258_v63 = vrot.slane %v10050_v20, 1 }
 0x1b5   : > { %v6757_v41 = vpop.f32.mrf.mxu1  ;;  %4344 = vmatmul.mubr.bf16.gmra.mxu1 %v12663_v18  ;;  %v6693_v31 = vpop.f32.mrf.mxu0  ;;  %4441 = vmatmul.mubr.bf16.gmra.mxu0 %v12664_v17  ;;  %v12671_v18 = vld [vmem:[#allocation153_spill] sm:$0xff] }
 0x1b6   : > { %v10230_v34 = vadd.f32 %v6756_v35, %v10035_v58  ;;  %4351 = vmatprep.mubr.bf16.mxu1 %v12665_v8  ;;  %v10238_v53 = vadd.f32 %v6692_v25, %v10030_v14  ;;  %4448 = vmatprep.mubr.bf16.mxu0 %v12667_v24  ;;  %v1259_v25 = vrot.slane %v10039_v16, 2  ;;  %v1263_v14 = vrot.slane %v10235_v9, 1 }
 0x1b7   : > { %v6758_v61 = vpop.f32.mrf.mxu1  ;;  %v6694_v35 = vpop.f32.mrf.mxu0  ;;  %v1264_v24 = vrot.slane %v10054_v44, 2 }
 0x1b8   : > { %v6759_v58 = vadd.f32 %v6758_v61, %v6757_v41  ;;  %v6695_v54 = vadd.f32 %v6694_v35, %v6693_v31  ;;  %v12668_v41 = vrot.slane %v10026_v38, 2 }
 0x1b9   : > { %v6760_v26 = vpop.f32.mrf.mxu1  ;;  %v6696_v8 = vpop.f32.mrf.mxu0 }
 0x1ba   : > { %v10245_v17 = vadd.f32 %v6759_v58, %v10047_v0  ;;  %v10251_v37 = vadd.f32 %v6695_v54, %v10044_v28  ;;  %v10256_v31 = vsel %vm973_vm4, %v1268_v56, %v12668_v41  ;;  %v1260_v28 = vor.u32 %v1259_v25, %v1258_v63 }
 0x1bb   : > { %v6761_v60 = vpop.f32.mrf.mxu1  ;;  %12669 = vst [vmem:[#allocation108_spill] sm:$0xff] %v10256_v31  ;;  %v6697_v61 = vpop.f32.mrf.mxu0  ;;  %v10264_v54 = vor.u32 %v1264_v24, %v1263_v14 }
 0x1bc   : > { %v6762_v35 = vadd.f32 %v6761_v60, %v6760_v26  ;;  %v6698_v0 = vadd.f32 %v6697_v61, %v6696_v8  ;;  %v12673_v60 = vld [vmem:[#allocation42_spill] sm:$0xff] }
 0x1bd   : > { %v6763_v58 = vpop.f32.mrf.mxu1  ;;  %4352 = vmatmul.mubr.bf16.gmra.mxu1 %v12670_v6  ;;  %v6699_v57 = vpop.f32.mrf.mxu0  ;;  %4449 = vmatmul.mubr.bf16.gmra.mxu0 %v12671_v18  ;;  %12672 = vst [vmem:[#allocation116_spill] sm:$0xff] %v10264_v54  ;;  %v10275_v18 = vsel %vm812_vm2, %v1260_v28, %v10264_v54  ;;  %v12688_v54 = vld [vmem:[#allocation44_spill] sm:$0xff] }
 0x1be   : > { %v10260_v49 = vadd.f32 %v6762_v35, %v10068_v48  ;;  %4359 = vmatprep.mubr.bf16.mxu1 %v10256_v31  ;;  %v10267_v56 = vadd.f32 %v6698_v0, %v10063_v19  ;;  %4456 = vmatprep.mubr.bf16.mxu0 %v12673_v60  ;;  %12674 = vst [vmem:[#allocation125_spill] sm:$0xff] %v10275_v18  ;;  %v12677_v60 = vld [vmem:[#allocation9_spill] sm:$0xff]  ;;  %v12685_v31 = vld [vmem:[#allocation43_spill] sm:$0xff] }
 0x1bf   : > { %v6764_v41 = vpop.f32.mrf.mxu1  ;;  %v6700_v8 = vpop.f32.mrf.mxu0 }
 0x1c0   : > { %v6765_v26 = vadd.f32 %v6764_v41, %v6763_v58  ;;  %v6701_v61 = vadd.f32 %v6700_v8, %v6699_v57  ;;  %v12675_v58 = vld [vmem:[#allocation126_spill] sm:$0xff]  ;;  %v12676_v41 = vld [vmem:[#allocation16_spill] sm:$0xff] }
 0x1c1   : > { %v6766_v6 = vpop.f32.mrf.mxu1  ;;  %v6702_v35 = vpop.f32.mrf.mxu0 }
 0x1c2   : > { %v10271_v48 = vadd.f32 %v6765_v26, %v10077_v42  ;;  %v10278_v63 = vadd.f32 %v6701_v61, %v10074_v55 }
 0x1c3   : > { %v6767_v19 = vpop.f32.mrf.mxu1  ;;  %v6703_v25 = vpop.f32.mrf.mxu0 }
 0x1c4   : > { %v6768_v14 = vadd.f32 %v6767_v19, %v6766_v6  ;;  %v6704_v24 = vadd.f32 %v6703_v25, %v6702_v35  ;;  %v8006_v19 = vld [vmem:[%s11939_s2 + $0x4b8] sm:$0xff]  }
 0x1c5   : > { %v6769_v0 = vpop.f32.mrf.mxu1  ;;  %4360 = vmatmul.mubr.bf16.gmra.mxu1 %v10275_v18  ;;  %v6705_v42 = vpop.f32.mrf.mxu0  ;;  %4457 = vmatmul.mubr.bf16.gmra.mxu0 %v12675_v58 }
 0x1c6   : > { %v10282_v57 = vadd.f32 %v6768_v14, %v10091_v52  ;;  %4561 = vmatprep.mubr.bf16.mxu1 %v12676_v41  ;;  %v10287_v28 = vadd.f32 %v6704_v24, %v10086_v2  ;;  %4464 = vmatprep.mubr.bf16.mxu0 %v12677_v60 }
 0x1c7   : > { %v6770_v55 = vpop.f32.mrf.mxu1  ;;  %v6706_v6 = vpop.f32.mrf.mxu0 }
 0x1c8   : > { %v6771_v8 = vadd.f32 %v6770_v55, %v6769_v0  ;;  %v6707_v26 = vadd.f32 %v6706_v6, %v6705_v42  ;;  %v8008_v0 = vld [vmem:[%s11939_s2 + $0x4f0] sm:$0xff]   ;;  %v8111_v55 = vld [vmem:[%s8251_s25 + $0x18] sm:$0xff]   ;;  %v12678_v6 = vld [vmem:[#allocation154_spill] sm:$0xff] }
 0x1c9   : > { %v6772_v61 = vpop.f32.mrf.mxu1  ;;  %v6708_v52 = vpop.f32.mrf.mxu0 }
 0x1ca   : > { %v10291_v35 = vadd.f32 %v6771_v8, %v10098_v22  ;;  %v10297_v25 = vadd.f32 %v6707_v26, %v10095_v40  ;;  %v8010_v40 = vld [vmem:[%s11939_s2 + $0x4b0] sm:$0xff]  }
 0x1cb   : > { %v6773_v2 = vpop.f32.mrf.mxu1  ;;  %v6709_v14 = vpop.f32.mrf.mxu0 }
 0x1cc   : > { %v6774_v24 = vadd.f32 %v6773_v2, %v6772_v61  ;;  %v6710_v42 = vadd.f32 %v6709_v14, %v6708_v52  ;;  %v12679_v61 = vld [vmem:[#allocation166_spill] sm:$0xff]  ;;  %v12680_v52 = vld [vmem:[#allocation25_spill] sm:$0xff] }
 0x1cd   : > { %v6775_v58 = vpop.f32.mrf.mxu1  ;;  %4562 = vmatmul.mubr.bf16.vlgmr.msra.gmra.mxu1 %v8111_v55  ;;  %v6839_v60 = vpop.f32.mrf.mxu0  ;;  %4465 = vmatmul.mubr.bf16.gmra.mxu0 %v12678_v6 }
 0x1ce   : > { %v10304_v22 = vadd.f32 %v6774_v24, %v10113_v12  ;;  %7384 = vmatpush3.bf16.msra.mxu1 %v8006_v19  ;;  %v10311_v8 = vadd.f32 %v6710_v42, %v10108_v45  ;;  %4472 = vmatprep.mubr.bf16.mxu0 %v12679_v61  ;;  %v8012_v12 = vld [vmem:[%s11939_s2 + $0x4e8] sm:$0xff]  }
 0x1cf   : > { %v6776_v26 = vpop.f32.mrf.mxu1  ;;  %4569 = vmatprep.mubr.bf16.mxu1 %v12680_v52  ;;  %v6840_v14 = vpop.f32.mrf.mxu0  ;;  %7385 = vmatprep.subr.bf16.mxu1 %v8008_v0  ;;  %v8014_v61 = vld [vmem:[%s11939_s2 + $0x4a8] sm:$0xff]   ;;  %v8016_v0 = vld [vmem:[%s11939_s2 + $0x4e0] sm:$0xff]  }
 0x1d0   : > { %v6777_v2 = vadd.f32 %v6776_v26, %v6775_v58  ;;  %v6841_v19 = vadd.f32 %v6840_v14, %v6839_v60  ;;  %v12681_v14 = vld [vmem:[#allocation139_spill] sm:$0xff] }
 0x1d1   : > { %v6778_v24 = vpop.f32.mrf.mxu1  ;;  %v6842_v45 = vpop.f32.mrf.mxu0 }
 0x1d2   : > { %v10319_v55 = vadd.f32 %v6777_v2, %v10126_v7  ;;  %7386 = vmatpush3.bf16.msra.mxu1 %v8010_v40  ;;  %v10322_v42 = vadd.f32 %v6841_v19, %v10123_v47  ;;  %v8112_v2 = vld [vmem:[%s8259_s30] sm:$0xff]  }
 0x1d3   : > { %v6779_v6 = vpop.f32.mrf.mxu1  ;;  %7387 = vmatprep.subr.bf16.mxu1 %v8012_v12  ;;  %v6843_v26 = vpop.f32.mrf.mxu0  ;;  %v12682_v12 = vld [vmem:[#allocation32_spill] sm:$0xff] }
 0x1d4   : > { %v6780_v58 = vadd.f32 %v6779_v6, %v6778_v24  ;;  %v6844_v60 = vadd.f32 %v6843_v26, %v6842_v45  ;;  %v12683_v6 = vld [vmem:[#allocation167_spill] sm:$0xff]  ;;  %v8018_v45 = vld [vmem:[%s11939_s2 + $0x4a0] sm:$0xff]  }
 0x1d5   : > { %v6781_v7 = vpop.f32.mrf.mxu1  ;;  %4570 = vmatmul.mubr.bf16.gmra.mxu1 %v8112_v2  ;;  %v6845_v47 = vpop.f32.mrf.mxu0  ;;  %4473 = vmatmul.mubr.bf16.gmra.mxu0 %v12681_v14 }
 0x1d6   : > { %v10332_v40 = vadd.f32 %v6780_v58, %v10141_v32  ;;  %4577 = vmatprep.mubr.bf16.mxu1 %v12682_v12  ;;  %v10337_v19 = vadd.f32 %v6844_v60, %v10136_v46  ;;  %4480 = vmatprep.mubr.bf16.mxu0 %v12683_v6  ;;  %v8019_v32 = vld [vmem:[%s11939_s2 + $0x4d8] sm:$0xff]  }
 0x1d7   : > { %v6782_v24 = vpop.f32.mrf.mxu1  ;;  %7388 = vmatpush3.bf16.msra.mxu1 %v8014_v61  ;;  %v6846_v2 = vpop.f32.mrf.mxu0 }
 0x1d8   : > { %v6783_v26 = vadd.f32 %v6782_v24, %v6781_v7  ;;  %7389 = vmatprep.subr.bf16.mxu1 %v8016_v0  ;;  %v6847_v58 = vadd.f32 %v6846_v2, %v6845_v47  ;;  %v8021_v0 = vld [vmem:[%s11939_s2 + $0x498] sm:$0xff]   ;;  %v8023_v47 = vld [vmem:[%s11939_s2 + $0x4d0] sm:$0xff]  }
 0x1d9   : > { %v6784_v14 = vpop.f32.mrf.mxu1  ;;  %v6848_v60 = vpop.f32.mrf.mxu0 }
 0x1da   : > { %v10347_v46 = vadd.f32 %v6783_v26, %v10154_v50  ;;  %v10350_v61 = vadd.f32 %v6847_v58, %v10151_v3  ;;  %v8113_v26 = vld [vmem:[%s8259_s30 + $0xc] sm:$0xff]  }
 0x1db   : > { %v6785_v6 = vpop.f32.mrf.mxu1  ;;  %7390 = vmatpush3.bf16.msra.mxu1 %v8018_v45  ;;  %v6849_v24 = vpop.f32.mrf.mxu0  ;;  %v12684_v45 = vld [vmem:[#allocation156_spill] sm:$0xff] }
 0x1dc   : > { %v6786_v7 = vadd.f32 %v6785_v6, %v6784_v14  ;;  %7391 = vmatprep.subr.bf16.mxu1 %v8019_v32  ;;  %v6850_v2 = vadd.f32 %v6849_v24, %v6848_v60  ;;  %v12686_v6 = vld [vmem:[#allocation168_spill] sm:$0xff] }
 0x1dd   : > { %v6787_v50 = vpop.f32.mrf.mxu1  ;;  %4578 = vmatmul.mubr.bf16.gmra.mxu1 %v8113_v26  ;;  %v6851_v58 = vpop.f32.mrf.mxu0  ;;  %4481 = vmatmul.mubr.bf16.gmra.mxu0 %v12684_v45  ;;  %v8025_v60 = vld [vmem:[%s11939_s2 + $0x490] sm:$0xff]  }
 0x1de   : > { %v10360_v3 = vadd.f32 %v6786_v7, %v10169_v29  ;;  %4585 = vmatprep.mubr.bf16.mxu1 %v12685_v31  ;;  %v10365_v14 = vadd.f32 %v6850_v2, %v10164_v10  ;;  %4488 = vmatprep.mubr.bf16.mxu0 %v12686_v6  ;;  %v8027_v29 = vld [vmem:[%s11939_s2 + $0x4c8] sm:$0xff]  }
 0x1df   : > { %v6788_v32 = vpop.f32.mrf.mxu1  ;;  %7392 = vmatpush3.bf16.msra.mxu1 %v8021_v0  ;;  %v6852_v26 = vpop.f32.mrf.mxu0 }
 0x1e0   : > { %v6789_v24 = vadd.f32 %v6788_v32, %v6787_v50  ;;  %7393 = vmatprep.subr.bf16.mxu1 %v8023_v47  ;;  %v6853_v7 = vadd.f32 %v6852_v26, %v6851_v58  ;;  %v8029_v47 = vld [vmem:[%s11939_s2 + $0x488] sm:$0xff]   ;;  %v8031_v58 = vld [vmem:[%s11939_s2 + $0x4c0] sm:$0xff]  }
 0x1e1   : > { %v6790_v45 = vpop.f32.mrf.mxu1  ;;  %v6854_v2 = vpop.f32.mrf.mxu0 }
 0x1e2   : > { %v10375_v10 = vadd.f32 %v6789_v24, %v10182_v51  ;;  %v10378_v0 = vadd.f32 %v6853_v7, %v10179_v62  ;;  %v8114_v24 = vld [vmem:[%s8259_s30 + $0x18] sm:$0xff]  }
 0x1e3   : > { %v6791_v6 = vpop.f32.mrf.mxu1  ;;  %7394 = vmatpush3.bf16.msra.mxu1 %v8025_v60  ;;  %v6855_v32 = vpop.f32.mrf.mxu0  ;;  %v12687_v60 = vld [vmem:[#allocation143_spill] sm:$0xff] }
 0x1e4   : > { %v6792_v50 = vadd.f32 %v6791_v6, %v6790_v45  ;;  %7395 = vmatprep.subr.bf16.mxu1 %v8027_v29  ;;  %v6856_v26 = vadd.f32 %v6855_v32, %v6854_v2  ;;  %v12689_v6 = vld [vmem:[#allocation169_spill] sm:$0xff]  ;;  %v8033_v2 = vld [vmem:[%s11939_s2 + $0x480] sm:$0xff]  }
 0x1e5   : > { %v6793_v51 = vpop.f32.mrf.mxu1  ;;  %4586 = vmatmul.mubr.bf16.gmra.mxu1 %v8114_v24  ;;  %v6857_v7 = vpop.f32.mrf.mxu0  ;;  %4489 = vmatmul.mubr.bf16.gmra.mxu0 %v12687_v60 }
 0x1e6   : > { %v10388_v62 = vadd.f32 %v6792_v50, %v10197_v1  ;;  %4593 = vmatprep.mubr.bf16.mxu1 %v12688_v54  ;;  %v10393_v45 = vadd.f32 %v6856_v26, %v10192_v5  ;;  %4496 = vmatprep.mubr.bf16.mxu0 %v12689_v6  ;;  %v8038_v50 = vld [vmem:[%s11939_s2 + $0x5f8] sm:$0xff]  }
 0x1e7   : > { %v6794_v29 = vpop.f32.mrf.mxu1  ;;  %7396 = vmatpush3.bf16.msra.mxu1 %v8029_v47  ;;  %v6858_v1 = vpop.f32.mrf.mxu0 }
 0x1e8   : > { %v6795_v32 = vadd.f32 %v6794_v29, %v6793_v51  ;;  %7397 = vmatprep.subr.bf16.mxu1 %v8031_v58  ;;  %v6859_v24 = vadd.f32 %v6858_v1, %v6857_v7  ;;  %v12690_v1 = vld [vmem:[#allocation158_spill] sm:$0xff] }
 0x1e9   : > { %v6796_v60 = vpop.f32.mrf.mxu1  ;;  %v6860_v26 = vpop.f32.mrf.mxu0 }
 0x1ea   : > { %v10403_v5 = vadd.f32 %v6795_v32, %v10210_v15  ;;  %v10406_v47 = vadd.f32 %v6859_v24, %v10207_v11  ;;  %v12691_v15 = vld [vmem:[#allocation57_spill] sm:$0xff]  ;;  %v12692_v32 = vld [vmem:[#allocation170_spill] sm:$0xff] }
 0x1eb   : > { %v6797_v6 = vpop.f32.mrf.mxu1  ;;  %7398 = vmatpush3.bf16.msra.mxu1 %v8033_v2  ;;  %v6861_v51 = vpop.f32.mrf.mxu0 }
 0x1ec   : > { %v6798_v18 = vadd.f32 %v6797_v6, %v6796_v60  ;;  %7607 = vmatprep.subr.bf16.mxu1 %v8038_v50  ;;  %v6862_v29 = vadd.f32 %v6861_v51, %v6860_v26 }
 0x1ed   : > { %v6799_v58 = vpop.f32.mrf.mxu1  ;;  %4594 = vmatmul.mubr.bf16.gmra.mxu1 %v8115_v23  ;;  %v6863_v7 = vpop.f32.mrf.mxu0  ;;  %4497 = vmatmul.mubr.bf16.gmra.mxu0 %v12690_v1 }
 0x1ee   : > { %v10410_v21 = vadd.f32 %v6798_v18, %v10219_v33  ;;  %4601 = vmatprep.mubr.bf16.mxu1 %v12691_v15  ;;  %v10415_v11 = vadd.f32 %v6862_v29, %v10214_v4  ;;  %4504 = vmatprep.mubr.bf16.mxu0 %v12692_v32 }
 0x1ef   : > { %v6800_v2 = vpop.f32.mrf.mxu1  ;;  %v6864_v24 = vpop.f32.mrf.mxu0 }
 0x1f0   : > { %v6801_v50 = vadd.f32 %v6800_v2, %v6799_v58  ;;  %v6865_v60 = vadd.f32 %v6864_v24, %v6863_v7  ;;  %v12693_v2 = vld [vmem:[#allocation160_spill] sm:$0xff] }
 0x1f1   : > { %v6802_v26 = vpop.f32.mrf.mxu1  ;;  %v6866_v33 = vpop.f32.mrf.mxu0 }
 0x1f2   : > { %v10419_v23 = vadd.f32 %v6801_v50, %v10226_v27  ;;  %v10422_v18 = vadd.f32 %v6865_v60, %v10223_v13  ;;  %v12694_v27 = vld [vmem:[#allocation69_spill] sm:$0xff]  ;;  %v12695_v50 = vld [vmem:[#allocation171_spill] sm:$0xff] }
 0x1f3   : > { %v6803_v6 = vpop.f32.mrf.mxu1  ;;  %v6867_v1 = vpop.f32.mrf.mxu0 }
 0x1f4   : > { %v6804_v51 = vadd.f32 %v6803_v6, %v6802_v26  ;;  %v6868_v4 = vadd.f32 %v6867_v1, %v6866_v33  ;;  %v10435_v26 = vld [vmem:[%s8259_s30 + $0x9c] sm:$0xff]  }
 0x1f5   : > { %v6805_v29 = vpop.f32.mrf.mxu1  ;;  %4602 = vmatmul.mubr.bf16.gmra.mxu1 %v8116_v30  ;;  %v6869_v7 = vpop.f32.mrf.mxu0  ;;  %4505 = vmatmul.mubr.bf16.gmra.mxu0 %v12693_v2  ;;  %12696 = vst [vmem:[#allocation136_spill] sm:$0xff] %v10435_v26  ;;  %v1280_v30 = vrot.slane %v10435_v26, 3  ;;  %v1273_v2 = vrot.slane %v10039_v16, 3  ;;  %v8118_v26 = vld [vmem:[%s8259_s30 + $0x3c] sm:$0xff]   ;;  %v12700_v16 = vld [vmem:[#allocation163_spill] sm:$0xff] }
 0x1f6   : > { %v10426_v58 = vadd.f32 %v6804_v51, %v10238_v53  ;;  %4609 = vmatprep.mubr.bf16.mxu1 %v12694_v27  ;;  %v10431_v32 = vadd.f32 %v6868_v4, %v10230_v34  ;;  %4512 = vmatprep.mubr.bf16.mxu0 %v12695_v50  ;;  %v1281_v53 = vrot.slane %v10026_v38, 3  ;;  %v1272_v34 = vrot.slane %v10050_v20, 2 }
 0x1f7   : > { %v6806_v13 = vpop.f32.mrf.mxu1  ;;  %v6870_v60 = vpop.f32.mrf.mxu0  ;;  %v1276_v50 = vrot.slane %v10054_v44, 3  ;;  %v12736_v44 = vld [vmem:[#allocation91_spill] sm:$0xff] }
 0x1f8   : > { %v6807_v24 = vadd.f32 %v6806_v13, %v6805_v29  ;;  %v6871_v33 = vadd.f32 %v6870_v60, %v6869_v7  ;;  %v1275_v13 = vrot.slane %v10235_v9, 2  ;;  %v1282_v60 = vsel %vm1167_vm5, %v1280_v30, %v1281_v53  ;;  %v12701_v9 = vld [vmem:[#allocation78_spill] sm:$0xff] }
 0x1f9   : > { %v6808_v6 = vpop.f32.mrf.mxu1  ;;  %v6872_v1 = vpop.f32.mrf.mxu0 }
 0x1fa   : > { %v10440_v51 = vadd.f32 %v6807_v24, %v10251_v37  ;;  %v10444_v4 = vadd.f32 %v6871_v33, %v10245_v17  ;;  %v12698_v37 = vrot.slane %v12697_v59, 1  ;;  %v12699_v24 = vld [vmem:[#allocation41_spill] sm:$0xff]  ;;  %v1274_v59 = vor.u32 %v1273_v2, %v1272_v34 }
 0x1fb   : > { %v6809_v29 = vpop.f32.mrf.mxu1  ;;  %v6873_v7 = vpop.f32.mrf.mxu0  ;;  %v1277_v53 = vor.u32 %v1276_v50, %v1275_v13  ;;  %v12702_v13 = vld [vmem:[#allocation21_spill] sm:$0xff] }
 0x1fc   : > { %v6810_v38 = vadd.f32 %v6809_v29, %v6808_v6  ;;  %v1306_v43 = vor.u32 %v12699_v24, %v12698_v37  ;;  %v6874_v39 = vadd.f32 %v6873_v7, %v6872_v1  ;;  %v12703_v50 = vrot.slane %v12702_v13, 1 }
 0x1fd   : > { %v6811_v20 = vpop.f32.mrf.mxu1  ;;  %4610 = vmatmul.mubr.bf16.gmra.mxu1 %v8118_v26  ;;  %v6875_v33 = vpop.f32.mrf.mxu0  ;;  %4513 = vmatmul.mubr.bf16.gmra.mxu0 %v12700_v16  ;;  %v1425_v26 = vrot.slane %v12676_v41, 1  ;;  %v12704_v41 = vld [vmem:[#allocation50_spill] sm:$0xff] }
 0x1fe   : > { %v10455_v17 = vadd.f32 %v6810_v38, %v10267_v56  ;;  %4617 = vmatprep.mubr.bf16.mxu1 %v12701_v9  ;;  %v10460_v6 = vadd.f32 %v6874_v39, %v10260_v49  ;;  %4520 = vmatprep.mubr.bf16.mxu0 %v1282_v60  ;;  %v1426_v7 = vrot.slane %v1306_v43, 1  ;;  %v1278_v39 = vsel %vm1038_vm3, %v1274_v59, %v1277_v53 }
 0x1ff   : > { %v6812_v30 = vpop.f32.mrf.mxu1  ;;  %v6876_v1 = vpop.f32.mrf.mxu0  ;;  %v1307_v43 = vor.u32 %v12704_v41, %v12703_v50  ;;  %v12707_v50 = vld [vmem:[#allocation30_spill] sm:$0xff] }
 0x200   : > { %v6813_v29 = vadd.f32 %v6812_v30, %v6811_v20  ;;  %v6877_v38 = vadd.f32 %v6876_v1, %v6875_v33  ;;  %v1427_v20 = vsel %vm747_vm1, %v1425_v26, %v1426_v7  ;;  %v8119_v30 = vld [vmem:[%s8259_s30 + $0x48] sm:$0xff]   ;;  %v1442_v7 = vrot.slane %v12680_v52, 1 }
 0x201   : > { %v6814_v56 = vpop.f32.mrf.mxu1  ;;  %v6878_v16 = vpop.f32.mrf.mxu0  ;;  %v12708_v41 = vrot.slane %v12707_v50, 1 }
 0x202   : > { %v10464_v37 = vadd.f32 %v6813_v29, %v10278_v63  ;;  %v10467_v24 = vadd.f32 %v6877_v38, %v10271_v48  ;;  %v12705_v29 = vld [vmem:[#allocation87_spill] sm:$0xff]  ;;  %v1443_v38 = vrot.slane %v1307_v43, 1 }
 0x203   : > { %v6815_v49 = vpop.f32.mrf.mxu1  ;;  %v6879_v2 = vpop.f32.mrf.mxu0  ;;  %v12709_v43 = vld [vmem:[#allocation59_spill] sm:$0xff] }
 0x204   : > { %v6816_v34 = vadd.f32 %v6815_v49, %v6814_v56  ;;  %v6880_v60 = vadd.f32 %v6879_v2, %v6878_v16  ;;  %v10493_v52 = vsel %vm747_vm1, %v1442_v7, %v1443_v38 }
 0x205   : > { %v6817_v33 = vpop.f32.mrf.mxu1  ;;  %4618 = vmatmul.mubr.bf16.gmra.mxu1 %v8119_v30  ;;  %v6881_v48 = vpop.f32.mrf.mxu0  ;;  %4521 = vmatmul.mubr.bf16.gmra.mxu0 %v1278_v39  ;;  %12706 = vst [vmem:[#allocation106_spill] sm:$0xff] %v10493_v52  ;;  %v8120_v30 = vld [vmem:[%s8259_s30 + $0x54] sm:$0xff]  }
 0x206   : > { %v10476_v63 = vadd.f32 %v6816_v34, %v10287_v28  ;;  %4625 = vmatprep.mubr.bf16.mxu1 %v12705_v29  ;;  %v10480_v59 = vadd.f32 %v6880_v60, %v10282_v57  ;;  %4722 = vmatprep.mubr.bf16.mxu0 %v1427_v20  ;;  %v8022_v57 = vld [vmem:[%s11939_s2 + $0x538] sm:$0xff]   ;;  %v1308_v60 = vor.u32 %v12709_v43, %v12708_v41 }
 0x207   : > { %v6818_v53 = vpop.f32.mrf.mxu1  ;;  %v6882_v26 = vpop.f32.mrf.mxu0 }
 0x208   : > { %v6819_v1 = vadd.f32 %v6818_v53, %v6817_v33  ;;  %v6883_v56 = vadd.f32 %v6882_v26, %v6881_v48  ;;  %v12711_v26 = vld [vmem:[#allocation93_spill] sm:$0xff] }
 0x209   : > { %v6820_v16 = vpop.f32.mrf.mxu1  ;;  %v6884_v49 = vpop.f32.mrf.mxu0 }
 0x20a   : > { %v10484_v28 = vadd.f32 %v6819_v1, %v10297_v25  ;;  %v10487_v39 = vadd.f32 %v6883_v56, %v10291_v35  ;;  %v8024_v25 = vld [vmem:[%s11939_s2 + $0x570] sm:$0xff]  }
 0x20b   : > { %v6821_v34 = vpop.f32.mrf.mxu1  ;;  %v6885_v20 = vpop.f32.mrf.mxu0  ;;  %v12710_v1 = vld [vmem:[#allocation52_spill] sm:$0xff] }
 0x20c   : > { %v6822_v2 = vadd.f32 %v6821_v34, %v6820_v16  ;;  %v6886_v35 = vadd.f32 %v6885_v20, %v6884_v49  ;;  %v8026_v56 = vld [vmem:[%s11939_s2 + $0x530] sm:$0xff]   ;;  %v1460_v34 = vrot.slane %v1308_v60, 1 }
 0x20d   : > { %v6951_v33 = vpop.f32.mrf.mxu1  ;;  %4626 = vmatmul.mubr.bf16.gmra.mxu1 %v8120_v30  ;;  %v6887_v53 = vpop.f32.mrf.mxu0  ;;  %4723 = vmatmul.mubr.bf16.vlgmr.msra.gmra.mxu0 %v12710_v1  ;;  %v12713_v30 = vld [vmem:[#allocation35_spill] sm:$0xff] }
 0x20e   : > { %v10503_v48 = vadd.f32 %v6822_v2, %v10311_v8  ;;  %4633 = vmatprep.mubr.bf16.mxu1 %v12711_v26  ;;  %v10508_v7 = vadd.f32 %v6886_v35, %v10304_v22  ;;  %7496 = vmatpush3.bf16.msra.mxu0 %v8022_v57  ;;  %v1459_v8 = vrot.slane %v12682_v12, 1  ;;  %v8028_v2 = vld [vmem:[%s11939_s2 + $0x568] sm:$0xff]  }
 0x20f   : > { %v6952_v38 = vpop.f32.mrf.mxu1  ;;  %4730 = vmatprep.mubr.bf16.mxu0 %v10493_v52  ;;  %v6888_v16 = vpop.f32.mrf.mxu0  ;;  %7497 = vmatprep.subr.bf16.mxu0 %v8024_v25  ;;  %v8030_v12 = vld [vmem:[%s11939_s2 + $0x528] sm:$0xff]  }
 0x210   : > { %v6953_v49 = vadd.f32 %v6952_v38, %v6951_v33  ;;  %v6889_v22 = vadd.f32 %v6888_v16, %v6887_v53  ;;  %v10528_v33 = vsel %vm747_vm1, %v1459_v8, %v1460_v34  ;;  %v12714_v53 = vrot.slane %v12713_v30, 1  ;;  %v12715_v38 = vld [vmem:[#allocation64_spill] sm:$0xff]  ;;  %v12717_v8 = vld [vmem:[#allocation5_spill] sm:$0xff] }
 0x211   : > { %v6954_v57 = vpop.f32.mrf.mxu1  ;;  %v6890_v41 = vpop.f32.mrf.mxu0  ;;  %12712 = vst [vmem:[#allocation161_spill] sm:$0xff] %v10528_v33 }
 0x212   : > { %v10519_v20 = vadd.f32 %v6953_v49, %v10322_v42  ;;  %v10522_v43 = vadd.f32 %v6889_v22, %v10319_v55  ;;  %7498 = vmatpush3.bf16.msra.mxu0 %v8026_v56  ;;  %v1309_v42 = vor.u32 %v12715_v38, %v12714_v53  ;;  %v8032_v55 = vld [vmem:[%s11939_s2 + $0x560] sm:$0xff]   ;;  %v8037_v38 = vld [vmem:[%s11939_s2 + $0x558] sm:$0xff]  }
 0x213   : > { %v6955_v35 = vpop.f32.mrf.mxu1  ;;  %v6891_v60 = vpop.f32.mrf.mxu0  ;;  %7499 = vmatprep.subr.bf16.mxu0 %v8028_v2  ;;  %v8121_v49 = vld [vmem:[%s8259_s30 + $0x60] sm:$0xff]  }
 0x214   : > { %v6956_v25 = vadd.f32 %v6955_v35, %v6954_v57  ;;  %v6892_v16 = vadd.f32 %v6891_v60, %v6890_v41  ;;  %v12716_v35 = vld [vmem:[#allocation65_spill] sm:$0xff]  ;;  %v8034_v41 = vld [vmem:[%s11939_s2 + $0x520] sm:$0xff]  }
 0x215   : > { %v6957_v56 = vpop.f32.mrf.mxu1  ;;  %4634 = vmatmul.mubr.bf16.gmra.mxu1 %v8121_v49  ;;  %v6893_v57 = vpop.f32.mrf.mxu0  ;;  %4731 = vmatmul.mubr.bf16.gmra.mxu0 %v12716_v35 }
 0x216   : > { %v10538_v22 = vadd.f32 %v6956_v25, %v10337_v19  ;;  %4641 = vmatprep.mubr.bf16.mxu1 %v12717_v8  ;;  %v10543_v34 = vadd.f32 %v6892_v16, %v10332_v40  ;;  %4738 = vmatprep.mubr.bf16.mxu0 %v10528_v33  ;;  %v1476_v19 = vrot.slane %v12685_v31, 1  ;;  %v1477_v25 = vrot.slane %v1309_v42, 1  ;;  %v8039_v31 = vld [vmem:[%s11939_s2 + $0x518] sm:$0xff]  }
 0x217   : > { %v6958_v2 = vpop.f32.mrf.mxu1  ;;  %7500 = vmatpush3.bf16.msra.mxu0 %v8030_v12  ;;  %v6894_v60 = vpop.f32.mrf.mxu0 }
 0x218   : > { %v6959_v53 = vadd.f32 %v6958_v2, %v6957_v56  ;;  %7501 = vmatprep.subr.bf16.mxu0 %v8032_v55  ;;  %v6895_v40 = vadd.f32 %v6894_v60, %v6893_v57  ;;  %v10563_v56 = vsel %vm747_vm1, %v1476_v19, %v1477_v25  ;;  %v12719_v57 = vld [vmem:[#allocation40_spill] sm:$0xff]  ;;  %v12721_v60 = vld [vmem:[#allocation71_spill] sm:$0xff]  ;;  %v12723_v19 = vld [vmem:[#allocation10_spill] sm:$0xff] }
 0x219   : > { %v6960_v16 = vpop.f32.mrf.mxu1  ;;  %v6896_v12 = vpop.f32.mrf.mxu0  ;;  %12718 = vst [vmem:[#allocation148_spill] sm:$0xff] %v10563_v56  ;;  %v12720_v2 = vrot.slane %v12719_v57, 1 }
 0x21a   : > { %v10554_v49 = vadd.f32 %v6959_v53, %v10350_v61  ;;  %v10557_v33 = vadd.f32 %v6895_v40, %v10347_v46  ;;  %v8041_v46 = vld [vmem:[%s11939_s2 + $0x550] sm:$0xff]  }
 0x21b   : > { %v6961_v52 = vpop.f32.mrf.mxu1  ;;  %7502 = vmatpush3.bf16.msra.mxu0 %v8034_v41  ;;  %v6897_v42 = vpop.f32.mrf.mxu0  ;;  %v1310_v61 = vor.u32 %v12721_v60, %v12720_v2  ;;  %v8122_v40 = vld [vmem:[%s8259_s30 + $0x6c] sm:$0xff]  }
 0x21c   : > { %v6962_v55 = vadd.f32 %v6961_v52, %v6960_v16  ;;  %7503 = vmatprep.subr.bf16.mxu0 %v8037_v38  ;;  %v6898_v53 = vadd.f32 %v6897_v42, %v6896_v12  ;;  %v12722_v16 = vld [vmem:[#allocation76_spill] sm:$0xff]  ;;  %v8045_v60 = vld [vmem:[%s11939_s2 + $0x548] sm:$0xff]  }
 0x21d   : > { %v6963_v41 = vpop.f32.mrf.mxu1  ;;  %4642 = vmatmul.mubr.bf16.gmra.mxu1 %v8122_v40  ;;  %v6899_v52 = vpop.f32.mrf.mxu0  ;;  %4739 = vmatmul.mubr.bf16.gmra.mxu0 %v12722_v16  ;;  %v8043_v12 = vld [vmem:[%s11939_s2 + $0x510] sm:$0xff]  }
 0x21e   : > { %v10573_v30 = vadd.f32 %v6962_v55, %v10365_v14  ;;  %4649 = vmatprep.mubr.bf16.mxu1 %v12723_v19  ;;  %v10578_v25 = vadd.f32 %v6898_v53, %v10360_v3  ;;  %4746 = vmatprep.mubr.bf16.mxu0 %v10563_v56  ;;  %v1493_v14 = vrot.slane %v12688_v54, 1  ;;  %v1494_v55 = vrot.slane %v1310_v61, 1  ;;  %v8047_v54 = vld [vmem:[%s11939_s2 + $0x508] sm:$0xff]  }
 0x21f   : > { %v6964_v38 = vpop.f32.mrf.mxu1  ;;  %7504 = vmatpush3.bf16.msra.mxu0 %v8039_v31  ;;  %v6900_v42 = vpop.f32.mrf.mxu0 }
 0x220   : > { %v6965_v2 = vadd.f32 %v6964_v38, %v6963_v41  ;;  %7505 = vmatprep.subr.bf16.mxu0 %v8041_v46  ;;  %v6901_v3 = vadd.f32 %v6900_v42, %v6899_v52  ;;  %v10598_v41 = vsel %vm747_vm1, %v1493_v14, %v1494_v55  ;;  %v12725_v52 = vld [vmem:[#allocation51_spill] sm:$0xff]  ;;  %v12727_v42 = vld [vmem:[#allocation81_spill] sm:$0xff]  ;;  %v12729_v14 = vld [vmem:[#allocation18_spill] sm:$0xff] }
 0x221   : > { %v6966_v53 = vpop.f32.mrf.mxu1  ;;  %v6902_v31 = vpop.f32.mrf.mxu0  ;;  %12724 = vst [vmem:[#allocation164_spill] sm:$0xff] %v10598_v41  ;;  %v12726_v38 = vrot.slane %v12725_v52, 1  ;;  %v12732_v52 = vld [vmem:[#allocation60_spill] sm:$0xff] }
 0x222   : > { %v10589_v40 = vadd.f32 %v6965_v2, %v10378_v0  ;;  %v10592_v56 = vadd.f32 %v6901_v3, %v10375_v10  ;;  %v8049_v10 = vld [vmem:[%s11939_s2 + $0x540] sm:$0xff]   ;;  %v8123_v3 = vld [vmem:[%s8259_s30 + $0x78] sm:$0xff]  }
 0x223   : > { %v6967_v57 = vpop.f32.mrf.mxu1  ;;  %7506 = vmatpush3.bf16.msra.mxu0 %v8043_v12  ;;  %v6903_v61 = vpop.f32.mrf.mxu0  ;;  %v1311_v0 = vor.u32 %v12727_v42, %v12726_v38 }
 0x224   : > { %v6968_v46 = vadd.f32 %v6967_v57, %v6966_v53  ;;  %7507 = vmatprep.subr.bf16.mxu0 %v8045_v60  ;;  %v6904_v2 = vadd.f32 %v6903_v61, %v6902_v31  ;;  %v12728_v53 = vld [vmem:[#allocation84_spill] sm:$0xff]  ;;  %v8051_v31 = vld [vmem:[%s11939_s2 + $0x500] sm:$0xff]  }
 0x225   : > { %v6969_v12 = vpop.f32.mrf.mxu1  ;;  %4650 = vmatmul.mubr.bf16.gmra.mxu1 %v8123_v3  ;;  %v6905_v57 = vpop.f32.mrf.mxu0  ;;  %4747 = vmatmul.mubr.bf16.gmra.mxu0 %v12728_v53  ;;  %v1511_v38 = vrot.slane %v1311_v0, 1 }
 0x226   : > { %v10608_v50 = vadd.f32 %v6968_v46, %v10393_v45  ;;  %4657 = vmatprep.mubr.bf16.mxu1 %v12729_v14  ;;  %v10613_v55 = vadd.f32 %v6904_v2, %v10388_v62  ;;  %4754 = vmatprep.mubr.bf16.mxu0 %v10598_v41  ;;  %v1510_v46 = vrot.slane %v12691_v15, 1  ;;  %v10623_v62 = vld [vmem:[%s11939_s2 + $0x638] sm:$0xff]  }
 0x227   : > { %v6970_v60 = vpop.f32.mrf.mxu1  ;;  %7508 = vmatpush3.bf16.msra.mxu0 %v8047_v54  ;;  %v6906_v61 = vpop.f32.mrf.mxu0  ;;  %12730 = vst [vmem:[#allocation153_spill] sm:$0xff] %v10623_v62 }
 0x228   : > { %v6971_v45 = vadd.f32 %v6970_v60, %v6969_v12  ;;  %7509 = vmatprep.subr.bf16.mxu0 %v8049_v10  ;;  %v6907_v42 = vadd.f32 %v6906_v61, %v6905_v57  ;;  %v10632_v60 = vld [vmem:[%s8259_s30 + $0xa8] sm:$0xff]   ;;  %v10635_v10 = vsel %vm747_vm1, %v1510_v46, %v1511_v38  ;;  %v12733_v57 = vrot.slane %v12732_v52, 1  ;;  %v12734_v61 = vld [vmem:[#allocation89_spill] sm:$0xff] }
 0x229   : > { %v6972_v2 = vpop.f32.mrf.mxu1  ;;  %v6908_v3 = vpop.f32.mrf.mxu0  ;;  %12731 = vst [vmem:[#allocation42_spill] sm:$0xff] %v10635_v10 }
 0x22a   : > { %v10626_v54 = vadd.f32 %v6971_v45, %v10406_v47  ;;  %v10629_v41 = vadd.f32 %v6907_v42, %v10403_v5  ;;  %v1312_v13 = vor.u32 %v12734_v61, %v12733_v57  ;;  %v8124_v5 = vld [vmem:[%s8259_s30 + $0x84] sm:$0xff]  }
 0x22b   : > { %v6973_v12 = vpop.f32.mrf.mxu1  ;;  %7510 = vmatpush3.bf16.msra.mxu0 %v8051_v31  ;;  %v6909_v15 = vpop.f32.mrf.mxu0 }
 0x22c   : > { %v6974_v0 = vadd.f32 %v6973_v12, %v6972_v2  ;;  %7743 = vmatprep.subr.bf16.mxu0 %v10623_v62  ;;  %v6910_v47 = vadd.f32 %v6909_v15, %v6908_v3  ;;  %v12737_v2 = vld [vmem:[#allocation26_spill] sm:$0xff]  ;;  %v10652_v12 = vld [vmem:[%s8259_s30 + $0xb0] ss:$0 sps:$4 sm:$0x77]   ;;  %v10655_v3 = vshll.u32 %v10632_v60, 16  ;;  %v10665_v62 = vshrl.u32 %v10632_v60, 16 }
 0x22d   : > { %v6975_v45 = vpop.f32.mrf.mxu1  ;;  %4658 = vmatmul.mubr.bf16.gmra.mxu1 %v8124_v5  ;;  %v6911_v31 = vpop.f32.mrf.mxu0  ;;  %4755 = vmatmul.mubr.bf16.gmra.mxu0 %v12736_v44 }
 0x22e   : > { %v10643_v42 = vadd.f32 %v6974_v0, %v10415_v11  ;;  %4665 = vmatprep.mubr.bf16.mxu1 %v12737_v2  ;;  %v10648_v46 = vadd.f32 %v6910_v47, %v10410_v21  ;;  %4762 = vmatprep.mubr.bf16.mxu0 %v10635_v10  ;;  %12739 = vst [vmem:[#allocation9_spill] sm:$0xff] %v10655_v3  ;;  %v1527_v11 = vrot.slane %v12694_v27, 1  ;;  %v1528_v0 = vrot.slane %v1312_v13, 1 }
 0x22f   : > { %v6976_v38 = vpop.f32.mrf.mxu1  ;;  %v6912_v15 = vpop.f32.mrf.mxu0  ;;  %12742 = vst [vmem:[#allocation25_spill] sm:$0xff] %v10665_v62 }
 0x230   : > { %12735 = vst [vmem:[#allocation126_spill] sm:$0xff] %v10643_v42  ;;  %12738 = vst [vmem:[#allocation16_spill] sm:$0xff] %v10648_v46  ;;  %v6977_v57 = vadd.f32 %v6976_v38, %v6975_v45  ;;  %v6913_v61 = vadd.f32 %v6912_v15, %v6911_v31  ;;  %v1298_v42 = vrot.slane %v10655_v3, 1  ;;  %v10669_v45 = vshll.u32 %v10652_v12, 16  ;;  %v12747_v15 = vld [vmem:[#allocation95_spill] sm:$0xff]  ;;  %v12748_v46 = vld [vmem:[#allocation96_spill] sm:$0xff] }
 0x231   : > { %v6978_v5 = vpop.f32.mrf.mxu1  ;;  %v6914_v21 = vpop.f32.mrf.mxu0  ;;  %v10672_v31 = vsel %vm747_vm1, %v1527_v11, %v1528_v0 }
 0x232   : > { %v10659_v52 = vadd.f32 %v6977_v57, %v10422_v18  ;;  %v10662_v47 = vadd.f32 %v6913_v61, %v10419_v23  ;;  %12743 = vst [vmem:[#allocation139_spill] sm:$0xff] %v10669_v45  ;;  %12744 = vst [vmem:[#allocation32_spill] sm:$0xff] %v10672_v31  ;;  %v12745_v18 = vld [vmem:[#allocation68_spill] sm:$0xff]  ;;  %v1299_v0 = vor.u32 %v1298_v42, %v10665_v62 }
 0x233   : > { %v6979_v10 = vpop.f32.mrf.mxu1  ;;  %v6915_v27 = vpop.f32.mrf.mxu0  ;;  %v12746_v38 = vrot.slane %v12745_v18, 1  ;;  %v12754_v62 = vld [vmem:[#allocation136_spill] sm:$0xff] }
 0x234   : > { %12740 = vst [vmem:[#allocation154_spill] sm:$0xff] %v10659_v52  ;;  %12741 = vst [vmem:[#allocation166_spill] sm:$0xff] %v10662_v47  ;;  %v6980_v13 = vadd.f32 %v6979_v10, %v6978_v5  ;;  %v6916_v23 = vadd.f32 %v6915_v27, %v6914_v21  ;;  %v8125_v52 = vld [vmem:[%s8259_s30 + $0x90] sm:$0xff]   ;;  %v12276_v5 = vrot.slane %v10669_v45, 1 }
 0x235   : > { %v1313_v57 = vor.u32 %v12747_v15, %v12746_v38  ;;  %v6981_v61 = vpop.f32.mrf.mxu1  ;;  %4666 = vmatmul.mubr.bf16.gmra.mxu1 %v8125_v52  ;;  %v6917_v3 = vpop.f32.mrf.mxu0  ;;  %4763 = vmatmul.mubr.bf16.gmra.mxu0 %v12748_v46 }
 0x236   : > { %v10679_v47 = vadd.f32 %v6980_v13, %v10431_v32  ;;  %4673 = vmatprep.mubr.bf16.mxu1 %v10082_v36  ;;  %v10684_v10 = vadd.f32 %v6916_v23, %v10426_v58  ;;  %4770 = vmatprep.mubr.bf16.mxu0 %v10672_v31  ;;  %v1544_v32 = vrot.slane %v12701_v9, 1  ;;  %v10699_v42 = vsel %vm538_vm0, %v1299_v0, %v12276_v5  ;;  %v12757_v0 = vld [vmem:[#allocation48_spill] sm:$0xff] }
 0x237   : > { %v6982_v11 = vpop.f32.mrf.mxu1  ;;  %v6918_v21 = vpop.f32.mrf.mxu0  ;;  %v1545_v27 = vrot.slane %v1313_v57, 1 }
 0x238   : > { %v6983_v52 = vadd.f32 %v6982_v11, %v6981_v61  ;;  %v6919_v13 = vadd.f32 %v6918_v21, %v6917_v3  ;;  %v12751_v3 = vld [vmem:[#allocation75_spill] sm:$0xff]  ;;  %v12753_v11 = vld [vmem:[#allocation98_spill] sm:$0xff] }
 0x239   : > { %v6984_v38 = vpop.f32.mrf.mxu1  ;;  %v6920_v18 = vpop.f32.mrf.mxu0  ;;  %v10702_v9 = vsel %vm747_vm1, %v1544_v32, %v1545_v27  ;;  %v12752_v57 = vrot.slane %v12751_v3, 1 }
 0x23a   : > { %v10691_v15 = vadd.f32 %v6983_v52, %v10444_v4  ;;  %v10694_v58 = vadd.f32 %v6919_v13, %v10440_v51  ;;  %12750 = vst [vmem:[#allocation156_spill] sm:$0xff] %v10702_v9 }
 0x23b   : > { %v6985_v23 = vpop.f32.mrf.mxu1  ;;  %v6921_v31 = vpop.f32.mrf.mxu0  ;;  %v1314_v4 = vor.u32 %v12753_v11, %v12752_v57 }
 0x23c   : > { %12749 = vst [vmem:[#allocation167_spill] sm:$0xff] %v10691_v15  ;;  %v6986_v61 = vadd.f32 %v6985_v23, %v6984_v38  ;;  %v6922_v21 = vadd.f32 %v6921_v31, %v6920_v18  ;;  %v12756_v15 = vld [vmem:[#allocation100_spill] sm:$0xff]  ;;  %v1431_v38 = vrot.slane %v12757_v0, 1  ;;  %v12758_v31 = vld [vmem:[#allocation45_spill] sm:$0xff] }
 0x23d   : > { %v6987_v52 = vpop.f32.mrf.mxu1  ;;  %4674 = vmatmul.mubr.bf16.gmra.mxu1 %v12754_v62  ;;  %v6923_v13 = vpop.f32.mrf.mxu0  ;;  %4771 = vmatmul.mubr.bf16.gmra.mxu0 %v12756_v15  ;;  %v1432_v18 = vrot.slane %v12758_v31, 1 }
 0x23e   : > { %v10709_v51 = vadd.f32 %v6986_v61, %v10460_v6  ;;  %4681 = vmatprep.mubr.bf16.mxu1 %v10699_v42  ;;  %v10715_v32 = vadd.f32 %v6922_v21, %v10455_v17  ;;  %4778 = vmatprep.mubr.bf16.mxu0 %v10702_v9  ;;  %v1561_v6 = vrot.slane %v12705_v29, 1  ;;  %v1562_v61 = vrot.slane %v1314_v4, 1  ;;  %v12762_v4 = vld [vmem:[#allocation104_spill] sm:$0xff] }
 0x23f   : > { %v6988_v27 = vpop.f32.mrf.mxu1  ;;  %v6924_v23 = vpop.f32.mrf.mxu0  ;;  %v1433_v21 = vsel %vm747_vm1, %v1431_v38, %v1432_v18 }
 0x240   : > { %12755 = vst [vmem:[#allocation43_spill] sm:$0xff] %v10709_v51  ;;  %v6989_v62 = vadd.f32 %v6988_v27, %v6987_v52  ;;  %v6925_v57 = vadd.f32 %v6924_v23, %v6923_v13  ;;  %v10728_v31 = vsel %vm747_vm1, %v1561_v6, %v1562_v61  ;;  %v12760_v52 = vld [vmem:[#allocation88_spill] sm:$0xff]  ;;  %v12766_v6 = vld [vmem:[#allocation58_spill] sm:$0xff] }
 0x241   : > { %v6990_v11 = vpop.f32.mrf.mxu1  ;;  %v6926_v3 = vpop.f32.mrf.mxu0  ;;  %12759 = vst [vmem:[#allocation168_spill] sm:$0xff] %v10728_v31  ;;  %v12761_v29 = vrot.slane %v12760_v52, 1  ;;  %v1448_v61 = vrot.slane %v12766_v6, 1 }
 0x242   : > { %v10721_v5 = vadd.f32 %v6989_v62, %v10467_v24  ;;  %v10724_v0 = vadd.f32 %v6925_v57, %v10464_v37  ;;  %v1428_v24 = vrot.slane %v12710_v1, 1  ;;  %v12763_v37 = vld [vmem:[#allocation11_spill] sm:$0xff] }
 0x243   : > { %v6991_v17 = vpop.f32.mrf.mxu1  ;;  %v6927_v9 = vpop.f32.mrf.mxu0  ;;  %v1315_v13 = vor.u32 %v12762_v4, %v12761_v29  ;;  %v12764_v62 = vrot.slane %v12763_v37, 1  ;;  %v1578_v29 = vrot.slane %v12711_v26, 1  ;;  %v12767_v37 = vld [vmem:[#allocation53_spill] sm:$0xff] }
 0x244   : > { %v6992_v51 = vadd.f32 %v6991_v17, %v6990_v11  ;;  %v6928_v27 = vadd.f32 %v6927_v9, %v6926_v3  ;;  %v12765_v11 = vld [vmem:[#allocation105_spill] sm:$0xff] }
 0x245   : > { %v6993_v23 = vpop.f32.mrf.mxu1  ;;  %4682 = vmatmul.mubr.bf16.gmra.mxu1 %v10632_v60  ;;  %v1429_v57 = vrot.slane %v12764_v62, 1  ;;  %v6929_v18 = vpop.f32.mrf.mxu0  ;;  %4779 = vmatmul.mubr.bf16.gmra.mxu0 %v12765_v11  ;;  %v1579_v4 = vrot.slane %v1315_v13, 1 }
 0x246   : > { %v10738_v38 = vadd.f32 %v6992_v51, %v10480_v59  ;;  %4883 = vmatprep.mubr.bf16.mxu1 %v1433_v21  ;;  %v10743_v17 = vadd.f32 %v6928_v27, %v10476_v63  ;;  %4786 = vmatprep.mubr.bf16.mxu0 %v10728_v31  ;;  %v1449_v59 = vrot.slane %v12767_v37, 1  ;;  %v8040_v63 = vld [vmem:[%s11939_s2 + $0x5b8] sm:$0xff]  }
 0x247   : > { %v6994_v9 = vpop.f32.mrf.mxu1  ;;  %v6930_v3 = vpop.f32.mrf.mxu0  ;;  %v1430_v6 = vsel %vm747_vm1, %v1428_v24, %v1429_v57  ;;  %v8042_v24 = vld [vmem:[%s11939_s2 + $0x5f0] sm:$0xff]  }
 0x248   : > { %v6995_v1 = vadd.f32 %v6994_v9, %v6993_v23  ;;  %v6931_v51 = vadd.f32 %v6930_v3, %v6929_v18  ;;  %v10759_v9 = vsel %vm747_vm1, %v1578_v29, %v1579_v4  ;;  %v1450_v18 = vsel %vm747_vm1, %v1448_v61, %v1449_v59  ;;  %v12773_v29 = vld [vmem:[#allocation17_spill] sm:$0xff] }
 0x249   : > { %v6996_v62 = vpop.f32.mrf.mxu1  ;;  %v6932_v21 = vpop.f32.mrf.mxu0  ;;  %12768 = vst [vmem:[#allocation143_spill] sm:$0xff] %v10759_v9  ;;  %v1445_v61 = vrot.slane %v12716_v35, 1  ;;  %v12774_v4 = vrot.slane %v12773_v29, 1 }
 0x24a   : > { %v10749_v52 = vadd.f32 %v6995_v1, %v10487_v39  ;;  %v10756_v27 = vadd.f32 %v6931_v51, %v10484_v28  ;;  %v12769_v39 = vld [vmem:[#allocation4_spill] sm:$0xff] }
 0x24b   : > { %v6997_v23 = vpop.f32.mrf.mxu1  ;;  %v6933_v26 = vpop.f32.mrf.mxu0  ;;  %v12770_v3 = vrot.slane %v12769_v39, 1  ;;  %v12771_v1 = vld [vmem:[#allocation112_spill] sm:$0xff]  ;;  %v1446_v59 = vrot.slane %v12774_v4, 1  ;;  %v1595_v4 = vrot.slane %v12717_v8, 1  ;;  %v8048_v8 = vld [vmem:[%s11939_s2 + $0x5a8] sm:$0xff]  }
 0x24c   : > { %v6998_v13 = vadd.f32 %v6997_v23, %v6996_v62  ;;  %v6934_v57 = vadd.f32 %v6933_v26, %v6932_v21  ;;  %v12772_v62 = vld [vmem:[#allocation113_spill] sm:$0xff]  ;;  %v8044_v23 = vld [vmem:[%s11939_s2 + $0x5b0] sm:$0xff]  }
 0x24d   : > { %v1316_v37 = vor.u32 %v12771_v1, %v12770_v3  ;;  %v6999_v31 = vpop.f32.mrf.mxu1  ;;  %4884 = vmatmul.mubr.bf16.vlgmr.msra.gmra.mxu1 %v1430_v6  ;;  %v7063_v51 = vpop.f32.mrf.mxu0  ;;  %4787 = vmatmul.mubr.bf16.gmra.mxu0 %v12772_v62  ;;  %v12775_v3 = vld [vmem:[#allocation67_spill] sm:$0xff]  ;;  %v12776_v26 = vld [vmem:[#allocation61_spill] sm:$0xff] }
 0x24e   : > { %v10769_v28 = vadd.f32 %v6998_v13, %v10508_v7  ;;  %7608 = vmatpush3.bf16.msra.mxu1 %v8040_v63  ;;  %v1465_v21 = vrot.slane %v12775_v3, 1  ;;  %v10780_v6 = vadd.f32 %v6934_v57, %v10503_v48  ;;  %4794 = vmatprep.mubr.bf16.mxu0 %v10759_v9  ;;  %v1466_v63 = vrot.slane %v12776_v26, 1  ;;  %v8046_v13 = vld [vmem:[%s11939_s2 + $0x5e8] sm:$0xff]  }
 0x24f   : > { %v7000_v7 = vpop.f32.mrf.mxu1  ;;  %4891 = vmatprep.mubr.bf16.mxu1 %v1450_v18  ;;  %v7064_v29 = vpop.f32.mrf.mxu0  ;;  %v1596_v39 = vrot.slane %v1316_v37, 1  ;;  %7609 = vmatprep.subr.bf16.mxu1 %v8042_v24  ;;  %v1447_v18 = vsel %vm747_vm1, %v1445_v61, %v1446_v59  ;;  %v12780_v61 = vld [vmem:[#allocation119_spill] sm:$0xff] }
 0x250   : > { %v7001_v1 = vadd.f32 %v7000_v7, %v6999_v31  ;;  %v7065_v3 = vadd.f32 %v7064_v29, %v7063_v51  ;;  %v1467_v31 = vsel %vm747_vm1, %v1465_v21, %v1466_v63  ;;  %v12778_v51 = vld [vmem:[#allocation8_spill] sm:$0xff] }
 0x251   : > { %v7002_v35 = vpop.f32.mrf.mxu1  ;;  %v7066_v57 = vpop.f32.mrf.mxu0  ;;  %v12779_v7 = vrot.slane %v12778_v51, 1 }
 0x252   : > { %v10789_v48 = vadd.f32 %v7001_v1, %v10522_v43  ;;  %7610 = vmatpush3.bf16.msra.mxu1 %v8044_v23  ;;  %v10793_v26 = vadd.f32 %v7065_v3, %v10519_v20  ;;  %v10800_v43 = vsel %vm747_vm1, %v1595_v4, %v1596_v39  ;;  %v8050_v20 = vld [vmem:[%s11939_s2 + $0x5e0] sm:$0xff]   ;;  %v12782_v39 = vld [vmem:[#allocation27_spill] sm:$0xff]  ;;  %v12784_v4 = vld [vmem:[#allocation77_spill] sm:$0xff] }
 0x253   : > { %v7003_v9 = vpop.f32.mrf.mxu1  ;;  %7611 = vmatprep.subr.bf16.mxu1 %v8046_v13  ;;  %v7067_v24 = vpop.f32.mrf.mxu0  ;;  %12777 = vst [vmem:[#allocation44_spill] sm:$0xff] %v10800_v43  ;;  %v1317_v59 = vor.u32 %v12780_v61, %v12779_v7  ;;  %v12783_v1 = vrot.slane %v12782_v39, 1  ;;  %v1482_v3 = vrot.slane %v12784_v4, 1  ;;  %v1612_v61 = vrot.slane %v12723_v19, 1 }
 0x254   : > { %v7004_v37 = vadd.f32 %v7003_v9, %v7002_v35  ;;  %v7068_v23 = vadd.f32 %v7067_v24, %v7066_v57  ;;  %v12781_v35 = vld [vmem:[#allocation122_spill] sm:$0xff]  ;;  %v1462_v9 = vrot.slane %v12722_v16, 1 }
 0x255   : > { %v7005_v21 = vpop.f32.mrf.mxu1  ;;  %4892 = vmatmul.mubr.bf16.gmra.mxu1 %v1447_v18  ;;  %v7069_v13 = vpop.f32.mrf.mxu0  ;;  %4795 = vmatmul.mubr.bf16.gmra.mxu0 %v12781_v35  ;;  %v1463_v29 = vrot.slane %v12783_v1, 1  ;;  %v12785_v18 = vld [vmem:[#allocation72_spill] sm:$0xff]  ;;  %v1613_v39 = vrot.slane %v1317_v59, 1  ;;  %v8055_v59 = vld [vmem:[%s11939_s2 + $0x598] sm:$0xff]  }
 0x256   : > { %v10809_v63 = vadd.f32 %v7004_v37, %v10543_v34  ;;  %4899 = vmatprep.mubr.bf16.mxu1 %v1467_v31  ;;  %v10817_v7 = vadd.f32 %v7068_v23, %v10538_v22  ;;  %4802 = vmatprep.mubr.bf16.mxu0 %v10800_v43  ;;  %v1483_v34 = vrot.slane %v12785_v18, 1  ;;  %v8052_v31 = vld [vmem:[%s11939_s2 + $0x5a0] sm:$0xff]   ;;  %v8053_v22 = vld [vmem:[%s11939_s2 + $0x5d8] sm:$0xff]  }
 0x257   : > { %v7006_v57 = vpop.f32.mrf.mxu1  ;;  %7612 = vmatpush3.bf16.msra.mxu1 %v8048_v8  ;;  %v7070_v24 = vpop.f32.mrf.mxu0  ;;  %v1464_v18 = vsel %vm747_vm1, %v1462_v9, %v1463_v29 }
 0x258   : > { %v7007_v37 = vadd.f32 %v7006_v57, %v7005_v21  ;;  %7613 = vmatprep.subr.bf16.mxu1 %v8050_v20  ;;  %v7071_v23 = vadd.f32 %v7070_v24, %v7069_v13  ;;  %v1484_v19 = vsel %vm747_vm1, %v1482_v3, %v1483_v34  ;;  %v10840_v57 = vsel %vm747_vm1, %v1612_v61, %v1613_v39  ;;  %v12789_v24 = vld [vmem:[#allocation129_spill] sm:$0xff]  ;;  %v12791_v39 = vld [vmem:[#allocation31_spill] sm:$0xff] }
 0x259   : > { %v7008_v1 = vpop.f32.mrf.mxu1  ;;  %v7072_v8 = vpop.f32.mrf.mxu0  ;;  %12786 = vst [vmem:[#allocation169_spill] sm:$0xff] %v10840_v57  ;;  %v1479_v61 = vrot.slane %v12728_v53, 1 }
 0x25a   : > { %v10829_v4 = vadd.f32 %v7007_v37, %v10557_v33  ;;  %v10833_v43 = vadd.f32 %v7071_v23, %v10554_v49  ;;  %v12787_v33 = vld [vmem:[#allocation15_spill] sm:$0xff]  ;;  %v8056_v49 = vld [vmem:[%s11939_s2 + $0x5d0] sm:$0xff]  }
 0x25b   : > { %v7009_v21 = vpop.f32.mrf.mxu1  ;;  %7614 = vmatpush3.bf16.msra.mxu1 %v8052_v31  ;;  %v7073_v13 = vpop.f32.mrf.mxu0  ;;  %v12788_v37 = vrot.slane %v12787_v33, 1  ;;  %v12790_v23 = vld [vmem:[#allocation132_spill] sm:$0xff] }
 0x25c   : > { %v7010_v20 = vadd.f32 %v7009_v21, %v7008_v1  ;;  %7615 = vmatprep.subr.bf16.mxu1 %v8053_v22  ;;  %v7074_v29 = vadd.f32 %v7073_v13, %v7072_v8  ;;  %v12792_v1 = vrot.slane %v12791_v39, 1  ;;  %v12793_v22 = vld [vmem:[#allocation85_spill] sm:$0xff]  ;;  %v1629_v39 = vrot.slane %v12729_v14, 1 }
 0x25d   : > { %v1318_v9 = vor.u32 %v12789_v24, %v12788_v37  ;;  %v7011_v3 = vpop.f32.mrf.mxu1  ;;  %4900 = vmatmul.mubr.bf16.gmra.mxu1 %v1464_v18  ;;  %v7075_v31 = vpop.f32.mrf.mxu0  ;;  %4803 = vmatmul.mubr.bf16.gmra.mxu0 %v12790_v23  ;;  %v1499_v37 = vrot.slane %v12793_v22, 1  ;;  %v12794_v18 = vld [vmem:[#allocation80_spill] sm:$0xff] }
 0x25e   : > { %v10849_v34 = vadd.f32 %v7010_v20, %v10578_v25  ;;  %4907 = vmatprep.mubr.bf16.mxu1 %v1484_v19  ;;  %v1480_v21 = vrot.slane %v12792_v1, 1  ;;  %v10857_v24 = vadd.f32 %v7074_v29, %v10573_v30  ;;  %4810 = vmatprep.mubr.bf16.mxu0 %v10840_v57  ;;  %v1500_v25 = vrot.slane %v12794_v18, 1  ;;  %v8058_v19 = vld [vmem:[%s11939_s2 + $0x590] sm:$0xff]   ;;  %v8059_v30 = vld [vmem:[%s11939_s2 + $0x5c8] sm:$0xff]  }
 0x25f   : > { %v7012_v8 = vpop.f32.mrf.mxu1  ;;  %7616 = vmatpush3.bf16.msra.mxu1 %v8055_v59  ;;  %v7076_v13 = vpop.f32.mrf.mxu0  ;;  %v1630_v1 = vrot.slane %v1318_v9, 1  ;;  %v8061_v9 = vld [vmem:[%s11939_s2 + $0x588] sm:$0xff]  }
 0x260   : > { %v7013_v20 = vadd.f32 %v7012_v8, %v7011_v3  ;;  %7617 = vmatprep.subr.bf16.mxu1 %v8056_v49  ;;  %v7077_v29 = vadd.f32 %v7076_v13, %v7075_v31  ;;  %v1481_v18 = vsel %vm747_vm1, %v1479_v61, %v1480_v21  ;;  %v1501_v14 = vsel %vm747_vm1, %v1499_v37, %v1500_v25  ;;  %v12798_v13 = vld [vmem:[#allocation138_spill] sm:$0xff] }
 0x261   : > { %v7014_v22 = vpop.f32.mrf.mxu1  ;;  %v7078_v59 = vpop.f32.mrf.mxu0  ;;  %v10880_v8 = vsel %vm747_vm1, %v1629_v39, %v1630_v1  ;;  %v1496_v39 = vrot.slane %v12736_v44, 1  ;;  %v12800_v1 = vld [vmem:[#allocation36_spill] sm:$0xff] }
 0x262   : > { %v10869_v57 = vadd.f32 %v7013_v20, %v10592_v56  ;;  %v10873_v33 = vadd.f32 %v7077_v29, %v10589_v40  ;;  %12795 = vst [vmem:[#allocation158_spill] sm:$0xff] %v10880_v8  ;;  %v12796_v56 = vld [vmem:[#allocation24_spill] sm:$0xff]  ;;  %v8062_v40 = vld [vmem:[%s11939_s2 + $0x5c0] sm:$0xff]   ;;  %v12799_v29 = vld [vmem:[#allocation145_spill] sm:$0xff] }
 0x263   : > { %v7015_v3 = vpop.f32.mrf.mxu1  ;;  %7618 = vmatpush3.bf16.msra.mxu1 %v8058_v19  ;;  %v7079_v31 = vpop.f32.mrf.mxu0  ;;  %v12797_v20 = vrot.slane %v12796_v56, 1 }
 0x264   : > { %v7016_v49 = vadd.f32 %v7015_v3, %v7014_v22  ;;  %7619 = vmatprep.subr.bf16.mxu1 %v8059_v30  ;;  %v7080_v21 = vadd.f32 %v7079_v31, %v7078_v59  ;;  %v12801_v22 = vrot.slane %v12800_v1, 1  ;;  %v12802_v30 = vld [vmem:[#allocation92_spill] sm:$0xff]  ;;  %v1646_v1 = vrot.slane %v12737_v2, 1 }
 0x265   : > { %v1319_v61 = vor.u32 %v12798_v13, %v12797_v20  ;;  %v7017_v37 = vpop.f32.mrf.mxu1  ;;  %4908 = vmatmul.mubr.bf16.gmra.mxu1 %v1481_v18  ;;  %v7081_v19 = vpop.f32.mrf.mxu0  ;;  %4811 = vmatmul.mubr.bf16.gmra.mxu0 %v12799_v29  ;;  %v1516_v20 = vrot.slane %v12802_v30, 1  ;;  %v12803_v18 = vld [vmem:[#allocation90_spill] sm:$0xff] }
 0x266   : > { %v10889_v25 = vadd.f32 %v7016_v49, %v10613_v55  ;;  %4915 = vmatprep.mubr.bf16.mxu1 %v1501_v14  ;;  %v1497_v3 = vrot.slane %v12801_v22, 1  ;;  %v10897_v13 = vadd.f32 %v7080_v21, %v10608_v50  ;;  %4818 = vmatprep.mubr.bf16.mxu0 %v10880_v8  ;;  %v1517_v55 = vrot.slane %v12803_v18, 1  ;;  %v8064_v14 = vld [vmem:[%s11939_s2 + $0x580] sm:$0xff]  }
 0x267   : > { %v7018_v59 = vpop.f32.mrf.mxu1  ;;  %7620 = vmatpush3.bf16.msra.mxu1 %v8061_v9  ;;  %v7082_v31 = vpop.f32.mrf.mxu0  ;;  %v1647_v22 = vrot.slane %v1319_v61, 1  ;;  %v12805_v61 = vld [vmem:[#allocation174_spill] sm:$0xff] }
 0x268   : > { %v7019_v49 = vadd.f32 %v7018_v59, %v7017_v37  ;;  %7621 = vmatprep.subr.bf16.mxu1 %v8062_v40  ;;  %v7083_v30 = vadd.f32 %v7082_v31, %v7081_v19  ;;  %v1498_v8 = vsel %vm747_vm1, %v1496_v39, %v1497_v3  ;;  %v1518_v51 = vsel %vm747_vm1, %v1516_v20, %v1517_v55  ;;  %v12807_v19 = vld [vmem:[#allocation102_spill] sm:$0xff]  ;;  %v12808_v39 = vld [vmem:[#allocation16_spill] sm:$0xff] }
 0x269   : > { %v7020_v56 = vpop.f32.mrf.mxu1  ;;  %v7084_v21 = vpop.f32.mrf.mxu0  ;;  %v10914_v2 = vsel %vm747_vm1, %v1646_v1, %v1647_v22  ;;  %v12806_v40 = vrot.slane %v12805_v61, 1  ;;  %v12810_v20 = vld [vmem:[#allocation46_spill] sm:$0xff]  ;;  %v12812_v1 = vld [vmem:[#allocation97_spill] sm:$0xff] }
 0x26a   : > { %v10906_v50 = vadd.f32 %v7019_v49, %v10629_v41  ;;  %v10910_v9 = vadd.f32 %v7083_v30, %v10626_v54  ;;  %12804 = vst [vmem:[#allocation57_spill] sm:$0xff] %v10914_v2  ;;  %v12809_v30 = vld [vmem:[#allocation150_spill] sm:$0xff]  ;;  %v12811_v55 = vrot.slane %v12810_v20, 1  ;;  %v1533_v22 = vrot.slane %v12812_v1, 1 }
 0x26b   : > { %v7021_v18 = vpop.f32.mrf.mxu1  ;;  %7622 = vmatpush3.bf16.msra.mxu1 %v8064_v14  ;;  %v7085_v59 = vpop.f32.mrf.mxu0  ;;  %v1320_v41 = vor.u32 %v12807_v19, %v12806_v40 }
 0x26c   : > { %v7022_v37 = vadd.f32 %v7021_v18, %v7020_v56  ;;  %v7086_v49 = vadd.f32 %v7085_v59, %v7084_v21  ;;  %v1513_v56 = vrot.slane %v12748_v46, 1  ;;  %v1514_v14 = vrot.slane %v12811_v55, 1  ;;  %v12813_v18 = vld [vmem:[#allocation126_spill] sm:$0xff] }
 0x26d   : > { %v7023_v31 = vpop.f32.mrf.mxu1  ;;  %4916 = vmatmul.mubr.bf16.gmra.mxu1 %v1498_v8  ;;  %v7087_v54 = vpop.f32.mrf.mxu0  ;;  %4819 = vmatmul.mubr.bf16.gmra.mxu0 %v12809_v30  ;;  %v12814_v8 = vld [vmem:[#allocation94_spill] sm:$0xff]  ;;  %v1663_v59 = vrot.slane %v10082_v36, 1 }
 0x26e   : > { %v10920_v3 = vadd.f32 %v7022_v37, %v12808_v39  ;;  %4923 = vmatprep.mubr.bf16.mxu1 %v1518_v51  ;;  %v10928_v61 = vadd.f32 %v7086_v49, %v12813_v18  ;;  %4826 = vmatprep.mubr.bf16.mxu0 %v10914_v2  ;;  %v1534_v37 = vrot.slane %v12814_v8, 1  ;;  %v1664_v51 = vrot.slane %v1320_v41, 1  ;;  %v12815_v55 = vld [vmem:[#allocation166_spill] sm:$0xff] }
 0x26f   : > { %v7024_v21 = vpop.f32.mrf.mxu1  ;;  %v7088_v19 = vpop.f32.mrf.mxu0  ;;  %v12289_v39 = vshrl.u32 %v10652_v12, 16  ;;  %v1515_v49 = vsel %vm747_vm1, %v1513_v56, %v1514_v14  ;;  %v12816_v18 = vld [vmem:[#allocation154_spill] sm:$0xff]  ;;  %v12820_v14 = vld [vmem:[#allocation79_spill] sm:$0xff] }
 0x270   : > { %v7025_v40 = vadd.f32 %v7024_v21, %v7023_v31  ;;  %v7089_v46 = vadd.f32 %v7088_v19, %v7087_v54  ;;  %v1535_v8 = vsel %vm747_vm1, %v1533_v22, %v1534_v37  ;;  %v10943_v41 = vsel %vm747_vm1, %v1663_v59, %v1664_v51  ;;  %v12823_v59 = vld [vmem:[#allocation101_spill] sm:$0xff] }
 0x271   : > { %v7026_v44 = vpop.f32.mrf.mxu1  ;;  %v7090_v1 = vpop.f32.mrf.mxu0  ;;  %12817 = vst [vmem:[#allocation170_spill] sm:$0xff] %v10943_v41  ;;  %v12818_v54 = vrot.slane %v10669_v45, 1  ;;  %v1550_v51 = vrot.slane %v12823_v59, 1 }
 0x272   : > { %v10935_v53 = vadd.f32 %v7025_v40, %v12815_v55  ;;  %v10939_v16 = vadd.f32 %v7089_v46, %v12816_v18  ;;  %v1680_v18 = vrot.slane %v10699_v42, 1 }
 0x273   : > { %v7027_v2 = vpop.f32.mrf.mxu1  ;;  %v7091_v31 = vpop.f32.mrf.mxu0  ;;  %v1323_v21 = vor.u32 %v12289_v39, %v12818_v54 }
 0x274   : > { %v7028_v36 = vadd.f32 %v7027_v2, %v7026_v44  ;;  %v7092_v40 = vadd.f32 %v7091_v31, %v7090_v1  ;;  %v1530_v44 = vrot.slane %v12756_v15, 1  ;;  %v12821_v2 = vld [vmem:[#allocation54_spill] sm:$0xff] }
 0x275   : > { %v7029_v19 = vpop.f32.mrf.mxu1  ;;  %4924 = vmatmul.mubr.bf16.gmra.mxu1 %v1515_v49  ;;  %v7093_v46 = vpop.f32.mrf.mxu0  ;;  %4827 = vmatmul.mubr.bf16.gmra.mxu0 %v12820_v14  ;;  %v12822_v22 = vrot.slane %v12821_v2, 1  ;;  %v12824_v49 = vld [vmem:[#allocation99_spill] sm:$0xff] }
 0x276   : > { %v10950_v56 = vadd.f32 %v7028_v36, %v10684_v10  ;;  %4931 = vmatprep.mubr.bf16.mxu1 %v1535_v8  ;;  %v10958_v55 = vadd.f32 %v7092_v40, %v10679_v47  ;;  %4834 = vmatprep.mubr.bf16.mxu0 %v10943_v41  ;;  %v1551_v10 = vrot.slane %v12824_v49, 1  ;;  %v1681_v8 = vrot.slane %v1323_v21, 1  ;;  %v12825_v47 = vld [vmem:[#allocation167_spill] sm:$0xff] }
 0x277   : > { %v1531_v37 = vrot.slane %v12822_v22, 1  ;;  %v7030_v1 = vpop.f32.mrf.mxu1  ;;  %v7094_v31 = vpop.f32.mrf.mxu0 }
 0x278   : > { %12819 = vst [vmem:[#allocation160_spill] sm:$0xff] %v10950_v56  ;;  %v7031_v36 = vadd.f32 %v7030_v1, %v7029_v19  ;;  %v7095_v54 = vadd.f32 %v7094_v31, %v7093_v46  ;;  %v1552_v41 = vsel %vm747_vm1, %v1550_v51, %v1551_v10  ;;  %v10972_v42 = vsel %vm747_vm1, %v1680_v18, %v1681_v8  ;;  %v12827_v46 = vld [vmem:[#allocation107_spill] sm:$0xff]  ;;  %v12829_v51 = vld [vmem:[#allocation62_spill] sm:$0xff] }
 0x279   : > { %v7032_v39 = vpop.f32.mrf.mxu1  ;;  %v7096_v22 = vpop.f32.mrf.mxu0  ;;  %v1532_v59 = vsel %vm747_vm1, %v1530_v44, %v1531_v37  ;;  %12826 = vst [vmem:[#allocation69_spill] sm:$0xff] %v10972_v42  ;;  %v12828_v37 = vld [vmem:[#allocation175_spill] sm:$0xff]  ;;  %v1324_v31 = vrot.slane %v10632_v60, 1 }
 0x27a   : > { %v10964_v15 = vadd.f32 %v7031_v36, %v10694_v58  ;;  %v10968_v40 = vadd.f32 %v7095_v54, %v12825_v47  ;;  %v1567_v58 = vrot.slane %v12827_v46, 1  ;;  %v1547_v36 = vrot.slane %v12765_v11, 1  ;;  %v12831_v10 = vld [vmem:[#allocation43_spill] sm:$0xff] }
 0x27b   : > { %v7033_v2 = vpop.f32.mrf.mxu1  ;;  %v7097_v56 = vpop.f32.mrf.mxu0  ;;  %v12832_v8 = vld [vmem:[#allocation103_spill] sm:$0xff] }
 0x27c   : > { %v7034_v49 = vadd.f32 %v7033_v2, %v7032_v39  ;;  %v7098_v21 = vadd.f32 %v7097_v56, %v7096_v22  ;;  %v12830_v39 = vrot.slane %v12829_v51, 1  ;;  %v1568_v54 = vrot.slane %v12832_v8, 1 }
 0x27d   : > { %v7035_v19 = vpop.f32.mrf.mxu1  ;;  %4932 = vmatmul.mubr.bf16.gmra.mxu1 %v1532_v59  ;;  %v7099_v44 = vpop.f32.mrf.mxu0  ;;  %4835 = vmatmul.mubr.bf16.gmra.mxu0 %v12828_v37 }
 0x27e   : > { %v10976_v1 = vadd.f32 %v7034_v49, %v10715_v32  ;;  %4939 = vmatprep.mubr.bf16.mxu1 %v1552_v41  ;;  %v1548_v2 = vrot.slane %v12830_v39, 1  ;;  %v10983_v18 = vadd.f32 %v7098_v21, %v12831_v10  ;;  %4842 = vmatprep.mubr.bf16.mxu0 %v10972_v42  ;;  %v12292_v32 = vrot.slane %v10652_v12, 1 }
 0x27f   : > { %v7036_v56 = vpop.f32.mrf.mxu1  ;;  %v7100_v59 = vpop.f32.mrf.mxu0 }
 0x280   : > { %v7037_v22 = vadd.f32 %v7036_v56, %v7035_v19  ;;  %v7101_v41 = vadd.f32 %v7100_v59, %v7099_v44  ;;  %v1549_v21 = vsel %vm747_vm1, %v1547_v36, %v1548_v2  ;;  %v10999_v60 = vsel %vm747_vm1, %v1324_v31, %v12292_v32 }
 0x281   : > { %v7038_v47 = vpop.f32.mrf.mxu1  ;;  %v7102_v46 = vpop.f32.mrf.mxu0  ;;  %v1569_v19 = vsel %vm747_vm1, %v1567_v58, %v1568_v54  ;;  %v1564_v31 = vrot.slane %v12772_v62, 1 }
 0x282   : > { %v10990_v49 = vadd.f32 %v7037_v22, %v10724_v0  ;;  %v10994_v39 = vadd.f32 %v7101_v41, %v10721_v5  ;;  %v12833_v22 = vld [vmem:[#allocation109_spill] sm:$0xff]  ;;  %v12835_v41 = vld [vmem:[#allocation70_spill] sm:$0xff] }
 0x283   : > { %v7039_v10 = vpop.f32.mrf.mxu1  ;;  %v7103_v44 = vpop.f32.mrf.mxu0  ;;  %v12834_v59 = vrot.slane %v12833_v22, 2  ;;  %v12836_v58 = vrot.slane %v12835_v41, 1 }
 0x284   : > { %v7040_v56 = vadd.f32 %v7039_v10, %v7038_v47  ;;  %v7104_v8 = vadd.f32 %v7103_v44, %v7102_v46  ;;  %v12837_v47 = vld [vmem:[#allocation114_spill] sm:$0xff]  ;;  %v12838_v46 = vld [vmem:[#allocation115_spill] sm:$0xff] }
 0x285   : > { %v7041_v0 = vpop.f32.mrf.mxu1  ;;  %4940 = vmatmul.mubr.bf16.gmra.mxu1 %v1549_v21  ;;  %v1435_v36 = vrot.slane %v12834_v59, 1  ;;  %v7105_v2 = vpop.f32.mrf.mxu0  ;;  %4843 = vmatmul.mubr.bf16.gmra.mxu0 %v10999_v60  ;;  %v1565_v54 = vrot.slane %v12836_v58, 1  ;;  %v1434_v10 = vrot.slane %v12837_v47, 1  ;;  %v1584_v44 = vrot.slane %v12838_v46, 1  ;;  %v8126_v59 = vld [vmem:[%s8259_s30] sm:$0xff]  }
 0x286   : > { %v11005_v5 = vadd.f32 %v7040_v56, %v10743_v17  ;;  %4947 = vmatprep.mubr.bf16.mxu1 %v1569_v19  ;;  %v11014_v21 = vadd.f32 %v7104_v8, %v10738_v38  ;;  %5044 = vmatprep.mubr.bf16.mxu0 %v8126_v59  ;;  %v12839_v17 = vld [vmem:[#allocation110_spill] sm:$0xff] }
 0x287   : > { %v7042_v22 = vpop.f32.mrf.mxu1  ;;  %v1585_v56 = vrot.slane %v12839_v17, 1  ;;  %v7106_v42 = vpop.f32.mrf.mxu0  ;;  %v1566_v47 = vsel %vm747_vm1, %v1564_v31, %v1565_v54  ;;  %v1436_v8 = vsel %vm747_vm1, %v1434_v10, %v1435_v36  ;;  %v1581_v36 = vrot.slane %v12781_v35, 1 }
 0x288   : > { %v7043_v32 = vadd.f32 %v7042_v22, %v7041_v0  ;;  %v7107_v19 = vadd.f32 %v7106_v42, %v7105_v2  ;;  %v8057_v42 = vld [vmem:[%s11939_s2 + $0x630] sm:$0xff]   ;;  %v12840_v0 = vld [vmem:[#allocation123_spill] sm:$0xff] }
 0x289   : > { %v7044_v11 = vpop.f32.mrf.mxu1  ;;  %v7108_v58 = vpop.f32.mrf.mxu0  ;;  %v1586_v59 = vsel %vm747_vm1, %v1584_v44, %v1585_v56  ;;  %v1451_v2 = vrot.slane %v12840_v0, 1  ;;  %v12843_v44 = vld [vmem:[#allocation124_spill] sm:$0xff] }
 0x28a   : > { %v11019_v62 = vadd.f32 %v7043_v32, %v10756_v27  ;;  %v11023_v46 = vadd.f32 %v7107_v19, %v10749_v52  ;;  %v1601_v22 = vrot.slane %v12843_v44, 1  ;;  %v12844_v19 = vld [vmem:[#allocation153_spill] sm:$0xff] }
 0x28b   : > { %v7045_v38 = vpop.f32.mrf.mxu1  ;;  %v7109_v17 = vpop.f32.mrf.mxu0 }
 0x28c   : > { %v7046_v41 = vadd.f32 %v7045_v38, %v7044_v11  ;;  %v7110_v27 = vadd.f32 %v7109_v17, %v7108_v58  ;;  %v12841_v11 = vld [vmem:[#allocation82_spill] sm:$0xff] }
 0x28d   : > { %v7175_v32 = vpop.f32.mrf.mxu1  ;;  %4948 = vmatmul.mubr.bf16.gmra.mxu1 %v1566_v47  ;;  %v7111_v31 = vpop.f32.mrf.mxu0  ;;  %5045 = vmatmul.mubr.bf16.vlgmr.msra.gmra.mxu0 %v1436_v8  ;;  %v12842_v54 = vrot.slane %v12841_v11, 1  ;;  %v8127_v47 = vld [vmem:[%s8259_s30 + $0xc] sm:$0xff]   ;;  %v12847_v8 = vld [vmem:[#allocation121_spill] sm:$0xff] }
 0x28e   : > { %v11032_v52 = vadd.f32 %v7046_v41, %v10780_v6  ;;  %4955 = vmatprep.mubr.bf16.mxu1 %v1586_v59  ;;  %v11039_v56 = vadd.f32 %v7110_v27, %v10769_v28  ;;  %7744 = vmatpush3.bf16.msra.mxu0 %v12844_v19  ;;  %v12845_v6 = vld [vmem:[#allocation120_spill] sm:$0xff]  ;;  %v1602_v59 = vrot.slane %v12847_v8, 1 }
 0x28f   : > { %v1582_v10 = vrot.slane %v12842_v54, 1  ;;  %v7176_v58 = vpop.f32.mrf.mxu1  ;;  %5052 = vmatprep.mubr.bf16.mxu0 %v8127_v47  ;;  %v12846_v41 = vrot.slane %v12845_v6, 2  ;;  %v7112_v17 = vpop.f32.mrf.mxu0  ;;  %7745 = vmatprep.subr.bf16.mxu0 %v8057_v42  ;;  %v8060_v54 = vld [vmem:[%s11939_s2 + $0x628] sm:$0xff]  }
 0x290   : > { %v7177_v0 = vadd.f32 %v7176_v58, %v7175_v32  ;;  %v7113_v44 = vadd.f32 %v7112_v17, %v7111_v31  ;;  %v1603_v32 = vsel %vm747_vm1, %v1601_v22, %v1602_v59  ;;  %v12849_v22 = vld [vmem:[#allocation111_spill] sm:$0xff] }
 0x291   : > { %v1452_v38 = vrot.slane %v12846_v41, 1  ;;  %v7178_v28 = vpop.f32.mrf.mxu1  ;;  %v7114_v19 = vpop.f32.mrf.mxu0  ;;  %v1583_v47 = vsel %vm747_vm1, %v1581_v36, %v1582_v10  ;;  %v12848_v36 = vld [vmem:[#allocation134_spill] sm:$0xff] }
 0x292   : > { %v11050_v27 = vadd.f32 %v7177_v0, %v10793_v26  ;;  %v11054_v6 = vadd.f32 %v7113_v44, %v10789_v48  ;;  %7746 = vmatpush3.bf16.msra.mxu0 %v8057_v42  ;;  %v8063_v26 = vld [vmem:[%s11939_s2 + $0x620] sm:$0xff]   ;;  %v1468_v48 = vrot.slane %v12848_v36, 1  ;;  %v1598_v42 = vrot.slane %v12790_v23, 1  ;;  %v12851_v0 = vld [vmem:[#allocation135_spill] sm:$0xff] }
 0x293   : > { %v7179_v41 = vpop.f32.mrf.mxu1  ;;  %v1453_v8 = vsel %vm747_vm1, %v1451_v2, %v1452_v38  ;;  %v7115_v58 = vpop.f32.mrf.mxu0  ;;  %7747 = vmatprep.subr.bf16.mxu0 %v8060_v54  ;;  %v12850_v38 = vrot.slane %v12849_v22, 1  ;;  %v1618_v44 = vrot.slane %v12851_v0, 1 }
 0x294   : > { %v7180_v35 = vadd.f32 %v7179_v41, %v7178_v28  ;;  %v7116_v31 = vadd.f32 %v7115_v58, %v7114_v19  ;;  %v12852_v41 = vld [vmem:[#allocation130_spill] sm:$0xff] }
 0x295   : > { %v7181_v17 = vpop.f32.mrf.mxu1  ;;  %4956 = vmatmul.mubr.bf16.gmra.mxu1 %v1583_v47  ;;  %v7117_v2 = vpop.f32.mrf.mxu0  ;;  %5053 = vmatmul.mubr.bf16.gmra.mxu0 %v1453_v8  ;;  %v1599_v59 = vrot.slane %v12850_v38, 1  ;;  %v8128_v47 = vld [vmem:[%s8259_s30 + $0x18] sm:$0xff]   ;;  %v12853_v58 = vrot.slane %v12852_v41, 2 }
 0x296   : > { %v11063_v10 = vadd.f32 %v7180_v35, %v10817_v7  ;;  %4963 = vmatprep.mubr.bf16.mxu1 %v1603_v32  ;;  %v11070_v28 = vadd.f32 %v7116_v31, %v10809_v63  ;;  %5060 = vmatprep.mubr.bf16.mxu0 %v8128_v47  ;;  %v12854_v7 = vld [vmem:[#allocation131_spill] sm:$0xff]  ;;  %v8065_v38 = vld [vmem:[%s11939_s2 + $0x618] sm:$0xff]  }
 0x297   : > { %v7182_v19 = vpop.f32.mrf.mxu1  ;;  %v1469_v35 = vrot.slane %v12853_v58, 1  ;;  %v1619_v36 = vrot.slane %v12854_v7, 1  ;;  %7748 = vmatpush3.bf16.msra.mxu0 %v8060_v54  ;;  %v7118_v8 = vpop.f32.mrf.mxu0  ;;  %v1600_v47 = vsel %vm747_vm1, %v1598_v42, %v1599_v59  ;;  %v12855_v42 = vld [vmem:[#allocation146_spill] sm:$0xff] }
 0x298   : > { %v7183_v32 = vadd.f32 %v7182_v19, %v7181_v17  ;;  %7749 = vmatprep.subr.bf16.mxu0 %v8063_v26  ;;  %v7119_v0 = vadd.f32 %v7118_v8, %v7117_v2 }
 0x299   : > { %v7184_v23 = vpop.f32.mrf.mxu1  ;;  %v7120_v31 = vpop.f32.mrf.mxu0  ;;  %v1470_v54 = vsel %vm747_vm1, %v1468_v48, %v1469_v35  ;;  %v1620_v17 = vsel %vm747_vm1, %v1618_v44, %v1619_v36  ;;  %v12858_v36 = vld [vmem:[#allocation147_spill] sm:$0xff] }
 0x29a   : > { %v11080_v63 = vadd.f32 %v7183_v32, %v10833_v43  ;;  %v11084_v41 = vadd.f32 %v7119_v0, %v10829_v4  ;;  %v8066_v43 = vld [vmem:[%s11939_s2 + $0x610] sm:$0xff]   ;;  %v1485_v4 = vrot.slane %v12855_v42, 1  ;;  %v1635_v32 = vrot.slane %v12858_v36, 1 }
 0x29b   : > { %v7185_v58 = vpop.f32.mrf.mxu1  ;;  %7750 = vmatpush3.bf16.msra.mxu0 %v8063_v26  ;;  %v7121_v19 = vpop.f32.mrf.mxu0  ;;  %v1615_v26 = vrot.slane %v12799_v29, 1 }
 0x29c   : > { %v7186_v7 = vadd.f32 %v7185_v58, %v7184_v23  ;;  %7751 = vmatprep.subr.bf16.mxu0 %v8065_v38  ;;  %v7122_v2 = vadd.f32 %v7121_v19, %v7120_v31  ;;  %v12856_v23 = vld [vmem:[#allocation118_spill] sm:$0xff]  ;;  %v12859_v58 = vld [vmem:[#allocation140_spill] sm:$0xff] }
 0x29d   : > { %v7187_v8 = vpop.f32.mrf.mxu1  ;;  %4964 = vmatmul.mubr.bf16.gmra.mxu1 %v1600_v47  ;;  %v7123_v48 = vpop.f32.mrf.mxu0  ;;  %5061 = vmatmul.mubr.bf16.gmra.mxu0 %v1470_v54  ;;  %v12857_v44 = vrot.slane %v12856_v23, 1  ;;  %v8129_v47 = vld [vmem:[%s8259_s30 + $0x24] sm:$0xff]   ;;  %v12860_v19 = vrot.slane %v12859_v58, 2 }
 0x29e   : > { %v11093_v59 = vadd.f32 %v7186_v7, %v10857_v24  ;;  %4971 = vmatprep.mubr.bf16.mxu1 %v1620_v17  ;;  %v11100_v0 = vadd.f32 %v7122_v2, %v10849_v34  ;;  %5068 = vmatprep.mubr.bf16.mxu0 %v8129_v47  ;;  %v12861_v7 = vld [vmem:[#allocation142_spill] sm:$0xff] }
 0x29f   : > { %v1616_v35 = vrot.slane %v12857_v44, 1  ;;  %v7188_v31 = vpop.f32.mrf.mxu1  ;;  %v1486_v24 = vrot.slane %v12860_v19, 1  ;;  %v1636_v42 = vrot.slane %v12861_v7, 1  ;;  %7752 = vmatpush3.bf16.msra.mxu0 %v8065_v38  ;;  %v7124_v54 = vpop.f32.mrf.mxu0  ;;  %v8067_v44 = vld [vmem:[%s11939_s2 + $0x608] sm:$0xff]  }
 0x2a0   : > { %v7189_v17 = vadd.f32 %v7188_v31, %v7187_v8  ;;  %7753 = vmatprep.subr.bf16.mxu0 %v8066_v43  ;;  %v7125_v36 = vadd.f32 %v7124_v54, %v7123_v48 }
 0x2a1   : > { %v7190_v29 = vpop.f32.mrf.mxu1  ;;  %v7126_v2 = vpop.f32.mrf.mxu0  ;;  %v1617_v47 = vsel %vm747_vm1, %v1615_v26, %v1616_v35  ;;  %v1487_v38 = vsel %vm747_vm1, %v1485_v4, %v1486_v24  ;;  %v1637_v8 = vsel %vm747_vm1, %v1635_v32, %v1636_v42  ;;  %v12862_v26 = vld [vmem:[#allocation151_spill] sm:$0xff]  ;;  %v12865_v42 = vld [vmem:[#allocation152_spill] sm:$0xff] }
 0x2a2   : > { %v11110_v34 = vadd.f32 %v7189_v17, %v10873_v33  ;;  %v11114_v58 = vadd.f32 %v7125_v36, %v10869_v57  ;;  %v8068_v33 = vld [vmem:[%s11939_s2 + $0x600] sm:$0xff]   ;;  %v1502_v57 = vrot.slane %v12862_v26, 1  ;;  %v1652_v17 = vrot.slane %v12865_v42, 1 }
 0x2a3   : > { %v7191_v19 = vpop.f32.mrf.mxu1  ;;  %7754 = vmatpush3.bf16.msra.mxu0 %v8066_v43  ;;  %v7127_v31 = vpop.f32.mrf.mxu0  ;;  %v1632_v43 = vrot.slane %v12809_v30, 1 }
 0x2a4   : > { %v7192_v7 = vadd.f32 %v7191_v19, %v7190_v29  ;;  %7755 = vmatprep.subr.bf16.mxu0 %v8067_v44  ;;  %v7128_v48 = vadd.f32 %v7127_v31, %v7126_v2  ;;  %v12863_v29 = vld [vmem:[#allocation128_spill] sm:$0xff] }
 0x2a5   : > { %v7193_v54 = vpop.f32.mrf.mxu1  ;;  %4972 = vmatmul.mubr.bf16.gmra.mxu1 %v1617_v47  ;;  %v7129_v4 = vpop.f32.mrf.mxu0  ;;  %5069 = vmatmul.mubr.bf16.gmra.mxu0 %v1487_v38  ;;  %v12864_v32 = vrot.slane %v12863_v29, 1  ;;  %v8130_v47 = vld [vmem:[%s8259_s30 + $0x30] sm:$0xff]  }
 0x2a6   : > { %v11123_v35 = vadd.f32 %v7192_v7, %v10897_v13  ;;  %4979 = vmatprep.mubr.bf16.mxu1 %v1637_v8  ;;  %v11130_v36 = vadd.f32 %v7128_v48, %v10889_v25  ;;  %5076 = vmatprep.mubr.bf16.mxu0 %v8130_v47  ;;  %v12866_v19 = vld [vmem:[#allocation144_spill] sm:$0xff]  ;;  %v12868_v7 = vld [vmem:[#allocation149_spill] sm:$0xff] }
 0x2a7   : > { %v1633_v24 = vrot.slane %v12864_v32, 1  ;;  %v7194_v2 = vpop.f32.mrf.mxu1  ;;  %v12867_v31 = vrot.slane %v12866_v19, 2  ;;  %v1653_v26 = vrot.slane %v12868_v7, 1  ;;  %7756 = vmatpush3.bf16.msra.mxu0 %v8067_v44  ;;  %v7130_v38 = vpop.f32.mrf.mxu0  ;;  %v12869_v44 = vld [vmem:[#allocation25_spill] sm:$0xff] }
 0x2a8   : > { %v7195_v8 = vadd.f32 %v7194_v2, %v7193_v54  ;;  %7757 = vmatprep.subr.bf16.mxu0 %v8068_v33  ;;  %v7131_v30 = vadd.f32 %v7130_v38, %v7129_v4  ;;  %v1327_v7 = vrot.slane %v12869_v44, 1  ;;  %v12870_v2 = vld [vmem:[#allocation9_spill] sm:$0xff] }
 0x2a9   : > { %v1503_v13 = vrot.slane %v12867_v31, 1  ;;  %v7196_v29 = vpop.f32.mrf.mxu1  ;;  %v7132_v42 = vpop.f32.mrf.mxu0  ;;  %v1634_v25 = vsel %vm747_vm1, %v1632_v43, %v1633_v24  ;;  %v1654_v31 = vsel %vm747_vm1, %v1652_v17, %v1653_v26  ;;  %v1328_v38 = vrot.slane %v12870_v2, 2  ;;  %v12872_v24 = vld [vmem:[#allocation117_spill] sm:$0xff] }
 0x2aa   : > { %v11137_v32 = vadd.f32 %v7195_v8, %v10910_v9  ;;  %v11141_v48 = vadd.f32 %v7131_v30, %v10906_v50  ;;  %v12871_v9 = vshrl.u32 %v10652_v12, 16  ;;  %v1331_v43 = vrot.slane %v10669_v45, 2  ;;  %v12876_v2 = vld [vmem:[#allocation125_spill] sm:$0xff] }
 0x2ab   : > { %v7197_v47 = vpop.f32.mrf.mxu1  ;;  %v1504_v19 = vsel %vm747_vm1, %v1502_v57, %v1503_v13  ;;  %7758 = vmatpush3.bf16.msra.mxu0 %v8068_v33  ;;  %v7133_v54 = vpop.f32.mrf.mxu0  ;;  %v1519_v57 = vrot.slane %v12872_v24, 1  ;;  %v1649_v33 = vrot.slane %v12820_v14, 1  ;;  %v1329_v44 = vor.u32 %v1328_v38, %v1327_v7 }
 0x2ac   : > { %v7198_v4 = vadd.f32 %v7197_v47, %v7196_v29  ;;  %v1330_v8 = vrot.slane %v12871_v9, 1  ;;  %v7134_v50 = vadd.f32 %v7133_v54, %v7132_v42  ;;  %v12874_v29 = vld [vmem:[#allocation137_spill] sm:$0xff]  ;;  %v1669_v9 = vrot.slane %v12876_v2, 1 }
 0x2ad   : > { %v7199_v30 = vpop.f32.mrf.mxu1  ;;  %4980 = vmatmul.mubr.bf16.gmra.mxu1 %v1634_v25  ;;  %v7135_v13 = vpop.f32.mrf.mxu0  ;;  %5077 = vmatmul.mubr.bf16.gmra.mxu0 %v1504_v19  ;;  %v12875_v26 = vrot.slane %v12874_v29, 1  ;;  %v8131_v25 = vld [vmem:[%s8259_s30 + $0x3c] sm:$0xff]   ;;  %v12877_v54 = vrot.slane %v12810_v20, 2 }
 0x2ae   : > { %v11152_v17 = vadd.f32 %v7198_v4, %v10928_v61  ;;  %4987 = vmatprep.mubr.bf16.mxu1 %v1654_v31  ;;  %v11159_v45 = vadd.f32 %v7134_v50, %v10920_v3  ;;  %5084 = vmatprep.mubr.bf16.mxu0 %v8131_v25  ;;  %v12878_v4 = vld [vmem:[#allocation116_spill] sm:$0xff]  ;;  %v1332_v14 = vor.u32 %v1331_v43, %v1330_v8 }
 0x2af   : > { %v1650_v47 = vrot.slane %v12875_v26, 1  ;;  %v7200_v42 = vpop.f32.mrf.mxu1  ;;  %v1520_v61 = vrot.slane %v12877_v54, 1  ;;  %v1670_v24 = vrot.slane %v12878_v4, 1  ;;  %v7136_v19 = vpop.f32.mrf.mxu0  ;;  %v12883_v4 = vld [vmem:[#allocation54_spill] sm:$0xff] }
 0x2b0   : > { %12873 = vst [vmem:[#allocation171_spill] sm:$0xff] %v11152_v17  ;;  %v7201_v31 = vadd.f32 %v7200_v42, %v7199_v30  ;;  %v7137_v17 = vadd.f32 %v7136_v19, %v7135_v13  ;;  %v1333_v38 = vsel %vm812_vm2, %v1329_v44, %v1332_v14  ;;  %v12882_v42 = vld [vmem:[#allocation160_spill] sm:$0xff] }
 0x2b1   : > { %v7202_v29 = vpop.f32.mrf.mxu1  ;;  %v7138_v2 = vpop.f32.mrf.mxu0  ;;  %v1651_v3 = vsel %vm747_vm1, %v1649_v33, %v1650_v47  ;;  %v1521_v20 = vsel %vm747_vm1, %v1519_v57, %v1520_v61  ;;  %v1671_v54 = vsel %vm747_vm1, %v1669_v9, %v1670_v24  ;;  %v1666_v33 = vrot.slane %v12828_v37, 1  ;;  %v12880_v57 = vld [vmem:[#allocation37_spill] sm:$0xff]  ;;  %v8132_v61 = vld [vmem:[%s8259_s30 + $0x48] sm:$0xff]  }
 0x2b2   : > { %v11166_v26 = vadd.f32 %v7201_v31, %v10939_v16  ;;  %v11170_v50 = vadd.f32 %v7137_v17, %v10935_v53  ;;  %v12879_v16 = vld [vmem:[#allocation127_spill] sm:$0xff]  ;;  %v12881_v47 = vrot.slane %v12880_v57, 1  ;;  %v12884_v24 = vrot.slane %v12883_v4, 2  ;;  %v12887_v4 = vld [vmem:[#allocation133_spill] sm:$0xff] }
 0x2b3   : > { %v7203_v25 = vpop.f32.mrf.mxu1  ;;  %v7139_v30 = vpop.f32.mrf.mxu0  ;;  %v1536_v13 = vrot.slane %v12879_v16, 1  ;;  %v1686_v31 = vrot.slane %v1333_v38, 1 }
 0x2b4   : > { %v7204_v7 = vadd.f32 %v7203_v25, %v7202_v29  ;;  %v7140_v8 = vadd.f32 %v7139_v30, %v7138_v2  ;;  %v1667_v9 = vrot.slane %v12881_v47, 1  ;;  %v1537_v19 = vrot.slane %v12884_v24, 1 }
 0x2b5   : > { %v7205_v43 = vpop.f32.mrf.mxu1  ;;  %4988 = vmatmul.mubr.bf16.gmra.mxu1 %v1651_v3  ;;  %v7141_v17 = vpop.f32.mrf.mxu0  ;;  %5085 = vmatmul.mubr.bf16.gmra.mxu0 %v1521_v20  ;;  %v1687_v2 = vrot.slane %v1332_v14, 1  ;;  %v1553_v24 = vrot.slane %v12887_v4, 1 }
 0x2b6   : > { %v11178_v53 = vadd.f32 %v7204_v7, %v10958_v55  ;;  %4995 = vmatprep.mubr.bf16.mxu1 %v1671_v54  ;;  %v11183_v29 = vadd.f32 %v7140_v8, %v12882_v42  ;;  %5092 = vmatprep.mubr.bf16.mxu0 %v8132_v61  ;;  %v1668_v7 = vsel %vm747_vm1, %v1666_v33, %v1667_v9 }
 0x2b7   : > { %v7206_v44 = vpop.f32.mrf.mxu1  ;;  %v7142_v3 = vpop.f32.mrf.mxu0  ;;  %v1538_v47 = vsel %vm747_vm1, %v1536_v13, %v1537_v19  ;;  %v1688_v42 = vsel %vm747_vm1, %v1686_v31, %v1687_v2  ;;  %v12886_v13 = vld [vmem:[#allocation19_spill] sm:$0xff]  ;;  %v8133_v2 = vld [vmem:[%s8259_s30 + $0x54] sm:$0xff]  }
 0x2b8   : > { %v7207_v55 = vadd.f32 %v7206_v44, %v7205_v43  ;;  %v7143_v25 = vadd.f32 %v7142_v3, %v7141_v17  ;;  %v1362_v61 = vrot.slane %v12886_v13, 7  ;;  %v12888_v3 = vrot.slane %v12829_v51, 2 }
 0x2b9   : > { %v7208_v30 = vpop.f32.mrf.mxu1  ;;  %v7144_v54 = vpop.f32.mrf.mxu0 }
 0x2ba   : > { %v11189_v20 = vadd.f32 %v7207_v55, %v10968_v40  ;;  %v11193_v8 = vadd.f32 %v7143_v25, %v10964_v15  ;;  %v1683_v40 = vrot.slane %v10999_v60, 1  ;;  %v12885_v15 = vrot.slane %v10652_v12, 1 }
 0x2bb   : > { %v7209_v16 = vpop.f32.mrf.mxu1  ;;  %v7145_v14 = vpop.f32.mrf.mxu0 }
 0x2bc   : > { %v7210_v38 = vadd.f32 %v7209_v16, %v7208_v30  ;;  %v7146_v43 = vadd.f32 %v7145_v14, %v7144_v54  ;;  %v1684_v9 = vrot.slane %v12885_v15, 1 }
 0x2bd   : > { %v7211_v17 = vpop.f32.mrf.mxu1  ;;  %4996 = vmatmul.mubr.bf16.gmra.mxu1 %v1668_v7  ;;  %v7147_v33 = vpop.f32.mrf.mxu0  ;;  %5093 = vmatmul.mubr.bf16.gmra.mxu0 %v1538_v47  ;;  %v12889_v47 = vld [vmem:[#allocation20_spill] sm:$0xff] }
 0x2be   : > { %v11199_v44 = vadd.f32 %v7210_v38, %v10983_v18  ;;  %5003 = vmatprep.mubr.bf16.mxu1 %v1688_v42  ;;  %v11206_v19 = vadd.f32 %v7146_v43, %v10976_v1  ;;  %5100 = vmatprep.mubr.bf16.mxu0 %v8133_v2  ;;  %v1554_v18 = vrot.slane %v12888_v3, 1  ;;  %v1685_v16 = vsel %vm747_vm1, %v1683_v40, %v1684_v9  ;;  %v12890_v38 = vld [vmem:[#allocation21_spill] sm:$0xff]  ;;  %v12893_v2 = vld [vmem:[#allocation155_spill] sm:$0xff] }
 0x2bf   : > { %v7212_v31 = vpop.f32.mrf.mxu1  ;;  %v7148_v55 = vpop.f32.mrf.mxu0  ;;  %v1363_v1 = vor.u32 %v1362_v61, %v12889_v47  ;;  %v1364_v43 = vsel %vm1361_vm6, %v1362_v61, %v12890_v38  ;;  %v12891_v9 = vld [vmem:[#allocation65_spill] sm:$0xff]  ;;  %v1570_v3 = vrot.slane %v12893_v2, 1 }
 0x2c0   : > { %v7213_v25 = vadd.f32 %v7212_v31, %v7211_v17  ;;  %v7149_v30 = vadd.f32 %v7148_v55, %v7147_v33  ;;  %v1555_v51 = vsel %vm747_vm1, %v1553_v24, %v1554_v18  ;;  %v1440_v4 = vrot.slane %v1364_v43, 1  ;;  %v12892_v31 = vld [vmem:[#allocation28_spill] sm:$0xff]  ;;  %v8134_v55 = vld [vmem:[%s8259_s30 + $0x60] sm:$0xff]   ;;  %v12896_v38 = vld [vmem:[#allocation29_spill] sm:$0xff] }
 0x2c1   : > { %v7214_v54 = vpop.f32.mrf.mxu1  ;;  %v7150_v7 = vpop.f32.mrf.mxu0  ;;  %v1365_v24 = vrot.slane %v12892_v31, 7 }
 0x2c2   : > { %v11212_v12 = vadd.f32 %v7213_v25, %v10994_v39  ;;  %v11217_v42 = vadd.f32 %v7149_v30, %v10990_v49  ;;  %v1439_v49 = vrot.slane %v1363_v1, 1  ;;  %v12894_v25 = vld [vmem:[#allocation70_spill] sm:$0xff] }
 0x2c3   : > { %v7215_v14 = vpop.f32.mrf.mxu1  ;;  %v7151_v17 = vpop.f32.mrf.mxu0  ;;  %v12895_v30 = vrot.slane %v12894_v25, 2  ;;  %v1366_v43 = vor.u32 %v1365_v24, %v12896_v38  ;;  %v12900_v25 = vld [vmem:[#allocation141_spill] sm:$0xff] }
 0x2c4   : > { %v7216_v33 = vadd.f32 %v7215_v14, %v7214_v54  ;;  %v7152_v15 = vadd.f32 %v7151_v17, %v7150_v7 }
 0x2c5   : > { %v7217_v39 = vpop.f32.mrf.mxu1  ;;  %5004 = vmatmul.mubr.bf16.gmra.mxu1 %v1685_v16  ;;  %v7153_v40 = vpop.f32.mrf.mxu0  ;;  %5101 = vmatmul.mubr.bf16.gmra.mxu0 %v1555_v51  ;;  %v1441_v51 = vsel %vm747_vm1, %v1439_v49, %v1440_v4  ;;  %v12898_v4 = vld [vmem:[#allocation76_spill] sm:$0xff] }
 0x2c6   : > { %v11223_v13 = vadd.f32 %v7216_v33, %v11014_v21  ;;  %5205 = vmatprep.mubr.bf16.mxu1 %v12891_v9  ;;  %v11229_v61 = vadd.f32 %v7152_v15, %v11005_v5  ;;  %5108 = vmatprep.mubr.bf16.mxu0 %v8134_v55  ;;  %v1571_v21 = vrot.slane %v12895_v30, 1  ;;  %v12897_v15 = vld [vmem:[#allocation30_spill] sm:$0xff]  ;;  %v12899_v55 = vld [vmem:[#allocation33_spill] sm:$0xff]  ;;  %v1587_v30 = vrot.slane %v12900_v25, 1 }
 0x2c7   : > { %v7218_v18 = vpop.f32.mrf.mxu1  ;;  %v7154_v54 = vpop.f32.mrf.mxu0  ;;  %v1367_v9 = vsel %vm1361_vm6, %v1365_v24, %v12897_v15  ;;  %v12905_v25 = vld [vmem:[#allocation38_spill] sm:$0xff] }
 0x2c8   : > { %v7219_v7 = vadd.f32 %v7218_v18, %v7217_v39  ;;  %v7155_v16 = vadd.f32 %v7154_v54, %v7153_v40  ;;  %v1572_v33 = vsel %vm747_vm1, %v1570_v3, %v1571_v21  ;;  %v1457_v18 = vrot.slane %v1367_v9, 1  ;;  %v8135_v54 = vld [vmem:[%s8259_s30 + $0x6c] sm:$0xff]  }
 0x2c9   : > { %v7220_v47 = vpop.f32.mrf.mxu1  ;;  %v7156_v14 = vpop.f32.mrf.mxu0  ;;  %v1368_v3 = vrot.slane %v12899_v55, 7 }
 0x2ca   : > { %v11235_v1 = vadd.f32 %v7219_v7, %v11023_v46  ;;  %v11240_v5 = vadd.f32 %v7155_v16, %v11019_v62  ;;  %v1456_v62 = vrot.slane %v1366_v43, 1  ;;  %v12901_v7 = vrot.slane %v12841_v11, 2  ;;  %v12903_v11 = vld [vmem:[#allocation35_spill] sm:$0xff] }
 0x2cb   : > { %v7221_v17 = vpop.f32.mrf.mxu1  ;;  %v7157_v39 = vpop.f32.mrf.mxu0 }
 0x2cc   : > { %v7222_v40 = vadd.f32 %v7221_v17, %v7220_v47  ;;  %v7158_v31 = vadd.f32 %v7157_v39, %v7156_v14  ;;  %v1458_v17 = vsel %vm747_vm1, %v1456_v62, %v1457_v18  ;;  %v12904_v18 = vld [vmem:[#allocation84_spill] sm:$0xff] }
 0x2cd   : > { %v7223_v46 = vpop.f32.mrf.mxu1  ;;  %5206 = vmatmul.mubr.bf16.vlgmr.msra.gmra.mxu1 %v1441_v51  ;;  %v7287_v49 = vpop.f32.mrf.mxu0  ;;  %5109 = vmatmul.mubr.bf16.gmra.mxu0 %v1572_v33  ;;  %v12902_v33 = vld [vmem:[#allocation34_spill] sm:$0xff] }
 0x2ce   : > { %v11246_v2 = vadd.f32 %v7222_v40, %v11039_v56  ;;  %5213 = vmatprep.mubr.bf16.mxu1 %v12898_v4  ;;  %v11252_v24 = vadd.f32 %v7158_v31, %v11032_v52  ;;  %5116 = vmatprep.mubr.bf16.mxu0 %v8135_v54  ;;  %v1588_v56 = vrot.slane %v12901_v7, 1  ;;  %v1369_v15 = vor.u32 %v1368_v3, %v12902_v33 }
 0x2cf   : > { %v7224_v21 = vpop.f32.mrf.mxu1  ;;  %v7288_v47 = vpop.f32.mrf.mxu0  ;;  %v1370_v40 = vsel %vm1361_vm6, %v1368_v3, %v12903_v11 }
 0x2d0   : > { %v7225_v16 = vadd.f32 %v7224_v21, %v7223_v46  ;;  %v7289_v14 = vadd.f32 %v7288_v47, %v7287_v49  ;;  %v1589_v39 = vsel %vm747_vm1, %v1587_v30, %v1588_v56  ;;  %v1474_v55 = vrot.slane %v1370_v40, 1  ;;  %v12906_v21 = vld [vmem:[#allocation157_spill] sm:$0xff] }
 0x2d1   : > { %v7226_v51 = vpop.f32.mrf.mxu1  ;;  %v7290_v43 = vpop.f32.mrf.mxu0  ;;  %v1371_v30 = vrot.slane %v12905_v25, 7  ;;  %v1604_v54 = vrot.slane %v12906_v21, 1  ;;  %v8136_v56 = vld [vmem:[%s8259_s30 + $0x78] sm:$0xff]   ;;  %v12911_v25 = vld [vmem:[#allocation47_spill] sm:$0xff] }
 0x2d2   : > { %v11258_v38 = vadd.f32 %v7225_v16, %v11054_v6  ;;  %v11263_v52 = vadd.f32 %v7289_v14, %v11050_v27  ;;  %v1473_v27 = vrot.slane %v1369_v15, 1  ;;  %v12907_v16 = vrot.slane %v12849_v22, 2  ;;  %v12909_v22 = vld [vmem:[#allocation40_spill] sm:$0xff] }
 0x2d3   : > { %v7227_v9 = vpop.f32.mrf.mxu1  ;;  %v7291_v46 = vpop.f32.mrf.mxu0  ;;  %v1374_v21 = vrot.slane %v12911_v25, 7 }
 0x2d4   : > { %v7228_v31 = vadd.f32 %v7227_v9, %v7226_v51  ;;  %v7292_v49 = vadd.f32 %v7291_v46, %v7290_v43  ;;  %v1475_v15 = vsel %vm747_vm1, %v1473_v27, %v1474_v55  ;;  %v12908_v9 = vld [vmem:[#allocation39_spill] sm:$0xff] }
 0x2d5   : > { %v7229_v6 = vpop.f32.mrf.mxu1  ;;  %5214 = vmatmul.mubr.bf16.gmra.mxu1 %v1458_v17  ;;  %v7293_v62 = vpop.f32.mrf.mxu0  ;;  %5117 = vmatmul.mubr.bf16.gmra.mxu0 %v1589_v39  ;;  %v1372_v39 = vor.u32 %v1371_v30, %v12908_v9  ;;  %v12910_v27 = vld [vmem:[#allocation91_spill] sm:$0xff] }
 0x2d6   : > { %v11269_v4 = vadd.f32 %v7228_v31, %v11070_v28  ;;  %5221 = vmatprep.mubr.bf16.mxu1 %v12904_v18  ;;  %v11275_v3 = vadd.f32 %v7292_v49, %v11063_v10  ;;  %5124 = vmatprep.mubr.bf16.mxu0 %v8136_v56  ;;  %v1605_v28 = vrot.slane %v12907_v16, 1  ;;  %v1373_v31 = vsel %vm1361_vm6, %v1371_v30, %v12909_v22  ;;  %v8137_v16 = vld [vmem:[%s8259_s30 + $0x84] sm:$0xff]  }
 0x2d7   : > { %v7230_v7 = vpop.f32.mrf.mxu1  ;;  %v7294_v14 = vpop.f32.mrf.mxu0  ;;  %v1491_v55 = vrot.slane %v1373_v31, 1 }
 0x2d8   : > { %v7231_v47 = vadd.f32 %v7230_v7, %v7229_v6  ;;  %v7295_v51 = vadd.f32 %v7294_v14, %v7293_v62  ;;  %v1606_v40 = vsel %vm747_vm1, %v1604_v54, %v1605_v28  ;;  %v12912_v54 = vld [vmem:[#allocation159_spill] sm:$0xff]  ;;  %v12913_v28 = vrot.slane %v12856_v23, 2 }
 0x2d9   : > { %v7232_v43 = vpop.f32.mrf.mxu1  ;;  %v7296_v33 = vpop.f32.mrf.mxu0  ;;  %v1621_v7 = vrot.slane %v12912_v54, 1  ;;  %v12915_v23 = vld [vmem:[#allocation51_spill] sm:$0xff]  ;;  %v12918_v54 = vld [vmem:[#allocation162_spill] sm:$0xff] }
 0x2da   : > { %v11281_v17 = vadd.f32 %v7231_v47, %v11084_v41  ;;  %v11286_v10 = vadd.f32 %v7295_v51, %v11080_v63  ;;  %v1490_v63 = vrot.slane %v1372_v39, 1  ;;  %v12914_v39 = vld [vmem:[#allocation49_spill] sm:$0xff]  ;;  %v1376_v31 = vsel %vm1361_vm6, %v1374_v21, %v12915_v23 }
 0x2db   : > { %v7233_v11 = vpop.f32.mrf.mxu1  ;;  %v7297_v49 = vpop.f32.mrf.mxu0 }
 0x2dc   : > { %v7234_v46 = vadd.f32 %v7233_v11, %v7232_v43  ;;  %v7298_v6 = vadd.f32 %v7297_v49, %v7296_v33  ;;  %v1492_v9 = vsel %vm747_vm1, %v1490_v63, %v1491_v55  ;;  %v1375_v11 = vor.u32 %v1374_v21, %v12914_v39  ;;  %v12917_v55 = vld [vmem:[#allocation55_spill] sm:$0xff] }
 0x2dd   : > { %v7235_v41 = vpop.f32.mrf.mxu1  ;;  %5222 = vmatmul.mubr.bf16.gmra.mxu1 %v1475_v15  ;;  %v7299_v18 = vpop.f32.mrf.mxu0  ;;  %5125 = vmatmul.mubr.bf16.gmra.mxu0 %v1606_v40  ;;  %v1508_v63 = vrot.slane %v1376_v31, 1  ;;  %v1377_v25 = vrot.slane %v12917_v55, 7  ;;  %v12922_v31 = vld [vmem:[#allocation60_spill] sm:$0xff]  ;;  %v12924_v55 = vld [vmem:[#allocation66_spill] sm:$0xff] }
 0x2de   : > { %v11292_v62 = vadd.f32 %v7234_v46, %v11100_v0  ;;  %5229 = vmatprep.mubr.bf16.mxu1 %v12910_v27  ;;  %v11298_v30 = vadd.f32 %v7298_v6, %v11093_v59  ;;  %5132 = vmatprep.mubr.bf16.mxu0 %v8137_v16  ;;  %v1622_v0 = vrot.slane %v12913_v28, 1  ;;  %v12916_v27 = vld [vmem:[#allocation96_spill] sm:$0xff] }
 0x2df   : > { %v7236_v56 = vpop.f32.mrf.mxu1  ;;  %v7300_v14 = vpop.f32.mrf.mxu0  ;;  %v8138_v16 = vld [vmem:[%s8259_s30 + $0x90] sm:$0xff]  }
 0x2e0   : > { %v7237_v47 = vadd.f32 %v7236_v56, %v7235_v41  ;;  %v7301_v51 = vadd.f32 %v7300_v14, %v7299_v18  ;;  %v1623_v22 = vsel %vm747_vm1, %v1621_v7, %v1622_v0  ;;  %v1638_v7 = vrot.slane %v12918_v54, 1  ;;  %v12919_v28 = vld [vmem:[#allocation128_spill] sm:$0xff] }
 0x2e1   : > { %v7238_v43 = vpop.f32.mrf.mxu1  ;;  %v7302_v15 = vpop.f32.mrf.mxu0  ;;  %v12920_v0 = vrot.slane %v12919_v28, 2  ;;  %v1380_v54 = vrot.slane %v12924_v55, 7 }
 0x2e2   : > { %v11304_v33 = vadd.f32 %v7237_v47, %v11114_v58  ;;  %v11309_v59 = vadd.f32 %v7301_v51, %v11110_v34  ;;  %v1507_v34 = vrot.slane %v1375_v11, 1  ;;  %v12921_v11 = vld [vmem:[#allocation56_spill] sm:$0xff] }
 0x2e3   : > { %v7239_v40 = vpop.f32.mrf.mxu1  ;;  %v7303_v49 = vpop.f32.mrf.mxu0 }
 0x2e4   : > { %v7240_v46 = vadd.f32 %v7239_v40, %v7238_v43  ;;  %v7304_v6 = vadd.f32 %v7303_v49, %v7302_v15  ;;  %v1509_v39 = vsel %vm747_vm1, %v1507_v34, %v1508_v63  ;;  %v1378_v40 = vor.u32 %v1377_v25, %v12921_v11  ;;  %v12923_v34 = vld [vmem:[#allocation100_spill] sm:$0xff] }
 0x2e5   : > { %v7241_v58 = vpop.f32.mrf.mxu1  ;;  %5230 = vmatmul.mubr.bf16.gmra.mxu1 %v1492_v9  ;;  %v7305_v18 = vpop.f32.mrf.mxu0  ;;  %5133 = vmatmul.mubr.bf16.gmra.mxu0 %v1623_v22 }
 0x2e6   : > { %v11315_v41 = vadd.f32 %v7240_v46, %v11130_v36  ;;  %5237 = vmatprep.mubr.bf16.mxu1 %v12916_v27  ;;  %v11321_v21 = vadd.f32 %v7304_v6, %v11123_v35  ;;  %5140 = vmatprep.mubr.bf16.mxu0 %v8138_v16  ;;  %v1639_v36 = vrot.slane %v12920_v0, 1  ;;  %v1379_v46 = vsel %vm1361_vm6, %v1377_v25, %v12922_v31  ;;  %v12926_v25 = vld [vmem:[#allocation171_spill] sm:$0xff]  ;;  %v8139_v0 = vld [vmem:[%s8259_s30 + $0x9c] sm:$0xff]  }
 0x2e7   : > { %v7242_v56 = vpop.f32.mrf.mxu1  ;;  %v7306_v14 = vpop.f32.mrf.mxu0  ;;  %v1525_v63 = vrot.slane %v1379_v46, 1 }
 0x2e8   : > { %v7243_v47 = vadd.f32 %v7242_v56, %v7241_v58  ;;  %v7307_v51 = vadd.f32 %v7306_v14, %v7305_v18  ;;  %v1640_v23 = vsel %vm747_vm1, %v1638_v7, %v1639_v36  ;;  %v12925_v7 = vld [vmem:[#allocation165_spill] sm:$0xff] }
 0x2e9   : > { %v7244_v43 = vpop.f32.mrf.mxu1  ;;  %v7308_v9 = vpop.f32.mrf.mxu0  ;;  %v1655_v56 = vrot.slane %v12925_v7, 1  ;;  %v12927_v36 = vld [vmem:[#allocation137_spill] sm:$0xff] }
 0x2ea   : > { %v11327_v15 = vadd.f32 %v7243_v47, %v11141_v48  ;;  %v11332_v35 = vadd.f32 %v7307_v51, %v11137_v32  ;;  %v1524_v32 = vrot.slane %v1378_v40, 1  ;;  %v12928_v47 = vrot.slane %v12927_v36, 2 }
 0x2eb   : > { %v7245_v22 = vpop.f32.mrf.mxu1  ;;  %v7309_v6 = vpop.f32.mrf.mxu0 }
 0x2ec   : > { %v7246_v49 = vadd.f32 %v7245_v22, %v7244_v43  ;;  %v7310_v58 = vadd.f32 %v7309_v6, %v7308_v9  ;;  %v1526_v40 = vsel %vm747_vm1, %v1524_v32, %v1525_v63  ;;  %v12929_v22 = vld [vmem:[#allocation63_spill] sm:$0xff]  ;;  %v12930_v6 = vld [vmem:[#allocation68_spill] sm:$0xff] }
 0x2ed   : > { %v7247_v48 = vpop.f32.mrf.mxu1  ;;  %5238 = vmatmul.mubr.bf16.gmra.mxu1 %v1509_v39  ;;  %v7311_v27 = vpop.f32.mrf.mxu0  ;;  %5141 = vmatmul.mubr.bf16.gmra.mxu0 %v1640_v23  ;;  %v1381_v23 = vor.u32 %v1380_v54, %v12929_v22 }
 0x2ee   : > { %v11338_v18 = vadd.f32 %v7246_v49, %v11159_v45  ;;  %5245 = vmatprep.mubr.bf16.mxu1 %v12923_v34  ;;  %v11344_v16 = vadd.f32 %v7310_v58, %v12926_v25  ;;  %5148 = vmatprep.mubr.bf16.mxu0 %v8139_v0  ;;  %v1656_v45 = vrot.slane %v12928_v47, 1  ;;  %v1382_v58 = vsel %vm1361_vm6, %v1380_v54, %v12930_v6  ;;  %v8140_v47 = vld [vmem:[%s8259_s30 + $0xa8] sm:$0xff]  }
 0x2ef   : > { %v7248_v28 = vpop.f32.mrf.mxu1  ;;  %v7312_v51 = vpop.f32.mrf.mxu0  ;;  %v1541_v63 = vrot.slane %v1381_v23, 1  ;;  %v1542_v7 = vrot.slane %v1382_v58, 1 }
 0x2f0   : > { %v7249_v14 = vadd.f32 %v7248_v28, %v7247_v48  ;;  %v7313_v43 = vadd.f32 %v7312_v51, %v7311_v27  ;;  %v1657_v49 = vsel %vm747_vm1, %v1655_v56, %v1656_v45  ;;  %v12932_v56 = vld [vmem:[#allocation73_spill] sm:$0xff]  ;;  %v12933_v28 = vld [vmem:[#allocation108_spill] sm:$0xff] }
 0x2f1   : > { %v7250_v9 = vpop.f32.mrf.mxu1  ;;  %v7314_v11 = vpop.f32.mrf.mxu0  ;;  %v1383_v25 = vrot.slane %v12932_v56, 7  ;;  %v1672_v54 = vrot.slane %v12933_v28, 1 }
 0x2f2   : > { %v11350_v39 = vadd.f32 %v7249_v14, %v11170_v50  ;;  %v11355_v31 = vadd.f32 %v7313_v43, %v11166_v26  ;;  %v12931_v26 = vld [vmem:[#allocation105_spill] sm:$0xff]  ;;  %v1334_v43 = vrot.slane %v8140_v47, 2 }
 0x2f3   : > { %v7251_v46 = vpop.f32.mrf.mxu1  ;;  %v7315_v27 = vpop.f32.mrf.mxu0 }
 0x2f4   : > { %v7252_v48 = vadd.f32 %v7251_v46, %v7250_v9  ;;  %v7316_v34 = vadd.f32 %v7315_v27, %v7314_v11  ;;  %v8141_v9 = vld [vmem:[%s8259_s30 + $0xb0] ss:$0 sps:$4 sm:$0x77]   ;;  %v11383_v27 = vld [vmem:[%s8259_s30 + $0xb4] sm:$0xff]  }
 0x2f5   : > { %v7253_v50 = vpop.f32.mrf.mxu1  ;;  %5246 = vmatmul.mubr.bf16.gmra.mxu1 %v1526_v40  ;;  %v7317_v32 = vpop.f32.mrf.mxu0  ;;  %5149 = vmatmul.mubr.bf16.gmra.mxu0 %v1657_v49  ;;  %v1335_v11 = vrot.slane %v8141_v9, 2  ;;  %v12935_v49 = vld [vmem:[#allocation74_spill] sm:$0xff] }
 0x2f6   : > { %v11361_v55 = vadd.f32 %v7252_v48, %v11183_v29  ;;  %5253 = vmatprep.mubr.bf16.mxu1 %v12931_v26  ;;  %v11367_v0 = vadd.f32 %v7316_v34, %v11178_v53  ;;  %5156 = vmatprep.mubr.bf16.mxu0 %v8140_v47  ;;  %v12934_v29 = vrot.slane %v12880_v57, 2  ;;  %v1543_v53 = vsel %vm747_vm1, %v1541_v63, %v1542_v7  ;;  %v12936_v34 = vld [vmem:[#allocation75_spill] sm:$0xff]  ;;  %v12937_v7 = vld [vmem:[#allocation113_spill] sm:$0xff]  ;;  %v12938_v47 = vld [vmem:[#allocation86_spill] sm:$0xff] }
 0x2f7   : > { %v7254_v36 = vpop.f32.mrf.mxu1  ;;  %v7318_v51 = vpop.f32.mrf.mxu0  ;;  %v1384_v6 = vor.u32 %v1383_v25, %v12935_v49  ;;  %v12939_v49 = vld [vmem:[#allocation83_spill] sm:$0xff] }
 0x2f8   : > { %v1673_v45 = vrot.slane %v12934_v29, 1  ;;  %v7255_v14 = vadd.f32 %v7254_v36, %v7253_v50  ;;  %v7319_v40 = vadd.f32 %v7318_v51, %v7317_v32  ;;  %v1385_v50 = vsel %vm1361_vm6, %v1383_v25, %v12936_v34  ;;  %v12940_v34 = vld [vmem:[#allocation88_spill] sm:$0xff] }
 0x2f9   : > { %v7256_v22 = vpop.f32.mrf.mxu1  ;;  %v7320_v46 = vpop.f32.mrf.mxu0  ;;  %v1559_v36 = vrot.slane %v1385_v50, 1  ;;  %v1386_v29 = vrot.slane %v12938_v47, 7  ;;  %v1690_v51 = vrot.slane %v1335_v11, 1 }
 0x2fa   : > { %v11374_v23 = vadd.f32 %v7255_v14, %v11193_v8  ;;  %v11379_v58 = vadd.f32 %v7319_v40, %v11189_v20  ;;  %v1674_v48 = vsel %vm747_vm1, %v1672_v54, %v1673_v45  ;;  %v1336_v8 = vsel %vm973_vm4, %v1334_v43, %v1335_v11 }
 0x2fb   : > { %v7257_v57 = vpop.f32.mrf.mxu1  ;;  %v7321_v26 = vpop.f32.mrf.mxu0  ;;  %v1558_v54 = vrot.slane %v1384_v6, 1  ;;  %v1689_v14 = vrot.slane %v1336_v8, 1  ;;  %v1387_v6 = vor.u32 %v1386_v29, %v12939_v49  ;;  %v1388_v11 = vsel %vm1361_vm6, %v1386_v29, %v12940_v34  ;;  %v12943_v29 = vld [vmem:[#allocation106_spill] sm:$0xff]  ;;  %v12945_v49 = vld [vmem:[#allocation4_spill] sm:$0xff] }
 0x2fc   : > { %v7258_v32 = vadd.f32 %v7257_v57, %v7256_v22  ;;  %v7322_v56 = vadd.f32 %v7321_v26, %v7320_v46 }
 0x2fd   : > { %v7259_v28 = vpop.f32.mrf.mxu1  ;;  %5254 = vmatmul.mubr.bf16.gmra.mxu1 %v1543_v53  ;;  %v7323_v20 = vpop.f32.mrf.mxu0  ;;  %5157 = vmatmul.mubr.bf16.gmra.mxu0 %v1674_v48  ;;  %v1560_v53 = vsel %vm747_vm1, %v1558_v54, %v1559_v36  ;;  %v1691_v48 = vsel %vm747_vm1, %v1689_v14, %v1690_v51 }
 0x2fe   : > { %v11389_v63 = vadd.f32 %v7258_v32, %v11206_v19  ;;  %5261 = vmatprep.mubr.bf16.mxu1 %v12937_v7  ;;  %v11394_v25 = vadd.f32 %v7322_v56, %v11199_v44  ;;  %5164 = vmatprep.mubr.bf16.mxu0 %v11383_v27  ;;  %v12942_v7 = vld [vmem:[#allocation2_spill] sm:$0xff] }
 0x2ff   : > { %v7260_v45 = vpop.f32.mrf.mxu1  ;;  %v7324_v9 = vpop.f32.mrf.mxu0  ;;  %v1389_v54 = vrot.slane %v12942_v7, 7  ;;  %v12949_v7 = vld [vmem:[#allocation148_spill] sm:$0xff] }
 0x300   : > { %v7261_v43 = vadd.f32 %v7260_v45, %v7259_v28  ;;  %v7325_v19 = vadd.f32 %v7324_v9, %v7323_v20  ;;  %v12941_v28 = vld [vmem:[#allocation122_spill] sm:$0xff]  ;;  %v1576_v20 = vrot.slane %v1388_v11, 1 }
 0x301   : > { %v7262_v40 = vpop.f32.mrf.mxu1  ;;  %v7326_v46 = vpop.f32.mrf.mxu0 }
 0x302   : > { %v11398_v22 = vadd.f32 %v7261_v43, %v11217_v42  ;;  %v11403_v44 = vadd.f32 %v7325_v19, %v11212_v12  ;;  %v1575_v12 = vrot.slane %v1387_v6, 1  ;;  %v1391_v6 = vsel %vm1361_vm6, %v1389_v54, %v12945_v49 }
 0x303   : > { %v7263_v57 = vpop.f32.mrf.mxu1  ;;  %v7327_v32 = vpop.f32.mrf.mxu0 }
 0x304   : > { %v7264_v50 = vadd.f32 %v7263_v57, %v7262_v40  ;;  %v7328_v26 = vadd.f32 %v7327_v32, %v7326_v46  ;;  %v1577_v19 = vsel %vm747_vm1, %v1575_v12, %v1576_v20  ;;  %v12944_v40 = vld [vmem:[#allocation3_spill] sm:$0xff]  ;;  %v12946_v32 = vld [vmem:[#allocation161_spill] sm:$0xff] }
 0x305   : > { %v7265_v8 = vpop.f32.mrf.mxu1  ;;  %5262 = vmatmul.mubr.bf16.gmra.mxu1 %v1560_v53  ;;  %v7329_v56 = vpop.f32.mrf.mxu0  ;;  %5165 = vmatmul.mubr.bf16.gmra.mxu0 %v1691_v48  ;;  %v1390_v46 = vor.u32 %v1389_v54, %v12944_v40  ;;  %v12951_v40 = vld [vmem:[#allocation8_spill] sm:$0xff] }
 0x306   : > { %v11409_v42 = vadd.f32 %v7264_v50, %v11229_v61  ;;  %5269 = vmatprep.mubr.bf16.mxu1 %v12941_v28  ;;  %v11414_v36 = vadd.f32 %v7328_v26, %v11223_v13  ;;  %7759 = vmatprep.mubr.bf16.mxu0 %v12943_v29  ;;  %v12947_v26 = vld [vmem:[#allocation132_spill] sm:$0xff] }
 0x307   : > { %v7266_v47 = vpop.f32.mrf.mxu1  ;;  %v7330_v14 = vpop.f32.mrf.mxu0 }
 0x308   : > { %v7267_v45 = vadd.f32 %v7266_v47, %v7265_v8  ;;  %v7331_v51 = vadd.f32 %v7330_v14, %v7329_v56  ;;  %v1592_v8 = vrot.slane %v1390_v46, 1  ;;  %v12948_v56 = vld [vmem:[#allocation6_spill] sm:$0xff] }
 0x309   : > { %v7268_v43 = vpop.f32.mrf.mxu1  ;;  %v7332_v9 = vpop.f32.mrf.mxu0  ;;  %v1392_v28 = vrot.slane %v12948_v56, 7  ;;  %v12955_v56 = vld [vmem:[#allocation42_spill] sm:$0xff] }
 0x30a   : > { %v11418_v61 = vadd.f32 %v7267_v45, %v11240_v5  ;;  %v11423_v53 = vadd.f32 %v7331_v51, %v11235_v1  ;;  %v1593_v1 = vrot.slane %v1391_v6, 1 }
 0x30b   : > { %v7269_v13 = vpop.f32.mrf.mxu1  ;;  %v7333_v48 = vpop.f32.mrf.mxu0  ;;  %v1394_v46 = vsel %vm1361_vm6, %v1392_v28, %v12951_v40 }
 0x30c   : > { %v7270_v57 = vadd.f32 %v7269_v13, %v7268_v43  ;;  %v7334_v34 = vadd.f32 %v7333_v48, %v7332_v9  ;;  %v1594_v51 = vsel %vm747_vm1, %v1592_v8, %v1593_v1  ;;  %v12950_v43 = vld [vmem:[#allocation7_spill] sm:$0xff] }
 0x30d   : > { %v7399_v11 = vpop.f32.mrf.mxu1  ;;  %5270 = vmatmul.mubr.bf16.gmra.mxu1 %v1577_v19  ;;  %v7335_v50 = vpop.f32.mrf.mxu0  ;;  %7760 = vmatmul.mubr.bf16.vlgmr.msra.gmra.mxu0 %v12946_v32  ;;  %v1393_v9 = vor.u32 %v1392_v28, %v12950_v43  ;;  %v12954_v32 = vld [vmem:[#allocation13_spill] sm:$0xff]  ;;  %v12957_v43 = vld [vmem:[#allocation15_spill] sm:$0xff] }
 0x30e   : > { %v11428_v5 = vadd.f32 %v7270_v57, %v11252_v24  ;;  %5277 = vmatprep.mubr.bf16.mxu1 %v12947_v26  ;;  %v11434_v12 = vadd.f32 %v7334_v34, %v11246_v2  ;;  %7763 = vmatprep.mubr.bf16.mxu0 %v12949_v7  ;;  %v12952_v34 = vld [vmem:[#allocation164_spill] sm:$0xff]  ;;  %v1395_v26 = vrot.slane %v12954_v32, 7 }
 0x30f   : > { %v7400_v20 = vpop.f32.mrf.mxu1  ;;  %v7336_v54 = vpop.f32.mrf.mxu0  ;;  %v12961_v32 = vld [vmem:[#allocation156_spill] sm:$0xff] }
 0x310   : > { %v7401_v47 = vadd.f32 %v7400_v20, %v7399_v11  ;;  %v7337_v29 = vadd.f32 %v7336_v54, %v7335_v50  ;;  %v12953_v11 = vld [vmem:[#allocation145_spill] sm:$0xff]  ;;  %v1609_v50 = vrot.slane %v1393_v9, 1  ;;  %v1397_v9 = vsel %vm1361_vm6, %v1395_v26, %v12957_v43 }
 0x311   : > { %v7402_v24 = vpop.f32.mrf.mxu1  ;;  %v7338_v14 = vpop.f32.mrf.mxu0 }
 0x312   : > { %v11438_v45 = vadd.f32 %v7401_v47, %v11263_v52  ;;  %v11443_v19 = vadd.f32 %v7337_v29, %v11258_v38  ;;  %v1610_v38 = vrot.slane %v1394_v46, 1 }
 0x313   : > { %v7403_v2 = vpop.f32.mrf.mxu1  ;;  %v7339_v13 = vpop.f32.mrf.mxu0 }
 0x314   : > { %v7404_v49 = vadd.f32 %v7403_v2, %v7402_v24  ;;  %v7340_v6 = vadd.f32 %v7339_v13, %v7338_v14  ;;  %v1611_v29 = vsel %vm747_vm1, %v1609_v50, %v1610_v38  ;;  %v12956_v24 = vld [vmem:[#allocation14_spill] sm:$0xff] }
 0x315   : > { %v7405_v57 = vpop.f32.mrf.mxu1  ;;  %5278 = vmatmul.mubr.bf16.gmra.mxu1 %v1594_v51  ;;  %v7341_v48 = vpop.f32.mrf.mxu0  ;;  %7764 = vmatmul.mubr.bf16.gmra.mxu0 %v12952_v34  ;;  %v1396_v14 = vor.u32 %v1395_v26, %v12956_v24  ;;  %v12960_v34 = vld [vmem:[#allocation22_spill] sm:$0xff]  ;;  %v12963_v24 = vld [vmem:[#allocation24_spill] sm:$0xff] }
 0x316   : > { %v11448_v52 = vadd.f32 %v7404_v49, %v11275_v3  ;;  %5285 = vmatprep.mubr.bf16.mxu1 %v12953_v11  ;;  %v11454_v8 = vadd.f32 %v7340_v6, %v11269_v4  ;;  %7767 = vmatprep.mubr.bf16.mxu0 %v12955_v56  ;;  %v12958_v6 = vld [vmem:[#allocation32_spill] sm:$0xff]  ;;  %v1398_v11 = vrot.slane %v12960_v34, 7  ;;  %v12967_v34 = vld [vmem:[#allocation143_spill] sm:$0xff] }
 0x317   : > { %v7406_v1 = vpop.f32.mrf.mxu1  ;;  %v7342_v28 = vpop.f32.mrf.mxu0 }
 0x318   : > { %v7407_v20 = vadd.f32 %v7406_v1, %v7405_v57  ;;  %v7343_v7 = vadd.f32 %v7342_v28, %v7341_v48  ;;  %v12959_v57 = vld [vmem:[#allocation150_spill] sm:$0xff]  ;;  %v1626_v48 = vrot.slane %v1396_v14, 1  ;;  %v1400_v14 = vsel %vm1361_vm6, %v1398_v11, %v12963_v24 }
 0x319   : > { %v7408_v3 = vpop.f32.mrf.mxu1  ;;  %v7344_v47 = vpop.f32.mrf.mxu0 }
 0x31a   : > { %v11458_v54 = vadd.f32 %v7407_v20, %v11286_v10  ;;  %v11463_v51 = vadd.f32 %v7343_v7, %v11281_v17  ;;  %v1627_v17 = vrot.slane %v1397_v9, 1 }
 0x31b   : > { %v7409_v4 = vpop.f32.mrf.mxu1  ;;  %v7345_v2 = vpop.f32.mrf.mxu0 }
 0x31c   : > { %v7410_v40 = vadd.f32 %v7409_v4, %v7408_v3  ;;  %v7346_v46 = vadd.f32 %v7345_v2, %v7344_v47  ;;  %v1628_v7 = vsel %vm747_vm1, %v1626_v48, %v1627_v17  ;;  %v12962_v3 = vld [vmem:[#allocation23_spill] sm:$0xff] }
 0x31d   : > { %v7411_v13 = vpop.f32.mrf.mxu1  ;;  %5286 = vmatmul.mubr.bf16.gmra.mxu1 %v1611_v29  ;;  %v7347_v49 = vpop.f32.mrf.mxu0  ;;  %7768 = vmatmul.mubr.bf16.gmra.mxu0 %v12958_v6  ;;  %v1399_v47 = vor.u32 %v1398_v11, %v12962_v3  ;;  %v12966_v6 = vld [vmem:[#allocation173_spill] sm:$0xff]  ;;  %v12969_v3 = vld [vmem:[#allocation174_spill] sm:$0xff] }
 0x31e   : > { %v11468_v10 = vadd.f32 %v7410_v40, %v11298_v30  ;;  %5293 = vmatprep.mubr.bf16.mxu1 %v12959_v57  ;;  %v11474_v50 = vadd.f32 %v7346_v46, %v11292_v62  ;;  %7771 = vmatprep.mubr.bf16.mxu0 %v12961_v32  ;;  %v12964_v46 = vld [vmem:[#allocation168_spill] sm:$0xff]  ;;  %v1401_v57 = vrot.slane %v12966_v6, 7  ;;  %v12972_v6 = vld [vmem:[#allocation169_spill] sm:$0xff] }
 0x31f   : > { %v7412_v38 = vpop.f32.mrf.mxu1  ;;  %v7348_v26 = vpop.f32.mrf.mxu0 }
 0x320   : > { %v7413_v1 = vadd.f32 %v7412_v38, %v7411_v13  ;;  %v7349_v56 = vadd.f32 %v7348_v26, %v7347_v49  ;;  %v12965_v13 = vld [vmem:[#allocation79_spill] sm:$0xff]  ;;  %v1643_v49 = vrot.slane %v1399_v47, 1  ;;  %v1403_v47 = vsel %vm1361_vm6, %v1401_v57, %v12969_v3 }
 0x321   : > { %v7414_v30 = vpop.f32.mrf.mxu1  ;;  %v7350_v20 = vpop.f32.mrf.mxu0 }
 0x322   : > { %v11478_v28 = vadd.f32 %v7413_v1, %v11309_v59  ;;  %v11483_v29 = vadd.f32 %v7349_v56, %v11304_v33  ;;  %v1644_v33 = vrot.slane %v1400_v14, 1 }
 0x323   : > { %v7415_v62 = vpop.f32.mrf.mxu1  ;;  %v7351_v4 = vpop.f32.mrf.mxu0 }
 0x324   : > { %v7416_v43 = vadd.f32 %v7415_v62, %v7414_v30  ;;  %v7352_v9 = vadd.f32 %v7351_v4, %v7350_v20  ;;  %v1645_v56 = vsel %vm747_vm1, %v1643_v49, %v1644_v33  ;;  %v12968_v30 = vld [vmem:[#allocation172_spill] sm:$0xff] }
 0x325   : > { %v7417_v2 = vpop.f32.mrf.mxu1  ;;  %5294 = vmatmul.mubr.bf16.gmra.mxu1 %v1628_v7  ;;  %v7353_v40 = vpop.f32.mrf.mxu0  ;;  %7772 = vmatmul.mubr.bf16.gmra.mxu0 %v12964_v46  ;;  %v1402_v20 = vor.u32 %v1401_v57, %v12968_v30  ;;  %v1661_v46 = vrot.slane %v1403_v47, 1 }
 0x326   : > { %v11488_v59 = vadd.f32 %v7416_v43, %v11321_v21  ;;  %5301 = vmatprep.mubr.bf16.mxu1 %v12965_v13  ;;  %v11494_v48 = vadd.f32 %v7352_v9, %v11315_v41  ;;  %7775 = vmatprep.mubr.bf16.mxu0 %v12967_v34  ;;  %v8070_v13 = vld [vmem:[%s8259_s30 + $0xbc] ss:$0 sps:$4 sm:$0x77]   ;;  %v1411_v34 = vshll.u32 %v11383_v27, 16  ;;  %s6247_s30 = sshll.u32 %s13012_s18, 7 }
 0x327   : > { %v7418_v17 = vpop.f32.mrf.mxu1  ;;  %v7354_v11 = vpop.f32.mrf.mxu0  ;;  %s11816_s23 = scalar_lea.vmem %s11940_s3, %s6247_s30 }
 0x328   : > { %v7419_v38 = vadd.f32 %v7418_v17, %v7417_v2  ;;  %v7355_v32 = vadd.f32 %v7354_v11, %v7353_v40  ;;  %v12971_v40 = vld [vmem:[#allocation44_spill] sm:$0xff] }
 0x329   : > { %v7420_v21 = vpop.f32.mrf.mxu1  ;;  %v7356_v1 = vpop.f32.mrf.mxu0 }
 0x32a   : > { %v11498_v26 = vadd.f32 %v7419_v38, %v11332_v35  ;;  %v11503_v7 = vadd.f32 %v7355_v32, %v11327_v15  ;;  %v12970_v35 = vld [vmem:[#allocation25_spill] sm:$0xff]  ;;  %v1660_v15 = vrot.slane %v1402_v20, 1 }
 0x32b   : > { %v7421_v41 = vpop.f32.mrf.mxu1  ;;  %v7357_v62 = vpop.f32.mrf.mxu0  ;;  %v1404_v43 = vrot.slane %v12970_v35, 7  ;;  %v12973_v38 = vld [vmem:[#allocation9_spill] sm:$0xff] }
 0x32c   : > { %v7422_v24 = vadd.f32 %v7421_v41, %v7420_v21  ;;  %v7358_v14 = vadd.f32 %v7357_v62, %v7356_v1  ;;  %v1662_v1 = vsel %vm747_vm1, %v1660_v15, %v1661_v46  ;;  %v12974_v41 = vld [vmem:[#allocation139_spill] sm:$0xff] }
 0x32d   : > { %v7423_v4 = vpop.f32.mrf.mxu1  ;;  %5302 = vmatmul.mubr.bf16.gmra.mxu1 %v1645_v56  ;;  %v7359_v2 = vpop.f32.mrf.mxu0  ;;  %7776 = vmatmul.mubr.bf16.gmra.mxu0 %v12971_v40  ;;  %v1405_v32 = vor.u32 %v1404_v43, %v12973_v38  ;;  %v1415_v56 = vshll.u32 %v8070_v13, 16  ;;  %v1406_v3 = vsel %vm1361_vm6, %v1404_v43, %v12974_v41  ;;  %v12975_v40 = vld [vmem:[#allocation158_spill] sm:$0xff] }
 0x32e   : > { %v11509_v9 = vadd.f32 %v7422_v24, %v11344_v16  ;;  %5309 = vmatprep.mubr.bf16.mxu1 %v12828_v37  ;;  %v11515_v49 = vadd.f32 %v7358_v14, %v11338_v18  ;;  %7779 = vmatprep.mubr.bf16.mxu0 %v12972_v6  ;;  %v1408_v18 = vshrl.u32 %v11383_v27, 16  ;;  %v1418_v24 = vrot.slane %v1411_v34, 1  ;;  %v12976_v6 = vld [vmem:[#allocation57_spill] sm:$0xff] }
 0x32f   : > { %v7424_v33 = vpop.f32.mrf.mxu1  ;;  %v7360_v57 = vpop.f32.mrf.mxu0  ;;  %v1420_v46 = vrot.slane %v1415_v56, 1 }
 0x330   : > { %v7425_v17 = vadd.f32 %v7424_v33, %v7423_v4  ;;  %v7361_v16 = vadd.f32 %v7360_v57, %v7359_v2  ;;  %v1410_v15 = vrot.slane %v1408_v18, 7  ;;  %v1697_v57 = vrot.slane %v11383_v27, 1 }
 0x331   : > { %v7426_v11 = vpop.f32.mrf.mxu1  ;;  %v7362_v37 = vpop.f32.mrf.mxu0  ;;  %v1419_v38 = vor.u32 %v1418_v24, %v1408_v18 }
 0x332   : > { %v11521_v21 = vadd.f32 %v7425_v17, %v11355_v31  ;;  %v11526_v30 = vadd.f32 %v7361_v16, %v11350_v39  ;;  %v1677_v31 = vrot.slane %v1405_v32, 1  ;;  %v1678_v39 = vrot.slane %v1406_v3, 1 }
 0x333   : > { %v7427_v20 = vpop.f32.mrf.mxu1  ;;  %v7363_v47 = vpop.f32.mrf.mxu0  ;;  %v1698_v17 = vrot.slane %v8070_v13, 1  ;;  %v1422_v16 = vshrl.u32 %v8070_v13, 16  ;;  %v1417_v13 = vsel %vm1361_vm6, %v1410_v15, %v1415_v56  ;;  %v1421_v24 = vsel %vm538_vm0, %v1419_v38, %v1420_v46 }
 0x334   : > { %v7428_v62 = vadd.f32 %v7427_v20, %v7426_v11  ;;  %v7364_v14 = vadd.f32 %v7363_v47, %v7362_v37  ;;  %v1679_v20 = vsel %vm747_vm1, %v1677_v31, %v1678_v39  ;;  %v12977_v31 = vld [vmem:[#allocation170_spill] sm:$0xff]  ;;  %v12978_v39 = vld [vmem:[#allocation69_spill] sm:$0xff] }
 0x335   : > { %v7429_v4 = vpop.f32.mrf.mxu1  ;;  %5310 = vmatmul.mubr.bf16.gmra.mxu1 %v1662_v1  ;;  %v7365_v2 = vpop.f32.mrf.mxu0  ;;  %7780 = vmatmul.mubr.bf16.gmra.mxu0 %v12975_v40  ;;  %v1699_v27 = vsel %vm747_vm1, %v1697_v57, %v1698_v17  ;;  %v1424_v47 = vor.u32 %v1422_v16, %v1420_v46 }
 0x336   : > { %v11531_v35 = vadd.f32 %v7428_v62, %v11367_v0  ;;  %5317 = vmatprep.mubr.bf16.mxu1 %v10999_v60  ;;  %v11536_v43 = vadd.f32 %v7364_v14, %v11361_v55  ;;  %7783 = vmatprep.mubr.bf16.mxu0 %v12976_v6  ;;  %v1413_v55 = vor.u32 %v1411_v34, %v1410_v15  ;;  %v1700_v15 = vrot.slane %v1421_v24, 1 }
 0x337   : > { %v7430_v33 = vpop.f32.mrf.mxu1  ;;  %v7366_v0 = vpop.f32.mrf.mxu0  ;;  %v1701_v46 = vrot.slane %v1424_v47, 1 }
 0x338   : > { %v7431_v11 = vadd.f32 %v7430_v33, %v7429_v4  ;;  %v7367_v32 = vadd.f32 %v7366_v0, %v7365_v2  ;;  %v1695_v2 = vrot.slane %v1417_v13, 1 }
 0x339   : > { %v7432_v37 = vpop.f32.mrf.mxu1  ;;  %v7368_v1 = vpop.f32.mrf.mxu0  ;;  %v1702_v38 = vsel %vm747_vm1, %v1700_v15, %v1701_v46 }
 0x33a   : > { %v11541_v60 = vadd.f32 %v7431_v11, %v11379_v58  ;;  %v11545_v41 = vadd.f32 %v7367_v32, %v11374_v23  ;;  %v1694_v23 = vrot.slane %v1413_v55, 1 }
 0x33b   : > { %v7433_v3 = vpop.f32.mrf.mxu1  ;;  %v7369_v62 = vpop.f32.mrf.mxu0 }
 0x33c   : > { %v7434_v18 = vadd.f32 %v7433_v3, %v7432_v37  ;;  %v7370_v14 = vadd.f32 %v7369_v62, %v7368_v1  ;;  %v1696_v0 = vsel %vm747_vm1, %v1694_v23, %v1695_v2 }
 0x33d   : > { %v7435_v58 = vpop.f32.mrf.mxu1  ;;  %5318 = vmatmul.mubr.bf16.gmra.mxu1 %v1679_v20  ;;  %v7371_v34 = vpop.f32.mrf.mxu0  ;;  %7784 = vmatmul.mubr.bf16.gmra.mxu0 %v12977_v31 }
 0x33e   : > { %v11551_v4 = vadd.f32 %v7434_v18, %v11394_v25  ;;  %5325 = vmatprep.mubr.bf16.mxu1 %v1699_v27  ;;  %v11555_v40 = vadd.f32 %v7370_v14, %v11389_v63  ;;  %7787 = vmatprep.mubr.bf16.mxu0 %v12978_v39 }
 0x33f   : > { %v7436_v56 = vpop.f32.mrf.mxu1  ;;  %v7372_v33 = vpop.f32.mrf.mxu0 }
 0x340   : > { %v7437_v6 = vadd.f32 %v7436_v56, %v7435_v58  ;;  %v7373_v57 = vadd.f32 %v7372_v33, %v7371_v34 }
 0x341   : > { %v7438_v17 = vpop.f32.mrf.mxu1  ;;  %v7374_v16 = vpop.f32.mrf.mxu0 }
 0x342   : > { %v11559_v25 = vadd.f32 %v7437_v6, %v11403_v44  ;;  %v11563_v11 = vadd.f32 %v7373_v57, %v11398_v22 }
 0x343   : > { %v7439_v63 = vpop.f32.mrf.mxu1  ;;  %v7375_v32 = vpop.f32.mrf.mxu0 }
 0x344   : > { %v7440_v37 = vadd.f32 %v7439_v63, %v7438_v17  ;;  %v7376_v1 = vadd.f32 %v7375_v32, %v7374_v16 }
 0x345   : > { %v7441_v20 = vpop.f32.mrf.mxu1  ;;  %5326 = vmatmul.mubr.bf16.gmra.mxu1 %v1696_v0  ;;  %v7377_v3 = vpop.f32.mrf.mxu0  ;;  %7788 = vmatmul.mubr.bf16.gmra.mxu0 %v1702_v38 }
 0x346   : > { %v11567_v55 = vadd.f32 %v7440_v37, %v11414_v36  ;;  %v11570_v44 = vadd.f32 %v7376_v1, %v11409_v42 }
 0x347   : > { %v7442_v27 = vpop.f32.mrf.mxu1  ;;  %v7378_v13 = vpop.f32.mrf.mxu0 }
 0x348   : > { %v7443_v22 = vadd.f32 %v7442_v27, %v7441_v20  ;;  %v7379_v47 = vadd.f32 %v7378_v13, %v7377_v3 }
 0x349   : > { %v7444_v62 = vpop.f32.mrf.mxu1  ;;  %v7380_v24 = vpop.f32.mrf.mxu0 }
 0x34a   : > { %v11573_v18 = vadd.f32 %v7443_v22, %v11423_v53  ;;  %v11576_v14 = vadd.f32 %v7379_v47, %v11418_v61 }
 0x34b   : > { %v7445_v58 = vpop.f32.mrf.mxu1  ;;  %v7381_v36 = vpop.f32.mrf.mxu0 }
 0x34c   : > { %v7446_v34 = vadd.f32 %v7445_v58, %v7444_v62  ;;  %v7382_v31 = vadd.f32 %v7381_v36, %v7380_v24 }
 0x34d   : > { %v7447_v23 = vpop.f32.mrf.mxu1  ;;  %v7511_v2 = vpop.f32.mrf.mxu0 }
 0x34e   : > { %v11579_v42 = vadd.f32 %v7446_v34, %v11434_v12  ;;  %v11582_v56 = vadd.f32 %v7382_v31, %v11428_v5 }
 0x34f   : > { %v7448_v39 = vpop.f32.mrf.mxu1  ;;  %v7512_v53 = vpop.f32.mrf.mxu0 }
 0x350   : > { %v7449_v15 = vadd.f32 %v7448_v39, %v7447_v23  ;;  %v7513_v46 = vadd.f32 %v7512_v53, %v7511_v2 }
 0x351   : > { %v7450_v33 = vpop.f32.mrf.mxu1  ;;  %v7514_v6 = vpop.f32.mrf.mxu0 }
 0x352   : > { %v11585_v61 = vadd.f32 %v7449_v15, %v11443_v19  ;;  %v11588_v57 = vadd.f32 %v7513_v46, %v11438_v45 }
 0x353   : > { %v7451_v17 = vpop.f32.mrf.mxu1  ;;  %v7515_v12 = vpop.f32.mrf.mxu0 }
 0x354   : > { %v7452_v16 = vadd.f32 %v7451_v17, %v7450_v33  ;;  %v7516_v0 = vadd.f32 %v7515_v12, %v7514_v6 }
 0x355   : > { %v7453_v63 = vpop.f32.mrf.mxu1  ;;  %v7517_v38 = vpop.f32.mrf.mxu0 }
 0x356   : > { %v11591_v5 = vadd.f32 %v7452_v16, %v11454_v8  ;;  %v11594_v32 = vadd.f32 %v7516_v0, %v11448_v52 }
 0x357   : > { %v7454_v37 = vpop.f32.mrf.mxu1  ;;  %v7518_v19 = vpop.f32.mrf.mxu0 }
 0x358   : > { %v7455_v1 = vadd.f32 %v7454_v37, %v7453_v63  ;;  %v7519_v20 = vadd.f32 %v7518_v19, %v7517_v38 }
 0x359   : > { %v7456_v3 = vpop.f32.mrf.mxu1  ;;  %v7520_v27 = vpop.f32.mrf.mxu0 }
 0x35a   : > { %v11597_v45 = vadd.f32 %v7455_v1, %v11463_v51  ;;  %v11600_v13 = vadd.f32 %v7519_v20, %v11458_v54 }
 0x35b   : > { %v7457_v22 = vpop.f32.mrf.mxu1  ;;  %v7521_v8 = vpop.f32.mrf.mxu0 }
 0x35c   : > { %v7458_v47 = vadd.f32 %v7457_v22, %v7456_v3  ;;  %v7522_v62 = vadd.f32 %v7521_v8, %v7520_v27 }
 0x35d   : > { %v7459_v24 = vpop.f32.mrf.mxu1  ;;  %v7523_v58 = vpop.f32.mrf.mxu0 }
 0x35e   : > { %v11603_v52 = vadd.f32 %v7458_v47, %v11474_v50  ;;  %v11606_v36 = vadd.f32 %v7522_v62, %v11468_v10 }
 0x35f   : > { %v7460_v34 = vpop.f32.mrf.mxu1  ;;  %v7524_v51 = vpop.f32.mrf.mxu0 }
 0x360   : > { %v7461_v31 = vadd.f32 %v7460_v34, %v7459_v24  ;;  %v7525_v23 = vadd.f32 %v7524_v51, %v7523_v58 }
 0x361   : > { %v7462_v2 = vpop.f32.mrf.mxu1  ;;  %v7526_v39 = vpop.f32.mrf.mxu0 }
 0x362   : > { %v11609_v54 = vadd.f32 %v7461_v31, %v11483_v29  ;;  %v11612_v15 = vadd.f32 %v7525_v23, %v11478_v28 }
 0x363   : > { %v7463_v53 = vpop.f32.mrf.mxu1  ;;  %v7527_v50 = vpop.f32.mrf.mxu0 }
 0x364   : > { %v7464_v46 = vadd.f32 %v7463_v53, %v7462_v2  ;;  %v7528_v33 = vadd.f32 %v7527_v50, %v7526_v39 }
 0x365   : > { %v7465_v6 = vpop.f32.mrf.mxu1  ;;  %v7529_v17 = vpop.f32.mrf.mxu0 }
 0x366   : > { %v11615_v10 = vadd.f32 %v7464_v46, %v11494_v48  ;;  %v11618_v16 = vadd.f32 %v7528_v33, %v11488_v59 }
 0x367   : > { %v7466_v12 = vpop.f32.mrf.mxu1  ;;  %v7530_v29 = vpop.f32.mrf.mxu0 }
 0x368   : > { %v7467_v0 = vadd.f32 %v7466_v12, %v7465_v6  ;;  %v7531_v63 = vadd.f32 %v7530_v29, %v7529_v17 }
 0x369   : > { %v7468_v38 = vpop.f32.mrf.mxu1  ;;  %v7532_v37 = vpop.f32.mrf.mxu0 }
 0x36a   : > { %v11621_v28 = vadd.f32 %v7467_v0, %v11503_v7  ;;  %v11624_v1 = vadd.f32 %v7531_v63, %v11498_v26 }
 0x36b   : > { %v7469_v19 = vpop.f32.mrf.mxu1  ;;  %v7533_v48 = vpop.f32.mrf.mxu0 }
 0x36c   : > { %v7470_v20 = vadd.f32 %v7469_v19, %v7468_v38  ;;  %v7534_v3 = vadd.f32 %v7533_v48, %v7532_v37 }
 0x36d   : > { %v7471_v27 = vpop.f32.mrf.mxu1  ;;  %v7535_v22 = vpop.f32.mrf.mxu0 }
 0x36e   : > { %v11627_v59 = vadd.f32 %v7470_v20, %v11515_v49  ;;  %v11630_v47 = vadd.f32 %v7534_v3, %v11509_v9 }
 0x36f   : > { %v7472_v8 = vpop.f32.mrf.mxu1  ;;  %v7536_v7 = vpop.f32.mrf.mxu0 }
 0x370   : > { %v7473_v62 = vadd.f32 %v7472_v8, %v7471_v27  ;;  %v7537_v24 = vadd.f32 %v7536_v7, %v7535_v22 }
 0x371   : > { %v7474_v58 = vpop.f32.mrf.mxu1  ;;  %v7538_v34 = vpop.f32.mrf.mxu0 }
 0x372   : > { %v11633_v26 = vadd.f32 %v7473_v62, %v11526_v30  ;;  %v11636_v31 = vadd.f32 %v7537_v24, %v11521_v21 }
 0x373   : > { %v7475_v51 = vpop.f32.mrf.mxu1  ;;  %v7539_v49 = vpop.f32.mrf.mxu0 }
 0x374   : > { %v7476_v23 = vadd.f32 %v7475_v51, %v7474_v58  ;;  %v7540_v2 = vadd.f32 %v7539_v49, %v7538_v34 }
 0x375   : > { %v7477_v39 = vpop.f32.mrf.mxu1  ;;  %v7541_v53 = vpop.f32.mrf.mxu0 }
 0x376   : > { %v11639_v9 = vadd.f32 %v7476_v23, %v11536_v43  ;;  %v11642_v46 = vadd.f32 %v7540_v2, %v11531_v35 }
 0x377   : > { %v7478_v50 = vpop.f32.mrf.mxu1  ;;  %v7542_v30 = vpop.f32.mrf.mxu0 }
 0x378   : > { %v7479_v33 = vadd.f32 %v7478_v50, %v7477_v39  ;;  %v7543_v6 = vadd.f32 %v7542_v30, %v7541_v53 }
 0x379   : > { %v7480_v17 = vpop.f32.mrf.mxu1  ;;  %v7544_v12 = vpop.f32.mrf.mxu0 }
 0x37a   : > { %v11645_v21 = vadd.f32 %v7479_v33, %v11545_v41  ;;  %v11648_v0 = vadd.f32 %v7543_v6, %v11541_v60 }
 0x37b   : > { %v7481_v29 = vpop.f32.mrf.mxu1  ;;  %v7545_v43 = vpop.f32.mrf.mxu0 }
 0x37c   : > { %v7482_v63 = vadd.f32 %v7481_v29, %v7480_v17  ;;  %v7546_v38 = vadd.f32 %v7545_v43, %v7544_v12 }
 0x37d   : > { %v7483_v37 = vpop.f32.mrf.mxu1  ;;  %v7547_v19 = vpop.f32.mrf.mxu0 }
 0x37e   : > { %v11651_v35 = vadd.f32 %v7482_v63, %v11555_v40  ;;  %v11654_v20 = vadd.f32 %v7546_v38, %v11551_v4 }
 0x37f   : > { %v7484_v48 = vpop.f32.mrf.mxu1  ;;  %v7548_v41 = vpop.f32.mrf.mxu0 }
 0x380   : > { %v7485_v3 = vadd.f32 %v7484_v48, %v7483_v37  ;;  %v7549_v27 = vadd.f32 %v7548_v41, %v7547_v19 }
 0x381   : > { %v7486_v22 = vpop.f32.mrf.mxu1  ;;  %v7550_v8 = vpop.f32.mrf.mxu0 }
 0x382   : > { %v11657_v60 = vadd.f32 %v7485_v3, %v11563_v11  ;;  %v11660_v62 = vadd.f32 %v7549_v27, %v11559_v25 }
 0x383   : > { %v7487_v7 = vpop.f32.mrf.mxu1  ;;  %v7551_v40 = vpop.f32.mrf.mxu0 }
 0x384   : > { %v7488_v24 = vadd.f32 %v7487_v7, %v7486_v22  ;;  %v7552_v58 = vadd.f32 %v7551_v40, %v7550_v8 }
 0x385   : > { %v7489_v34 = vpop.f32.mrf.mxu1  ;;  %v7553_v51 = vpop.f32.mrf.mxu0 }
 0x386   : > { %v11663_v4 = vadd.f32 %v7488_v24, %v11570_v44  ;;  %v11666_v23 = vadd.f32 %v7552_v58, %v11567_v55 }
 0x387   : > { %v7490_v49 = vpop.f32.mrf.mxu1  ;;  %v7554_v11 = vpop.f32.mrf.mxu0 }
 0x388   : > { %v7491_v2 = vadd.f32 %v7490_v49, %v7489_v34  ;;  %v7555_v39 = vadd.f32 %v7554_v11, %v7553_v51 }
 0x389   : > { %v7492_v53 = vpop.f32.mrf.mxu1  ;;  %v7556_v50 = vpop.f32.mrf.mxu0 }
 0x38a   : > { %v11669_v25 = vadd.f32 %v7491_v2, %v11576_v14  ;;  %v11672_v33 = vadd.f32 %v7555_v39, %v11573_v18 }
 0x38b   : > { %v7493_v30 = vpop.f32.mrf.mxu1  ;;  %v7557_v44 = vpop.f32.mrf.mxu0 }
 0x38c   : > { %v7494_v6 = vadd.f32 %v7493_v30, %v7492_v53  ;;  %v7558_v17 = vadd.f32 %v7557_v44, %v7556_v50 }
 0x38d   : > { %v7623_v12 = vpop.f32.mrf.mxu1  ;;  %v7559_v29 = vpop.f32.mrf.mxu0 }
 0x38e   : > { %v11675_v55 = vadd.f32 %v7494_v6, %v11582_v56  ;;  %v11678_v63 = vadd.f32 %v7558_v17, %v11579_v42 }
 0x38f   : > { %v7624_v43 = vpop.f32.mrf.mxu1  ;;  %v7560_v38 = vpop.f32.mrf.mxu0 }
 0x390   : > { %12979 = vst [vmem:[#allocation12_spill] sm:$0xff] %v11675_v55  ;;  %v7625_v14 = vadd.f32 %v7624_v43, %v7623_v12  ;;  %v7561_v37 = vadd.f32 %v7560_v38, %v7559_v29 }
 0x391   : > { %v11680_v19 = vpop.f32.mrf.mxu1  ;;  %v7562_v18 = vpop.f32.mrf.mxu0 }
 0x392   : > { %v11683_v48 = vadd.f32 %v7625_v14, %v11588_v57  ;;  %v11686_v3 = vadd.f32 %v7561_v37, %v11585_v61 }
 0x393   : > { %v11688_v41 = vpop.f32.mrf.mxu1  ;;  %v7563_v56 = vpop.f32.mrf.mxu0 }
 0x394   : > { %v7564_v27 = vadd.f32 %v7563_v56, %v7562_v18 }
 0x395   : > { %v11690_v22 = vpop.f32.mrf.mxu1  ;;  %v7565_v42 = vpop.f32.mrf.mxu0 }
 0x396   : > { %v11693_v8 = vadd.f32 %v7564_v27, %v11591_v5 }
 0x397   : > { %v11695_v7 = vpop.f32.mrf.mxu1  ;;  %v7566_v24 = vpop.f32.mrf.mxu0 }
 0x398   : > { %v7567_v40 = vadd.f32 %v7566_v24, %v7565_v42 }
 0x399   : > { %v11697_v58 = vpop.f32.mrf.mxu1  ;;  %v7568_v57 = vpop.f32.mrf.mxu0 }
 0x39a   : > { %v11700_v61 = vadd.f32 %v7567_v40, %v11597_v45 }
 0x39b   : > { %v11702_v34 = vpop.f32.mrf.mxu1  ;;  %v7569_v51 = vpop.f32.mrf.mxu0 }
 0x39c   : > { %v7570_v49 = vadd.f32 %v7569_v51, %v7568_v57 }
 0x39d   : > { %v11704_v2 = vpop.f32.mrf.mxu1  ;;  %v7571_v11 = vpop.f32.mrf.mxu0 }
 0x39e   : > { %v11707_v5 = vadd.f32 %v7570_v49, %v11603_v52 }
 0x39f   : > { %v11709_v39 = vpop.f32.mrf.mxu1  ;;  %v7572_v53 = vpop.f32.mrf.mxu0 }
 0x3a0   : > { %v7573_v50 = vadd.f32 %v7572_v53, %v7571_v11 }
 0x3a1   : > { %v11711_v30 = vpop.f32.mrf.mxu1  ;;  %v7574_v6 = vpop.f32.mrf.mxu0 }
 0x3a2   : > { %v11714_v45 = vadd.f32 %v7573_v50, %v11609_v54 }
 0x3a3   : > { %v11716_v44 = vpop.f32.mrf.mxu1  ;;  %v7575_v17 = vpop.f32.mrf.mxu0 }
 0x3a4   : > { %12980 = vst [vmem:[#allocation41_spill] sm:$0xff] %v11714_v45  ;;  %v7576_v12 = vadd.f32 %v7575_v17, %v7574_v6 }
 0x3a5   : > { %v11718_v29 = vpop.f32.mrf.mxu1  ;;  %v7577_v43 = vpop.f32.mrf.mxu0 }
 0x3a6   : > { %v11721_v52 = vadd.f32 %v7576_v12, %v11615_v10 }
 0x3a7   : > { %v11723_v38 = vpop.f32.mrf.mxu1  ;;  %v7578_v14 = vpop.f32.mrf.mxu0 }
 0x3a8   : > { %12981 = vst [vmem:[#allocation163_spill] sm:$0xff] %v11721_v52  ;;  %v7579_v37 = vadd.f32 %v7578_v14, %v7577_v43 }
 0x3a9   : > { %v11725_v18 = vpop.f32.mrf.mxu1  ;;  %v7580_v56 = vpop.f32.mrf.mxu0 }
 0x3aa   : > { %v11728_v54 = vadd.f32 %v7579_v37, %v11621_v28 }
 0x3ab   : > { %v11730_v27 = vpop.f32.mrf.mxu1  ;;  %v7581_v42 = vpop.f32.mrf.mxu0 }
 0x3ac   : > { %12982 = vst [vmem:[#allocation78_spill] sm:$0xff] %v11728_v54  ;;  %v7582_v24 = vadd.f32 %v7581_v42, %v7580_v56 }
 0x3ad   : > { %v11732_v40 = vpop.f32.mrf.mxu1  ;;  %v7583_v57 = vpop.f32.mrf.mxu0 }
 0x3ae   : > { %v11735_v10 = vadd.f32 %v7582_v24, %v11627_v59 }
 0x3af   : > { %v11737_v51 = vpop.f32.mrf.mxu1  ;;  %v7584_v49 = vpop.f32.mrf.mxu0 }
 0x3b0   : > { %12983 = vst [vmem:[#allocation50_spill] sm:$0xff] %v11735_v10  ;;  %v7585_v11 = vadd.f32 %v7584_v49, %v7583_v57 }
 0x3b1   : > { %v11739_v53 = vpop.f32.mrf.mxu1  ;;  %v7586_v50 = vpop.f32.mrf.mxu0 }
 0x3b2   : > { %v11742_v28 = vadd.f32 %v7585_v11, %v11633_v26 }
 0x3b3   : > { %v11744_v6 = vpop.f32.mrf.mxu1  ;;  %v7587_v17 = vpop.f32.mrf.mxu0 }
 0x3b4   : > { %12984 = vst [vmem:[#allocation87_spill] sm:$0xff] %v11742_v28  ;;  %v7588_v12 = vadd.f32 %v7587_v17, %v7586_v50 }
 0x3b5   : > { %v11746_v43 = vpop.f32.mrf.mxu1  ;;  %v7589_v14 = vpop.f32.mrf.mxu0 }
 0x3b6   : > { %v11749_v59 = vadd.f32 %v7588_v12, %v11639_v9 }
 0x3b7   : > { %v11751_v37 = vpop.f32.mrf.mxu1  ;;  %v7590_v56 = vpop.f32.mrf.mxu0 }
 0x3b8   : > { %12985 = vst [vmem:[#allocation59_spill] sm:$0xff] %v11749_v59  ;;  %v7591_v42 = vadd.f32 %v7590_v56, %v7589_v14 }
 0x3b9   : > { %v11753_v24 = vpop.f32.mrf.mxu1  ;;  %v7592_v57 = vpop.f32.mrf.mxu0 }
 0x3ba   : > { %v11756_v26 = vadd.f32 %v7591_v42, %v11645_v21 }
 0x3bb   : > { %v11758_v49 = vpop.f32.mrf.mxu1  ;;  %v7593_v11 = vpop.f32.mrf.mxu0 }
 0x3bc   : > { %12986 = vst [vmem:[#allocation52_spill] sm:$0xff] %v11756_v26  ;;  %v7594_v50 = vadd.f32 %v7593_v11, %v7592_v57 }
 0x3bd   : > { %v11760_v17 = vpop.f32.mrf.mxu1  ;;  %v7595_v55 = vpop.f32.mrf.mxu0 }
 0x3be   : > { %v11763_v9 = vadd.f32 %v7594_v50, %v11651_v35 }
 0x3bf   : > { %v11765_v12 = vpop.f32.mrf.mxu1  ;;  %v7596_v59 = vpop.f32.mrf.mxu0 }
 0x3c0   : > { %12987 = vst [vmem:[#allocation93_spill] sm:$0xff] %v11763_v9  ;;  %v7597_v14 = vadd.f32 %v7596_v59, %v7595_v55 }
 0x3c1   : > { %v11767_v56 = vpop.f32.mrf.mxu1  ;;  %v7598_v28 = vpop.f32.mrf.mxu0 }
 0x3c2   : > { %v11770_v21 = vadd.f32 %v7597_v14, %v11657_v60 }
 0x3c3   : > { %v11772_v42 = vpop.f32.mrf.mxu1  ;;  %v7599_v26 = vpop.f32.mrf.mxu0 }
 0x3c4   : > { %12988 = vst [vmem:[#allocation64_spill] sm:$0xff] %v11770_v21  ;;  %v7600_v57 = vadd.f32 %v7599_v26, %v7598_v28  ;;  %v7634_v26 = vadd.f32 %v11702_v34, %v11697_v58 }
 0x3c5   : > { %v11774_v11 = vpop.f32.mrf.mxu1  ;;  %v7601_v52 = vpop.f32.mrf.mxu0 }
 0x3c6   : > { %v11777_v35 = vadd.f32 %v7600_v57, %v11663_v4  ;;  %v7631_v4 = vadd.f32 %v11695_v7, %v11690_v22  ;;  %v5219_v21 = vadd.f32 %v7634_v26, %v11606_v36  ;;  %v7637_v22 = vadd.f32 %v11709_v39, %v11704_v2 }
 0x3c7   : > { %v11779_v50 = vpop.f32.mrf.mxu1  ;;  %v7602_v55 = vpop.f32.mrf.mxu0  ;;  %v7646_v36 = vadd.f32 %v11730_v27, %v11725_v18 }
 0x3c8   : > { %12989 = vst [vmem:[#allocation5_spill] sm:$0xff] %v11777_v35  ;;  %v7603_v59 = vadd.f32 %v7602_v55, %v7601_v52  ;;  %v7628_v55 = vadd.f32 %v11688_v41, %v11680_v19 }
 0x3c9   : > { %v11781_v9 = vpop.f32.mrf.mxu1  ;;  %v11783_v10 = vpop.f32.mrf.mxu0  ;;  %v5235_v27 = vadd.f32 %v7646_v36, %v11630_v47  ;;  %v7655_v47 = vadd.f32 %v11751_v37, %v11746_v43 }
 0x3ca   : > { %12990 = vst [vmem:[#allocation71_spill] sm:$0xff] %v11783_v10  ;;  %v11786_v60 = vadd.f32 %v7603_v59, %v11669_v25  ;;  %v5216_v59 = vadd.f32 %v7631_v4, %v11600_v13  ;;  %v5211_v19 = vadd.f32 %v7628_v55, %v11594_v32  ;;  %v7643_v13 = vadd.f32 %v11723_v38, %v11718_v29 }
 0x3cb   : > { %v11788_v14 = vpop.f32.mrf.mxu1  ;;  %v11790_v28 = vpop.f32.mrf.mxu0  ;;  %v5224_v32 = vadd.f32 %v7637_v22, %v11612_v15  ;;  %v7640_v29 = vadd.f32 %v11716_v44, %v11711_v30  ;;  %v7658_v44 = vadd.f32 %v11758_v49, %v11753_v24 }
 0x3cc   : > { %12991 = vst [vmem:[#allocation10_spill] sm:$0xff] %v11786_v60  ;;  %12992 = vst [vmem:[#allocation81_spill] sm:$0xff] %v11790_v28  ;;  %v5232_v38 = vadd.f32 %v7643_v13, %v11624_v1  ;;  %v7649_v1 = vadd.f32 %v11737_v51, %v11732_v40  ;;  %v7652_v40 = vadd.f32 %v11744_v6, %v11739_v53 }
 0x3cd   : > { %v11796_v57 = vpop.f32.mrf.mxu1  ;;  %v7761_v52 = vpop.f32.mrf.mxu0 }
 0x3ce   : > { %v5377_v58 = vadd.f32 %v7761_v52, %v5216_v59 }
 0x3cf   : > { %v11800_v35 = vpop.f32.mrf.mxu1  ;;  %v5368_v25 = vpop.f32.mrf.mxu0 }
 0x3d0   : > { %v5369_v34 = vadd.f32 %v5368_v25, %v11683_v48  ;;  %v5535_v59 = vmul.f32 %v5377_v58, %v5377_v58 }
 0x3d1   : > { %v11804_v60 = vpop.f32.mrf.mxu1  ;;  %v7762_v7 = vpop.f32.mrf.mxu0 }
 0x3d2   : > { %v5380_v28 = vadd.f32 %v7762_v7, %v5219_v21  ;;  %v5533_v4 = vmul.f32 %v5369_v34, %v5369_v34 }
 0x3d3   : > { %v11810_v10 = vpop.f32.mrf.mxu1  ;;  %v5371_v41 = vpop.f32.mrf.mxu0 }
 0x3d4   : > { %v6288_v2 = vpack.c.bf16 %v5380_v28, %v5377_v58  ;;  %v5372_v48 = vadd.f32 %v5371_v41, %v5211_v19  ;;  %v5536_v41 = vmul.f32 %v5380_v28, %v5380_v28 }
 0x3d5   : > { %v11822_v39 = vpop.f32.mrf.mxu1  ;;  %v7765_v21 = vpop.f32.mrf.mxu0 }
 0x3d6   : > { %6360 = vst [vmem:[%s11816_s23 + $0x8] sm:$0xff] %v6288_v2   ;;  %v5495_v26 = vadd.f32 %v5372_v48, %v5369_v34  ;;  %v5534_v52 = vmul.f32 %v5372_v48, %v5372_v48  ;;  %v6283_v55 = vpack.c.bf16 %v5372_v48, %v5369_v34  ;;  %v5393_v48 = vadd.f32 %v7765_v21, %v5232_v38 }
 0x3d7   : > { %v11826_v25 = vpop.f32.mrf.mxu1  ;;  %v5384_v18 = vpop.f32.mrf.mxu0  ;;  %v5251_v38 = vadd.f32 %v7658_v44, %v11654_v20 }
 0x3d8   : > { %v5496_v7 = vadd.f32 %v5495_v26, %v5377_v58  ;;  %v5565_v19 = vadd.f32 %v5534_v52, %v5533_v4  ;;  %6284 = vst [vmem:[%s11816_s23] sm:$0xff] %v6283_v55   ;;  %v5385_v15 = vadd.f32 %v5384_v18, %v5224_v32  ;;  %v5227_v58 = vadd.f32 %v7640_v29, %v11618_v16 }
 0x3d9   : > { %v11833_v22 = vpop.f32.mrf.mxu1  ;;  %v7766_v2 = vpop.f32.mrf.mxu0  ;;  %v5248_v55 = vadd.f32 %v7655_v47, %v11648_v0  ;;  %v5539_v18 = vmul.f32 %v5393_v48, %v5393_v48 }
 0x3da   : > { %v5566_v34 = vadd.f32 %v5565_v19, %v5535_v59  ;;  %v5497_v54 = vadd.f32 %v5496_v7, %v5380_v28  ;;  %v5396_v45 = vadd.f32 %v7766_v2, %v5235_v27  ;;  %v5537_v32 = vmul.f32 %v5385_v15, %v5385_v15 }
 0x3db   : > { %v11835_v30 = vpop.f32.mrf.mxu1  ;;  %v5387_v13 = vpop.f32.mrf.mxu0 }
 0x3dc   : > { %v5498_v36 = vadd.f32 %v5497_v54, %v5385_v15  ;;  %v5567_v21 = vadd.f32 %v5566_v34, %v5536_v41  ;;  %v6298_v28 = vpack.c.bf16 %v5396_v45, %v5393_v48  ;;  %v5388_v26 = vadd.f32 %v5387_v13, %v5227_v58 }
 0x3dd   : > { %v11844_v4 = vpop.f32.mrf.mxu1  ;;  %v7769_v52 = vpop.f32.mrf.mxu0  ;;  %v5240_v54 = vadd.f32 %v7649_v1, %v11636_v31  ;;  %v7661_v31 = vadd.f32 %v11765_v12, %v11760_v17  ;;  %v5540_v0 = vmul.f32 %v5396_v45, %v5396_v45  ;;  %v7670_v1 = vadd.f32 %v11788_v14, %v11781_v9 }
 0x3de   : > { %v5568_v51 = vadd.f32 %v5567_v21, %v5537_v32  ;;  %6362 = vst [vmem:[%s11816_s23 + $0x18] sm:$0xff] %v6298_v28   ;;  %v5499_v37 = vadd.f32 %v5498_v36, %v5388_v26  ;;  %v5538_v24 = vmul.f32 %v5388_v26, %v5388_v26  ;;  %v6293_v16 = vpack.c.bf16 %v5388_v26, %v5385_v15 }
 0x3df   : > { %v11849_v43 = vpop.f32.mrf.mxu1  ;;  %v5400_v49 = vpop.f32.mrf.mxu0  ;;  %v5409_v7 = vadd.f32 %v7769_v52, %v5248_v55  ;;  %v5243_v15 = vadd.f32 %v7652_v40, %v11642_v46  ;;  %v7664_v17 = vadd.f32 %v11772_v42, %v11767_v56  ;;  %v5256_v9 = vadd.f32 %v7661_v31, %v11660_v62 }
 0x3e0   : > { %v5500_v27 = vadd.f32 %v5499_v37, %v5393_v48  ;;  %v5569_v59 = vadd.f32 %v5568_v51, %v5538_v24  ;;  %6361 = vst [vmem:[%s11816_s23 + $0x10] sm:$0xff] %v6293_v16   ;;  %v5401_v53 = vadd.f32 %v5400_v49, %v5240_v54  ;;  %v7667_v48 = vadd.f32 %v11779_v50, %v11774_v11 }
 0x3e1   : > { %v11853_v29 = vpop.f32.mrf.mxu1  ;;  %v7770_v6 = vpop.f32.mrf.mxu0  ;;  %v5267_v52 = vadd.f32 %v7670_v1, %v11678_v63  ;;  %v5543_v40 = vmul.f32 %v5409_v7, %v5409_v7  ;;  %v5259_v49 = vadd.f32 %v7664_v17, %v11666_v23  ;;  %v7673_v62 = vadd.f32 %v11800_v35, %v11796_v57 }
 0x3e2   : > { %v5412_v19 = vadd.f32 %v7770_v6, %v5251_v38  ;;  %v5570_v2 = vadd.f32 %v5569_v59, %v5539_v18  ;;  %v5501_v34 = vadd.f32 %v5500_v27, %v5396_v45  ;;  %v5541_v13 = vmul.f32 %v5401_v53, %v5401_v53 }
 0x3e3   : > { %v11857_v41 = vpop.f32.mrf.mxu1  ;;  %v5403_v20 = vpop.f32.mrf.mxu0  ;;  %v5264_v28 = vadd.f32 %v7667_v48, %v11672_v33  ;;  %v7679_v63 = vadd.f32 %v11826_v25, %v11822_v39  ;;  %v7682_v27 = vadd.f32 %v11835_v30, %v11833_v22  ;;  %v7676_v35 = vadd.f32 %v11810_v10, %v11804_v60 }
 0x3e4   : > { %v6308_v47 = vpack.c.bf16 %v5412_v19, %v5409_v7  ;;  %v5404_v44 = vadd.f32 %v5403_v20, %v5243_v15  ;;  %v5502_v46 = vadd.f32 %v5501_v34, %v5401_v53  ;;  %v5571_v36 = vadd.f32 %v5570_v2, %v5540_v0 }
 0x3e5   : > { %v11866_v58 = vpop.f32.mrf.mxu1  ;;  %v7773_v32 = vpop.f32.mrf.mxu0  ;;  %v5544_v55 = vmul.f32 %v5412_v19, %v5412_v19  ;;  %v5272_v22 = vadd.f32 %v7673_v62, %v11686_v3  ;;  %v5280_v2 = vadd.f32 %v7679_v63, %v11700_v61  ;;  %v5283_v20 = vadd.f32 %v7682_v27, %v11707_v5  ;;  %v12996_v27 = vld [vmem:[#allocation163_spill] sm:$0xff] }
 0x3e6   : > { %6364 = vst [vmem:[%s11816_s23 + $0x28] sm:$0xff] %v6308_v47   ;;  %v5542_v45 = vmul.f32 %v5404_v44, %v5404_v44  ;;  %v6303_v12 = vpack.c.bf16 %v5404_v44, %v5401_v53  ;;  %v5572_v11 = vadd.f32 %v5571_v36, %v5541_v13  ;;  %v5503_v50 = vadd.f32 %v5502_v46, %v5404_v44 }
 0x3e7   : > { %v7690_v21 = vpop.f32.mrf.mxu1  ;;  %v5416_v14 = vpop.f32.mrf.mxu0  ;;  %v5425_v42 = vadd.f32 %v7773_v32, %v5264_v28  ;;  %v5275_v36 = vadd.f32 %v7676_v35, %v11693_v8  ;;  %v7685_v3 = vadd.f32 %v11849_v43, %v11844_v4  ;;  %v7688_v8 = vadd.f32 %v11857_v41, %v11853_v29 }
 0x3e8   : > { %6363 = vst [vmem:[%s11816_s23 + $0x20] sm:$0xff] %v6303_v12   ;;  %v5504_v51 = vadd.f32 %v5503_v50, %v5409_v7  ;;  %v5573_v37 = vadd.f32 %v5572_v11, %v5542_v45  ;;  %v5417_v24 = vadd.f32 %v5416_v14, %v5256_v9  ;;  %v7691_v5 = vadd.f32 %v7690_v21, %v11866_v58 }
 0x3e9   : > { %v7692_v26 = vpop.f32.mrf.mxu1  ;;  %v7774_v56 = vpop.f32.mrf.mxu0  ;;  %v5547_v48 = vmul.f32 %v5425_v42, %v5425_v42 }
 0x3ea   : > { %v5428_v16 = vadd.f32 %v7774_v56, %v5267_v52  ;;  %v5574_v38 = vadd.f32 %v5573_v37, %v5543_v40  ;;  %v5505_v33 = vadd.f32 %v5504_v51, %v5412_v19  ;;  %v5545_v7 = vmul.f32 %v5417_v24, %v5417_v24  ;;  %v12993_v56 = vld [vmem:[#allocation41_spill] sm:$0xff] }
 0x3eb   : > { %v7693_v54 = vpop.f32.mrf.mxu1  ;;  %v5419_v18 = vpop.f32.mrf.mxu0  ;;  %v5288_v58 = vadd.f32 %v7685_v3, %v12993_v56 }
 0x3ec   : > { %v6318_v59 = vpack.c.bf16 %v5428_v16, %v5425_v42  ;;  %v5420_v53 = vadd.f32 %v5419_v18, %v5259_v49  ;;  %v5506_v23 = vadd.f32 %v5505_v33, %v5417_v24  ;;  %v5575_v15 = vadd.f32 %v5574_v38, %v5544_v55 }
 0x3ed   : > { %v11882_v6 = vpop.f32.mrf.mxu1  ;;  %v7777_v31 = vpop.f32.mrf.mxu0  ;;  %v5548_v32 = vmul.f32 %v5428_v16, %v5428_v16  ;;  %v7694_v12 = vadd.f32 %v7693_v54, %v7692_v26  ;;  %v12994_v26 = vld [vmem:[#allocation78_spill] sm:$0xff] }
 0x3ee   : > { %6366 = vst [vmem:[%s11816_s23 + $0x38] sm:$0xff] %v6318_v59   ;;  %v5546_v57 = vmul.f32 %v5420_v53, %v5420_v53  ;;  %v6313_v19 = vpack.c.bf16 %v5420_v53, %v5417_v24  ;;  %v5576_v39 = vadd.f32 %v5575_v15, %v5545_v7  ;;  %v5507_v25 = vadd.f32 %v5506_v23, %v5420_v53  ;;  %v12995_v54 = vld [vmem:[#allocation50_spill] sm:$0xff] }
 0x3ef   : > { %v7696_v0 = vpop.f32.mrf.mxu1  ;;  %v5432_v30 = vpop.f32.mrf.mxu0  ;;  %v5441_v60 = vadd.f32 %v7777_v31, %v5280_v2  ;;  %v5299_v49 = vadd.f32 %v7694_v12, %v12995_v54  ;;  %v5291_v59 = vadd.f32 %v7688_v8, %v12996_v27 }
 0x3f0   : > { %6365 = vst [vmem:[%s11816_s23 + $0x30] sm:$0xff] %v6313_v19   ;;  %v5508_v1 = vadd.f32 %v5507_v25, %v5425_v42  ;;  %v5577_v47 = vadd.f32 %v5576_v39, %v5546_v57  ;;  %v5433_v44 = vadd.f32 %v5432_v30, %v5272_v22  ;;  %v5296_v42 = vadd.f32 %v7691_v5, %v12994_v26 }
 0x3f1   : > { %v7698_v34 = vpop.f32.mrf.mxu1  ;;  %v7778_v10 = vpop.f32.mrf.mxu0  ;;  %v5551_v62 = vmul.f32 %v5441_v60, %v5441_v60  ;;  %v7697_v53 = vadd.f32 %v7696_v0, %v11882_v6 }
 0x3f2   : > { %v5444_v46 = vadd.f32 %v7778_v10, %v5283_v20  ;;  %v5578_v17 = vadd.f32 %v5577_v47, %v5547_v48  ;;  %v5509_v61 = vadd.f32 %v5508_v1, %v5428_v16  ;;  %v5549_v28 = vmul.f32 %v5433_v44, %v5433_v44  ;;  %v12997_v10 = vld [vmem:[#allocation87_spill] sm:$0xff] }
 0x3f3   : > { %v7699_v13 = vpop.f32.mrf.mxu1  ;;  %v5435_v45 = vpop.f32.mrf.mxu0 }
 0x3f4   : > { %v6328_v11 = vpack.c.bf16 %v5444_v46, %v5441_v60  ;;  %v5436_v50 = vadd.f32 %v5435_v45, %v5275_v36  ;;  %v5510_v14 = vadd.f32 %v5509_v61, %v5433_v44  ;;  %v5579_v52 = vadd.f32 %v5578_v17, %v5548_v32  ;;  %v12998_v36 = vld [vmem:[#allocation52_spill] sm:$0xff]  ;;  %v12999_v17 = vld [vmem:[#allocation93_spill] sm:$0xff] }
 0x3f5   : > { %v7701_v9 = vpop.f32.mrf.mxu1  ;;  %v7781_v40 = vpop.f32.mrf.mxu0  ;;  %v5552_v23 = vmul.f32 %v5444_v46, %v5444_v46  ;;  %v7700_v48 = vadd.f32 %v7699_v13, %v7698_v34 }
 0x3f6   : > { %6368 = vst [vmem:[%s11816_s23 + $0x48] sm:$0xff] %v6328_v11   ;;  %v5550_v4 = vmul.f32 %v5436_v50, %v5436_v50  ;;  %v6323_v43 = vpack.c.bf16 %v5436_v50, %v5433_v44  ;;  %v5580_v37 = vadd.f32 %v5579_v52, %v5549_v28  ;;  %v5511_v24 = vadd.f32 %v5510_v14, %v5436_v50  ;;  %v13000_v14 = vld [vmem:[#allocation59_spill] sm:$0xff] }
 0x3f7   : > { %v7702_v51 = vpop.f32.mrf.mxu1  ;;  %v5448_v21 = vpop.f32.mrf.mxu0  ;;  %v5457_v41 = vadd.f32 %v7781_v40, %v5296_v42  ;;  %v5307_v28 = vadd.f32 %v7700_v48, %v13000_v14  ;;  %v13001_v42 = vld [vmem:[#allocation71_spill] sm:$0xff] }
 0x3f8   : > { %6367 = vst [vmem:[%s11816_s23 + $0x40] sm:$0xff] %v6323_v43   ;;  %v5512_v55 = vadd.f32 %v5511_v24, %v5441_v60  ;;  %v5581_v38 = vadd.f32 %v5580_v37, %v5550_v4  ;;  %v5449_v33 = vadd.f32 %v5448_v21, %v5288_v58  ;;  %v7703_v35 = vadd.f32 %v7702_v51, %v7701_v9 }
 0x3f9   : > { %v7704_v16 = vpop.f32.mrf.mxu1  ;;  %v7782_v29 = vpop.f32.mrf.mxu0  ;;  %v5304_v60 = vadd.f32 %v7697_v53, %v12997_v10  ;;  %v5555_v45 = vmul.f32 %v5457_v41, %v5457_v41 }
 0x3fa   : > { %v5460_v18 = vadd.f32 %v7782_v29, %v5299_v49  ;;  %v5582_v7 = vadd.f32 %v5581_v38, %v5551_v62  ;;  %v5513_v15 = vadd.f32 %v5512_v55, %v5444_v46  ;;  %v5553_v30 = vmul.f32 %v5449_v33, %v5449_v33 }
 0x3fb   : > { %v7705_v63 = vpop.f32.mrf.mxu1  ;;  %v5451_v31 = vpop.f32.mrf.mxu0  ;;  %v5312_v3 = vadd.f32 %v7703_v35, %v12998_v36 }
 0x3fc   : > { %v6338_v57 = vpack.c.bf16 %v5460_v18, %v5457_v41  ;;  %v7706_v19 = vadd.f32 %v7705_v63, %v7704_v16  ;;  %v5452_v39 = vadd.f32 %v5451_v31, %v5291_v59  ;;  %v5514_v22 = vadd.f32 %v5513_v15, %v5449_v33  ;;  %v13002_v16 = vld [vmem:[#allocation81_spill] sm:$0xff]  ;;  %v13004_v15 = vld [vmem:[#allocation10_spill] sm:$0xff] }
 0x3fd   : > { %v7707_v25 = vpop.f32.mrf.mxu1  ;;  %v5583_v2 = vadd.f32 %v5582_v7, %v5552_v23  ;;  %v7785_v20 = vpop.f32.mrf.mxu0  ;;  %v5556_v52 = vmul.f32 %v5460_v18, %v5460_v18  ;;  %v7606_v54 = vadd.f32 %v13002_v16, %v13001_v42 }
 0x3fe   : > { %6370 = vst [vmem:[%s11816_s23 + $0x58] sm:$0xff] %v6338_v57   ;;  %v5554_v1 = vmul.f32 %v5452_v39, %v5452_v39  ;;  %v6333_v47 = vpack.c.bf16 %v5452_v39, %v5449_v33  ;;  %v5515_v0 = vadd.f32 %v5514_v22, %v5452_v39  ;;  %v5315_v61 = vadd.f32 %v7706_v19, %v12999_v17  ;;  %v13005_v19 = vld [vmem:[#allocation12_spill] sm:$0xff]  ;;  %v13006_v22 = vld [vmem:[#allocation5_spill] sm:$0xff] }
 0x3ff   : > { %v7708_v44 = vpop.f32.mrf.mxu1  ;;  %v5584_v6 = vadd.f32 %v5583_v2, %v5553_v30  ;;  %v5464_v46 = vpop.f32.mrf.mxu0  ;;  %v5473_v13 = vadd.f32 %v7785_v20, %v5312_v3  ;;  %v5170_v39 = vadd.f32 %v7606_v54, %v13005_v19 }
 0x400   : > { %6369 = vst [vmem:[%s11816_s23 + $0x50] sm:$0xff] %v6333_v47   ;;  %v5516_v5 = vadd.f32 %v5515_v0, %v5457_v41  ;;  %v5465_v11 = vadd.f32 %v5464_v46, %v5304_v60  ;;  %v7709_v8 = vadd.f32 %v7708_v44, %v7707_v25 }
 0x401   : > { %v7710_v32 = vpop.f32.mrf.mxu1  ;;  %v5585_v12 = vadd.f32 %v5584_v6, %v5554_v1  ;;  %v7786_v34 = vpop.f32.mrf.mxu0  ;;  %v5559_v59 = vmul.f32 %v5473_v13, %v5473_v13 }
 0x402   : > { %v5476_v50 = vadd.f32 %v7786_v34, %v5315_v61  ;;  %v5517_v4 = vadd.f32 %v5516_v5, %v5460_v18  ;;  %v5557_v58 = vmul.f32 %v5465_v11, %v5465_v11  ;;  %v13003_v18 = vld [vmem:[#allocation64_spill] sm:$0xff] }
 0x403   : > { %v7711_v9 = vpop.f32.mrf.mxu1  ;;  %v5586_v40 = vadd.f32 %v5585_v12, %v5555_v45  ;;  %v5467_v43 = vpop.f32.mrf.mxu0  ;;  %v5320_v63 = vadd.f32 %v7709_v8, %v13003_v18 }
 0x404   : > { %v6348_v51 = vpack.c.bf16 %v5476_v50, %v5473_v13  ;;  %v5468_v37 = vadd.f32 %v5467_v43, %v5307_v28  ;;  %v5518_v56 = vadd.f32 %v5517_v4, %v5465_v11  ;;  %v7712_v49 = vadd.f32 %v7711_v9, %v7710_v32 }
 0x405   : > { %v7713_v24 = vpop.f32.mrf.mxu1  ;;  %v5587_v21 = vadd.f32 %v5586_v40, %v5556_v52  ;;  %v7789_v26 = vpop.f32.mrf.mxu0  ;;  %v5560_v2 = vmul.f32 %v5476_v50, %v5476_v50 }
 0x406   : > { %6372 = vst [vmem:[%s11816_s23 + $0x68] sm:$0xff] %v6348_v51   ;;  %v5558_v62 = vmul.f32 %v5468_v37, %v5468_v37  ;;  %v6343_v55 = vpack.c.bf16 %v5468_v37, %v5465_v11  ;;  %v5519_v29 = vadd.f32 %v5518_v56, %v5468_v37  ;;  %v5323_v30 = vadd.f32 %v7712_v49, %v13006_v22 }
 0x407   : > { %v7714_v38 = vpop.f32.mrf.mxu1  ;;  %v5588_v33 = vadd.f32 %v5587_v21, %v5557_v58  ;;  %v5480_v27 = vpop.f32.mrf.mxu0 }
 0x408   : > { %v7715_v41 = vadd.f32 %v7714_v38, %v7713_v24  ;;  %6371 = vst [vmem:[%s11816_s23 + $0x60] sm:$0xff] %v6343_v55   ;;  %v5520_v23 = vadd.f32 %v5519_v29, %v5473_v13  ;;  %v5481_v35 = vadd.f32 %v5480_v27, %v5320_v63 }
 0x409   : > { %v7716_v53 = vpop.f32.mrf.mxu1  ;;  %v5589_v7 = vadd.f32 %v5588_v33, %v5558_v62  ;;  %v7790_v57 = vpop.f32.mrf.mxu0 }
 0x40a   : > { %v5328_v31 = vadd.f32 %v7715_v41, %v13004_v15  ;;  %v5521_v48 = vadd.f32 %v5520_v23, %v5476_v50  ;;  %v5561_v10 = vmul.f32 %v5481_v35, %v5481_v35 }
 0x40b   : > { %v7717_v25 = vpop.f32.mrf.mxu1  ;;  %v5590_v20 = vadd.f32 %v5589_v7, %v5559_v59  ;;  %v5483_v47 = vpop.f32.mrf.mxu0 }
 0x40c   : > { %v7718_v1 = vadd.f32 %v7717_v25, %v7716_v53  ;;  %v5489_v44 = vadd.f32 %v7789_v26, %v5328_v31  ;;  %v5484_v6 = vadd.f32 %v5483_v47, %v5323_v30  ;;  %v5522_v0 = vadd.f32 %v5521_v48, %v5481_v35 }
 0x40d   : > { %v5591_v60 = vadd.f32 %v5590_v20, %v5560_v2 }
 0x40e   : > { %v5331_v46 = vadd.f32 %v7718_v1, %v5170_v39  ;;  %v5562_v36 = vmul.f32 %v5484_v6, %v5484_v6  ;;  %v6353_v3 = vpack.c.bf16 %v5484_v6, %v5481_v35  ;;  %v5523_v61 = vadd.f32 %v5522_v0, %v5484_v6 }
 0x40f   : > { %v5592_v32 = vadd.f32 %v5591_v60, %v5561_v10  ;;  %v5563_v45 = vmul.f32 %v5489_v44, %v5489_v44 }
 0x410   : > { %v5492_v17 = vadd.f32 %v7790_v57, %v5331_v46  ;;  %6373 = vst [vmem:[%s11816_s23 + $0x70] sm:$0xff] %v6353_v3   ;;  %v5524_v11 = vadd.f32 %v5523_v61, %v5489_v44 }
 0x411   : > { %v5593_v34 = vadd.f32 %v5592_v32, %v5562_v36 }
 0x412   : > { %v5564_v5 = vmul.f32 %v5492_v17, %v5492_v17  ;;  %v6358_v12 = vpack.c.bf16 %v5492_v17, %v5489_v44  ;;  %v5525_v13 = vadd.f32 %v5524_v11, %v5492_v17 }
 0x413   : > { %v5594_v50 = vadd.f32 %v5593_v34, %v5563_v45 }
 0x414   : > { %6374 = vst [vmem:[%s11816_s23 + $0x78] sm:$0xff] %v6358_v12   ;;  %v5526_v9 = vrot.slane %v5525_v13, 4 }
 0x415   : > { %v5595_v14 = vadd.f32 %v5594_v50, %v5564_v5 }
 0x416   : > { %v5527_v28 = vadd.f32 %v5526_v9, %v5525_v13 }
 0x417   : > { %v5596_v52 = vrot.slane %v5595_v14, 4 }
 0x418   : > { %v5528_v40 = vrot.slane %v5527_v28, 2 }
 0x419   : > { %v5597_v8 = vadd.f32 %v5596_v52, %v5595_v14 }
 0x41a   : > { %v5529_v4 = vadd.f32 %v5528_v40, %v5527_v28 }
 0x41b   : > { %v5598_v43 = vrot.slane %v5597_v8, 2 }
 0x41c   : > { %v5530_v51 = vrot.slane %v5529_v4, 1 }
 0x41d   : > { %v5599_v37 = vadd.f32 %v5598_v43, %v5597_v8 }
 0x41e   : > { %v5531_v24 = vadd.f32 %v5530_v51, %v5529_v4 }
 0x41f   : > { %v5600_v56 = vrot.slane %v5599_v37, 1 }
 0x420   : > { %5532 = vst [vmem:[%s329_s27] sm:$0x1] %v5531_v24 }
 0x421   : > { %v5601_v58 = vadd.f32 %v5600_v56, %v5599_v37 }
 0x423   : > { %5602 = vst [vmem:[%s335_s6] sm:$0x1] %v5601_v58 }
 0x424 PF: > { %s16_s20 = sadd.s32 1, %s8164_s20   ;;  %s13007_s18 = smov %s8160_s19 }
 0x425   : > { %p13_p5 = scmp.ge.s32.totalorder %s16_s20, 4   ;;  %s13008_s19 = smov %s13010_s21 }
 0x427   :  { %15 = sbr.rel (!%p13_p5) target bundleno = 2 (0x2), region = 89 }

</bundles_post_ra>
